<compile_context>
chip_gen: v7x
topology: tpu7x:2x2x1
jax: 0.10.0
libtpu: 0.0.40
codegen_flags: <defaults>
</compile_context>

<pallas_src>
import jax
import jax.numpy as jnp
from jax.experimental import pallas as pl
from jax.experimental.pallas import tpu as pltpu

# Logical (PyTorch) dims; output-feature dims padded to 128-lane multiples.
D_IN, H1, H2, D_OUT = 28 * 28, 1000, 500, 10     # 784 is a multiple of 16 -> no K padding
H1_P, H2_P, D_OUT_P = 1024, 512, 128
TM = 256                                         # batch tile: matches 256-wide v6e/v7x MXUs


def _sigmoid_fast(z_f32):
    # bf16 exp runs on the EUP (bf16-capable on v6e/v7x); approximate reciprocal also stays
    # off the VALU.  Error ~1e-3 absolute — fine for sigmoid outputs in (0, 1).
    e = jnp.exp(-z_f32.astype(jnp.bfloat16)).astype(jnp.float32)
    return pl.reciprocal(1.0 + e, approx=True)


def mlp_kernel(x_ref, w1_ref, b1_ref, w2_ref, b2_ref, w3_ref, b3_ref, o_ref):
    # Whole MLP hot path for one 256-row batch tile.  bf16 matmul inputs, f32 accumulate.
    x = x_ref[...].astype(jnp.bfloat16)                                   # (TM, 784)
    h1 = jnp.dot(x, w1_ref[...], preferred_element_type=jnp.float32) + b1_ref[...]
    h1 = _sigmoid_fast(h1).astype(jnp.bfloat16)                           # (TM, H1_P)
    h2 = jnp.dot(h1, w2_ref[...], preferred_element_type=jnp.float32) + b2_ref[...]
    h2 = _sigmoid_fast(h2).astype(jnp.bfloat16)                           # (TM, H2_P)
    out = jnp.dot(h2, w3_ref[...], preferred_element_type=jnp.float32) + b3_ref[...]
    o_ref[...] = out.astype(jnp.bfloat16)                                 # (TM, D_OUT_P) lane-dense


def _mlp_forward_padded(x_p, w1, b1, w2, b2, w3, b3):
    bp = x_p.shape[0]
    # Weights / biases never change block index -> single-buffered (saves ~2.8 MiB VMEM).
    resident = lambda shape: pl.BlockSpec(shape, lambda i: (0, 0),
                                          pipeline_mode=pl.Buffered(1))
    return pl.pallas_call(
        mlp_kernel,
        out_shape=jax.ShapeDtypeStruct((bp, D_OUT_P), jnp.bfloat16),
        grid_spec=pltpu.PrefetchScalarGridSpec(
            num_scalar_prefetch=0,
            grid=(bp // TM,),
            in_specs=[
                pl.BlockSpec((TM, D_IN), lambda i: (i, 0)),   # x: batch-tiled, double-buffered
                resident((D_IN, H1_P)), resident((1, H1_P)),
                resident((H1_P, H2_P)), resident((1, H2_P)),
                resident((H2_P, D_OUT_P)), resident((1, D_OUT_P)),
            ],
            out_specs=pl.BlockSpec((TM, D_OUT_P), lambda i: (i, 0)),
        ),
        compiler_params=pltpu.CompilerParams(
            dimension_semantics=("parallel",),   # shard batch tiles across TCs (v7x megacore)
            vmem_limit_bytes=32 << 20,           # live set ~7 MiB; comfortable headroom
        ),
    )(x_p, w1, b1, w2, b2, w3, b3)


def net_forward(x, params):
    """x: (B, 784) f32.  params: padded bf16 weights / f32 biases.  Returns (B, 10) f32."""
    w1, b1, w2, b2, w3, b3 = params
    b = x.shape[0]
    bp = TM * pl.cdiv(b, TM)
    x_p = x if bp == b else jnp.pad(x, ((0, bp - b), (0, 0)))  # rows only; no feature pad/cast
    out_p = _mlp_forward_padded(x_p, w1, b1, w2, b2, w3, b3)
    return out_p[:b, :D_OUT].astype(jnp.float32)


def init_params(key):
    # Deterministic init mimicking PyTorch nn.Linear default: U(-1/sqrt(fan_in), +1/sqrt(fan_in)).
    ks = jax.random.split(key, 6)

    def linear(kw, kb, fan_in, fan_out):
        bound = 1.0 / jnp.sqrt(jnp.float32(fan_in))
        w = jax.random.uniform(kw, (fan_in, fan_out), jnp.float32, -bound, bound)
        b = jax.random.uniform(kb, (1, fan_out), jnp.float32, -bound, bound)
        return w, b

    w1, b1 = linear(ks[0], ks[1], D_IN, H1)
    w2, b2 = linear(ks[2], ks[3], H1, H2)
    w3, b3 = linear(ks[4], ks[5], H2, D_OUT)
    return w1, b1, w2, b2, w3, b3


def pack_params(raw):
    """Zero-pad output-feature dims to 128-lane multiples; weights -> bf16, biases stay f32.

    Invariant: padding MUST be zeros.  Padded H1/H2 columns produce sigmoid(0)=0.5 inside
    the kernel, which only cancels because the matching W2/W3 rows are zero-padded here.
    """
    w1, b1, w2, b2, w3, b3 = raw

    def pad2(a, rows, cols):
        return jnp.pad(a, ((0, rows - a.shape[0]), (0, cols - a.shape[1])))

    return (
        pad2(w1, D_IN, H1_P).astype(jnp.bfloat16),   pad2(b1, 1, H1_P),
        pad2(w2, H1_P, H2_P).astype(jnp.bfloat16),   pad2(b2, 1, H2_P),
        pad2(w3, H2_P, D_OUT_P).astype(jnp.bfloat16), pad2(b3, 1, D_OUT_P),
    )


def reference_forward(x, raw_params):
    # Mirrors the kernel's bf16 rounding points so the check can use a tight tolerance.
    w1, b1, w2, b2, w3, b3 = raw_params
    bf = lambda a: a.astype(jnp.bfloat16).astype(jnp.float32)
    sig = lambda z: 1.0 / (1.0 + jnp.exp(-bf(z)))
    h1 = bf(sig(bf(x) @ bf(w1) + b1))
    h2 = bf(sig(h1 @ bf(w2) + b2))
    return bf(h2 @ bf(w3) + b3)


if __name__ == "__main__":
    key = jax.random.PRNGKey(0)
    k_x, k_p = jax.random.split(key)

    # 8 x 256-row tiles: enough grid steps to amortize the resident weight stream and to
    # give each v7x TensorCore 4 tiles under the "parallel" batch axis.
    B = 2048
    x = jax.random.normal(k_x, (B, D_IN), jnp.float32)

    raw_params = init_params(k_p)
    params = pack_params(raw_params)

    out = net_forward(x, params)
    jax.block_until_ready(out)

    ref = reference_forward(x, raw_params)
    assert out.shape == (B, D_OUT)
    max_err = float(jnp.max(jnp.abs(out - ref)))
    assert jnp.allclose(out, ref, atol=2e-2, rtol=2e-2), max_err

    print("KERNEL_OK")
</pallas_src>

<mosaic_0001>
module attributes {stable_mosaic.version = 11 : i64} {
  func.func @mlp_kernel(%arg0: i32, %arg1: memref<256x784xf32, #tpu.memory_space<vmem>>, %arg2: memref<784x1024xbf16, #tpu.memory_space<vmem>>, %arg3: memref<1x1024xf32, #tpu.memory_space<vmem>>, %arg4: memref<1024x512xbf16, #tpu.memory_space<vmem>>, %arg5: memref<1x512xf32, #tpu.memory_space<vmem>>, %arg6: memref<512x128xbf16, #tpu.memory_space<vmem>>, %arg7: memref<1x128xf32, #tpu.memory_space<vmem>>, %arg8: memref<256x128xbf16, #tpu.memory_space<vmem>>) attributes {dimension_semantics = [#tpu.dimension_semantics<parallel>], iteration_bounds = array<i64: 8>, scalar_prefetch = 0 : i64, scratch_operands = 0 : i64, tpu.core_type = #tpu.core_type<tc>, window_params = [{transform_indices = @transform_0, window_bounds = array<i64: 256, 784>}, {pipeline_mode = #tpu.pipeline_mode<synchronous>, transform_indices = @transform_1, window_bounds = array<i64: 784, 1024>}, {pipeline_mode = #tpu.pipeline_mode<synchronous>, transform_indices = @transform_2, window_bounds = array<i64: 1, 1024>}, {pipeline_mode = #tpu.pipeline_mode<synchronous>, transform_indices = @transform_3, window_bounds = array<i64: 1024, 512>}, {pipeline_mode = #tpu.pipeline_mode<synchronous>, transform_indices = @transform_4, window_bounds = array<i64: 1, 512>}, {pipeline_mode = #tpu.pipeline_mode<synchronous>, transform_indices = @transform_5, window_bounds = array<i64: 512, 128>}, {pipeline_mode = #tpu.pipeline_mode<synchronous>, transform_indices = @transform_6, window_bounds = array<i64: 1, 128>}, {transform_indices = @transform_7, window_bounds = array<i64: 256, 128>}]} {
    %c0 = arith.constant 0 : index
    %c0_0 = arith.constant 0 : index
    %0 = vector.load %arg1[%c0, %c0_0] : memref<256x784xf32, #tpu.memory_space<vmem>>, vector<256x784xf32>
    %1 = arith.truncf %0 : vector<256x784xf32> to vector<256x784xbf16>
    %c0_1 = arith.constant 0 : index
    %c0_2 = arith.constant 0 : index
    %2 = vector.load %arg2[%c0_1, %c0_2] : memref<784x1024xbf16, #tpu.memory_space<vmem>>, vector<784x1024xbf16>
    %cst = arith.constant dense<0.000000e+00> : vector<256x1024xf32>
    %3 = tpu.matmul %1, %2, %cst {dimension_numbers = #tpu.dot_dimension_numbers<[1], [0], [0], [1], [0, 0, 1, 1], [], []>} : vector<256x784xbf16>, vector<784x1024xbf16>, vector<256x1024xf32> -> vector<256x1024xf32>
    %c0_3 = arith.constant 0 : index
    %c0_4 = arith.constant 0 : index
    %4 = vector.load %arg3[%c0_3, %c0_4] : memref<1x1024xf32, #tpu.memory_space<vmem>>, vector<1x1024xf32>
    %5 = vector.broadcast %4 : vector<1x1024xf32> to vector<256x1024xf32>
    %6 = arith.addf %3, %5 : vector<256x1024xf32>
    %7 = arith.truncf %6 : vector<256x1024xf32> to vector<256x1024xbf16>
    %cst_5 = arith.constant 0.000000e+00 : bf16
    %8 = vector.broadcast %cst_5 : bf16 to vector<256x1024xbf16>
    %9 = arith.subf %8, %7 : vector<256x1024xbf16>
    %10 = math.exp %9 : vector<256x1024xbf16>
    %11 = arith.extf %10 : vector<256x1024xbf16> to vector<256x1024xf32>
    %cst_6 = arith.constant 1.000000e+00 : f32
    %12 = vector.broadcast %cst_6 : f32 to vector<256x1024xf32>
    %13 = arith.addf %12, %11 : vector<256x1024xf32>
    %14 = tpu.reciprocal %13 {approx = true} : vector<256x1024xf32> -> vector<256x1024xf32>
    %15 = arith.truncf %14 : vector<256x1024xf32> to vector<256x1024xbf16>
    %c0_7 = arith.constant 0 : index
    %c0_8 = arith.constant 0 : index
    %16 = vector.load %arg4[%c0_7, %c0_8] : memref<1024x512xbf16, #tpu.memory_space<vmem>>, vector<1024x512xbf16>
    %cst_9 = arith.constant dense<0.000000e+00> : vector<256x512xf32>
    %17 = tpu.matmul %15, %16, %cst_9 {dimension_numbers = #tpu.dot_dimension_numbers<[1], [0], [0], [1], [0, 0, 1, 1], [], []>} : vector<256x1024xbf16>, vector<1024x512xbf16>, vector<256x512xf32> -> vector<256x512xf32>
    %c0_10 = arith.constant 0 : index
    %c0_11 = arith.constant 0 : index
    %18 = vector.load %arg5[%c0_10, %c0_11] : memref<1x512xf32, #tpu.memory_space<vmem>>, vector<1x512xf32>
    %19 = vector.broadcast %18 : vector<1x512xf32> to vector<256x512xf32>
    %20 = arith.addf %17, %19 : vector<256x512xf32>
    %21 = arith.truncf %20 : vector<256x512xf32> to vector<256x512xbf16>
    %cst_12 = arith.constant 0.000000e+00 : bf16
    %22 = vector.broadcast %cst_12 : bf16 to vector<256x512xbf16>
    %23 = arith.subf %22, %21 : vector<256x512xbf16>
    %24 = math.exp %23 : vector<256x512xbf16>
    %25 = arith.extf %24 : vector<256x512xbf16> to vector<256x512xf32>
    %cst_13 = arith.constant 1.000000e+00 : f32
    %26 = vector.broadcast %cst_13 : f32 to vector<256x512xf32>
    %27 = arith.addf %26, %25 : vector<256x512xf32>
    %28 = tpu.reciprocal %27 {approx = true} : vector<256x512xf32> -> vector<256x512xf32>
    %29 = arith.truncf %28 : vector<256x512xf32> to vector<256x512xbf16>
    %c0_14 = arith.constant 0 : index
    %c0_15 = arith.constant 0 : index
    %30 = vector.load %arg6[%c0_14, %c0_15] : memref<512x128xbf16, #tpu.memory_space<vmem>>, vector<512x128xbf16>
    %cst_16 = arith.constant dense<0.000000e+00> : vector<256x128xf32>
    %31 = tpu.matmul %29, %30, %cst_16 {dimension_numbers = #tpu.dot_dimension_numbers<[1], [0], [0], [1], [0, 0, 1, 1], [], []>} : vector<256x512xbf16>, vector<512x128xbf16>, vector<256x128xf32> -> vector<256x128xf32>
    %c0_17 = arith.constant 0 : index
    %c0_18 = arith.constant 0 : index
    %32 = vector.load %arg7[%c0_17, %c0_18] : memref<1x128xf32, #tpu.memory_space<vmem>>, vector<1x128xf32>
    %33 = vector.broadcast %32 : vector<1x128xf32> to vector<256x128xf32>
    %34 = arith.addf %31, %33 : vector<256x128xf32>
    %35 = arith.truncf %34 : vector<256x128xf32> to vector<256x128xbf16>
    %c0_19 = arith.constant 0 : index
    %c0_20 = arith.constant 0 : index
    %36 = vector.load %arg8[%c0_19, %c0_20] : memref<256x128xbf16, #tpu.memory_space<vmem>>, vector<256x128xbf16>
    tpu.vector_store %arg8[%c0_19, %c0_20], %35 {strides = array<i32>} : memref<256x128xbf16, #tpu.memory_space<vmem>>, vector<256x128xbf16>,
    return
  }
  func.func @transform_0(%arg0: i32) -> (i32, i32) {
    %c0_i32 = arith.constant 0 : i32
    %c0_i32_0 = arith.constant 0 : i32
    return %arg0, %c0_i32 : i32, i32
  }
  func.func @transform_1(%arg0: i32) -> (i32, i32) {
    %c0_i32 = arith.constant 0 : i32
    %c0_i32_0 = arith.constant 0 : i32
    %c0_i32_1 = arith.constant 0 : i32
    return %c0_i32, %c0_i32_0 : i32, i32
  }
  func.func @transform_2(%arg0: i32) -> (i32, i32) {
    %c0_i32 = arith.constant 0 : i32
    %c0_i32_0 = arith.constant 0 : i32
    %c0_i32_1 = arith.constant 0 : i32
    return %c0_i32, %c0_i32_0 : i32, i32
  }
  func.func @transform_3(%arg0: i32) -> (i32, i32) {
    %c0_i32 = arith.constant 0 : i32
    %c0_i32_0 = arith.constant 0 : i32
    %c0_i32_1 = arith.constant 0 : i32
    return %c0_i32, %c0_i32_0 : i32, i32
  }
  func.func @transform_4(%arg0: i32) -> (i32, i32) {
    %c0_i32 = arith.constant 0 : i32
    %c0_i32_0 = arith.constant 0 : i32
    %c0_i32_1 = arith.constant 0 : i32
    return %c0_i32, %c0_i32_0 : i32, i32
  }
  func.func @transform_5(%arg0: i32) -> (i32, i32) {
    %c0_i32 = arith.constant 0 : i32
    %c0_i32_0 = arith.constant 0 : i32
    %c0_i32_1 = arith.constant 0 : i32
    return %c0_i32, %c0_i32_0 : i32, i32
  }
  func.func @transform_6(%arg0: i32) -> (i32, i32) {
    %c0_i32 = arith.constant 0 : i32
    %c0_i32_0 = arith.constant 0 : i32
    %c0_i32_1 = arith.constant 0 : i32
    return %c0_i32, %c0_i32_0 : i32, i32
  }
  func.func @transform_7(%arg0: i32) -> (i32, i32) {
    %c0_i32 = arith.constant 0 : i32
    %c0_i32_0 = arith.constant 0 : i32
    return %arg0, %c0_i32 : i32, i32
  }
}

</mosaic_0001>

<bundles_post_ra>
// kernel: tpu_custom_call.1
= control target key start
LH: loop header
LB: loop body
LE: loop exit
PB: predicated region body
PF: predicated region fallthrough
CT: control target
= control target key end

     0   :  { %12 = vsyncpa [#allocation3], 0  ;;  %s22667_s0 = inlined_call_operand.vmem [shape: f32[2048,784], index: 0, kind: input, shape index: {}]   ;;  %s22668_s1 = inlined_call_operand.vmem [shape: bf16[784,1024], index: 1, kind: input, shape index: {}]   ;;  %s22669_s2 = inlined_call_operand.vmem [shape: f32[1,1024], index: 2, kind: input, shape index: {}]   ;;  %s22670_s3 = inlined_call_operand.vmem [shape: bf16[1024,512], index: 3, kind: input, shape index: {}]   ;;  %s22671_s4 = inlined_call_operand.vmem [shape: f32[1,512], index: 4, kind: input, shape index: {}]   ;;  %s22672_s5 = inlined_call_operand.vmem [shape: bf16[512,128], index: 5, kind: input, shape index: {}]   ;;  %s22673_s6 = inlined_call_operand.vmem [shape: f32[1,128], index: 6, kind: input, shape index: {}]   ;;  %s22674_s7 = inlined_call_operand.hbm [shape: bf16[2048,128], index: 7, kind: output, shape index: {}]  }
   0x1   :  { %14 = vsyncpa [#allocation3 + $0x1], 0  ;;  %s16775_s24 = smov 0   ;;  %s16777_s25 = smov 0  }
   0x2   :  { %s16779_s26 = smov 0   ;;  %s16781_s27 = smov 0  }
   0x3 LB: > { %s16796_s28 = sadd.s32 4294967295, %s16729_s27   ;;  %s12378_s29 = sadd.s32 4294967294, %s16729_s27   ;;  %s16729_s27 = sphi %s16781_s27, %s23651_s27   ;;  %s16725_s26 = sphi %s16779_s26, %s23650_s26   ;;  %s16721_s25 = sphi %s16777_s25, %s23649_s25   ;;  %s16717_s24 = sphi %s16775_s24, %s23648_s24  }
   0x4   : > { %s16800_s30 = sadd.s32 1, %s16729_s27   ;;  %s179_s8 = sadd.s32 1, %s16725_s26 }
   0x5   : > { %s176_s9 = ssub.s32 %s16729_s27, %s16800_s30  ;;  %p189_p0 = scmp.ne.s32.totalorder %s16725_s26, %s16721_s25 }
   0x6   : > { %p177_p1 = scmp.eq.s32.totalorder %s176_s9, 0  ;;  %p190_p2 = scmp.eq.s32.totalorder %s16796_s28, 7 }
   0x7   : > { %p195_p3 = scmp.ne.s32.totalorder %s16721_s25, %s16717_s24  ;;  %p196_p4 = scmp.eq.s32.totalorder %s12378_s29, 7 }
   0x8   : > { %s16811_s10 = scalar_select %p177_p1, %s16725_s26, %s179_s8  }
   0x9   : > { %p16813_p5 = por %p190_p2, %p189_p0  ;;  %p16817_p6 = por %p196_p4, %p195_p3 }
   0xa   : > { %p12381_p7 = scmp.ge.s32.totalorder %s16729_s27, 1  ;;  %p242_p8 = scmp.lt.s32.totalorder %s16729_s27, 9 }
   0xc   : > { %p243_p9 = pnand %p12381_p7, %p242_p8 }
   0xe   : > { %246 = sbr.rel (%p243_p9) target bundleno = 2182 (0x886), region = 48 }
  0x15   : > { %v620_v0 = vld [vmem:[%s22668_s1] sm:$0xff]  ;;  %v621_v2 = vld [vmem:[%s22668_s1 + $0x8] sm:$0xff]  ;;  %s12383_s23 = sshll.u32 %s16796_s28, 5  ;;  %vm3014_vm0 = vcmask 130048   ;;  %s272_s29 = sand.u32 1, %s16721_s25  }
  0x16   : > { %v624_v1 = vld [vmem:[%s22668_s1 + $0x20] sm:$0xff]  ;;  %v625_v4 = vld [vmem:[%s22668_s1 + $0x28] sm:$0xff]  ;;  %p276_p10 = scmp.lt.s32.totalorder %s12383_s23, 255  ;;  %s22626_s18 = scalar_lea.sflag [#allocation3], %s272_s29 }
  0x17   : > { %v12386_v3 = vcombine.high %v620_v0, %v624_v1  ;;  %v12385_v5 = vcombine.low %v620_v0, %v624_v1  ;;  %v628_v6 = vld [vmem:[%s22668_s1 + $0x40] sm:$0xff]  ;;  %v12388_v8 = vcombine.high %v621_v2, %v625_v4  ;;  %v12387_v9 = vcombine.low %v621_v2, %v625_v4  ;;  %v629_v11 = vld [vmem:[%s22668_s1 + $0x48] sm:$0xff] }
  0x18   : > { %v632_v7 = vld [vmem:[%s22668_s1 + $0x60] sm:$0xff]  ;;  %v633_v12 = vld [vmem:[%s22668_s1 + $0x68] sm:$0xff]  ;;  %s23653_s23 = smov (!%p276_p10, %s12383_s23), 255 }
  0x19   : > { %v12394_v10 = vcombine.high %v628_v6, %v632_v7  ;;  %v636_v13 = vld [vmem:[%s22668_s1 + $0x80] sm:$0xff]  ;;  %3063 = vmatprep.subr.bf16.mxu0 %v12386_v3  ;;  %v12396_v14 = vcombine.high %v629_v11, %v633_v12  ;;  %v637_v16 = vld [vmem:[%s22668_s1 + $0x88] sm:$0xff]  ;;  %3835 = vmatprep.subr.bf16.mxu1 %v12388_v8  ;;  %v12393_v18 = vcombine.low %v628_v6, %v632_v7  ;;  %s15055_s17 = smul.u32 56, %s23653_s23  ;;  %s12382_s23 = sshll.u32 %s272_s29, 7 }
  0x1a   : > { %v640_v15 = vld [vmem:[%s22668_s1 + $0xa0] sm:$0xff]  ;;  %v641_v17 = vld [vmem:[%s22668_s1 + $0xa8] sm:$0xff]  ;;  %3064 = vmatpush1.bf16.msra.mxu0 %v12385_v5  ;;  %3836 = vmatpush1.bf16.msra.mxu1 %v12387_v9  ;;  %v12395_v19 = vcombine.low %v629_v11, %v633_v12  ;;  %s22567_s8 = scalar_lea.vmem [#allocation2], %s12382_s23 }
  0x1b   : > { %3065 = vmatprep.subr.bf16.mxu0 %v12394_v10  ;;  %v12402_v20 = vcombine.high %v636_v13, %v640_v15  ;;  %3837 = vmatprep.subr.bf16.mxu1 %v12396_v14  ;;  %v12404_v21 = vcombine.high %v637_v16, %v641_v17  ;;  %v644_v22 = vld [vmem:[%s22668_s1 + $0xc0] sm:$0xff]  ;;  %v645_v24 = vld [vmem:[%s22668_s1 + $0xc8] sm:$0xff]  ;;  %v12401_v26 = vcombine.low %v636_v13, %v640_v15  ;;  %s16905_s14 = scalar_lea.vmem %s22667_s0, %s15055_s17  ;;  %s12316_s9 = sshll.u32 %s22567_s8, 4  ;;  %s22621_s9 = int_to_ptr.vmem [resolvable:$true] %s12316_s9 }
  0x1c   : > { %v648_v23 = vld [vmem:[%s22668_s1 + $0xe0] sm:$0xff]  ;;  %v649_v25 = vld [vmem:[%s22668_s1 + $0xe8] sm:$0xff]  ;;  %v12403_v27 = vcombine.low %v637_v16, %v641_v17  ;;  %s16667_s19 = scalar_lea.vmem %s22621_s9, 2048 }
  0x1d   : > { %v12410_v28 = vcombine.high %v644_v22, %v648_v23  ;;  %v12412_v29 = vcombine.high %v645_v24, %v649_v25  ;;  %v652_v30 = vld [vmem:[%s22668_s1 + $0x100] sm:$0xff]  ;;  %v653_v32 = vld [vmem:[%s22668_s1 + $0x108] sm:$0xff]  ;;  %v12409_v34 = vcombine.low %v644_v22, %v648_v23  ;;  %v12411_v35 = vcombine.low %v645_v24, %v649_v25  ;;  %p16668_p11 = scmp.ne.s32.totalorder %s22621_s9, %s16667_s19 }
  0x1e   : > { %3066 = vmatpush1.bf16.msra.mxu0 %v12393_v18  ;;  %3838 = vmatpush1.bf16.msra.mxu1 %v12395_v19  ;;  %v656_v31 = vld [vmem:[%s22668_s1 + $0x120] sm:$0xff]  ;;  %v657_v33 = vld [vmem:[%s22668_s1 + $0x128] sm:$0xff] }
  0x1f   : > { %3067 = vmatprep.subr.bf16.mxu0 %v12402_v20  ;;  %3839 = vmatprep.subr.bf16.mxu1 %v12404_v21  ;;  %v12418_v36 = vcombine.high %v652_v30, %v656_v31  ;;  %v12420_v37 = vcombine.high %v653_v32, %v657_v33  ;;  %v660_v38 = vld [vmem:[%s22668_s1 + $0x140] sm:$0xff]  ;;  %v661_v40 = vld [vmem:[%s22668_s1 + $0x148] sm:$0xff]  ;;  %v12417_v42 = vcombine.low %v652_v30, %v656_v31  ;;  %p16669_p12 = pnand %p16668_p11, %p16813_p5 }
  0x20   : > { %v664_v39 = vld [vmem:[%s22668_s1 + $0x160] sm:$0xff]  ;;  %v665_v41 = vld [vmem:[%s22668_s1 + $0x168] sm:$0xff]  ;;  %v12419_v43 = vcombine.low %v653_v32, %v657_v33 }
  0x21   : > { %v12426_v44 = vcombine.high %v660_v38, %v664_v39  ;;  %v12428_v45 = vcombine.high %v661_v40, %v665_v41  ;;  %v668_v46 = vld [vmem:[%s22668_s1 + $0x180] sm:$0xff]  ;;  %v669_v48 = vld [vmem:[%s22668_s1 + $0x188] sm:$0xff]  ;;  %v12425_v50 = vcombine.low %v660_v38, %v664_v39  ;;  %v12427_v51 = vcombine.low %v661_v40, %v665_v41  ;;  %p16670_p13 = pneg %p16669_p12 }
  0x22   : > { %3068 = vmatpush1.bf16.msra.mxu0 %v12401_v26  ;;  %3840 = vmatpush1.bf16.msra.mxu1 %v12403_v27  ;;  %v672_v47 = vld [vmem:[%s22668_s1 + $0x1a0] sm:$0xff]  ;;  %v673_v49 = vld [vmem:[%s22668_s1 + $0x1a8] sm:$0xff] }
  0x23   : > { %3069 = vmatprep.subr.bf16.mxu0 %v12410_v28  ;;  %3841 = vmatprep.subr.bf16.mxu1 %v12412_v29  ;;  %v12434_v52 = vcombine.high %v668_v46, %v672_v47  ;;  %v285_v53 = vld [vmem:[%s16905_s14 + $0x8] sm:$0xff]  ;;  %v292_v54 = vld [vmem:[%s16905_s14 + $0x40] sm:$0xff]  ;;  %v12436_v55 = vcombine.high %v669_v48, %v673_v49  ;;  %v12433_v61 = vcombine.low %v668_v46, %v672_v47 }
  0x24   : > { %v676_v56 = vld [vmem:[%s22668_s1 + $0x1c0] sm:$0xff]  ;;  %v16921_v58 = vpack.c.bf16 %v292_v54, %v285_v53  ;;  %v677_v59 = vld [vmem:[%s22668_s1 + $0x1c8] sm:$0xff]  ;;  %v12435_v62 = vcombine.low %v669_v48, %v673_v49 }
  0x25   : > { %v680_v57 = vld [vmem:[%s22668_s1 + $0x1e0] sm:$0xff]  ;;  %v681_v60 = vld [vmem:[%s22668_s1 + $0x1e8] sm:$0xff] }
  0x26   : > { %3070 = vmatpush1.bf16.msra.mxu0 %v12409_v34  ;;  %3842 = vmatpush1.bf16.msra.mxu1 %v12411_v35  ;;  %v12442_v63 = vcombine.high %v676_v56, %v680_v57  ;;  %v12444_v0 = vcombine.high %v677_v59, %v681_v60  ;;  %v684_v1 = vld [vmem:[%s22668_s1 + $0x200] sm:$0xff]  ;;  %v685_v3 = vld [vmem:[%s22668_s1 + $0x208] sm:$0xff]  ;;  %v12441_v5 = vcombine.low %v676_v56, %v680_v57 }
  0x27   : > { %3071 = vmatprep.subr.bf16.mxu0 %v12418_v36  ;;  %3843 = vmatprep.subr.bf16.mxu1 %v12420_v37  ;;  %v688_v2 = vld [vmem:[%s22668_s1 + $0x220] sm:$0xff]  ;;  %v689_v4 = vld [vmem:[%s22668_s1 + $0x228] sm:$0xff]  ;;  %v12443_v6 = vcombine.low %v677_v59, %v681_v60 }
  0x28   : > { %3095 = vmatprep.mubr.bf16.mxu0 %v16921_v58  ;;  %3867 = vmatprep.mubr.bf16.mxu1 %v16921_v58  ;;  %v12450_v7 = vcombine.high %v684_v1, %v688_v2  ;;  %v12452_v8 = vcombine.high %v685_v3, %v689_v4  ;;  %v692_v9 = vld [vmem:[%s22668_s1 + $0x240] sm:$0xff]  ;;  %v693_v11 = vld [vmem:[%s22668_s1 + $0x248] sm:$0xff]  ;;  %v12449_v13 = vcombine.low %v684_v1, %v688_v2 }
  0x29   : > { %v696_v10 = vld [vmem:[%s22668_s1 + $0x260] sm:$0xff]  ;;  %v697_v12 = vld [vmem:[%s22668_s1 + $0x268] sm:$0xff]  ;;  %v12451_v14 = vcombine.low %v685_v3, %v689_v4 }
  0x2a   : > { %3072 = vmatpush1.bf16.msra.mxu0 %v12417_v42  ;;  %3844 = vmatpush1.bf16.msra.mxu1 %v12419_v43  ;;  %v12458_v15 = vcombine.high %v692_v9, %v696_v10  ;;  %v12460_v16 = vcombine.high %v693_v11, %v697_v12  ;;  %v700_v17 = vld [vmem:[%s22668_s1 + $0x280] sm:$0xff]  ;;  %v701_v19 = vld [vmem:[%s22668_s1 + $0x288] sm:$0xff]  ;;  %v12457_v21 = vcombine.low %v692_v9, %v696_v10 }
  0x2b   : > { %3073 = vmatprep.subr.bf16.mxu0 %v12426_v44  ;;  %3845 = vmatprep.subr.bf16.mxu1 %v12428_v45  ;;  %v704_v18 = vld [vmem:[%s22668_s1 + $0x2a0] sm:$0xff]  ;;  %v705_v20 = vld [vmem:[%s22668_s1 + $0x2a8] sm:$0xff]  ;;  %v12459_v22 = vcombine.low %v693_v11, %v697_v12  ;;  %v299_v12 = vld [vmem:[%s16905_s14 + $0x78] sm:$0xff] }
  0x2c   : > { %v12466_v23 = vcombine.high %v700_v17, %v704_v18  ;;  %v12468_v24 = vcombine.high %v701_v19, %v705_v20  ;;  %v708_v25 = vld [vmem:[%s22668_s1 + $0x2c0] sm:$0xff]  ;;  %v709_v27 = vld [vmem:[%s22668_s1 + $0x2c8] sm:$0xff]  ;;  %v12465_v29 = vcombine.low %v700_v17, %v704_v18  ;;  %v12467_v30 = vcombine.low %v701_v19, %v705_v20 }
  0x2d   : > { %v712_v26 = vld [vmem:[%s22668_s1 + $0x2e0] sm:$0xff]  ;;  %v713_v28 = vld [vmem:[%s22668_s1 + $0x2e8] sm:$0xff] }
  0x2e   : > { %3074 = vmatpush1.bf16.msra.mxu0 %v12425_v50  ;;  %3846 = vmatpush1.bf16.msra.mxu1 %v12427_v51  ;;  %v12474_v31 = vcombine.high %v708_v25, %v712_v26  ;;  %v12476_v32 = vcombine.high %v709_v27, %v713_v28  ;;  %v716_v33 = vld [vmem:[%s22668_s1 + $0x300] sm:$0xff]  ;;  %v717_v35 = vld [vmem:[%s22668_s1 + $0x308] sm:$0xff]  ;;  %v12473_v37 = vcombine.low %v708_v25, %v712_v26  ;;  %v298_v26 = vld [vmem:[%s16905_s14 + $0x70] sm:$0xff] }
  0x2f   : > { %3075 = vmatprep.subr.bf16.mxu0 %v12434_v52  ;;  %3847 = vmatprep.subr.bf16.mxu1 %v12436_v55  ;;  %v720_v34 = vld [vmem:[%s22668_s1 + $0x320] sm:$0xff]  ;;  %v721_v36 = vld [vmem:[%s22668_s1 + $0x328] sm:$0xff]  ;;  %v12475_v38 = vcombine.low %v709_v27, %v713_v28 }
  0x30   : > { %v12482_v39 = vcombine.high %v716_v33, %v720_v34  ;;  %v12484_v40 = vcombine.high %v717_v35, %v721_v36  ;;  %v724_v41 = vld [vmem:[%s22668_s1 + $0x340] sm:$0xff]  ;;  %v725_v43 = vld [vmem:[%s22668_s1 + $0x348] sm:$0xff]  ;;  %v12481_v45 = vcombine.low %v716_v33, %v720_v34  ;;  %v12483_v46 = vcombine.low %v717_v35, %v721_v36 }
  0x31   : > { %v728_v42 = vld [vmem:[%s22668_s1 + $0x360] sm:$0xff]  ;;  %v729_v44 = vld [vmem:[%s22668_s1 + $0x368] sm:$0xff] }
  0x32   : > { %3076 = vmatpush1.bf16.msra.mxu0 %v12433_v61  ;;  %3848 = vmatpush1.bf16.msra.mxu1 %v12435_v62  ;;  %v12490_v47 = vcombine.high %v724_v41, %v728_v42  ;;  %v12492_v48 = vcombine.high %v725_v43, %v729_v44  ;;  %v732_v49 = vld [vmem:[%s22668_s1 + $0x380] sm:$0xff]  ;;  %v733_v51 = vld [vmem:[%s22668_s1 + $0x388] sm:$0xff]  ;;  %v12489_v53 = vcombine.low %v724_v41, %v728_v42 }
  0x33   : > { %3077 = vmatprep.subr.bf16.mxu0 %v12442_v63  ;;  %3849 = vmatprep.subr.bf16.mxu1 %v12444_v0  ;;  %v736_v50 = vld [vmem:[%s22668_s1 + $0x3a0] sm:$0xff]  ;;  %v737_v52 = vld [vmem:[%s22668_s1 + $0x3a8] sm:$0xff]  ;;  %v12491_v54 = vcombine.low %v725_v43, %v729_v44 }
  0x34   : > { %v12498_v55 = vcombine.high %v732_v49, %v736_v50  ;;  %v12500_v56 = vcombine.high %v733_v51, %v737_v52  ;;  %v740_v57 = vld [vmem:[%s22668_s1 + $0x3c0] sm:$0xff]  ;;  %v741_v60 = vld [vmem:[%s22668_s1 + $0x3c8] sm:$0xff]  ;;  %v12497_v62 = vcombine.low %v732_v49, %v736_v50  ;;  %v12499_v63 = vcombine.low %v733_v51, %v737_v52  ;;  %v319_v50 = vld [vmem:[%s16905_s14 + $0x118] sm:$0xff] }
  0x35   : > { %v744_v59 = vld [vmem:[%s22668_s1 + $0x3e0] sm:$0xff]  ;;  %v745_v61 = vld [vmem:[%s22668_s1 + $0x3e8] sm:$0xff] }
  0x36   : > { %3078 = vmatpush1.bf16.msra.mxu0 %v12441_v5  ;;  %3850 = vmatpush1.bf16.msra.mxu1 %v12443_v6  ;;  %v12506_v0 = vcombine.high %v740_v57, %v744_v59  ;;  %v12508_v1 = vcombine.high %v741_v60, %v745_v61  ;;  %v748_v2 = vld [vmem:[%s22668_s1 + $0x400] sm:$0xff]  ;;  %v749_v4 = vld [vmem:[%s22668_s1 + $0x408] sm:$0xff]  ;;  %v12505_v6 = vcombine.low %v740_v57, %v744_v59 }
  0x37   : > { %3079 = vmatprep.subr.bf16.mxu0 %v12450_v7  ;;  %3851 = vmatprep.subr.bf16.mxu1 %v12452_v8  ;;  %v752_v3 = vld [vmem:[%s22668_s1 + $0x420] sm:$0xff]  ;;  %v753_v5 = vld [vmem:[%s22668_s1 + $0x428] sm:$0xff]  ;;  %v291_v8 = vld [vmem:[%s16905_s14 + $0x38] sm:$0xff]  ;;  %v12507_v9 = vcombine.low %v741_v60, %v745_v61 }
  0x38   : > { %v284_v7 = vld [vmem:[%s16905_s14] sm:$0xff]  ;;  %v12514_v10 = vcombine.high %v748_v2, %v752_v3  ;;  %v12516_v11 = vcombine.high %v749_v4, %v753_v5  ;;  %v757_v17 = vld [vmem:[%s22668_s1 + $0x448] sm:$0xff]  ;;  %v12513_v18 = vcombine.low %v748_v2, %v752_v3  ;;  %v334_v60 = vld [vmem:[%s16905_s14 + $0x190] sm:$0xff] }
  0x39   : > { %v761_v19 = vld [vmem:[%s22668_s1 + $0x468] sm:$0xff]  ;;  %v764_v20 = vld [vmem:[%s22668_s1 + $0x480] sm:$0xff] }
  0x3a   : > { %3080 = vmatpush1.bf16.msra.mxu0 %v12449_v13  ;;  %3852 = vmatpush1.bf16.msra.mxu1 %v12451_v14  ;;  %v306_v13 = vld [vmem:[%s16905_s14 + $0xb0] sm:$0xff]  ;;  %v17043_v14 = vpack.c.bf16 %v291_v8, %v284_v7  ;;  %v769_v25 = vld [vmem:[%s22668_s1 + $0x4a8] sm:$0xff]  ;;  %v17084_v33 = vld [vmem:[%s22668_s1 + $0x820] sm:$0xff] }
  0x3b   : > { %3081 = vmatprep.subr.bf16.mxu0 %v12458_v15  ;;  %3853 = vmatprep.subr.bf16.mxu1 %v12460_v16  ;;  %v756_v15 = vld [vmem:[%s22668_s1 + $0x440] sm:$0xff]  ;;  %v305_v27 = vld [vmem:[%s16905_s14 + $0xa8] sm:$0xff]  ;;  %v326_v8 = vld [vmem:[%s16905_s14 + $0x150] sm:$0xff] }
  0x3c   : > { %v760_v16 = vld [vmem:[%s22668_s1 + $0x460] sm:$0xff]  ;;  %v17092_v36 = vld [vmem:[%s22668_s1 + $0x808] sm:$0xff] }
  0x3d   : > { %v12522_v28 = vcombine.high %v756_v15, %v760_v16  ;;  %v12521_v34 = vcombine.low %v756_v15, %v760_v16  ;;  %v776_v41 = vld [vmem:[%s22668_s1 + $0x4e0] sm:$0xff]  ;;  %v773_v44 = vld [vmem:[%s22668_s1 + $0x4c8] sm:$0xff] }
  0x3e   : > { %3082 = vmatpush1.bf16.msra.mxu0 %v12457_v21  ;;  %3854 = vmatpush1.bf16.msra.mxu1 %v12459_v22  ;;  %v768_v21 = vld [vmem:[%s22668_s1 + $0x4a0] sm:$0xff]  ;;  %v12515_v22 = vcombine.low %v749_v4, %v753_v5  ;;  %v781_v57 = vld [vmem:[%s22668_s1 + $0x508] sm:$0xff] }
  0x3f   : > { %3083 = vmatprep.subr.bf16.mxu0 %v12466_v23  ;;  %3855 = vmatprep.subr.bf16.mxu1 %v12468_v24  ;;  %v17063_v23 = vpack.c.bf16 %v306_v13, %v299_v12  ;;  %v765_v24 = vld [vmem:[%s22668_s1 + $0x488] sm:$0xff]  ;;  %v312_v49 = vld [vmem:[%s16905_s14 + $0xe0] sm:$0xff] }
  0x40   : > { %v12532_v43 = vcombine.high %v765_v24, %v769_v25  ;;  %v12531_v51 = vcombine.low %v765_v24, %v769_v25  ;;  %v785_v59 = vld [vmem:[%s22668_s1 + $0x528] sm:$0xff]  ;;  %v17151_v4 = vpack.c.bf16 %v319_v50, %v312_v49  ;;  %v796_v13 = vld [vmem:[%s22668_s1 + $0x580] sm:$0xff]  ;;  %v362_v50 = vld [vmem:[%s16905_s14 + $0x270] sm:$0xff] }
  0x41   : > { %v789_v2 = vld [vmem:[%s22668_s1 + $0x548] sm:$0xff]  ;;  %v12548_v5 = vcombine.high %v781_v57, %v785_v59  ;;  %v800_v15 = vld [vmem:[%s22668_s1 + $0x5a0] sm:$0xff] }
  0x42   : > { %3084 = vmatpush1.bf16.msra.mxu0 %v12465_v29  ;;  %3856 = vmatpush1.bf16.msra.mxu1 %v12467_v30  ;;  %v12524_v29 = vcombine.high %v757_v17, %v761_v19  ;;  %v313_v30 = vld [vmem:[%s16905_s14 + $0xe8] sm:$0xff]  ;;  %v12562_v25 = vcombine.high %v796_v13, %v800_v15 }
  0x43   : > { %3085 = vmatprep.subr.bf16.mxu0 %v12474_v31  ;;  %3857 = vmatprep.subr.bf16.mxu1 %v12476_v32  ;;  %v320_v31 = vld [vmem:[%s16905_s14 + $0x120] sm:$0xff]  ;;  %v793_v3 = vld [vmem:[%s22668_s1 + $0x568] sm:$0xff] }
  0x44   : > { %v17079_v32 = vld [vmem:[%s22668_s1 + $0x800] sm:$0xff]  ;;  %v12556_v12 = vcombine.high %v789_v2, %v793_v3  ;;  %v341_v16 = vld [vmem:[%s16905_s14 + $0x1c8] sm:$0xff]  ;;  %v12555_v24 = vcombine.low %v789_v2, %v793_v3 }
  0x45   : > { %v12641_v35 = vcombine.low %v17079_v32, %v17084_v33  ;;  %v817_v49 = vld [vmem:[%s22668_s1 + $0x628] sm:$0xff] }
  0x46   : > { %3086 = vmatpush1.bf16.msra.mxu0 %v12473_v37  ;;  %3858 = vmatpush1.bf16.msra.mxu1 %v12475_v38  ;;  %v17097_v37 = vld [vmem:[%s22668_s1 + $0x828] sm:$0xff]  ;;  %v12523_v38 = vcombine.low %v757_v17, %v761_v19  ;;  %v348_v19 = vld [vmem:[%s16905_s14 + $0x200] sm:$0xff] }
  0x47   : > { %3087 = vmatprep.subr.bf16.mxu0 %v12482_v39  ;;  %3859 = vmatprep.subr.bf16.mxu1 %v12484_v40  ;;  %v12530_v39 = vcombine.high %v764_v20, %v768_v21  ;;  %v772_v40 = vld [vmem:[%s22668_s1 + $0x4c0] sm:$0xff]  ;;  %v12643_v42 = vcombine.low %v17092_v36, %v17097_v37  ;;  %v797_v17 = vld [vmem:[%s22668_s1 + $0x588] sm:$0xff] }
  0x48   : > { %v12538_v52 = vcombine.high %v772_v40, %v776_v41  ;;  %v12537_v61 = vcombine.low %v772_v40, %v776_v41 }
  0x4a   : > { %3088 = vmatpush1.bf16.msra.mxu0 %v12481_v45  ;;  %3860 = vmatpush1.bf16.msra.mxu1 %v12483_v46  ;;  %v777_v45 = vld [vmem:[%s22668_s1 + $0x4e8] sm:$0xff]  ;;  %v17115_v46 = vpack.c.bf16 %v305_v27, %v298_v26 }
  0x4b   : > { %3089 = vmatprep.subr.bf16.mxu0 %v12490_v47  ;;  %3861 = vmatprep.subr.bf16.mxu1 %v12492_v48  ;;  %v17117_v47 = vpack.c.bf16 %v320_v31, %v313_v30  ;;  %v12529_v48 = vcombine.low %v764_v20, %v768_v21  ;;  %v804_v21 = vld [vmem:[%s22668_s1 + $0x5c0] sm:$0xff]  ;;  %v805_v26 = vld [vmem:[%s22668_s1 + $0x5c8] sm:$0xff]  ;;  %v17189_v30 = vpack.c.bf16 %v348_v19, %v341_v16 }
  0x4c   : > { %v809_v27 = vld [vmem:[%s22668_s1 + $0x5e8] sm:$0xff]  ;;  %v12561_v31 = vcombine.low %v796_v13, %v800_v15  ;;  %v836_v13 = vld [vmem:[%s22668_s1 + $0x6c0] sm:$0xff] }
  0x4d   : > { %v12572_v41 = vcombine.high %v805_v26, %v809_v27  ;;  %v840_v15 = vld [vmem:[%s22668_s1 + $0x6e0] sm:$0xff]  ;;  %v841_v19 = vld [vmem:[%s22668_s1 + $0x6e8] sm:$0xff] }
  0x4e   : > { %3090 = vmatpush1.bf16.msra.mxu0 %v12489_v53  ;;  %3862 = vmatpush1.bf16.msra.mxu1 %v12491_v54  ;;  %v12540_v53 = vcombine.high %v773_v44, %v777_v45  ;;  %v780_v54 = vld [vmem:[%s22668_s1 + $0x500] sm:$0xff] }
  0x4f   : > { %3091 = vmatprep.subr.bf16.mxu0 %v12498_v55  ;;  %3863 = vmatprep.subr.bf16.mxu1 %v12500_v56  ;;  %v784_v55 = vld [vmem:[%s22668_s1 + $0x520] sm:$0xff]  ;;  %v327_v56 = vld [vmem:[%s16905_s14 + $0x158] sm:$0xff] }
  0x50   : > { %v12545_v7 = vcombine.low %v780_v54, %v784_v55 }
  0x52   : > { %3092 = vmatpush1.bf16.msra.mxu0 %v12497_v62  ;;  %3864 = vmatpush1.bf16.msra.mxu1 %v12499_v63  ;;  %v788_v62 = vld [vmem:[%s22668_s1 + $0x540] sm:$0xff] }
  0x53   : > { %3093 = vmatprep.subr.bf16.mxu0 %v12506_v0  ;;  %3865 = vmatprep.subr.bf16.mxu1 %v12508_v1  ;;  %v792_v63 = vld [vmem:[%s22668_s1 + $0x560] sm:$0xff]  ;;  %v12539_v0 = vcombine.low %v773_v44, %v777_v45  ;;  %v12546_v1 = vcombine.high %v780_v54, %v784_v55  ;;  %v355_v45 = vld [vmem:[%s16905_s14 + $0x238] sm:$0xff]  ;;  %v12571_v54 = vcombine.low %v805_v26, %v809_v27 }
  0x54   : > { %v12553_v20 = vcombine.low %v788_v62, %v792_v63  ;;  %v816_v44 = vld [vmem:[%s22668_s1 + $0x620] sm:$0xff]  ;;  %v375_v26 = vld [vmem:[%s16905_s14 + $0x2d8] sm:$0xff] }
  0x56   : > { %3094 = vmatpush1.bf16.msra.mxu0 %v12505_v6  ;;  %3866 = vmatpush1.bf16.msra.mxu1 %v12507_v9  ;;  %v17153_v6 = vpack.c.bf16 %v334_v60, %v327_v56  ;;  %v333_v9 = vld [vmem:[%s16905_s14 + $0x188] sm:$0xff] }
  0x57   : > { %3256 = vmatprep.subr.bf16.mxu0 %v12514_v10  ;;  %4028 = vmatprep.subr.bf16.mxu1 %v12516_v11  ;;  %v12547_v10 = vcombine.low %v781_v57, %v785_v59  ;;  %v12554_v11 = vcombine.high %v788_v62, %v792_v63  ;;  %v821_v56 = vld [vmem:[%s22668_s1 + $0x648] sm:$0xff]  ;;  %v354_v63 = vld [vmem:[%s16905_s14 + $0x230] sm:$0xff] }
  0x58   : > { %v825_v57 = vld [vmem:[%s22668_s1 + $0x668] sm:$0xff] }
  0x59   : > { %3096 = vmatmul.mubr.bf16.vlgmr.msra.gmra.mrb[0].mxu0 %v17043_v14  ;;  %3868 = vmatmul.mubr.bf16.vlgmr.msra.gmra.mrb[0].mxu1 %v17043_v14  ;;  %v12588_v3 = vcombine.high %v821_v56, %v825_v57  ;;  %v12587_v16 = vcombine.low %v821_v56, %v825_v57  ;;  %v382_v57 = vld [vmem:[%s16905_s14 + $0x310] sm:$0xff] }
  0x5a   : > { %3257 = vmatpush1.bf16.msra.mxu0 %v12513_v18  ;;  %4029 = vmatpush1.bf16.msra.mxu1 %v12515_v22  ;;  %v801_v18 = vld [vmem:[%s22668_s1 + $0x5a8] sm:$0xff]  ;;  %v808_v22 = vld [vmem:[%s22668_s1 + $0x5e0] sm:$0xff] }
  0x5b   : > { %3105 = vmatprep.mubr.bf16.mxu0 %v17063_v23  ;;  %3877 = vmatprep.mubr.bf16.mxu1 %v17063_v23  ;;  %v12570_v40 = vcombine.high %v804_v21, %v808_v22 }
  0x5c   : > { %3258 = vmatprep.subr.bf16.mxu0 %v12522_v28  ;;  %4030 = vmatprep.subr.bf16.mxu1 %v12524_v29  ;;  %v17187_v28 = vpack.c.bf16 %v333_v9, %v326_v8  ;;  %v12564_v29 = vcombine.high %v797_v17, %v801_v18  ;;  %v369_v8 = vld [vmem:[%s16905_s14 + $0x2a8] sm:$0xff] }
  0x5d   : > { %v829_v9 = vld [vmem:[%s22668_s1 + $0x688] sm:$0xff] }
  0x5e   : > { %3259 = vmatpush1.bf16.msra.mxu0 %v12521_v34  ;;  %4031 = vmatpush1.bf16.msra.mxu1 %v12523_v38  ;;  %v340_v34 = vld [vmem:[%s16905_s14 + $0x1c0] sm:$0xff]  ;;  %v347_v38 = vld [vmem:[%s16905_s14 + $0x1f8] sm:$0xff] }
  0x5f   : > { %3260 = vmatprep.subr.bf16.mxu0 %v12530_v39  ;;  %4032 = vmatprep.subr.bf16.mxu1 %v12532_v43  ;;  %v12563_v39 = vcombine.low %v797_v17, %v801_v18  ;;  %v812_v43 = vld [vmem:[%s22668_s1 + $0x600] sm:$0xff]  ;;  %v17223_v59 = vpack.c.bf16 %v347_v38, %v340_v34  ;;  %v837_v18 = vld [vmem:[%s22668_s1 + $0x6c8] sm:$0xff] }
  0x60   : > { %v12578_v55 = vcombine.high %v812_v43, %v816_v44  ;;  %v12577_v62 = vcombine.low %v812_v43, %v816_v44  ;;  %v844_v34 = vld [vmem:[%s22668_s1 + $0x700] sm:$0xff]  ;;  %v390_v43 = vld [vmem:[%s16905_s14 + $0x350] sm:$0xff]  ;;  %v12601_v44 = vcombine.low %v836_v13, %v840_v15 }
  0x61   : > { %3106 = vmatmul.mubr.bf16.gmra.mrb[4].mxu0 %v17115_v46  ;;  %3878 = vmatmul.mubr.bf16.gmra.mrb[4].mxu1 %v17115_v46  ;;  %v848_v38 = vld [vmem:[%s22668_s1 + $0x720] sm:$0xff] }
  0x62   : > { %3115 = vmatprep.mubr.bf16.mxu0 %v17117_v47  ;;  %3887 = vmatprep.mubr.bf16.mxu1 %v17117_v47  ;;  %v12609_v56 = vcombine.low %v844_v34, %v848_v38 }
  0x63   : > { %3261 = vmatpush1.bf16.msra.mxu0 %v12529_v48  ;;  %4033 = vmatpush1.bf16.msra.mxu1 %v12531_v51  ;;  %v813_v48 = vld [vmem:[%s22668_s1 + $0x608] sm:$0xff]  ;;  %v12569_v51 = vcombine.low %v804_v21, %v808_v22 }
  0x64   : > { %3262 = vmatprep.subr.bf16.mxu0 %v12538_v52  ;;  %4034 = vmatprep.subr.bf16.mxu1 %v12540_v53  ;;  %v820_v52 = vld [vmem:[%s22668_s1 + $0x640] sm:$0xff]  ;;  %v12580_v60 = vcombine.high %v813_v48, %v817_v49 }
  0x65   : > { %v824_v53 = vld [vmem:[%s22668_s1 + $0x660] sm:$0xff] }
  0x66   : > { %v12586_v2 = vcombine.high %v820_v52, %v824_v53 }
  0x67   : > { %3263 = vmatpush1.bf16.msra.mxu0 %v12537_v61  ;;  %4035 = vmatpush1.bf16.msra.mxu1 %v12539_v0  ;;  %v17225_v61 = vpack.c.bf16 %v362_v50, %v355_v45  ;;  %v361_v0 = vld [vmem:[%s16905_s14 + $0x268] sm:$0xff]  ;;  %v852_v45 = vld [vmem:[%s22668_s1 + $0x740] sm:$0xff]  ;;  %v12610_v50 = vcombine.high %v844_v34, %v848_v38  ;;  %v418_v34 = vld [vmem:[%s16905_s14 + $0x430] sm:$0xff] }
  0x68   : > { %3264 = vmatprep.subr.bf16.mxu0 %v12546_v1  ;;  %4036 = vmatprep.subr.bf16.mxu1 %v12548_v5  ;;  %v12579_v1 = vcombine.low %v813_v48, %v817_v49  ;;  %v828_v5 = vld [vmem:[%s22668_s1 + $0x680] sm:$0xff]  ;;  %v12603_v49 = vcombine.low %v837_v18, %v841_v19 }
  0x69   : > { %3116 = vmatmul.mubr.bf16.gmra.mrb[8].mxu0 %v17151_v4  ;;  %3888 = vmatmul.mubr.bf16.gmra.mrb[8].mxu1 %v17151_v4  ;;  %v856_v48 = vld [vmem:[%s22668_s1 + $0x760] sm:$0xff] }
  0x6a   : > { %3125 = vmatprep.mubr.bf16.mxu0 %v17153_v6  ;;  %3897 = vmatprep.mubr.bf16.mxu1 %v17153_v6 }
  0x6b   : > { %3265 = vmatpush1.bf16.msra.mxu0 %v12545_v7  ;;  %4037 = vmatpush1.bf16.msra.mxu1 %v12547_v10  ;;  %v832_v7 = vld [vmem:[%s22668_s1 + $0x6a0] sm:$0xff]  ;;  %v833_v10 = vld [vmem:[%s22668_s1 + $0x6a8] sm:$0xff] }
  0x6c   : > { %3266 = vmatprep.subr.bf16.mxu0 %v12554_v11  ;;  %4038 = vmatprep.subr.bf16.mxu1 %v12556_v12  ;;  %v376_v11 = vld [vmem:[%s16905_s14 + $0x2e0] sm:$0xff]  ;;  %v12585_v12 = vcombine.low %v820_v52, %v824_v53  ;;  %v12594_v17 = vcombine.high %v828_v5, %v832_v7  ;;  %v12596_v21 = vcombine.high %v829_v9, %v833_v10  ;;  %v857_v52 = vld [vmem:[%s22668_s1 + $0x768] sm:$0xff] }
  0x6d   : > { %v17261_v22 = vpack.c.bf16 %v376_v11, %v369_v8  ;;  %v12595_v27 = vcombine.low %v829_v9, %v833_v10  ;;  %v404_v8 = vld [vmem:[%s16905_s14 + $0x3c0] sm:$0xff]  ;;  %v12617_v9 = vcombine.low %v852_v45, %v856_v48 }
  0x6e   : > { %v868_v10 = vld [vmem:[%s22668_s1 + $0x7c0] sm:$0xff] }
  0x6f   : > { %3267 = vmatpush1.bf16.msra.mxu0 %v12553_v20  ;;  %4039 = vmatpush1.bf16.msra.mxu1 %v12555_v24  ;;  %v17259_v20 = vpack.c.bf16 %v361_v0, %v354_v63  ;;  %v12593_v24 = vcombine.low %v828_v5, %v832_v7  ;;  %v12618_v63 = vcombine.high %v852_v45, %v856_v48  ;;  %v861_v5 = vld [vmem:[%s22668_s1 + $0x788] sm:$0xff]  ;;  %v872_v11 = vld [vmem:[%s22668_s1 + $0x7e0] sm:$0xff]  ;;  %v410_v45 = vld [vmem:[%s16905_s14 + $0x3f0] sm:$0xff] }
  0x70   : > { %3268 = vmatprep.subr.bf16.mxu0 %v12562_v25  ;;  %4040 = vmatprep.subr.bf16.mxu1 %v12564_v29  ;;  %v368_v25 = vld [vmem:[%s16905_s14 + $0x2a0] sm:$0xff]  ;;  %v12602_v29 = vcombine.high %v836_v13, %v840_v15  ;;  %v865_v7 = vld [vmem:[%s22668_s1 + $0x7a8] sm:$0xff]  ;;  %v12633_v38 = vcombine.low %v868_v10, %v872_v11 }
  0x71   : > { %3126 = vmatmul.mubr.bf16.gmra.mrb[12].mxu0 %v17187_v28  ;;  %3898 = vmatmul.mubr.bf16.gmra.mrb[12].mxu1 %v17187_v28  ;;  %v17295_v53 = vpack.c.bf16 %v375_v26, %v368_v25  ;;  %v869_v15 = vld [vmem:[%s22668_s1 + $0x7c8] sm:$0xff]  ;;  %v12634_v25 = vcombine.high %v868_v10, %v872_v11  ;;  %v467_v10 = vld [vmem:[%s16905_s14 + $0x5b8] sm:$0xff]  ;;  %v474_v11 = vld [vmem:[%s16905_s14 + $0x5f0] sm:$0xff] }
  0x72   : > { %3135 = vmatprep.mubr.bf16.mxu0 %v17189_v30  ;;  %3907 = vmatprep.mubr.bf16.mxu1 %v17189_v30  ;;  %v417_v48 = vld [vmem:[%s16905_s14 + $0x428] sm:$0xff] }
  0x73   : > { %3269 = vmatpush1.bf16.msra.mxu0 %v12561_v31  ;;  %4041 = vmatpush1.bf16.msra.mxu1 %v12563_v39  ;;  %v12604_v31 = vcombine.high %v837_v18, %v841_v19  ;;  %v383_v39 = vld [vmem:[%s16905_s14 + $0x318] sm:$0xff]  ;;  %v12628_v18 = vcombine.high %v861_v5, %v865_v7 }
  0x74   : > { %3270 = vmatprep.subr.bf16.mxu0 %v12570_v40  ;;  %4042 = vmatprep.subr.bf16.mxu1 %v12572_v41  ;;  %v845_v40 = vld [vmem:[%s22668_s1 + $0x708] sm:$0xff] }
  0x75   : > { %v849_v41 = vld [vmem:[%s22668_s1 + $0x728] sm:$0xff] }
  0x77   : > { %3271 = vmatpush1.bf16.msra.mxu0 %v12569_v51  ;;  %4043 = vmatpush1.bf16.msra.mxu1 %v12571_v54  ;;  %v853_v51 = vld [vmem:[%s22668_s1 + $0x748] sm:$0xff]  ;;  %v12612_v54 = vcombine.high %v845_v40, %v849_v41 }
  0x78   : > { %3272 = vmatprep.subr.bf16.mxu0 %v12578_v55  ;;  %4044 = vmatprep.subr.bf16.mxu1 %v12580_v60  ;;  %v17297_v55 = vpack.c.bf16 %v390_v43, %v383_v39  ;;  %v389_v60 = vld [vmem:[%s16905_s14 + $0x348] sm:$0xff]  ;;  %v12620_v0 = vcombine.high %v853_v51, %v857_v52  ;;  %v12644_v43 = vcombine.high %v17092_v36, %v17097_v37 }
  0x79   : > { %3136 = vmatmul.mubr.bf16.gmra.mrb[16].mxu0 %v17223_v59  ;;  %3908 = vmatmul.mubr.bf16.gmra.mrb[16].mxu1 %v17223_v59  ;;  %v901_v37 = vld [vmem:[%s22668_s1 + $0x8c8] sm:$0xff] }
  0x7a   : > { %3145 = vmatprep.mubr.bf16.mxu0 %v17225_v61  ;;  %3917 = vmatprep.mubr.bf16.mxu1 %v17225_v61 }
  0x7b   : > { %3273 = vmatpush1.bf16.msra.mxu0 %v12577_v62  ;;  %4045 = vmatpush1.bf16.msra.mxu1 %v12579_v1  ;;  %v12611_v62 = vcombine.low %v845_v40, %v849_v41  ;;  %v860_v1 = vld [vmem:[%s22668_s1 + $0x780] sm:$0xff]  ;;  %v12642_v40 = vcombine.high %v17079_v32, %v17084_v33 }
  0x7c   : > { %3274 = vmatprep.subr.bf16.mxu0 %v12586_v2  ;;  %4046 = vmatprep.subr.bf16.mxu1 %v12588_v3  ;;  %v864_v2 = vld [vmem:[%s22668_s1 + $0x7a0] sm:$0xff]  ;;  %v397_v3 = vld [vmem:[%s16905_s14 + $0x388] sm:$0xff] }
  0x7d   : > { %v12626_v13 = vcombine.high %v860_v1, %v864_v2  ;;  %v17333_v19 = vpack.c.bf16 %v404_v8, %v397_v3  ;;  %v460_v3 = vld [vmem:[%s16905_s14 + $0x580] sm:$0xff] }
  0x7e   : > { %v452_v8 = vld [vmem:[%s16905_s14 + $0x540] sm:$0xff] }
  0x7f   : > { %3275 = vmatpush1.bf16.msra.mxu0 %v12585_v12  ;;  %4047 = vmatpush1.bf16.msra.mxu1 %v12587_v16  ;;  %v12619_v12 = vcombine.low %v853_v51, %v857_v52  ;;  %v873_v16 = vld [vmem:[%s22668_s1 + $0x7e8] sm:$0xff]  ;;  %v17359_v51 = vpack.c.bf16 %v417_v48, %v410_v45  ;;  %v294_v45 = vld [vmem:[%s16905_s14 + $0x50] sm:$0xff] }
  0x80   : > { %3276 = vmatprep.subr.bf16.mxu0 %v12594_v17  ;;  %4048 = vmatprep.subr.bf16.mxu1 %v12596_v21  ;;  %v17331_v17 = vpack.c.bf16 %v389_v60, %v382_v57  ;;  %v12625_v21 = vcombine.low %v860_v1, %v864_v2  ;;  %v12636_v26 = vcombine.high %v869_v15, %v873_v16  ;;  %v439_v57 = vld [vmem:[%s16905_s14 + $0x4d8] sm:$0xff]  ;;  %v446_v60 = vld [vmem:[%s16905_s14 + $0x510] sm:$0xff]  ;;  %v445_v1 = vld [vmem:[%s16905_s14 + $0x508] sm:$0xff] }
  0x81   : > { %3146 = vmatmul.mubr.bf16.gmra.mrb[20].mxu0 %v17259_v20  ;;  %3918 = vmatmul.mubr.bf16.gmra.mrb[20].mxu1 %v17259_v20  ;;  %v12635_v39 = vcombine.low %v869_v15, %v873_v16  ;;  %v453_v2 = vld [vmem:[%s16905_s14 + $0x548] sm:$0xff]  ;;  %v466_v15 = vld [vmem:[%s16905_s14 + $0x5b0] sm:$0xff] }
  0x82   : > { %3155 = vmatprep.mubr.bf16.mxu0 %v17261_v22  ;;  %3927 = vmatprep.mubr.bf16.mxu1 %v17261_v22  ;;  %v473_v16 = vld [vmem:[%s16905_s14 + $0x5e8] sm:$0xff] }
  0x83   : > { %3277 = vmatpush1.bf16.msra.mxu0 %v12593_v24  ;;  %4049 = vmatpush1.bf16.msra.mxu1 %v12595_v27  ;;  %v12627_v24 = vcombine.low %v861_v5, %v865_v7  ;;  %v396_v27 = vld [vmem:[%s16905_s14 + $0x380] sm:$0xff]  ;;  %v17385_v7 = vpack.c.bf16 %v460_v3, %v453_v2  ;;  %v889_v2 = vld [vmem:[%s22668_s1 + $0x868] sm:$0xff] }
  0x84   : > { %3278 = vmatprep.subr.bf16.mxu0 %v12602_v29  ;;  %4050 = vmatprep.subr.bf16.mxu1 %v12604_v31  ;;  %v403_v29 = vld [vmem:[%s16905_s14 + $0x3b8] sm:$0xff] }
  0x85   : > { %v411_v31 = vld [vmem:[%s16905_s14 + $0x3f8] sm:$0xff]  ;;  %v17345_v41 = vpack.c.bf16 %v403_v29, %v396_v27 }
  0x86   : > { %v487_v27 = vld [vmem:[%s16905_s14 + $0x658] sm:$0xff] }
  0x87   : > { %3279 = vmatpush1.bf16.msra.mxu0 %v12601_v44  ;;  %4051 = vmatpush1.bf16.msra.mxu1 %v12603_v49  ;;  %v17349_v44 = vpack.c.bf16 %v418_v34, %v411_v31  ;;  %v425_v49 = vld [vmem:[%s16905_s14 + $0x468] sm:$0xff]  ;;  %v495_v29 = vld [vmem:[%s16905_s14 + $0x698] sm:$0xff]  ;;  %v502_v31 = vld [vmem:[%s16905_s14 + $0x6d0] sm:$0xff] }
  0x88   : > { %3280 = vmatprep.subr.bf16.mxu0 %v12610_v50  ;;  %4052 = vmatprep.subr.bf16.mxu1 %v12612_v54  ;;  %v432_v50 = vld [vmem:[%s16905_s14 + $0x4a0] sm:$0xff] }
  0x89   : > { %3156 = vmatmul.mubr.bf16.gmra.mrb[24].mxu0 %v17295_v53  ;;  %3928 = vmatmul.mubr.bf16.gmra.mrb[24].mxu1 %v17295_v53  ;;  %v17361_v52 = vpack.c.bf16 %v432_v50, %v425_v49  ;;  %v424_v54 = vld [vmem:[%s16905_s14 + $0x460] sm:$0xff]  ;;  %v286_v50 = vld [vmem:[%s16905_s14 + $0x10] sm:$0xff] }
  0x8a   : > { %3165 = vmatprep.mubr.bf16.mxu0 %v17297_v55  ;;  %3937 = vmatprep.mubr.bf16.mxu1 %v17297_v55 }
  0x8b   : > { %3281 = vmatpush1.bf16.msra.mxu0 %v12609_v56  ;;  %4053 = vmatpush1.bf16.msra.mxu1 %v12611_v62  ;;  %v431_v56 = vld [vmem:[%s16905_s14 + $0x498] sm:$0xff] }
  0x8c   : > { %3282 = vmatprep.subr.bf16.mxu0 %v12618_v63  ;;  %4054 = vmatprep.subr.bf16.mxu1 %v12620_v0  ;;  %v17371_v62 = vpack.c.bf16 %v431_v56, %v424_v54  ;;  %v17373_v63 = vpack.c.bf16 %v446_v60, %v439_v57  ;;  %v438_v0 = vld [vmem:[%s16905_s14 + $0x4d0] sm:$0xff]  ;;  %v293_v54 = vld [vmem:[%s16905_s14 + $0x48] sm:$0xff]  ;;  %v308_v57 = vld [vmem:[%s16905_s14 + $0xc0] sm:$0xff] }
  0x8d   : > { %v17383_v5 = vpack.c.bf16 %v445_v1, %v438_v0  ;;  %v301_v56 = vld [vmem:[%s16905_s14 + $0x88] sm:$0xff]  ;;  %v884_v60 = vld [vmem:[%s22668_s1 + $0x840] sm:$0xff]  ;;  %v17455_v3 = vpack.c.bf16 %v293_v54, %v286_v50 }
  0x8e   : > { %v888_v0 = vld [vmem:[%s22668_s1 + $0x860] sm:$0xff]  ;;  %v885_v1 = vld [vmem:[%s22668_s1 + $0x848] sm:$0xff] }
  0x8f   : > { %3283 = vmatpush1.bf16.msra.mxu0 %v12617_v9  ;;  %4055 = vmatpush1.bf16.msra.mxu1 %v12619_v12  ;;  %v459_v9 = vld [vmem:[%s16905_s14 + $0x578] sm:$0xff]  ;;  %v17500_v50 = vld [vmem:[%s22668_s1 + $0xc28] sm:$0xff]  ;;  %v12651_v32 = vcombine.low %v885_v1, %v889_v2  ;;  %v904_v54 = vld [vmem:[%s22668_s1 + $0x8e0] sm:$0xff] }
  0x90   : > { %3284 = vmatprep.subr.bf16.mxu0 %v12626_v13  ;;  %4056 = vmatprep.subr.bf16.mxu1 %v12628_v18  ;;  %v17395_v12 = vpack.c.bf16 %v459_v9, %v452_v8  ;;  %v17397_v13 = vpack.c.bf16 %v474_v11, %v467_v10  ;;  %v481_v18 = vld [vmem:[%s16905_s14 + $0x628] sm:$0xff]  ;;  %v892_v8 = vld [vmem:[%s22668_s1 + $0x880] sm:$0xff]  ;;  %v17463_v10 = vpack.c.bf16 %v308_v57, %v301_v56 }
  0x91   : > { %3166 = vmatmul.mubr.bf16.gmra.mrb[28].mxu0 %v17331_v17  ;;  %3938 = vmatmul.mubr.bf16.gmra.mrb[28].mxu1 %v17331_v17  ;;  %v896_v9 = vld [vmem:[%s22668_s1 + $0x8a0] sm:$0xff]  ;;  %v893_v11 = vld [vmem:[%s22668_s1 + $0x888] sm:$0xff] }
  0x92   : > { %3175 = vmatprep.mubr.bf16.mxu0 %v17333_v19  ;;  %3947 = vmatprep.mubr.bf16.mxu1 %v17333_v19  ;;  %v12658_v33 = vcombine.high %v892_v8, %v896_v9  ;;  %v321_v56 = vld [vmem:[%s16905_s14 + $0x128] sm:$0xff] }
  0x93   : > { %3285 = vmatpush1.bf16.msra.mxu0 %v12625_v21  ;;  %4057 = vmatpush1.bf16.msra.mxu1 %v12627_v24  ;;  %v488_v21 = vld [vmem:[%s16905_s14 + $0x660] sm:$0xff]  ;;  %v17407_v24 = vpack.c.bf16 %v473_v16, %v466_v15  ;;  %v897_v15 = vld [vmem:[%s22668_s1 + $0x8a8] sm:$0xff] }
  0x94   : > { %3286 = vmatprep.subr.bf16.mxu0 %v12634_v25  ;;  %4058 = vmatprep.subr.bf16.mxu1 %v12636_v26  ;;  %v17409_v25 = vpack.c.bf16 %v488_v21, %v481_v18  ;;  %v480_v26 = vld [vmem:[%s16905_s14 + $0x620] sm:$0xff]  ;;  %v307_v18 = vld [vmem:[%s16905_s14 + $0xb8] sm:$0xff]  ;;  %v12650_v21 = vcombine.high %v884_v60, %v888_v0  ;;  %v12660_v36 = vcombine.high %v893_v11, %v897_v15 }
  0x95   : > { %v17419_v34 = vpack.c.bf16 %v487_v27, %v480_v26  ;;  %v300_v16 = vld [vmem:[%s16905_s14 + $0x80] sm:$0xff]  ;;  %v12652_v26 = vcombine.high %v885_v1, %v889_v2  ;;  %v315_v27 = vld [vmem:[%s16905_s14 + $0xf8] sm:$0xff] }
  0x96   : > { %v17521_v57 = vpack.c.bf16 %v307_v18, %v300_v16  ;;  %v908_v1 = vld [vmem:[%s22668_s1 + $0x900] sm:$0xff]  ;;  %v12659_v16 = vcombine.low %v893_v11, %v897_v15 }
  0x97   : > { %3287 = vmatpush1.bf16.msra.mxu0 %v12633_v38  ;;  %4059 = vmatpush1.bf16.msra.mxu1 %v12635_v39  ;;  %v17421_v38 = vpack.c.bf16 %v502_v31, %v495_v29  ;;  %v494_v39 = vld [vmem:[%s16905_s14 + $0x690] sm:$0xff]  ;;  %v17479_v31 = vld [vmem:[%s22668_s1 + $0xc00] sm:$0xff] }
  0x98   : > { %3449 = vmatprep.subr.bf16.mxu0 %v12642_v40  ;;  %4221 = vmatprep.subr.bf16.mxu1 %v12644_v43  ;;  %v501_v40 = vld [vmem:[%s16905_s14 + $0x6c8] sm:$0xff]  ;;  %v287_v43 = vld [vmem:[%s16905_s14 + $0x18] sm:$0xff]  ;;  %v322_v29 = vld [vmem:[%s16905_s14 + $0x130] sm:$0xff] }
  0x99   : > { %3176 = vmatmul.mubr.bf16.gmra.mrb[32].mxu0 %v17345_v41  ;;  %3948 = vmatmul.mubr.bf16.gmra.mrb[32].mxu1 %v17345_v41  ;;  %v17431_v48 = vpack.c.bf16 %v501_v40, %v494_v39  ;;  %v17433_v49 = vpack.c.bf16 %v294_v45, %v287_v43  ;;  %v17484_v39 = vld [vmem:[%s22668_s1 + $0xc20] sm:$0xff]  ;;  %v12649_v40 = vcombine.low %v884_v60, %v888_v0  ;;  %v17495_v45 = vld [vmem:[%s22668_s1 + $0xc08] sm:$0xff] }
  0x9a   : > { %3185 = vmatprep.mubr.bf16.mxu0 %v17349_v44  ;;  %3957 = vmatprep.mubr.bf16.mxu1 %v17349_v44  ;;  %v17523_v60 = vpack.c.bf16 %v322_v29, %v315_v27  ;;  %v12657_v0 = vcombine.low %v892_v8, %v896_v9  ;;  %v912_v2 = vld [vmem:[%s22668_s1 + $0x920] sm:$0xff]  ;;  %v909_v8 = vld [vmem:[%s22668_s1 + $0x908] sm:$0xff] }
  0x9b   : > { %v336_v27 = vld [vmem:[%s16905_s14 + $0x1a0] sm:$0xff]  ;;  %v913_v9 = vld [vmem:[%s22668_s1 + $0x928] sm:$0xff] }
  0x9c   : > { %22996 = vst [vmem:[#allocation5_spill] sm:$0xff] %v17523_v60  ;;  %v916_v15 = vld [vmem:[%s22668_s1 + $0x940] sm:$0xff] }
  0xa1   : > { %3186 = vmatmul.mubr.bf16.gmra.mrb[36].mxu0 %v17359_v51  ;;  %3958 = vmatmul.mubr.bf16.gmra.mrb[36].mxu1 %v17359_v51 }
  0xa2   : > { %3195 = vmatprep.mubr.bf16.mxu0 %v17361_v52  ;;  %3967 = vmatprep.mubr.bf16.mxu1 %v17361_v52 }
  0xa9   : > { %3196 = vmatmul.mubr.bf16.gmra.mrb[40].mxu0 %v17371_v62  ;;  %3968 = vmatmul.mubr.bf16.gmra.mrb[40].mxu1 %v17371_v62 }
  0xaa   : > { %3205 = vmatprep.mubr.bf16.mxu0 %v17373_v63  ;;  %3977 = vmatprep.mubr.bf16.mxu1 %v17373_v63 }
  0xb1   : > { %3206 = vmatmul.mubr.bf16.gmra.mrb[44].mxu0 %v17383_v5  ;;  %3978 = vmatmul.mubr.bf16.gmra.mrb[44].mxu1 %v17383_v5 }
  0xb2   : > { %3215 = vmatprep.mubr.bf16.mxu0 %v17385_v7  ;;  %3987 = vmatprep.mubr.bf16.mxu1 %v17385_v7 }
  0xb9   : > { %3216 = vmatmul.mubr.bf16.gmra.mrb[48].mxu0 %v17395_v12  ;;  %3988 = vmatmul.mubr.bf16.gmra.mrb[48].mxu1 %v17395_v12 }
  0xba   : > { %3225 = vmatprep.mubr.bf16.mxu0 %v17397_v13  ;;  %3997 = vmatprep.mubr.bf16.mxu1 %v17397_v13 }
  0xc1   : > { %3226 = vmatmul.mubr.bf16.gmra.mrb[52].mxu0 %v17407_v24  ;;  %3998 = vmatmul.mubr.bf16.gmra.mrb[52].mxu1 %v17407_v24 }
  0xc2   : > { %3235 = vmatprep.mubr.bf16.mxu0 %v17409_v25  ;;  %4007 = vmatprep.mubr.bf16.mxu1 %v17409_v25 }
  0xc9   : > { %3236 = vmatmul.mubr.bf16.gmra.mrb[56].mxu0 %v17419_v34  ;;  %4008 = vmatmul.mubr.bf16.gmra.mrb[56].mxu1 %v17419_v34 }
  0xca   : > { %3245 = vmatprep.mubr.bf16.mxu0 %v17421_v38  ;;  %4017 = vmatprep.mubr.bf16.mxu1 %v17421_v38 }
  0xd1   : > { %3246 = vmatmul.mubr.bf16.gmra.mrb[60].mxu0 %v17431_v48  ;;  %4018 = vmatmul.mubr.bf16.gmra.mrb[60].mxu1 %v17431_v48 }
  0xd2   : > { %3288 = vmatprep.mubr.bf16.mxu0 %v17433_v49  ;;  %4060 = vmatprep.mubr.bf16.mxu1 %v17433_v49 }
  0xd9   : > { %3289 = vmatmul.mubr.bf16.vlgmr.msra.gmra.mrb[0].mxu0 %v17455_v3  ;;  %4061 = vmatmul.mubr.bf16.vlgmr.msra.gmra.mrb[0].mxu1 %v17455_v3 }
  0xda   : > { %3450 = vmatpush1.bf16.msra.mxu0 %v12641_v35  ;;  %4222 = vmatpush1.bf16.msra.mxu1 %v12643_v42  ;;  %v900_v35 = vld [vmem:[%s22668_s1 + $0x8c0] sm:$0xff]  ;;  %v905_v42 = vld [vmem:[%s22668_s1 + $0x8e8] sm:$0xff] }
  0xdb   : > { %3298 = vmatprep.mubr.bf16.mxu0 %v17463_v10  ;;  %4070 = vmatprep.mubr.bf16.mxu1 %v17463_v10  ;;  %v12666_v18 = vcombine.high %v900_v35, %v904_v54  ;;  %v12668_v29 = vcombine.high %v901_v37, %v905_v42  ;;  %v12665_v11 = vcombine.low %v900_v35, %v904_v54  ;;  %v921_v35 = vld [vmem:[%s22668_s1 + $0x968] sm:$0xff] }
  0xdc   : > { %3451 = vmatprep.subr.bf16.mxu0 %v12650_v21  ;;  %4223 = vmatprep.subr.bf16.mxu1 %v12652_v26  ;;  %v314_v21 = vld [vmem:[%s16905_s14 + $0xf0] sm:$0xff]  ;;  %v329_v26 = vld [vmem:[%s16905_s14 + $0x168] sm:$0xff] }
  0xdd   : > { %v17557_v54 = vpack.c.bf16 %v321_v56, %v314_v21  ;;  %v17559_v43 = vpack.c.bf16 %v336_v27, %v329_v26  ;;  %v12675_v56 = vcombine.low %v909_v8, %v913_v9  ;;  %v343_v26 = vld [vmem:[%s16905_s14 + $0x1d8] sm:$0xff]  ;;  %v350_v27 = vld [vmem:[%s16905_s14 + $0x210] sm:$0xff] }
  0xde   : > { %3452 = vmatpush1.bf16.msra.mxu0 %v12649_v40  ;;  %4224 = vmatpush1.bf16.msra.mxu1 %v12651_v32  ;;  %v920_v40 = vld [vmem:[%s22668_s1 + $0x960] sm:$0xff]  ;;  %v12667_v32 = vcombine.low %v901_v37, %v905_v42 }
  0xdf   : > { %3453 = vmatprep.subr.bf16.mxu0 %v12658_v33  ;;  %4225 = vmatprep.subr.bf16.mxu1 %v12660_v36  ;;  %v12674_v33 = vcombine.high %v908_v1, %v912_v2  ;;  %v917_v36 = vld [vmem:[%s22668_s1 + $0x948] sm:$0xff]  ;;  %22997 = vst [vmem:[#allocation6_spill] sm:$0xff] %v17557_v54  ;;  %22998 = vst [vmem:[#allocation7_spill] sm:$0xff] %v17559_v43  ;;  %v924_v37 = vld [vmem:[%s22668_s1 + $0x980] sm:$0xff]  ;;  %v12682_v21 = vcombine.high %v916_v15, %v920_v40 }
  0xe0   : > { %v928_v42 = vld [vmem:[%s22668_s1 + $0x9a0] sm:$0xff] }
  0xe1   : > { %3299 = vmatmul.mubr.bf16.gmra.mrb[4].mxu0 %v17521_v57  ;;  %4071 = vmatmul.mubr.bf16.gmra.mrb[4].mxu1 %v17521_v57 }
  0xe2   : > { %3308 = vmatprep.mubr.bf16.mxu0 %v17523_v60  ;;  %4080 = vmatprep.mubr.bf16.mxu1 %v17523_v60  ;;  %v335_v60 = vld [vmem:[%s16905_s14 + $0x198] sm:$0xff] }
  0xe3   : > { %3454 = vmatpush1.bf16.msra.mxu0 %v12657_v0  ;;  %4226 = vmatpush1.bf16.msra.mxu1 %v12659_v16  ;;  %v12676_v0 = vcombine.high %v909_v8, %v913_v9  ;;  %v12673_v16 = vcombine.low %v908_v1, %v912_v2  ;;  %v12684_v1 = vcombine.high %v917_v36, %v921_v35  ;;  %v925_v2 = vld [vmem:[%s22668_s1 + $0x988] sm:$0xff]  ;;  %v932_v9 = vld [vmem:[%s22668_s1 + $0x9c0] sm:$0xff] }
  0xe4   : > { %3455 = vmatprep.subr.bf16.mxu0 %v12666_v18  ;;  %4227 = vmatprep.subr.bf16.mxu1 %v12668_v29  ;;  %v328_v18 = vld [vmem:[%s16905_s14 + $0x160] sm:$0xff]  ;;  %v929_v29 = vld [vmem:[%s22668_s1 + $0x9a8] sm:$0xff]  ;;  %v12681_v8 = vcombine.low %v916_v15, %v920_v40 }
  0xe5   : > { %v937_v15 = vld [vmem:[%s22668_s1 + $0x9e8] sm:$0xff]  ;;  %v17593_v40 = vpack.c.bf16 %v335_v60, %v328_v18  ;;  %v12691_v60 = vcombine.low %v925_v2, %v929_v29 }
  0xe7   : > { %3456 = vmatpush1.bf16.msra.mxu0 %v12665_v11  ;;  %4228 = vmatpush1.bf16.msra.mxu1 %v12667_v32  ;;  %v936_v11 = vld [vmem:[%s22668_s1 + $0x9e0] sm:$0xff]  ;;  %v12683_v32 = vcombine.low %v917_v36, %v921_v35  ;;  %22999 = vst [vmem:[#allocation8_spill] sm:$0xff] %v17593_v40 }
  0xe8   : > { %3457 = vmatprep.subr.bf16.mxu0 %v12674_v33  ;;  %4229 = vmatprep.subr.bf16.mxu1 %v12676_v0  ;;  %v12690_v33 = vcombine.high %v924_v37, %v928_v42  ;;  %v933_v0 = vld [vmem:[%s22668_s1 + $0x9c8] sm:$0xff]  ;;  %v940_v36 = vld [vmem:[%s22668_s1 + $0xa00] sm:$0xff]  ;;  %v12698_v18 = vcombine.high %v932_v9, %v936_v11 }
  0xe9   : > { %3309 = vmatmul.mubr.bf16.gmra.mrb[8].mxu0 %v17557_v54  ;;  %4081 = vmatmul.mubr.bf16.gmra.mrb[8].mxu1 %v17557_v54  ;;  %v944_v35 = vld [vmem:[%s22668_s1 + $0xa20] sm:$0xff] }
  0xea   : > { %3318 = vmatprep.mubr.bf16.mxu0 %v17559_v43  ;;  %4090 = vmatprep.mubr.bf16.mxu1 %v17559_v43  ;;  %v17595_v43 = vpack.c.bf16 %v350_v27, %v343_v26  ;;  %v12700_v26 = vcombine.high %v933_v0, %v937_v15  ;;  %v945_v27 = vld [vmem:[%s22668_s1 + $0xa28] sm:$0xff] }
  0xeb   : > { %3458 = vmatpush1.bf16.msra.mxu0 %v12673_v16  ;;  %4230 = vmatpush1.bf16.msra.mxu1 %v12675_v56  ;;  %v12692_v16 = vcombine.high %v925_v2, %v929_v29  ;;  %v12689_v56 = vcombine.low %v924_v37, %v928_v42  ;;  %v349_v37 = vld [vmem:[%s16905_s14 + $0x208] sm:$0xff]  ;;  %v364_v2 = vld [vmem:[%s16905_s14 + $0x280] sm:$0xff]  ;;  %v12697_v29 = vcombine.low %v932_v9, %v936_v11 }
  0xec   : > { %3459 = vmatprep.subr.bf16.mxu0 %v12682_v21  ;;  %4231 = vmatprep.subr.bf16.mxu1 %v12684_v1  ;;  %23000 = vst [vmem:[#allocation9_spill] sm:$0xff] %v17595_v43  ;;  %v342_v21 = vld [vmem:[%s16905_s14 + $0x1d0] sm:$0xff]  ;;  %v941_v42 = vld [vmem:[%s22668_s1 + $0xa08] sm:$0xff] }
  0xed   : > { %v357_v1 = vld [vmem:[%s16905_s14 + $0x248] sm:$0xff] }
  0xee   : > { %v17625_v54 = vpack.c.bf16 %v364_v2, %v357_v1  ;;  %v949_v9 = vld [vmem:[%s22668_s1 + $0xa48] sm:$0xff] }
  0xef   : > { %3460 = vmatpush1.bf16.msra.mxu0 %v12681_v8  ;;  %4232 = vmatpush1.bf16.msra.mxu1 %v12683_v32  ;;  %v12699_v8 = vcombine.low %v933_v0, %v937_v15  ;;  %v12706_v32 = vcombine.high %v940_v36, %v944_v35  ;;  %v953_v11 = vld [vmem:[%s22668_s1 + $0xa68] sm:$0xff]  ;;  %v12705_v0 = vcombine.low %v940_v36, %v944_v35  ;;  %v363_v36 = vld [vmem:[%s16905_s14 + $0x278] sm:$0xff] }
  0xf0   : > { %3461 = vmatprep.subr.bf16.mxu0 %v12690_v33  ;;  %4233 = vmatprep.subr.bf16.mxu1 %v12692_v16  ;;  %v17617_v33 = vpack.c.bf16 %v349_v37, %v342_v21  ;;  %v12708_v16 = vcombine.high %v941_v42, %v945_v27  ;;  %23002 = vst [vmem:[#allocation11_spill] sm:$0xff] %v17625_v54  ;;  %v356_v21 = vld [vmem:[%s16905_s14 + $0x240] sm:$0xff]  ;;  %v957_v35 = vld [vmem:[%s22668_s1 + $0xa88] sm:$0xff] }
  0xf1   : > { %3319 = vmatmul.mubr.bf16.gmra.mrb[12].mxu0 %v17593_v40  ;;  %4091 = vmatmul.mubr.bf16.gmra.mrb[12].mxu1 %v17593_v40  ;;  %v948_v40 = vld [vmem:[%s22668_s1 + $0xa40] sm:$0xff]  ;;  %v12707_v15 = vcombine.low %v941_v42, %v945_v27  ;;  %v961_v37 = vld [vmem:[%s22668_s1 + $0xaa8] sm:$0xff]  ;;  %v371_v42 = vld [vmem:[%s16905_s14 + $0x2b8] sm:$0xff]  ;;  %v12715_v2 = vcombine.low %v949_v9, %v953_v11 }
  0xf2   : > { %3328 = vmatprep.mubr.bf16.mxu0 %v17595_v43  ;;  %4100 = vmatprep.mubr.bf16.mxu1 %v17595_v43  ;;  %23001 = vst [vmem:[#allocation10_spill] sm:$0xff] %v17617_v33  ;;  %v952_v43 = vld [vmem:[%s22668_s1 + $0xa60] sm:$0xff]  ;;  %v378_v27 = vld [vmem:[%s16905_s14 + $0x2f0] sm:$0xff] }
  0xf3   : > { %3462 = vmatpush1.bf16.msra.mxu0 %v12689_v56  ;;  %4234 = vmatpush1.bf16.msra.mxu1 %v12691_v60  ;;  %v12714_v56 = vcombine.high %v948_v40, %v952_v43  ;;  %v12716_v60 = vcombine.high %v949_v9, %v953_v11  ;;  %v12713_v1 = vcombine.low %v948_v40, %v952_v43  ;;  %v965_v43 = vld [vmem:[%s22668_s1 + $0xac8] sm:$0xff] }
  0xf4   : > { %3463 = vmatprep.subr.bf16.mxu0 %v12698_v18  ;;  %4235 = vmatprep.subr.bf16.mxu1 %v12700_v26  ;;  %v956_v18 = vld [vmem:[%s22668_s1 + $0xa80] sm:$0xff]  ;;  %v969_v40 = vld [vmem:[%s22668_s1 + $0xae8] sm:$0xff]  ;;  %v12723_v11 = vcombine.low %v957_v35, %v961_v37 }
  0xf5   : > { %v960_v26 = vld [vmem:[%s22668_s1 + $0xaa0] sm:$0xff] }
  0xf6   : > { %v12721_v9 = vcombine.low %v956_v18, %v960_v26 }
  0xf7   : > { %3464 = vmatpush1.bf16.msra.mxu0 %v12697_v29  ;;  %4236 = vmatpush1.bf16.msra.mxu1 %v12699_v8  ;;  %v12722_v29 = vcombine.high %v956_v18, %v960_v26  ;;  %v17653_v8 = vpack.c.bf16 %v363_v36, %v356_v21  ;;  %v972_v21 = vld [vmem:[%s22668_s1 + $0xb00] sm:$0xff]  ;;  %v377_v18 = vld [vmem:[%s16905_s14 + $0x2e8] sm:$0xff] }
  0xf8   : > { %3465 = vmatprep.subr.bf16.mxu0 %v12706_v32  ;;  %4237 = vmatprep.subr.bf16.mxu1 %v12708_v16  ;;  %v12724_v32 = vcombine.high %v957_v35, %v961_v37  ;;  %v964_v16 = vld [vmem:[%s22668_s1 + $0xac0] sm:$0xff]  ;;  %v973_v26 = vld [vmem:[%s22668_s1 + $0xb08] sm:$0xff] }
  0xf9   : > { %3329 = vmatmul.mubr.bf16.gmra.mrb[16].mxu0 %v17617_v33  ;;  %4101 = vmatmul.mubr.bf16.gmra.mrb[16].mxu1 %v17617_v33  ;;  %23003 = vst [vmem:[#allocation12_spill] sm:$0xff] %v17653_v8  ;;  %v17661_v33 = vpack.c.bf16 %v378_v27, %v371_v42  ;;  %v977_v36 = vld [vmem:[%s22668_s1 + $0xb28] sm:$0xff]  ;;  %v392_v37 = vld [vmem:[%s16905_s14 + $0x360] sm:$0xff]  ;;  %v12731_v27 = vcombine.low %v965_v43, %v969_v40 }
  0xfa   : > { %3338 = vmatprep.mubr.bf16.mxu0 %v17625_v54  ;;  %4110 = vmatprep.mubr.bf16.mxu1 %v17625_v54  ;;  %v968_v54 = vld [vmem:[%s22668_s1 + $0xae0] sm:$0xff]  ;;  %v385_v35 = vld [vmem:[%s16905_s14 + $0x328] sm:$0xff] }
  0xfb   : > { %3466 = vmatpush1.bf16.msra.mxu0 %v12705_v0  ;;  %4238 = vmatpush1.bf16.msra.mxu1 %v12707_v15  ;;  %23004 = vst [vmem:[#allocation13_spill] sm:$0xff] %v17661_v33  ;;  %v12730_v0 = vcombine.high %v964_v16, %v968_v54  ;;  %v370_v15 = vld [vmem:[%s16905_s14 + $0x2b0] sm:$0xff]  ;;  %v12729_v42 = vcombine.low %v964_v16, %v968_v54  ;;  %v981_v54 = vld [vmem:[%s22668_s1 + $0xb48] sm:$0xff] }
  0xfc   : > { %3467 = vmatprep.subr.bf16.mxu0 %v12714_v56  ;;  %4239 = vmatprep.subr.bf16.mxu1 %v12716_v60  ;;  %v12732_v56 = vcombine.high %v965_v43, %v969_v40  ;;  %v976_v60 = vld [vmem:[%s22668_s1 + $0xb20] sm:$0xff]  ;;  %v985_v16 = vld [vmem:[%s22668_s1 + $0xb68] sm:$0xff]  ;;  %v12739_v40 = vcombine.low %v973_v26, %v977_v36 }
  0xfd   : > { %v12737_v43 = vcombine.low %v972_v21, %v976_v60 }
  0xff   : > { %3468 = vmatpush1.bf16.msra.mxu0 %v12713_v1  ;;  %4240 = vmatpush1.bf16.msra.mxu1 %v12715_v2  ;;  %v12738_v1 = vcombine.high %v972_v21, %v976_v60  ;;  %v17689_v2 = vpack.c.bf16 %v377_v18, %v370_v15  ;;  %v988_v15 = vld [vmem:[%s22668_s1 + $0xb80] sm:$0xff]  ;;  %v391_v21 = vld [vmem:[%s16905_s14 + $0x358] sm:$0xff]  ;;  %v989_v60 = vld [vmem:[%s22668_s1 + $0xb88] sm:$0xff] }
 0x100   : > { %3469 = vmatprep.subr.bf16.mxu0 %v12722_v29  ;;  %4241 = vmatprep.subr.bf16.mxu1 %v12724_v32  ;;  %v12740_v29 = vcombine.high %v973_v26, %v977_v36  ;;  %v980_v32 = vld [vmem:[%s22668_s1 + $0xb40] sm:$0xff]  ;;  %v993_v18 = vld [vmem:[%s22668_s1 + $0xba8] sm:$0xff]  ;;  %v399_v26 = vld [vmem:[%s16905_s14 + $0x398] sm:$0xff] }
 0x101   : > { %3339 = vmatmul.mubr.bf16.gmra.mrb[20].mxu0 %v17653_v8  ;;  %4111 = vmatmul.mubr.bf16.gmra.mrb[20].mxu1 %v17653_v8  ;;  %v17697_v8 = vpack.c.bf16 %v392_v37, %v385_v35  ;;  %v406_v36 = vld [vmem:[%s16905_s14 + $0x3d0] sm:$0xff]  ;;  %v12747_v37 = vcombine.low %v981_v54, %v985_v16 }
 0x102   : > { %3348 = vmatprep.mubr.bf16.mxu0 %v17661_v33  ;;  %4120 = vmatprep.mubr.bf16.mxu1 %v17661_v33  ;;  %v984_v33 = vld [vmem:[%s22668_s1 + $0xb60] sm:$0xff] }
 0x103   : > { %3470 = vmatpush1.bf16.msra.mxu0 %v12721_v9  ;;  %4242 = vmatpush1.bf16.msra.mxu1 %v12723_v11  ;;  %23005 = vst [vmem:[#allocation14_spill] sm:$0xff] %v17697_v8  ;;  %v12746_v9 = vcombine.high %v980_v32, %v984_v33  ;;  %v384_v11 = vld [vmem:[%s16905_s14 + $0x320] sm:$0xff]  ;;  %v12745_v35 = vcombine.low %v980_v32, %v984_v33  ;;  %v997_v33 = vld [vmem:[%s22668_s1 + $0xbc8] sm:$0xff] }
 0x104   : > { %3471 = vmatprep.subr.bf16.mxu0 %v12730_v0  ;;  %4243 = vmatprep.subr.bf16.mxu1 %v12732_v56  ;;  %v12748_v0 = vcombine.high %v981_v54, %v985_v16  ;;  %v992_v56 = vld [vmem:[%s22668_s1 + $0xba0] sm:$0xff]  ;;  %v1001_v32 = vld [vmem:[%s22668_s1 + $0xbe8] sm:$0xff]  ;;  %v12755_v16 = vcombine.low %v989_v60, %v993_v18 }
 0x105   : > { %v12753_v54 = vcombine.low %v988_v15, %v992_v56 }
 0x107   : > { %3472 = vmatpush1.bf16.msra.mxu0 %v12729_v42  ;;  %4244 = vmatpush1.bf16.msra.mxu1 %v12731_v27  ;;  %v12754_v42 = vcombine.high %v988_v15, %v992_v56  ;;  %v17725_v27 = vpack.c.bf16 %v391_v21, %v384_v11  ;;  %v398_v11 = vld [vmem:[%s16905_s14 + $0x390] sm:$0xff]  ;;  %v413_v21 = vld [vmem:[%s16905_s14 + $0x408] sm:$0xff]  ;;  %v12763_v56 = vcombine.low %v997_v33, %v1001_v32 }
 0x108   : > { %3473 = vmatprep.subr.bf16.mxu0 %v12738_v1  ;;  %4245 = vmatprep.subr.bf16.mxu1 %v12740_v29  ;;  %v12756_v1 = vcombine.high %v989_v60, %v993_v18  ;;  %v996_v29 = vld [vmem:[%s22668_s1 + $0xbc0] sm:$0xff]  ;;  %v12770_v60 = vcombine.high %v17479_v31, %v17484_v39 }
 0x109   : > { %3349 = vmatmul.mubr.bf16.gmra.mrb[24].mxu0 %v17689_v2  ;;  %4121 = vmatmul.mubr.bf16.gmra.mrb[24].mxu1 %v17689_v2 }
 0x10a   : > { %3358 = vmatprep.mubr.bf16.mxu0 %v17697_v8  ;;  %4130 = vmatprep.mubr.bf16.mxu1 %v17697_v8  ;;  %v1000_v8 = vld [vmem:[%s22668_s1 + $0xbe0] sm:$0xff] }
 0x10b   : > { %3474 = vmatpush1.bf16.msra.mxu0 %v12737_v43  ;;  %4246 = vmatpush1.bf16.msra.mxu1 %v12739_v40  ;;  %v17733_v43 = vpack.c.bf16 %v406_v36, %v399_v26  ;;  %v12762_v40 = vcombine.high %v996_v29, %v1000_v8  ;;  %v420_v26 = vld [vmem:[%s16905_s14 + $0x440] sm:$0xff]  ;;  %v12761_v15 = vcombine.low %v996_v29, %v1000_v8 }
 0x10c   : > { %3475 = vmatprep.subr.bf16.mxu0 %v12746_v9  ;;  %4247 = vmatprep.subr.bf16.mxu1 %v12748_v0  ;;  %v12764_v9 = vcombine.high %v997_v33, %v1001_v32  ;;  %v405_v0 = vld [vmem:[%s16905_s14 + $0x3c8] sm:$0xff]  ;;  %v12772_v36 = vcombine.high %v17495_v45, %v17500_v50  ;;  %v412_v8 = vld [vmem:[%s16905_s14 + $0x400] sm:$0xff]  ;;  %v426_v32 = vld [vmem:[%s16905_s14 + $0x470] sm:$0xff] }
 0x10d   : > { %23006 = vst [vmem:[#allocation15_spill] sm:$0xff] %v17733_v43  ;;  %v17751_v18 = vpack.c.bf16 %v405_v0, %v398_v11  ;;  %v440_v0 = vld [vmem:[%s16905_s14 + $0x4e0] sm:$0xff] }
 0x10f   : > { %3476 = vmatpush1.bf16.msra.mxu0 %v12745_v35  ;;  %4248 = vmatpush1.bf16.msra.mxu1 %v12747_v37  ;;  %23007 = vst [vmem:[#allocation16_spill] sm:$0xff] %v17751_v18  ;;  %v17755_v35 = vpack.c.bf16 %v420_v26, %v413_v21  ;;  %v419_v37 = vld [vmem:[%s16905_s14 + $0x438] sm:$0xff] }
 0x110   : > { %3477 = vmatprep.subr.bf16.mxu0 %v12754_v42  ;;  %4249 = vmatprep.subr.bf16.mxu1 %v12756_v1  ;;  %v427_v42 = vld [vmem:[%s16905_s14 + $0x478] sm:$0xff]  ;;  %v434_v1 = vld [vmem:[%s16905_s14 + $0x4b0] sm:$0xff]  ;;  %v17765_v29 = vpack.c.bf16 %v419_v37, %v412_v8  ;;  %v461_v8 = vld [vmem:[%s16905_s14 + $0x588] sm:$0xff] }
 0x111   : > { %3359 = vmatmul.mubr.bf16.gmra.mrb[28].mxu0 %v17725_v27  ;;  %4131 = vmatmul.mubr.bf16.gmra.mrb[28].mxu1 %v17725_v27  ;;  %23008 = vst [vmem:[#allocation17_spill] sm:$0xff] %v17755_v35  ;;  %v17767_v33 = vpack.c.bf16 %v434_v1, %v427_v42  ;;  %v447_v21 = vld [vmem:[%s16905_s14 + $0x518] sm:$0xff]  ;;  %v469_v37 = vld [vmem:[%s16905_s14 + $0x5c8] sm:$0xff]  ;;  %v476_v42 = vld [vmem:[%s16905_s14 + $0x600] sm:$0xff] }
 0x112   : > { %3368 = vmatprep.mubr.bf16.mxu0 %v17733_v43  ;;  %4140 = vmatprep.mubr.bf16.mxu1 %v17733_v43  ;;  %23009 = vst [vmem:[#allocation18_spill] sm:$0xff] %v17765_v29  ;;  %v455_v26 = vld [vmem:[%s16905_s14 + $0x558] sm:$0xff]  ;;  %v666_v43 = vld [vmem:[%s22668_s1 + $0x170] sm:$0xff] }
 0x113   : > { %3478 = vmatpush1.bf16.msra.mxu0 %v12753_v54  ;;  %4250 = vmatpush1.bf16.msra.mxu1 %v12755_v16  ;;  %23010 = vst [vmem:[#allocation19_spill] sm:$0xff] %v17767_v33  ;;  %v433_v54 = vld [vmem:[%s16905_s14 + $0x4a8] sm:$0xff] }
 0x114   : > { %3479 = vmatprep.subr.bf16.mxu0 %v12762_v40  ;;  %4251 = vmatprep.subr.bf16.mxu1 %v12764_v9  ;;  %v441_v16 = vld [vmem:[%s16905_s14 + $0x4e8] sm:$0xff]  ;;  %v448_v40 = vld [vmem:[%s16905_s14 + $0x520] sm:$0xff]  ;;  %v17777_v9 = vpack.c.bf16 %v433_v54, %v426_v32  ;;  %v17803_v32 = vpack.c.bf16 %v476_v42, %v469_v37 }
 0x115   : > { %v17779_v11 = vpack.c.bf16 %v448_v40, %v441_v16  ;;  %v468_v54 = vld [vmem:[%s16905_s14 + $0x5c0] sm:$0xff]  ;;  %v475_v16 = vld [vmem:[%s16905_s14 + $0x5f8] sm:$0xff] }
 0x116   : > { %23011 = vst [vmem:[#allocation20_spill] sm:$0xff] %v17777_v9  ;;  %23016 = vst [vmem:[#allocation25_spill] sm:$0xff] %v17803_v32  ;;  %v483_v40 = vld [vmem:[%s16905_s14 + $0x638] sm:$0xff]  ;;  %v504_v37 = vld [vmem:[%s16905_s14 + $0x6e0] sm:$0xff] }
 0x117   : > { %3480 = vmatpush1.bf16.msra.mxu0 %v12761_v15  ;;  %4252 = vmatpush1.bf16.msra.mxu1 %v12763_v56  ;;  %23012 = vst [vmem:[#allocation21_spill] sm:$0xff] %v17779_v11  ;;  %v462_v15 = vld [vmem:[%s16905_s14 + $0x590] sm:$0xff]  ;;  %v17789_v56 = vpack.c.bf16 %v447_v21, %v440_v0  ;;  %v17813_v21 = vpack.c.bf16 %v475_v16, %v468_v54  ;;  %v496_v16 = vld [vmem:[%s16905_s14 + $0x6a0] sm:$0xff] }
 0x118   : > { %3642 = vmatprep.subr.bf16.mxu0 %v12770_v60  ;;  %4414 = vmatprep.subr.bf16.mxu1 %v12772_v36  ;;  %v17791_v60 = vpack.c.bf16 %v462_v15, %v455_v26  ;;  %v454_v36 = vld [vmem:[%s16905_s14 + $0x550] sm:$0xff] }
 0x119   : > { %3369 = vmatmul.mubr.bf16.gmra.mrb[32].mxu0 %v17751_v18  ;;  %4141 = vmatmul.mubr.bf16.gmra.mrb[32].mxu1 %v17751_v18  ;;  %23013 = vst [vmem:[#allocation22_spill] sm:$0xff] %v17789_v56  ;;  %v17801_v1 = vpack.c.bf16 %v461_v8, %v454_v36  ;;  %v490_v0 = vld [vmem:[%s16905_s14 + $0x670] sm:$0xff]  ;;  %23017 = vst [vmem:[#allocation26_spill] sm:$0xff] %v17813_v21  ;;  %v489_v36 = vld [vmem:[%s16905_s14 + $0x668] sm:$0xff] }
 0x11a   : > { %3378 = vmatprep.mubr.bf16.mxu0 %v17755_v35  ;;  %4150 = vmatprep.mubr.bf16.mxu1 %v17755_v35  ;;  %23014 = vst [vmem:[#allocation23_spill] sm:$0xff] %v17791_v60  ;;  %v17815_v26 = vpack.c.bf16 %v490_v0, %v483_v40  ;;  %v482_v15 = vld [vmem:[%s16905_s14 + $0x630] sm:$0xff]  ;;  %v497_v8 = vld [vmem:[%s16905_s14 + $0x6a8] sm:$0xff]  ;;  %v503_v40 = vld [vmem:[%s16905_s14 + $0x6d8] sm:$0xff] }
 0x11b   : > { %23015 = vst [vmem:[#allocation24_spill] sm:$0xff] %v17801_v1  ;;  %v17825_v42 = vpack.c.bf16 %v489_v36, %v482_v15  ;;  %v17827_v54 = vpack.c.bf16 %v504_v37, %v497_v8  ;;  %v289_v0 = vld [vmem:[%s16905_s14 + $0x28] sm:$0xff]  ;;  %v296_v15 = vld [vmem:[%s16905_s14 + $0x60] sm:$0xff]  ;;  %v17837_v36 = vpack.c.bf16 %v503_v40, %v496_v16  ;;  %v302_v40 = vld [vmem:[%s16905_s14 + $0x90] sm:$0xff] }
 0x11c   : > { %23018 = vst [vmem:[#allocation27_spill] sm:$0xff] %v17815_v26  ;;  %v17839_v8 = vpack.c.bf16 %v296_v15, %v289_v0  ;;  %v288_v37 = vld [vmem:[%s16905_s14 + $0x20] sm:$0xff]  ;;  %v309_v0 = vld [vmem:[%s16905_s14 + $0xc8] sm:$0xff]  ;;  %v23025_v15 = vcombine.low %v17479_v31, %v17484_v39  ;;  %v18124_v35 = vld [vmem:[%s22668_s1 + $0x438] sm:$0xff] }
 0x11d   : > { %23019 = vst [vmem:[#allocation28_spill] sm:$0xff] %v17825_v42  ;;  %23020 = vst [vmem:[#allocation29_spill] sm:$0xff] %v17827_v54  ;;  %v317_v31 = vld [vmem:[%s16905_s14 + $0x108] sm:$0xff]  ;;  %v324_v39 = vld [vmem:[%s16905_s14 + $0x140] sm:$0xff] }
 0x11e   : > { %23021 = vst [vmem:[#allocation30_spill] sm:$0xff] %v17837_v36  ;;  %23022 = vst [vmem:[#allocation31_spill] sm:$0xff] %v17839_v8  ;;  %v662_v18 = vld [vmem:[%s22668_s1 + $0x150] sm:$0xff] }
 0x121   : > { %3379 = vmatmul.mubr.bf16.gmra.mrb[36].mxu0 %v17765_v29  ;;  %4151 = vmatmul.mubr.bf16.gmra.mrb[36].mxu1 %v17765_v29  ;;  %v18119_v29 = vld [vmem:[%s22668_s1 + $0x418] sm:$0xff] }
 0x122   : > { %3388 = vmatprep.mubr.bf16.mxu0 %v17767_v33  ;;  %4160 = vmatprep.mubr.bf16.mxu1 %v17767_v33 }
 0x129   : > { %3389 = vmatmul.mubr.bf16.gmra.mrb[40].mxu0 %v17777_v9  ;;  %4161 = vmatmul.mubr.bf16.gmra.mrb[40].mxu1 %v17777_v9 }
 0x12a   : > { %3398 = vmatprep.mubr.bf16.mxu0 %v17779_v11  ;;  %4170 = vmatprep.mubr.bf16.mxu1 %v17779_v11  ;;  %v311_v11 = vld [vmem:[%s16905_s14 + $0xd8] sm:$0xff] }
 0x131   : > { %3399 = vmatmul.mubr.bf16.gmra.mrb[44].mxu0 %v17789_v56  ;;  %4171 = vmatmul.mubr.bf16.gmra.mrb[44].mxu1 %v17789_v56 }
 0x132   : > { %3408 = vmatprep.mubr.bf16.mxu0 %v17791_v60  ;;  %4180 = vmatprep.mubr.bf16.mxu1 %v17791_v60  ;;  %v18106_v60 = vld [vmem:[%s22668_s1 + $0x430] sm:$0xff] }
 0x139   : > { %3409 = vmatmul.mubr.bf16.gmra.mrb[48].mxu0 %v17801_v1  ;;  %4181 = vmatmul.mubr.bf16.gmra.mrb[48].mxu1 %v17801_v1  ;;  %v18101_v1 = vld [vmem:[%s22668_s1 + $0x410] sm:$0xff] }
 0x13a   : > { %3418 = vmatprep.mubr.bf16.mxu0 %v17803_v32  ;;  %4190 = vmatprep.mubr.bf16.mxu1 %v17803_v32  ;;  %v643_v32 = vld [vmem:[%s22668_s1 + $0xb8] sm:$0xff] }
 0x141   : > { %3419 = vmatmul.mubr.bf16.gmra.mrb[52].mxu0 %v17813_v21  ;;  %4191 = vmatmul.mubr.bf16.gmra.mrb[52].mxu1 %v17813_v21 }
 0x142   : > { %3428 = vmatprep.mubr.bf16.mxu0 %v17815_v26  ;;  %4200 = vmatprep.mubr.bf16.mxu1 %v17815_v26  ;;  %v310_v26 = vld [vmem:[%s16905_s14 + $0xd0] sm:$0xff] }
 0x149   : > { %3429 = vmatmul.mubr.bf16.gmra.mrb[56].mxu0 %v17825_v42  ;;  %4201 = vmatmul.mubr.bf16.gmra.mrb[56].mxu1 %v17825_v42  ;;  %v295_v42 = vld [vmem:[%s16905_s14 + $0x58] sm:$0xff] }
 0x14a   : > { %3438 = vmatprep.mubr.bf16.mxu0 %v17827_v54  ;;  %4210 = vmatprep.mubr.bf16.mxu1 %v17827_v54  ;;  %v303_v54 = vld [vmem:[%s16905_s14 + $0x98] sm:$0xff]  ;;  %v17849_v21 = vpack.c.bf16 %v295_v42, %v288_v37  ;;  %v17897_v37 = vpack.c.bf16 %v324_v39, %v317_v31  ;;  %v330_v39 = vld [vmem:[%s16905_s14 + $0x170] sm:$0xff] }
 0x14b   : > { %v17851_v16 = vpack.c.bf16 %v310_v26, %v303_v54  ;;  %v17868_v26 = vld [vmem:[%s22668_s1 + $0x30] sm:$0xff]  ;;  %v17873_v42 = vld [vmem:[%s22668_s1 + $0x18] sm:$0xff]  ;;  %v23026_v54 = vcombine.low %v17495_v45, %v17500_v50  ;;  %v316_v45 = vld [vmem:[%s16905_s14 + $0x100] sm:$0xff] }
 0x14c   : > { %23023 = vst [vmem:[#allocation32_spill] sm:$0xff] %v17849_v21  ;;  %23028 = vst [vmem:[#allocation35_spill] sm:$0xff] %v17897_v37 }
 0x14d   : > { %23024 = vst [vmem:[#allocation33_spill] sm:$0xff] %v17851_v16 }
 0x151   : > { %3439 = vmatmul.mubr.bf16.gmra.mrb[60].mxu0 %v17837_v36  ;;  %4211 = vmatmul.mubr.bf16.gmra.mrb[60].mxu1 %v17837_v36 }
 0x152   : > { %3481 = vmatprep.mubr.bf16.mxu0 %v17839_v8  ;;  %4253 = vmatprep.mubr.bf16.mxu1 %v17839_v8  ;;  %v17863_v8 = vld [vmem:[%s22668_s1 + $0x10] sm:$0xff] }
 0x153   : > { %v23057_v56 = vcombine.low %v17863_v8, %v17868_v26 }
 0x159   : > { %3482 = vmatmul.mubr.bf16.vlgmr.msra.gmra.mrb[0].mxu0 %v17849_v21  ;;  %4254 = vmatmul.mubr.bf16.vlgmr.msra.gmra.mrb[0].mxu1 %v17849_v21  ;;  %v17888_v21 = vld [vmem:[%s22668_s1 + $0x38] sm:$0xff] }
 0x15a   : > { %3643 = vmatpush1.bf16.msra.mxu0 %v23025_v15  ;;  %4415 = vmatpush1.bf16.msra.mxu1 %v23026_v54  ;;  %v12390_v15 = vcombine.high %v17863_v8, %v17868_v26  ;;  %v12392_v50 = vcombine.high %v17873_v42, %v17888_v21  ;;  %v17895_v54 = vpack.c.bf16 %v309_v0, %v302_v40  ;;  %v331_v40 = vld [vmem:[%s16905_s14 + $0x178] sm:$0xff]  ;;  %v338_v0 = vld [vmem:[%s16905_s14 + $0x1b0] sm:$0xff] }
 0x15b   : > { %3491 = vmatprep.mubr.bf16.mxu0 %v17851_v16  ;;  %4263 = vmatprep.mubr.bf16.mxu1 %v17851_v16  ;;  %v323_v16 = vld [vmem:[%s16905_s14 + $0x138] sm:$0xff]  ;;  %v17909_v31 = vpack.c.bf16 %v338_v0, %v331_v40  ;;  %v344_v40 = vld [vmem:[%s16905_s14 + $0x1e0] sm:$0xff]  ;;  %v658_v26 = vld [vmem:[%s22668_s1 + $0x130] sm:$0xff] }
 0x15c   : > { %23027 = vst [vmem:[#allocation34_spill] sm:$0xff] %v17895_v54  ;;  %4607 = vmatprep.subr.bf16.mxu0 %v12390_v15  ;;  %5379 = vmatprep.subr.bf16.mxu1 %v12392_v50  ;;  %v17907_v15 = vpack.c.bf16 %v323_v16, %v316_v45  ;;  %v337_v50 = vld [vmem:[%s16905_s14 + $0x1a8] sm:$0xff]  ;;  %v351_v0 = vld [vmem:[%s16905_s14 + $0x218] sm:$0xff] }
 0x15d   : > { %23030 = vst [vmem:[#allocation37_spill] sm:$0xff] %v17909_v31  ;;  %v17919_v16 = vpack.c.bf16 %v337_v50, %v330_v39  ;;  %v17931_v39 = vpack.c.bf16 %v351_v0, %v344_v40  ;;  %v365_v50 = vld [vmem:[%s16905_s14 + $0x288] sm:$0xff]  ;;  %v379_v0 = vld [vmem:[%s16905_s14 + $0x2f8] sm:$0xff] }
 0x15e   : > { %23029 = vst [vmem:[#allocation36_spill] sm:$0xff] %v17907_v15 }
 0x15f   : > { %23031 = vst [vmem:[#allocation38_spill] sm:$0xff] %v17919_v16  ;;  %23033 = vst [vmem:[#allocation40_spill] sm:$0xff] %v17931_v39 }
 0x161   : > { %3492 = vmatmul.mubr.bf16.gmra.mrb[4].mxu0 %v17895_v54  ;;  %4264 = vmatmul.mubr.bf16.gmra.mrb[4].mxu1 %v17895_v54  ;;  %v352_v54 = vld [vmem:[%s16905_s14 + $0x220] sm:$0xff] }
 0x162   : > { %3501 = vmatprep.mubr.bf16.mxu0 %v17897_v37  ;;  %4273 = vmatprep.mubr.bf16.mxu1 %v17897_v37  ;;  %v345_v37 = vld [vmem:[%s16905_s14 + $0x1e8] sm:$0xff] }
 0x163   : > { %v17921_v45 = vpack.c.bf16 %v352_v54, %v345_v37  ;;  %v358_v54 = vld [vmem:[%s16905_s14 + $0x250] sm:$0xff] }
 0x164   : > { %v17943_v40 = vpack.c.bf16 %v365_v50, %v358_v54  ;;  %v393_v50 = vld [vmem:[%s16905_s14 + $0x368] sm:$0xff] }
 0x165   : > { %23032 = vst [vmem:[#allocation39_spill] sm:$0xff] %v17921_v45 }
 0x166   : > { %23035 = vst [vmem:[#allocation42_spill] sm:$0xff] %v17943_v40 }
 0x169   : > { %3502 = vmatmul.mubr.bf16.gmra.mrb[8].mxu0 %v17907_v15  ;;  %4274 = vmatmul.mubr.bf16.gmra.mrb[8].mxu1 %v17907_v15  ;;  %v366_v15 = vld [vmem:[%s16905_s14 + $0x290] sm:$0xff] }
 0x16a   : > { %3511 = vmatprep.mubr.bf16.mxu0 %v17909_v31  ;;  %4283 = vmatprep.mubr.bf16.mxu1 %v17909_v31  ;;  %v359_v31 = vld [vmem:[%s16905_s14 + $0x258] sm:$0xff] }
 0x16b   : > { %v17933_v37 = vpack.c.bf16 %v366_v15, %v359_v31  ;;  %v372_v31 = vld [vmem:[%s16905_s14 + $0x2c0] sm:$0xff] }
 0x16c   : > { %v17955_v54 = vpack.c.bf16 %v379_v0, %v372_v31  ;;  %v407_v0 = vld [vmem:[%s16905_s14 + $0x3d8] sm:$0xff] }
 0x16d   : > { %23034 = vst [vmem:[#allocation41_spill] sm:$0xff] %v17933_v37 }
 0x16e   : > { %23037 = vst [vmem:[#allocation44_spill] sm:$0xff] %v17955_v54 }
 0x171   : > { %3512 = vmatmul.mubr.bf16.gmra.mrb[12].mxu0 %v17919_v16  ;;  %4284 = vmatmul.mubr.bf16.gmra.mrb[12].mxu1 %v17919_v16  ;;  %v380_v16 = vld [vmem:[%s16905_s14 + $0x300] sm:$0xff] }
 0x172   : > { %3521 = vmatprep.mubr.bf16.mxu0 %v17921_v45  ;;  %4293 = vmatprep.mubr.bf16.mxu1 %v17921_v45  ;;  %v373_v45 = vld [vmem:[%s16905_s14 + $0x2c8] sm:$0xff] }
 0x173   : > { %v17945_v15 = vpack.c.bf16 %v380_v16, %v373_v45  ;;  %v386_v45 = vld [vmem:[%s16905_s14 + $0x330] sm:$0xff] }
 0x174   : > { %v17967_v31 = vpack.c.bf16 %v393_v50, %v386_v45  ;;  %v421_v50 = vld [vmem:[%s16905_s14 + $0x448] sm:$0xff] }
 0x175   : > { %23036 = vst [vmem:[#allocation43_spill] sm:$0xff] %v17945_v15 }
 0x176   : > { %23039 = vst [vmem:[#allocation46_spill] sm:$0xff] %v17967_v31 }
 0x179   : > { %3522 = vmatmul.mubr.bf16.gmra.mrb[16].mxu0 %v17931_v39  ;;  %4294 = vmatmul.mubr.bf16.gmra.mrb[16].mxu1 %v17931_v39  ;;  %v394_v39 = vld [vmem:[%s16905_s14 + $0x370] sm:$0xff] }
 0x17a   : > { %3531 = vmatprep.mubr.bf16.mxu0 %v17933_v37  ;;  %4303 = vmatprep.mubr.bf16.mxu1 %v17933_v37  ;;  %v387_v37 = vld [vmem:[%s16905_s14 + $0x338] sm:$0xff] }
 0x17b   : > { %v17957_v16 = vpack.c.bf16 %v394_v39, %v387_v37  ;;  %v400_v37 = vld [vmem:[%s16905_s14 + $0x3a0] sm:$0xff] }
 0x17c   : > { %v17979_v45 = vpack.c.bf16 %v407_v0, %v400_v37  ;;  %v435_v0 = vld [vmem:[%s16905_s14 + $0x4b8] sm:$0xff] }
 0x17d   : > { %23038 = vst [vmem:[#allocation45_spill] sm:$0xff] %v17957_v16 }
 0x17e   : > { %23041 = vst [vmem:[#allocation48_spill] sm:$0xff] %v17979_v45 }
 0x181   : > { %3532 = vmatmul.mubr.bf16.gmra.mrb[20].mxu0 %v17943_v40  ;;  %4304 = vmatmul.mubr.bf16.gmra.mrb[20].mxu1 %v17943_v40  ;;  %v408_v40 = vld [vmem:[%s16905_s14 + $0x3e0] sm:$0xff] }
 0x182   : > { %3541 = vmatprep.mubr.bf16.mxu0 %v17945_v15  ;;  %4313 = vmatprep.mubr.bf16.mxu1 %v17945_v15  ;;  %v401_v15 = vld [vmem:[%s16905_s14 + $0x3a8] sm:$0xff] }
 0x183   : > { %v17969_v39 = vpack.c.bf16 %v408_v40, %v401_v15  ;;  %v414_v15 = vld [vmem:[%s16905_s14 + $0x410] sm:$0xff] }
 0x184   : > { %v17991_v37 = vpack.c.bf16 %v421_v50, %v414_v15  ;;  %v449_v50 = vld [vmem:[%s16905_s14 + $0x528] sm:$0xff] }
 0x185   : > { %23040 = vst [vmem:[#allocation47_spill] sm:$0xff] %v17969_v39 }
 0x186   : > { %23043 = vst [vmem:[#allocation50_spill] sm:$0xff] %v17991_v37 }
 0x189   : > { %3542 = vmatmul.mubr.bf16.gmra.mrb[24].mxu0 %v17955_v54  ;;  %4314 = vmatmul.mubr.bf16.gmra.mrb[24].mxu1 %v17955_v54  ;;  %v422_v54 = vld [vmem:[%s16905_s14 + $0x450] sm:$0xff] }
 0x18a   : > { %3551 = vmatprep.mubr.bf16.mxu0 %v17957_v16  ;;  %4323 = vmatprep.mubr.bf16.mxu1 %v17957_v16  ;;  %v415_v16 = vld [vmem:[%s16905_s14 + $0x418] sm:$0xff] }
 0x18b   : > { %v17981_v40 = vpack.c.bf16 %v422_v54, %v415_v16  ;;  %v428_v16 = vld [vmem:[%s16905_s14 + $0x480] sm:$0xff] }
 0x18c   : > { %v18003_v15 = vpack.c.bf16 %v435_v0, %v428_v16  ;;  %v463_v0 = vld [vmem:[%s16905_s14 + $0x598] sm:$0xff] }
 0x18d   : > { %23042 = vst [vmem:[#allocation49_spill] sm:$0xff] %v17981_v40 }
 0x18e   : > { %23045 = vst [vmem:[#allocation52_spill] sm:$0xff] %v18003_v15 }
 0x191   : > { %3552 = vmatmul.mubr.bf16.gmra.mrb[28].mxu0 %v17967_v31  ;;  %4324 = vmatmul.mubr.bf16.gmra.mrb[28].mxu1 %v17967_v31  ;;  %v436_v31 = vld [vmem:[%s16905_s14 + $0x4c0] sm:$0xff] }
 0x192   : > { %3561 = vmatprep.mubr.bf16.mxu0 %v17969_v39  ;;  %4333 = vmatprep.mubr.bf16.mxu1 %v17969_v39  ;;  %v429_v39 = vld [vmem:[%s16905_s14 + $0x488] sm:$0xff] }
 0x193   : > { %v17993_v54 = vpack.c.bf16 %v436_v31, %v429_v39  ;;  %v442_v39 = vld [vmem:[%s16905_s14 + $0x4f0] sm:$0xff] }
 0x194   : > { %v18015_v16 = vpack.c.bf16 %v449_v50, %v442_v39  ;;  %v477_v50 = vld [vmem:[%s16905_s14 + $0x608] sm:$0xff] }
 0x195   : > { %23044 = vst [vmem:[#allocation51_spill] sm:$0xff] %v17993_v54 }
 0x196   : > { %23047 = vst [vmem:[#allocation54_spill] sm:$0xff] %v18015_v16 }
 0x199   : > { %3562 = vmatmul.mubr.bf16.gmra.mrb[32].mxu0 %v17979_v45  ;;  %4334 = vmatmul.mubr.bf16.gmra.mrb[32].mxu1 %v17979_v45  ;;  %v450_v45 = vld [vmem:[%s16905_s14 + $0x530] sm:$0xff] }
 0x19a   : > { %3571 = vmatprep.mubr.bf16.mxu0 %v17981_v40  ;;  %4343 = vmatprep.mubr.bf16.mxu1 %v17981_v40  ;;  %v443_v40 = vld [vmem:[%s16905_s14 + $0x4f8] sm:$0xff] }
 0x19b   : > { %v18005_v31 = vpack.c.bf16 %v450_v45, %v443_v40  ;;  %v456_v40 = vld [vmem:[%s16905_s14 + $0x560] sm:$0xff] }
 0x19c   : > { %v18027_v39 = vpack.c.bf16 %v463_v0, %v456_v40  ;;  %v491_v0 = vld [vmem:[%s16905_s14 + $0x678] sm:$0xff] }
 0x19d   : > { %23046 = vst [vmem:[#allocation53_spill] sm:$0xff] %v18005_v31 }
 0x19e   : > { %23049 = vst [vmem:[#allocation56_spill] sm:$0xff] %v18027_v39 }
 0x1a1   : > { %3572 = vmatmul.mubr.bf16.gmra.mrb[36].mxu0 %v17991_v37  ;;  %4344 = vmatmul.mubr.bf16.gmra.mrb[36].mxu1 %v17991_v37  ;;  %v464_v37 = vld [vmem:[%s16905_s14 + $0x5a0] sm:$0xff] }
 0x1a2   : > { %3581 = vmatprep.mubr.bf16.mxu0 %v17993_v54  ;;  %4353 = vmatprep.mubr.bf16.mxu1 %v17993_v54  ;;  %v457_v54 = vld [vmem:[%s16905_s14 + $0x568] sm:$0xff] }
 0x1a3   : > { %v18017_v45 = vpack.c.bf16 %v464_v37, %v457_v54  ;;  %v470_v54 = vld [vmem:[%s16905_s14 + $0x5d0] sm:$0xff] }
 0x1a4   : > { %v18039_v40 = vpack.c.bf16 %v477_v50, %v470_v54 }
 0x1a5   : > { %23048 = vst [vmem:[#allocation55_spill] sm:$0xff] %v18017_v45 }
 0x1a6   : > { %23051 = vst [vmem:[#allocation58_spill] sm:$0xff] %v18039_v40 }
 0x1a9   : > { %3582 = vmatmul.mubr.bf16.gmra.mrb[40].mxu0 %v18003_v15  ;;  %4354 = vmatmul.mubr.bf16.gmra.mrb[40].mxu1 %v18003_v15  ;;  %v478_v15 = vld [vmem:[%s16905_s14 + $0x610] sm:$0xff] }
 0x1aa   : > { %3591 = vmatprep.mubr.bf16.mxu0 %v18005_v31  ;;  %4363 = vmatprep.mubr.bf16.mxu1 %v18005_v31  ;;  %v471_v31 = vld [vmem:[%s16905_s14 + $0x5d8] sm:$0xff] }
 0x1ab   : > { %v18029_v37 = vpack.c.bf16 %v478_v15, %v471_v31  ;;  %v484_v31 = vld [vmem:[%s16905_s14 + $0x640] sm:$0xff] }
 0x1ac   : > { %v18051_v36 = vpack.c.bf16 %v491_v0, %v484_v31  ;;  %v22761_v31 = vmov 0  }
 0x1ad   : > { %23050 = vst [vmem:[#allocation57_spill] sm:$0xff] %v18029_v37 }
 0x1ae   : > { %23053 = vst [vmem:[#allocation60_spill] sm:$0xff] %v18051_v36 }
 0x1b1   : > { %3592 = vmatmul.mubr.bf16.gmra.mrb[44].mxu0 %v18015_v16  ;;  %4364 = vmatmul.mubr.bf16.gmra.mrb[44].mxu1 %v18015_v16  ;;  %v492_v16 = vld [vmem:[%s16905_s14 + $0x680] sm:$0xff] }
 0x1b2   : > { %3601 = vmatprep.mubr.bf16.mxu0 %v18017_v45  ;;  %4373 = vmatprep.mubr.bf16.mxu1 %v18017_v45  ;;  %v485_v45 = vld [vmem:[%s16905_s14 + $0x648] sm:$0xff] }
 0x1b3   : > { %v18041_v15 = vpack.c.bf16 %v492_v16, %v485_v45  ;;  %v498_v16 = vld [vmem:[%s16905_s14 + $0x6b0] sm:$0xff]  ;;  %v505_v45 = vld [vmem:[%s16905_s14 + $0x6e8] sm:$0xff] }
 0x1b4   : > { %v18061_v50 = vpack.c.bf16 %v505_v45, %v498_v16  ;;  %v634_v16 = vld [vmem:[%s22668_s1 + $0x70] sm:$0xff]  ;;  %v631_v45 = vld [vmem:[%s22668_s1 + $0x58] sm:$0xff] }
 0x1b5   : > { %23052 = vst [vmem:[#allocation59_spill] sm:$0xff] %v18041_v15 }
 0x1b6   : > { %23055 = vst [vmem:[#allocation62_spill] sm:$0xff] %v18061_v50 }
 0x1b9   : > { %3602 = vmatmul.mubr.bf16.gmra.mrb[48].mxu0 %v18027_v39  ;;  %4374 = vmatmul.mubr.bf16.gmra.mrb[48].mxu1 %v18027_v39  ;;  %v506_v39 = vld [vmem:[%s16905_s14 + $0x6f0] sm:$0xff] }
 0x1ba   : > { %3611 = vmatprep.mubr.bf16.mxu0 %v18029_v37  ;;  %4383 = vmatprep.mubr.bf16.mxu1 %v18029_v37  ;;  %v499_v37 = vld [vmem:[%s16905_s14 + $0x6b8] sm:$0xff] }
 0x1bb   : > { %v18053_v54 = vpack.c.bf16 %v506_v39, %v499_v37  ;;  %v290_v39 = vld [vmem:[%s16905_s14 + $0x30] sm:$0xff]  ;;  %v297_v37 = vld [vmem:[%s16905_s14 + $0x68] sm:$0xff] }
 0x1bc   : > { %v18069_v0 = vpack.c.bf16 %v297_v37, %v290_v39  ;;  %v304_v39 = vld [vmem:[%s16905_s14 + $0xa0] sm:$0xff] }
 0x1bd   : > { %23054 = vst [vmem:[#allocation61_spill] sm:$0xff] %v18053_v54  ;;  %v18133_v33 = vpack.c.bf16 %v311_v11, %v304_v39  ;;  %v651_v11 = vld [vmem:[%s22668_s1 + $0xf8] sm:$0xff]  ;;  %v318_v39 = vld [vmem:[%s16905_s14 + $0x110] sm:$0xff] }
 0x1be   : > { %23056 = vst [vmem:[#allocation63_spill] sm:$0xff] %v18069_v0 }
 0x1bf   : > { %23060 = vst [vmem:[#allocation64_spill] sm:$0xff] %v18133_v33 }
 0x1c1   : > { %3612 = vmatmul.mubr.bf16.gmra.mrb[52].mxu0 %v18039_v40  ;;  %4384 = vmatmul.mubr.bf16.gmra.mrb[52].mxu1 %v18039_v40 }
 0x1c2   : > { %3621 = vmatprep.mubr.bf16.mxu0 %v18041_v15  ;;  %4393 = vmatprep.mubr.bf16.mxu1 %v18041_v15  ;;  %v639_v15 = vld [vmem:[%s22668_s1 + $0x98] sm:$0xff] }
 0x1c9   : > { %3622 = vmatmul.mubr.bf16.gmra.mrb[56].mxu0 %v18051_v36  ;;  %4394 = vmatmul.mubr.bf16.gmra.mrb[56].mxu1 %v18051_v36  ;;  %v630_v36 = vld [vmem:[%s22668_s1 + $0x50] sm:$0xff] }
 0x1ca   : > { %3631 = vmatprep.mubr.bf16.mxu0 %v18053_v54  ;;  %4403 = vmatprep.mubr.bf16.mxu1 %v18053_v54  ;;  %v12398_v37 = vcombine.high %v630_v36, %v634_v16  ;;  %v642_v54 = vld [vmem:[%s22668_s1 + $0xb0] sm:$0xff]  ;;  %v12397_v9 = vcombine.low %v630_v36, %v634_v16  ;;  %v12408_v16 = vcombine.high %v639_v15, %v643_v32 }
 0x1d1   : > { %3632 = vmatmul.mubr.bf16.gmra.mrb[60].mxu0 %v18061_v50  ;;  %4404 = vmatmul.mubr.bf16.gmra.mrb[60].mxu1 %v18061_v50  ;;  %v638_v50 = vld [vmem:[%s22668_s1 + $0x90] sm:$0xff] }
 0x1d2   : > { %3674 = vmatprep.mubr.bf16.mxu0 %v22761_v31  ;;  %4446 = vmatprep.mubr.bf16.mxu1 %v22761_v31  ;;  %v635_v31 = vld [vmem:[%s22668_s1 + $0x78] sm:$0xff]  ;;  %v12406_v8 = vcombine.high %v638_v50, %v642_v54 }
 0x1d3   : > { %v12400_v40 = vcombine.high %v631_v45, %v635_v31  ;;  %v12399_v36 = vcombine.low %v631_v45, %v635_v31  ;;  %v647_v31 = vld [vmem:[%s22668_s1 + $0xd8] sm:$0xff] }
 0x1d9   : > { %12777 = vmatmul.mubr.msk.bf16.vlgmr.msra.gmra.mrb[0].mxu0 %vm3014_vm0, %v18069_v0  ;;  %12793 = vmatmul.mubr.msk.bf16.vlgmr.msra.gmra.mrb[0].mxu1 %vm3014_vm0, %v18069_v0  ;;  %v23058_v0 = vcombine.low %v17873_v42, %v17888_v21  ;;  %v646_v21 = vld [vmem:[%s22668_s1 + $0xd0] sm:$0xff] }
 0x1da   : > { %4608 = vmatpush1.bf16.msra.mxu0 %v23057_v56  ;;  %v23059_v56 = vmov 0   ;;  %v650_v42 = vld [vmem:[%s22668_s1 + $0xf0] sm:$0xff] }
 0x1db   : > { %5380 = vmatpush1.bf16.msra.mxu1 %v23058_v0  ;;  %3684 = vmatprep.mubr.bf16.mxu0 %v23059_v56  ;;  %v12407_v0 = vcombine.low %v639_v15, %v643_v32  ;;  %v12414_v45 = vcombine.high %v646_v21, %v650_v42  ;;  %v325_v32 = vld [vmem:[%s16905_s14 + $0x148] sm:$0xff]  ;;  %v655_v15 = vld [vmem:[%s22668_s1 + $0x118] sm:$0xff] }
 0x1dc   : > { %4456 = vmatprep.mubr.bf16.mxu1 %v23059_v56  ;;  %4609 = vmatprep.subr.bf16.mxu0 %v12398_v37  ;;  %v654_v37 = vld [vmem:[%s22668_s1 + $0x110] sm:$0xff] }
 0x1dd   : > { %5381 = vmatprep.subr.bf16.mxu1 %v12400_v40  ;;  %v12405_v40 = vcombine.low %v638_v50, %v642_v54  ;;  %v659_v54 = vld [vmem:[%s22668_s1 + $0x138] sm:$0xff]  ;;  %v12413_v50 = vcombine.low %v646_v21, %v650_v42 }
 0x1de   : > { %4610 = vmatpush1.bf16.msra.mxu0 %v12397_v9  ;;  %v12416_v9 = vcombine.high %v647_v31, %v651_v11  ;;  %v663_v21 = vld [vmem:[%s22668_s1 + $0x158] sm:$0xff] }
 0x1df   : > { %5382 = vmatpush1.bf16.msra.mxu1 %v12399_v36  ;;  %4611 = vmatprep.subr.bf16.mxu0 %v12406_v8  ;;  %v12415_v36 = vcombine.low %v647_v31, %v651_v11  ;;  %v12422_v8 = vcombine.high %v654_v37, %v658_v26  ;;  %v667_v42 = vld [vmem:[%s22668_s1 + $0x178] sm:$0xff]  ;;  %v12421_v31 = vcombine.low %v654_v37, %v658_v26 }
 0x1e0   : > { %5383 = vmatprep.subr.bf16.mxu1 %v12408_v16  ;;  %v18167_v16 = vpack.c.bf16 %v325_v32, %v318_v39  ;;  %v12423_v11 = vcombine.low %v655_v15, %v659_v54  ;;  %v670_v39 = vld [vmem:[%s22668_s1 + $0x190] sm:$0xff]  ;;  %v339_v26 = vld [vmem:[%s16905_s14 + $0x1b8] sm:$0xff]  ;;  %v12429_v32 = vcombine.low %v662_v18, %v666_v43 }
 0x1e1   : > { %12778 = vmatmul.mubr.msk.bf16.gmra.mrb[4].mxu0 %vm3014_vm0, %v18133_v33  ;;  %12794 = vmatmul.mubr.msk.bf16.gmra.mrb[4].mxu1 %vm3014_vm0, %v18133_v33  ;;  %v12424_v33 = vcombine.high %v655_v15, %v659_v54  ;;  %v671_v37 = vld [vmem:[%s22668_s1 + $0x198] sm:$0xff]  ;;  %v12431_v15 = vcombine.low %v663_v21, %v667_v42 }
 0x1e2   : > { %3694 = vmatprep.mubr.bf16.mxu0 %v23059_v56  ;;  %4466 = vmatprep.mubr.bf16.mxu1 %v23059_v56  ;;  %23061 = vst [vmem:[#allocation65_spill] sm:$0xff] %v18167_v16 }
 0x1e3   : > { %4612 = vmatpush1.bf16.msra.mxu0 %v12405_v40  ;;  %5384 = vmatpush1.bf16.msra.mxu1 %v12407_v0  ;;  %v12430_v40 = vcombine.high %v662_v18, %v666_v43  ;;  %v332_v0 = vld [vmem:[%s16905_s14 + $0x180] sm:$0xff]  ;;  %v679_v43 = vld [vmem:[%s22668_s1 + $0x1d8] sm:$0xff] }
 0x1e4   : > { %4613 = vmatprep.subr.bf16.mxu0 %v12414_v45  ;;  %5385 = vmatprep.subr.bf16.mxu1 %v12416_v9  ;;  %v12432_v45 = vcombine.high %v663_v21, %v667_v42  ;;  %v674_v9 = vld [vmem:[%s22668_s1 + $0x1b0] sm:$0xff]  ;;  %v683_v18 = vld [vmem:[%s22668_s1 + $0x1f8] sm:$0xff] }
 0x1e5   : > { %v12438_v54 = vcombine.high %v670_v39, %v674_v9  ;;  %v12437_v21 = vcombine.low %v670_v39, %v674_v9  ;;  %v353_v39 = vld [vmem:[%s16905_s14 + $0x228] sm:$0xff]  ;;  %v687_v9 = vld [vmem:[%s22668_s1 + $0x218] sm:$0xff] }
 0x1e7   : > { %4614 = vmatpush1.bf16.msra.mxu0 %v12413_v50  ;;  %5386 = vmatpush1.bf16.msra.mxu1 %v12415_v36  ;;  %v18201_v50 = vpack.c.bf16 %v339_v26, %v332_v0  ;;  %v686_v0 = vld [vmem:[%s22668_s1 + $0x210] sm:$0xff]  ;;  %v691_v26 = vld [vmem:[%s22668_s1 + $0x238] sm:$0xff] }
 0x1e8   : > { %4615 = vmatprep.subr.bf16.mxu0 %v12422_v8  ;;  %5387 = vmatprep.subr.bf16.mxu1 %v12424_v33  ;;  %v675_v33 = vld [vmem:[%s22668_s1 + $0x1b8] sm:$0xff]  ;;  %v678_v8 = vld [vmem:[%s22668_s1 + $0x1d0] sm:$0xff] }
 0x1e9   : > { %12779 = vmatmul.mubr.msk.bf16.gmra.mrb[8].mxu0 %vm3014_vm0, %v18167_v16  ;;  %12795 = vmatmul.mubr.msk.bf16.gmra.mrb[8].mxu1 %vm3014_vm0, %v18167_v16  ;;  %23062 = vst [vmem:[#allocation66_spill] sm:$0xff] %v18201_v50  ;;  %v12440_v36 = vcombine.high %v671_v37, %v675_v33  ;;  %v682_v16 = vld [vmem:[%s22668_s1 + $0x1f0] sm:$0xff]  ;;  %v12439_v42 = vcombine.low %v671_v37, %v675_v33 }
 0x1ea   : > { %3704 = vmatprep.mubr.bf16.mxu0 %v23059_v56  ;;  %4476 = vmatprep.mubr.bf16.mxu1 %v23059_v56  ;;  %v12445_v37 = vcombine.low %v678_v8, %v682_v16  ;;  %v12447_v33 = vcombine.low %v679_v43, %v683_v18 }
 0x1eb   : > { %4616 = vmatpush1.bf16.msra.mxu0 %v12421_v31  ;;  %5388 = vmatpush1.bf16.msra.mxu1 %v12423_v11  ;;  %v12446_v31 = vcombine.high %v678_v8, %v682_v16  ;;  %v346_v11 = vld [vmem:[%s16905_s14 + $0x1f0] sm:$0xff]  ;;  %v695_v16 = vld [vmem:[%s22668_s1 + $0x258] sm:$0xff] }
 0x1ec   : > { %4617 = vmatprep.subr.bf16.mxu0 %v12430_v40  ;;  %5389 = vmatprep.subr.bf16.mxu1 %v12432_v45  ;;  %v12448_v40 = vcombine.high %v679_v43, %v683_v18  ;;  %v690_v45 = vld [vmem:[%s22668_s1 + $0x230] sm:$0xff]  ;;  %v699_v8 = vld [vmem:[%s22668_s1 + $0x278] sm:$0xff]  ;;  %v12455_v18 = vcombine.low %v687_v9, %v691_v26 }
 0x1ed   : > { %v12453_v43 = vcombine.low %v686_v0, %v690_v45 }
 0x1ef   : > { %4618 = vmatpush1.bf16.msra.mxu0 %v12429_v32  ;;  %5390 = vmatpush1.bf16.msra.mxu1 %v12431_v15  ;;  %v12454_v32 = vcombine.high %v686_v0, %v690_v45  ;;  %v18235_v15 = vpack.c.bf16 %v353_v39, %v346_v11  ;;  %v702_v11 = vld [vmem:[%s22668_s1 + $0x290] sm:$0xff]  ;;  %v367_v0 = vld [vmem:[%s16905_s14 + $0x298] sm:$0xff] }
 0x1f0   : > { %4619 = vmatprep.subr.bf16.mxu0 %v12438_v54  ;;  %5391 = vmatprep.subr.bf16.mxu1 %v12440_v36  ;;  %v12456_v54 = vcombine.high %v687_v9, %v691_v26  ;;  %v694_v36 = vld [vmem:[%s22668_s1 + $0x250] sm:$0xff]  ;;  %v703_v45 = vld [vmem:[%s22668_s1 + $0x298] sm:$0xff]  ;;  %v12463_v26 = vcombine.low %v695_v16, %v699_v8 }
 0x1f1   : > { %12780 = vmatmul.mubr.msk.bf16.gmra.mrb[12].mxu0 %vm3014_vm0, %v18201_v50  ;;  %12796 = vmatmul.mubr.msk.bf16.gmra.mrb[12].mxu1 %vm3014_vm0, %v18201_v50  ;;  %23063 = vst [vmem:[#allocation67_spill] sm:$0xff] %v18235_v15  ;;  %v698_v50 = vld [vmem:[%s22668_s1 + $0x270] sm:$0xff]  ;;  %v707_v39 = vld [vmem:[%s22668_s1 + $0x2b8] sm:$0xff] }
 0x1f2   : > { %3714 = vmatprep.mubr.bf16.mxu0 %v23059_v56  ;;  %4486 = vmatprep.mubr.bf16.mxu1 %v23059_v56  ;;  %v12461_v9 = vcombine.low %v694_v36, %v698_v50 }
 0x1f3   : > { %4620 = vmatpush1.bf16.msra.mxu0 %v12437_v21  ;;  %5392 = vmatpush1.bf16.msra.mxu1 %v12439_v42  ;;  %v12462_v21 = vcombine.high %v694_v36, %v698_v50  ;;  %v360_v42 = vld [vmem:[%s16905_s14 + $0x260] sm:$0xff]  ;;  %v711_v50 = vld [vmem:[%s22668_s1 + $0x2d8] sm:$0xff] }
 0x1f4   : > { %4621 = vmatprep.subr.bf16.mxu0 %v12446_v31  ;;  %5393 = vmatprep.subr.bf16.mxu1 %v12448_v40  ;;  %v12464_v31 = vcombine.high %v695_v16, %v699_v8  ;;  %v706_v40 = vld [vmem:[%s22668_s1 + $0x2b0] sm:$0xff]  ;;  %v715_v36 = vld [vmem:[%s22668_s1 + $0x2f8] sm:$0xff]  ;;  %v12471_v8 = vcombine.low %v703_v45, %v707_v39 }
 0x1f5   : > { %v12469_v16 = vcombine.low %v702_v11, %v706_v40 }
 0x1f7   : > { %4622 = vmatpush1.bf16.msra.mxu0 %v12445_v37  ;;  %5394 = vmatpush1.bf16.msra.mxu1 %v12447_v33  ;;  %v12470_v37 = vcombine.high %v702_v11, %v706_v40  ;;  %v18269_v33 = vpack.c.bf16 %v367_v0, %v360_v42  ;;  %v718_v42 = vld [vmem:[%s22668_s1 + $0x310] sm:$0xff]  ;;  %v381_v11 = vld [vmem:[%s16905_s14 + $0x308] sm:$0xff]  ;;  %v719_v40 = vld [vmem:[%s22668_s1 + $0x318] sm:$0xff] }
 0x1f8   : > { %4623 = vmatprep.subr.bf16.mxu0 %v12454_v32  ;;  %5395 = vmatprep.subr.bf16.mxu1 %v12456_v54  ;;  %v12472_v32 = vcombine.high %v703_v45, %v707_v39  ;;  %v710_v54 = vld [vmem:[%s22668_s1 + $0x2d0] sm:$0xff]  ;;  %v723_v0 = vld [vmem:[%s22668_s1 + $0x338] sm:$0xff]  ;;  %v12479_v39 = vcombine.low %v711_v50, %v715_v36 }
 0x1f9   : > { %12781 = vmatmul.mubr.msk.bf16.gmra.mrb[16].mxu0 %vm3014_vm0, %v18235_v15  ;;  %12797 = vmatmul.mubr.msk.bf16.gmra.mrb[16].mxu1 %vm3014_vm0, %v18235_v15  ;;  %23064 = vst [vmem:[#allocation68_spill] sm:$0xff] %v18269_v33  ;;  %v714_v15 = vld [vmem:[%s22668_s1 + $0x2f0] sm:$0xff] }
 0x1fa   : > { %3724 = vmatprep.mubr.bf16.mxu0 %v23059_v56  ;;  %4496 = vmatprep.mubr.bf16.mxu1 %v23059_v56  ;;  %v12477_v45 = vcombine.low %v710_v54, %v714_v15 }
 0x1fb   : > { %4624 = vmatpush1.bf16.msra.mxu0 %v12453_v43  ;;  %5396 = vmatpush1.bf16.msra.mxu1 %v12455_v18  ;;  %v12478_v43 = vcombine.high %v710_v54, %v714_v15  ;;  %v374_v18 = vld [vmem:[%s16905_s14 + $0x2d0] sm:$0xff]  ;;  %v727_v15 = vld [vmem:[%s22668_s1 + $0x358] sm:$0xff] }
 0x1fc   : > { %4625 = vmatprep.subr.bf16.mxu0 %v12462_v21  ;;  %5397 = vmatprep.subr.bf16.mxu1 %v12464_v31  ;;  %v12480_v21 = vcombine.high %v711_v50, %v715_v36  ;;  %v722_v31 = vld [vmem:[%s22668_s1 + $0x330] sm:$0xff]  ;;  %v731_v54 = vld [vmem:[%s22668_s1 + $0x378] sm:$0xff]  ;;  %v12487_v36 = vcombine.low %v719_v40, %v723_v0 }
 0x1fd   : > { %v12485_v50 = vcombine.low %v718_v42, %v722_v31 }
 0x1ff   : > { %4626 = vmatpush1.bf16.msra.mxu0 %v12461_v9  ;;  %5398 = vmatpush1.bf16.msra.mxu1 %v12463_v26  ;;  %v12486_v9 = vcombine.high %v718_v42, %v722_v31  ;;  %v18303_v26 = vpack.c.bf16 %v381_v11, %v374_v18  ;;  %v734_v18 = vld [vmem:[%s22668_s1 + $0x390] sm:$0xff]  ;;  %v395_v42 = vld [vmem:[%s16905_s14 + $0x378] sm:$0xff] }
 0x200   : > { %4627 = vmatprep.subr.bf16.mxu0 %v12470_v37  ;;  %5399 = vmatprep.subr.bf16.mxu1 %v12472_v32  ;;  %v12488_v37 = vcombine.high %v719_v40, %v723_v0  ;;  %v726_v32 = vld [vmem:[%s22668_s1 + $0x350] sm:$0xff]  ;;  %v735_v31 = vld [vmem:[%s22668_s1 + $0x398] sm:$0xff]  ;;  %v12495_v0 = vcombine.low %v727_v15, %v731_v54 }
 0x201   : > { %12782 = vmatmul.mubr.msk.bf16.gmra.mrb[20].mxu0 %vm3014_vm0, %v18269_v33  ;;  %12798 = vmatmul.mubr.msk.bf16.gmra.mrb[20].mxu1 %vm3014_vm0, %v18269_v33  ;;  %23065 = vst [vmem:[#allocation69_spill] sm:$0xff] %v18303_v26  ;;  %v730_v33 = vld [vmem:[%s22668_s1 + $0x370] sm:$0xff]  ;;  %v739_v11 = vld [vmem:[%s22668_s1 + $0x3b8] sm:$0xff] }
 0x202   : > { %3734 = vmatprep.mubr.bf16.mxu0 %v23059_v56  ;;  %4506 = vmatprep.mubr.bf16.mxu1 %v23059_v56  ;;  %v12493_v40 = vcombine.low %v726_v32, %v730_v33 }
 0x203   : > { %4628 = vmatpush1.bf16.msra.mxu0 %v12469_v16  ;;  %5400 = vmatpush1.bf16.msra.mxu1 %v12471_v8  ;;  %v12494_v16 = vcombine.high %v726_v32, %v730_v33  ;;  %v388_v8 = vld [vmem:[%s16905_s14 + $0x340] sm:$0xff]  ;;  %v743_v33 = vld [vmem:[%s22668_s1 + $0x3d8] sm:$0xff] }
 0x204   : > { %4629 = vmatprep.subr.bf16.mxu0 %v12478_v43  ;;  %5401 = vmatprep.subr.bf16.mxu1 %v12480_v21  ;;  %v12496_v43 = vcombine.high %v727_v15, %v731_v54  ;;  %v738_v21 = vld [vmem:[%s22668_s1 + $0x3b0] sm:$0xff]  ;;  %v747_v32 = vld [vmem:[%s22668_s1 + $0x3f8] sm:$0xff]  ;;  %v12503_v54 = vcombine.low %v735_v31, %v739_v11 }
 0x205   : > { %v12501_v15 = vcombine.low %v734_v18, %v738_v21 }
 0x207   : > { %4630 = vmatpush1.bf16.msra.mxu0 %v12477_v45  ;;  %5402 = vmatpush1.bf16.msra.mxu1 %v12479_v39  ;;  %v12502_v45 = vcombine.high %v734_v18, %v738_v21  ;;  %v18337_v39 = vpack.c.bf16 %v395_v42, %v388_v8  ;;  %v409_v8 = vld [vmem:[%s16905_s14 + $0x3e8] sm:$0xff]  ;;  %v12511_v18 = vcombine.low %v743_v33, %v747_v32 }
 0x208   : > { %4631 = vmatprep.subr.bf16.mxu0 %v12486_v9  ;;  %5403 = vmatprep.subr.bf16.mxu1 %v12488_v37  ;;  %v12504_v9 = vcombine.high %v735_v31, %v739_v11  ;;  %v742_v37 = vld [vmem:[%s22668_s1 + $0x3d0] sm:$0xff]  ;;  %v12518_v21 = vcombine.high %v18101_v1, %v18106_v60  ;;  %v12520_v31 = vcombine.high %v18119_v29, %v18124_v35  ;;  %v423_v11 = vld [vmem:[%s16905_s14 + $0x458] sm:$0xff] }
 0x209   : > { %12783 = vmatmul.mubr.msk.bf16.gmra.mrb[24].mxu0 %vm3014_vm0, %v18303_v26  ;;  %12799 = vmatmul.mubr.msk.bf16.gmra.mrb[24].mxu1 %vm3014_vm0, %v18303_v26  ;;  %v746_v26 = vld [vmem:[%s22668_s1 + $0x3f0] sm:$0xff] }
 0x20a   : > { %3744 = vmatprep.mubr.bf16.mxu0 %v23059_v56  ;;  %4516 = vmatprep.mubr.bf16.mxu1 %v23059_v56 }
 0x20b   : > { %4632 = vmatpush1.bf16.msra.mxu0 %v12485_v50  ;;  %5404 = vmatpush1.bf16.msra.mxu1 %v12487_v36  ;;  %v12510_v50 = vcombine.high %v742_v37, %v746_v26  ;;  %v12512_v36 = vcombine.high %v743_v33, %v747_v32  ;;  %v451_v33 = vld [vmem:[%s16905_s14 + $0x538] sm:$0xff] }
 0x20c   : > { %4633 = vmatprep.subr.bf16.mxu0 %v12494_v16  ;;  %5405 = vmatprep.subr.bf16.mxu1 %v12496_v43  ;;  %v402_v16 = vld [vmem:[%s16905_s14 + $0x3b0] sm:$0xff]  ;;  %v12509_v43 = vcombine.low %v742_v37, %v746_v26  ;;  %v416_v26 = vld [vmem:[%s16905_s14 + $0x420] sm:$0xff] }
 0x20d   : > { %v18361_v42 = vpack.c.bf16 %v409_v8, %v402_v16  ;;  %v444_v37 = vld [vmem:[%s16905_s14 + $0x500] sm:$0xff]  ;;  %v479_v16 = vld [vmem:[%s16905_s14 + $0x618] sm:$0xff] }
 0x20e   : > { %v18393_v32 = vpack.c.bf16 %v451_v33, %v444_v37  ;;  %v759_v37 = vld [vmem:[%s22668_s1 + $0x458] sm:$0xff] }
 0x20f   : > { %4634 = vmatpush1.bf16.msra.mxu0 %v12493_v40  ;;  %5406 = vmatpush1.bf16.msra.mxu1 %v12495_v0  ;;  %v18373_v40 = vpack.c.bf16 %v423_v11, %v416_v26  ;;  %v430_v0 = vld [vmem:[%s16905_s14 + $0x490] sm:$0xff]  ;;  %v507_v26 = vld [vmem:[%s16905_s14 + $0x6f8] sm:$0xff] }
 0x210   : > { %4635 = vmatprep.subr.bf16.mxu0 %v12502_v45  ;;  %5407 = vmatprep.subr.bf16.mxu1 %v12504_v9  ;;  %v437_v45 = vld [vmem:[%s16905_s14 + $0x4c8] sm:$0xff]  ;;  %v763_v33 = vld [vmem:[%s22668_s1 + $0x478] sm:$0xff] }
 0x211   : > { %12784 = vmatmul.mubr.msk.bf16.gmra.mrb[28].mxu0 %vm3014_vm0, %v18337_v39  ;;  %12800 = vmatmul.mubr.msk.bf16.gmra.mrb[28].mxu1 %vm3014_vm0, %v18337_v39  ;;  %v18383_v9 = vpack.c.bf16 %v437_v45, %v430_v0  ;;  %v758_v0 = vld [vmem:[%s22668_s1 + $0x450] sm:$0xff] }
 0x212   : > { %3754 = vmatprep.mubr.bf16.mxu0 %v23059_v56  ;;  %4526 = vmatprep.mubr.bf16.mxu1 %v23059_v56  ;;  %v762_v45 = vld [vmem:[%s22668_s1 + $0x470] sm:$0xff] }
 0x213   : > { %4636 = vmatpush1.bf16.msra.mxu0 %v12501_v15  ;;  %5408 = vmatpush1.bf16.msra.mxu1 %v12503_v54  ;;  %v458_v15 = vld [vmem:[%s16905_s14 + $0x570] sm:$0xff]  ;;  %v465_v54 = vld [vmem:[%s16905_s14 + $0x5a8] sm:$0xff] }
 0x214   : > { %4637 = vmatprep.subr.bf16.mxu0 %v12510_v50  ;;  %5409 = vmatprep.subr.bf16.mxu1 %v12512_v36  ;;  %v18403_v50 = vpack.c.bf16 %v465_v54, %v458_v15  ;;  %v472_v36 = vld [vmem:[%s16905_s14 + $0x5e0] sm:$0xff]  ;;  %v12526_v15 = vcombine.high %v758_v0, %v762_v45  ;;  %v770_v54 = vld [vmem:[%s22668_s1 + $0x4b0] sm:$0xff] }
 0x215   : > { %v18413_v8 = vpack.c.bf16 %v479_v16, %v472_v36  ;;  %v12528_v36 = vcombine.high %v759_v37, %v763_v33  ;;  %v767_v16 = vld [vmem:[%s22668_s1 + $0x498] sm:$0xff] }
 0x217   : > { %4638 = vmatpush1.bf16.msra.mxu0 %v12509_v43  ;;  %5410 = vmatpush1.bf16.msra.mxu1 %v12511_v18  ;;  %23066 = vst [vmem:[#allocation70_spill] sm:$0xff] %v18413_v8  ;;  %v486_v43 = vld [vmem:[%s16905_s14 + $0x650] sm:$0xff]  ;;  %v493_v18 = vld [vmem:[%s16905_s14 + $0x688] sm:$0xff] }
 0x218   : > { %4800 = vmatprep.subr.bf16.mxu0 %v12518_v21  ;;  %5572 = vmatprep.subr.bf16.mxu1 %v12520_v31  ;;  %v18423_v21 = vpack.c.bf16 %v493_v18, %v486_v43  ;;  %v500_v31 = vld [vmem:[%s16905_s14 + $0x6c0] sm:$0xff]  ;;  %v771_v43 = vld [vmem:[%s22668_s1 + $0x4b8] sm:$0xff]  ;;  %v23069_v18 = vcombine.low %v18101_v1, %v18106_v60  ;;  %v778_v60 = vld [vmem:[%s22668_s1 + $0x4f0] sm:$0xff]  ;;  %s13199_s14 = sshll.u32 %s16796_s28, 11  ;;  %s16732_s28 = smov [#allocation2]  }
 0x219   : > { %12785 = vmatmul.mubr.msk.bf16.gmra.mrb[32].mxu0 %vm3014_vm0, %v18361_v42  ;;  %12801 = vmatmul.mubr.msk.bf16.gmra.mrb[32].mxu1 %vm3014_vm0, %v18361_v42  ;;  %v18433_v11 = vpack.c.bf16 %v507_v26, %v500_v31  ;;  %v12525_v31 = vcombine.low %v758_v0, %v762_v45  ;;  %v23070_v26 = vcombine.low %v18119_v29, %v18124_v35  ;;  %v775_v35 = vld [vmem:[%s22668_s1 + $0x4d8] sm:$0xff]  ;;  %v782_v45 = vld [vmem:[%s22668_s1 + $0x510] sm:$0xff]  ;;  %s22619_s16 = scalar_lea.hbm %s22674_s7, %s13199_s14  ;;  %s16671_s17 = sshll.u32 %s16732_s28, 4  ;;  %s16672_s17 = int_to_ptr.vmem [resolvable:$false] %s16671_s17 }
 0x21a   : > { %3764 = vmatprep.mubr.bf16.mxu0 %v23059_v56  ;;  %4536 = vmatprep.mubr.bf16.mxu1 %v23059_v56  ;;  %23067 = vst [vmem:[#allocation71_spill] sm:$0xff] %v18423_v21  ;;  %v12535_v1 = vcombine.low %v767_v16, %v771_v43  ;;  %s16673_s20 = scalar_lea.vmem %s16672_s17, 4096  ;;  %p16674_p0 = scmp.lt.s32.totalorder %s22621_s9, %s16672_s17 }
 0x21b   : > { %23068 = vst [vmem:[#allocation72_spill] sm:$0xff] %v18433_v11  ;;  %p16675_p1 = scmp.lt.s32.totalorder %s16673_s20, %s16667_s19 }
 0x21d   : > { %p16676_p2 = por %p16675_p1, %p16674_p0 }
 0x21f   : > { %p16677_p3 = pnand %p16676_p2, %p16670_p13 }
 0x221   : > { %12786 = vmatmul.mubr.msk.bf16.gmra.mrb[36].mxu0 %vm3014_vm0, %v18373_v40  ;;  %12802 = vmatmul.mubr.msk.bf16.gmra.mrb[36].mxu1 %vm3014_vm0, %v18373_v40 }
 0x222   : > { %3774 = vmatprep.mubr.bf16.mxu0 %v23059_v56  ;;  %4546 = vmatprep.mubr.bf16.mxu1 %v23059_v56 }
 0x229   : > { %12787 = vmatmul.mubr.msk.bf16.gmra.mrb[40].mxu0 %vm3014_vm0, %v18383_v9  ;;  %12803 = vmatmul.mubr.msk.bf16.gmra.mrb[40].mxu1 %vm3014_vm0, %v18383_v9 }
 0x22a   : > { %3784 = vmatprep.mubr.bf16.mxu0 %v23059_v56  ;;  %4556 = vmatprep.mubr.bf16.mxu1 %v23059_v56 }
 0x231   : > { %12788 = vmatmul.mubr.msk.bf16.gmra.mrb[44].mxu0 %vm3014_vm0, %v18393_v32  ;;  %12804 = vmatmul.mubr.msk.bf16.gmra.mrb[44].mxu1 %vm3014_vm0, %v18393_v32 }
 0x232   : > { %3794 = vmatprep.mubr.bf16.mxu0 %v23059_v56  ;;  %4566 = vmatprep.mubr.bf16.mxu1 %v23059_v56 }
 0x239   : > { %12789 = vmatmul.mubr.msk.bf16.gmra.mrb[48].mxu0 %vm3014_vm0, %v18403_v50  ;;  %12805 = vmatmul.mubr.msk.bf16.gmra.mrb[48].mxu1 %vm3014_vm0, %v18403_v50 }
 0x23a   : > { %3804 = vmatprep.mubr.bf16.mxu0 %v23059_v56  ;;  %4576 = vmatprep.mubr.bf16.mxu1 %v23059_v56 }
 0x241   : > { %12790 = vmatmul.mubr.msk.bf16.gmra.mrb[52].mxu0 %vm3014_vm0, %v18413_v8  ;;  %12806 = vmatmul.mubr.msk.bf16.gmra.mrb[52].mxu1 %vm3014_vm0, %v18413_v8  ;;  %v12536_v8 = vcombine.high %v767_v16, %v771_v43 }
 0x242   : > { %3814 = vmatprep.mubr.bf16.mxu0 %v23059_v56  ;;  %4586 = vmatprep.mubr.bf16.mxu1 %v23059_v56 }
 0x249   : > { %12791 = vmatmul.mubr.msk.bf16.gmra.mrb[56].mxu0 %vm3014_vm0, %v18423_v21  ;;  %12807 = vmatmul.mubr.msk.bf16.gmra.mrb[56].mxu1 %vm3014_vm0, %v18423_v21 }
 0x24a   : > { %3824 = vmatprep.mubr.bf16.mxu0 %v23059_v56  ;;  %4596 = vmatprep.mubr.bf16.mxu1 %v23059_v56 }
 0x251   : > { %12792 = vmatmul.mubr.msk.bf16.gmra.mrb[60].mxu0 %vm3014_vm0, %v18433_v11  ;;  %12808 = vmatmul.mubr.msk.bf16.gmra.mrb[60].mxu1 %vm3014_vm0, %v18433_v11  ;;  %v12527_v11 = vcombine.low %v759_v37, %v763_v33  ;;  %v786_v33 = vld [vmem:[%s22668_s1 + $0x530] sm:$0xff] }
 0x252   : > { %4639 = vmatprep.mubr.bf16.mxu0 %v16921_v58  ;;  %5411 = vmatprep.mubr.bf16.mxu1 %v16921_v58  ;;  %v766_v58 = vld [vmem:[%s22668_s1 + $0x490] sm:$0xff]  ;;  %v12550_v43 = vcombine.high %v782_v45, %v786_v33 }
 0x253   : > { %v12534_v21 = vcombine.high %v766_v58, %v770_v54  ;;  %v12533_v29 = vcombine.low %v766_v58, %v770_v54  ;;  %v18515_v58 = vld [vmem:[%s22668_s1 + $0x818] sm:$0xff] }
 0x259   : > { %4640 = vmatmul.mubr.bf16.vlgmr.msra.gmra.mrb[64].mxu0 %v17043_v14  ;;  %5412 = vmatmul.mubr.bf16.vlgmr.msra.gmra.mrb[64].mxu1 %v17043_v14  ;;  %v774_v14 = vld [vmem:[%s22668_s1 + $0x4d0] sm:$0xff] }
 0x25a   : > { %4801 = vmatpush1.bf16.msra.mxu0 %v23069_v18  ;;  %5573 = vmatpush1.bf16.msra.mxu1 %v23070_v26  ;;  %v12542_v0 = vcombine.high %v774_v14, %v778_v60  ;;  %v794_v26 = vld [vmem:[%s22668_s1 + $0x570] sm:$0xff] }
 0x25b   : > { %4649 = vmatprep.mubr.bf16.mxu0 %v17063_v23  ;;  %5421 = vmatprep.mubr.bf16.mxu1 %v17063_v23  ;;  %v779_v23 = vld [vmem:[%s22668_s1 + $0x4f8] sm:$0xff] }
 0x25c   : > { %4802 = vmatprep.subr.bf16.mxu0 %v12526_v15  ;;  %5574 = vmatprep.subr.bf16.mxu1 %v12528_v36  ;;  %v12544_v37 = vcombine.high %v775_v35, %v779_v23  ;;  %v18510_v15 = vld [vmem:[%s22668_s1 + $0x830] sm:$0xff]  ;;  %v18523_v36 = vld [vmem:[%s22668_s1 + $0x838] sm:$0xff]  ;;  %v12543_v16 = vcombine.low %v775_v35, %v779_v23  ;;  %v12549_v35 = vcombine.low %v782_v45, %v786_v33 }
 0x25d   : > { %v799_v45 = vld [vmem:[%s22668_s1 + $0x598] sm:$0xff] }
 0x25e   : > { %4803 = vmatpush1.bf16.msra.mxu0 %v12525_v31  ;;  %5575 = vmatpush1.bf16.msra.mxu1 %v12527_v11  ;;  %v783_v11 = vld [vmem:[%s22668_s1 + $0x518] sm:$0xff] }
 0x25f   : > { %4804 = vmatprep.subr.bf16.mxu0 %v12534_v21  ;;  %5576 = vmatprep.subr.bf16.mxu1 %v12536_v8  ;;  %v787_v8 = vld [vmem:[%s22668_s1 + $0x538] sm:$0xff]  ;;  %v18505_v21 = vld [vmem:[%s22668_s1 + $0x810] sm:$0xff] }
 0x260   : > { %v12552_v31 = vcombine.high %v783_v11, %v787_v8  ;;  %v12551_v23 = vcombine.low %v783_v11, %v787_v8  ;;  %v803_v33 = vld [vmem:[%s22668_s1 + $0x5b8] sm:$0xff] }
 0x261   : > { %4650 = vmatmul.mubr.bf16.gmra.mrb[68].mxu0 %v17115_v46  ;;  %5422 = vmatmul.mubr.bf16.gmra.mrb[68].mxu1 %v17115_v46  ;;  %v12541_v46 = vcombine.low %v774_v14, %v778_v60  ;;  %v791_v14 = vld [vmem:[%s22668_s1 + $0x558] sm:$0xff] }
 0x262   : > { %4659 = vmatprep.mubr.bf16.mxu0 %v17117_v47  ;;  %5431 = vmatprep.mubr.bf16.mxu1 %v17117_v47  ;;  %v790_v47 = vld [vmem:[%s22668_s1 + $0x550] sm:$0xff]  ;;  %v795_v60 = vld [vmem:[%s22668_s1 + $0x578] sm:$0xff] }
 0x263   : > { %4805 = vmatpush1.bf16.msra.mxu0 %v12533_v29  ;;  %5577 = vmatpush1.bf16.msra.mxu1 %v12535_v1  ;;  %v12558_v29 = vcombine.high %v790_v47, %v794_v26  ;;  %v12560_v1 = vcombine.high %v791_v14, %v795_v60  ;;  %v12557_v11 = vcombine.low %v790_v47, %v794_v26 }
 0x264   : > { %4806 = vmatprep.subr.bf16.mxu0 %v12542_v0  ;;  %5578 = vmatprep.subr.bf16.mxu1 %v12544_v37  ;;  %v798_v0 = vld [vmem:[%s22668_s1 + $0x590] sm:$0xff]  ;;  %v12559_v8 = vcombine.low %v791_v14, %v795_v60  ;;  %v12567_v26 = vcombine.low %v799_v45, %v803_v33 }
 0x265   : > { %v802_v37 = vld [vmem:[%s22668_s1 + $0x5b0] sm:$0xff] }
 0x266   : > { %v12565_v47 = vcombine.low %v798_v0, %v802_v37 }
 0x267   : > { %4807 = vmatpush1.bf16.msra.mxu0 %v12541_v46  ;;  %5579 = vmatpush1.bf16.msra.mxu1 %v12543_v16  ;;  %v12566_v46 = vcombine.high %v798_v0, %v802_v37  ;;  %v806_v16 = vld [vmem:[%s22668_s1 + $0x5d0] sm:$0xff] }
 0x268   : > { %4808 = vmatprep.subr.bf16.mxu0 %v12550_v43  ;;  %5580 = vmatprep.subr.bf16.mxu1 %v12552_v31  ;;  %v810_v43 = vld [vmem:[%s22668_s1 + $0x5f0] sm:$0xff]  ;;  %v811_v31 = vld [vmem:[%s22668_s1 + $0x5f8] sm:$0xff] }
 0x269   : > { %4660 = vmatmul.mubr.bf16.gmra.mrb[72].mxu0 %v17151_v4  ;;  %5432 = vmatmul.mubr.bf16.gmra.mrb[72].mxu1 %v17151_v4  ;;  %v12568_v4 = vcombine.high %v799_v45, %v803_v33  ;;  %v12574_v14 = vcombine.high %v806_v16, %v810_v43  ;;  %v12573_v0 = vcombine.low %v806_v16, %v810_v43  ;;  %v822_v33 = vld [vmem:[%s22668_s1 + $0x650] sm:$0xff] }
 0x26a   : > { %4669 = vmatprep.mubr.bf16.mxu0 %v17153_v6  ;;  %5441 = vmatprep.mubr.bf16.mxu1 %v17153_v6  ;;  %v807_v6 = vld [vmem:[%s22668_s1 + $0x5d8] sm:$0xff] }
 0x26b   : > { %4809 = vmatpush1.bf16.msra.mxu0 %v12549_v35  ;;  %5581 = vmatpush1.bf16.msra.mxu1 %v12551_v23  ;;  %v12576_v60 = vcombine.high %v807_v6, %v811_v31  ;;  %v814_v35 = vld [vmem:[%s22668_s1 + $0x610] sm:$0xff]  ;;  %v12575_v37 = vcombine.low %v807_v6, %v811_v31 }
 0x26c   : > { %4810 = vmatprep.subr.bf16.mxu0 %v12558_v29  ;;  %5582 = vmatprep.subr.bf16.mxu1 %v12560_v1  ;;  %v818_v23 = vld [vmem:[%s22668_s1 + $0x630] sm:$0xff]  ;;  %v815_v29 = vld [vmem:[%s22668_s1 + $0x618] sm:$0xff] }
 0x26d   : > { %v819_v1 = vld [vmem:[%s22668_s1 + $0x638] sm:$0xff]  ;;  %v12582_v45 = vcombine.high %v814_v35, %v818_v23  ;;  %v830_v6 = vld [vmem:[%s22668_s1 + $0x690] sm:$0xff] }
 0x26e   : > { %v834_v31 = vld [vmem:[%s22668_s1 + $0x6b0] sm:$0xff] }
 0x26f   : > { %4811 = vmatpush1.bf16.msra.mxu0 %v12557_v11  ;;  %5583 = vmatpush1.bf16.msra.mxu1 %v12559_v8  ;;  %v826_v11 = vld [vmem:[%s22668_s1 + $0x670] sm:$0xff]  ;;  %v827_v8 = vld [vmem:[%s22668_s1 + $0x678] sm:$0xff] }
 0x270   : > { %4812 = vmatprep.subr.bf16.mxu0 %v12566_v46  ;;  %5584 = vmatprep.subr.bf16.mxu1 %v12568_v4  ;;  %v12581_v46 = vcombine.low %v814_v35, %v818_v23  ;;  %v12583_v4 = vcombine.low %v815_v29, %v819_v1  ;;  %v12590_v16 = vcombine.high %v822_v33, %v826_v11  ;;  %v838_v23 = vld [vmem:[%s22668_s1 + $0x6d0] sm:$0xff] }
 0x271   : > { %4670 = vmatmul.mubr.bf16.gmra.mrb[76].mxu0 %v17187_v28  ;;  %5442 = vmatmul.mubr.bf16.gmra.mrb[76].mxu1 %v17187_v28  ;;  %v12584_v28 = vcombine.high %v815_v29, %v819_v1  ;;  %v12598_v35 = vcombine.high %v830_v6, %v834_v31  ;;  %v842_v29 = vld [vmem:[%s22668_s1 + $0x6f0] sm:$0xff]  ;;  %v843_v1 = vld [vmem:[%s22668_s1 + $0x6f8] sm:$0xff] }
 0x272   : > { %4679 = vmatprep.mubr.bf16.mxu0 %v17189_v30  ;;  %5451 = vmatprep.mubr.bf16.mxu1 %v17189_v30  ;;  %v823_v30 = vld [vmem:[%s22668_s1 + $0x658] sm:$0xff] }
 0x273   : > { %4813 = vmatpush1.bf16.msra.mxu0 %v12565_v47  ;;  %5585 = vmatpush1.bf16.msra.mxu1 %v12567_v26  ;;  %v12592_v43 = vcombine.high %v823_v30, %v827_v8  ;;  %v831_v47 = vld [vmem:[%s22668_s1 + $0x698] sm:$0xff] }
 0x274   : > { %4814 = vmatprep.subr.bf16.mxu0 %v12574_v14  ;;  %5586 = vmatprep.subr.bf16.mxu1 %v12576_v60  ;;  %v835_v26 = vld [vmem:[%s22668_s1 + $0x6b8] sm:$0xff]  ;;  %v12589_v14 = vcombine.low %v822_v33, %v826_v11  ;;  %v12591_v60 = vcombine.low %v823_v30, %v827_v8  ;;  %v846_v33 = vld [vmem:[%s22668_s1 + $0x710] sm:$0xff] }
 0x275   : > { %v850_v11 = vld [vmem:[%s22668_s1 + $0x730] sm:$0xff]  ;;  %v847_v30 = vld [vmem:[%s22668_s1 + $0x718] sm:$0xff] }
 0x276   : > { %v851_v8 = vld [vmem:[%s22668_s1 + $0x738] sm:$0xff] }
 0x277   : > { %4815 = vmatpush1.bf16.msra.mxu0 %v12573_v0  ;;  %5587 = vmatpush1.bf16.msra.mxu1 %v12575_v37  ;;  %v12597_v0 = vcombine.low %v830_v6, %v834_v31  ;;  %v12599_v37 = vcombine.low %v831_v47, %v835_v26  ;;  %v858_v6 = vld [vmem:[%s22668_s1 + $0x770] sm:$0xff]  ;;  %v859_v31 = vld [vmem:[%s22668_s1 + $0x778] sm:$0xff] }
 0x278   : > { %4816 = vmatprep.subr.bf16.mxu0 %v12582_v45  ;;  %5588 = vmatprep.subr.bf16.mxu1 %v12584_v28  ;;  %v12606_v45 = vcombine.high %v838_v23, %v842_v29 }
 0x279   : > { %4680 = vmatmul.mubr.bf16.gmra.mrb[80].mxu0 %v17223_v59  ;;  %5452 = vmatmul.mubr.bf16.gmra.mrb[80].mxu1 %v17223_v59  ;;  %v12600_v59 = vcombine.high %v831_v47, %v835_v26  ;;  %v12613_v47 = vcombine.low %v846_v33, %v850_v11  ;;  %v12615_v26 = vcombine.low %v847_v30, %v851_v8 }
 0x27a   : > { %4689 = vmatprep.mubr.bf16.mxu0 %v17225_v61  ;;  %5461 = vmatprep.mubr.bf16.mxu1 %v17225_v61  ;;  %v839_v61 = vld [vmem:[%s22668_s1 + $0x6d8] sm:$0xff] }
 0x27b   : > { %4817 = vmatpush1.bf16.msra.mxu0 %v12581_v46  ;;  %5589 = vmatpush1.bf16.msra.mxu1 %v12583_v4  ;;  %v12608_v28 = vcombine.high %v839_v61, %v843_v1  ;;  %v12605_v46 = vcombine.low %v838_v23, %v842_v29  ;;  %v12607_v4 = vcombine.low %v839_v61, %v843_v1  ;;  %v863_v23 = vld [vmem:[%s22668_s1 + $0x798] sm:$0xff] }
 0x27c   : > { %4818 = vmatprep.subr.bf16.mxu0 %v12590_v16  ;;  %5590 = vmatprep.subr.bf16.mxu1 %v12592_v43  ;;  %v12614_v16 = vcombine.high %v846_v33, %v850_v11  ;;  %v854_v43 = vld [vmem:[%s22668_s1 + $0x750] sm:$0xff]  ;;  %v867_v29 = vld [vmem:[%s22668_s1 + $0x7b8] sm:$0xff] }
 0x27d   : > { %v12621_v61 = vcombine.low %v854_v43, %v858_v6  ;;  %v12631_v11 = vcombine.low %v863_v23, %v867_v29 }
 0x27f   : > { %4819 = vmatpush1.bf16.msra.mxu0 %v12589_v14  ;;  %5591 = vmatpush1.bf16.msra.mxu1 %v12591_v60  ;;  %v12622_v14 = vcombine.high %v854_v43, %v858_v6 }
 0x280   : > { %4820 = vmatprep.subr.bf16.mxu0 %v12598_v35  ;;  %5592 = vmatprep.subr.bf16.mxu1 %v12600_v59  ;;  %v862_v35 = vld [vmem:[%s22668_s1 + $0x790] sm:$0xff] }
 0x281   : > { %4690 = vmatmul.mubr.bf16.gmra.mrb[84].mxu0 %v17259_v20  ;;  %5462 = vmatmul.mubr.bf16.gmra.mrb[84].mxu1 %v17259_v20  ;;  %v12616_v20 = vcombine.high %v847_v30, %v851_v8  ;;  %v866_v59 = vld [vmem:[%s22668_s1 + $0x7b0] sm:$0xff] }
 0x282   : > { %4699 = vmatprep.mubr.bf16.mxu0 %v17261_v22  ;;  %5471 = vmatprep.mubr.bf16.mxu1 %v17261_v22  ;;  %v855_v22 = vld [vmem:[%s22668_s1 + $0x758] sm:$0xff]  ;;  %v12629_v33 = vcombine.low %v862_v35, %v866_v59 }
 0x283   : > { %4821 = vmatpush1.bf16.msra.mxu0 %v12597_v0  ;;  %5593 = vmatpush1.bf16.msra.mxu1 %v12599_v37  ;;  %v12624_v60 = vcombine.high %v855_v22, %v859_v31  ;;  %v12623_v1 = vcombine.low %v855_v22, %v859_v31  ;;  %v12630_v0 = vcombine.high %v862_v35, %v866_v59  ;;  %v870_v37 = vld [vmem:[%s22668_s1 + $0x7d0] sm:$0xff] }
 0x284   : > { %4822 = vmatprep.subr.bf16.mxu0 %v12606_v45  ;;  %5594 = vmatprep.subr.bf16.mxu1 %v12608_v28  ;;  %v874_v45 = vld [vmem:[%s22668_s1 + $0x7f0] sm:$0xff]  ;;  %v875_v28 = vld [vmem:[%s22668_s1 + $0x7f8] sm:$0xff] }
 0x285   : > { %v12638_v30 = vcombine.high %v870_v37, %v874_v45 }
 0x287   : > { %4823 = vmatpush1.bf16.msra.mxu0 %v12605_v46  ;;  %5595 = vmatpush1.bf16.msra.mxu1 %v12607_v4  ;;  %v12637_v46 = vcombine.low %v870_v37, %v874_v45 }
 0x288   : > { %4824 = vmatprep.subr.bf16.mxu0 %v12614_v16  ;;  %5596 = vmatprep.subr.bf16.mxu1 %v12616_v20  ;;  %v12646_v16 = vcombine.high %v18505_v21, %v18510_v15  ;;  %v12648_v20 = vcombine.high %v18515_v58, %v18523_v36 }
 0x289   : > { %4700 = vmatmul.mubr.bf16.gmra.mrb[88].mxu0 %v17295_v53  ;;  %5472 = vmatmul.mubr.bf16.gmra.mrb[88].mxu1 %v17295_v53  ;;  %v12632_v53 = vcombine.high %v863_v23, %v867_v29 }
 0x28a   : > { %4709 = vmatprep.mubr.bf16.mxu0 %v17297_v55  ;;  %5481 = vmatprep.mubr.bf16.mxu1 %v17297_v55  ;;  %v871_v55 = vld [vmem:[%s22668_s1 + $0x7d8] sm:$0xff] }
 0x28b   : > { %4825 = vmatpush1.bf16.msra.mxu0 %v12613_v47  ;;  %5597 = vmatpush1.bf16.msra.mxu1 %v12615_v26  ;;  %v12640_v8 = vcombine.high %v871_v55, %v875_v28  ;;  %v12639_v4 = vcombine.low %v871_v55, %v875_v28 }
 0x28c   : > { %4826 = vmatprep.subr.bf16.mxu0 %v12622_v14  ;;  %5598 = vmatprep.subr.bf16.mxu1 %v12624_v60 }
 0x28f   : > { %4827 = vmatpush1.bf16.msra.mxu0 %v12621_v61  ;;  %5599 = vmatpush1.bf16.msra.mxu1 %v12623_v1 }
 0x290   : > { %4828 = vmatprep.subr.bf16.mxu0 %v12630_v0  ;;  %5600 = vmatprep.subr.bf16.mxu1 %v12632_v53 }
 0x291   : > { %4710 = vmatmul.mubr.bf16.gmra.mrb[92].mxu0 %v17331_v17  ;;  %5482 = vmatmul.mubr.bf16.gmra.mrb[92].mxu1 %v17331_v17  ;;  %v1014_v17 = vlaneseq }
 0x292   : > { %4719 = vmatprep.mubr.bf16.mxu0 %v17333_v19  ;;  %5491 = vmatprep.mubr.bf16.mxu1 %v17333_v19 }
 0x293   : > { %4829 = vmatpush1.bf16.msra.mxu0 %v12629_v33  ;;  %5601 = vmatpush1.bf16.msra.mxu1 %v12631_v11  ;;  %v18695_v19 = vshrl.u32 %v1014_v17, 7 }
 0x294   : > { %4830 = vmatprep.subr.bf16.mxu0 %v12638_v30  ;;  %5602 = vmatprep.subr.bf16.mxu1 %v12640_v8 }
 0x295   : > { %23071 = vst [vmem:[#allocation73_spill] sm:$0xff] %v18695_v19  ;;  %v22816_v43 = vsub.s32 0, %v18695_v19  ;;  %v22815_v6 = vsub.s32 2, %v18695_v19 }
 0x297   : > { %4831 = vmatpush1.bf16.msra.mxu0 %v12637_v46  ;;  %5603 = vmatpush1.bf16.msra.mxu1 %v12639_v4 }
 0x298   : > { %4993 = vmatprep.subr.bf16.mxu0 %v12646_v16  ;;  %5765 = vmatprep.subr.bf16.mxu1 %v12648_v20 }
 0x299   : > { %4720 = vmatmul.mubr.bf16.gmra.mrb[96].mxu0 %v17345_v41  ;;  %5492 = vmatmul.mubr.bf16.gmra.mrb[96].mxu1 %v17345_v41  ;;  %v1012_v41 = vld [vmem:[%s22669_s2] sm:$0xff] }
 0x29a   : > { %4729 = vmatprep.mubr.bf16.mxu0 %v17349_v44  ;;  %5501 = vmatprep.mubr.bf16.mxu1 %v17349_v44  ;;  %v22814_v44 = vsub.s32 1, %v18695_v19  ;;  %v18714_v31 = vrot.slane %v1012_v41, %v22815_v6 }
 0x29c   : > { %v18718_v47 = vrot.slane %v1012_v41, %v22814_v44 }
 0x2a1   : > { %4730 = vmatmul.mubr.bf16.gmra.mrb[100].mxu0 %v17359_v51  ;;  %5502 = vmatmul.mubr.bf16.gmra.mrb[100].mxu1 %v17359_v51  ;;  %v22813_v51 = vsub.s32 3, %v18695_v19 }
 0x2a2   : > { %4739 = vmatprep.mubr.bf16.mxu0 %v17361_v52  ;;  %5511 = vmatprep.mubr.bf16.mxu1 %v17361_v52  ;;  %v18709_v52 = vrot.slane %v1012_v41, %v22816_v43 }
 0x2a9   : > { %4740 = vmatmul.mubr.bf16.gmra.mrb[104].mxu0 %v17371_v62  ;;  %5512 = vmatmul.mubr.bf16.gmra.mrb[104].mxu1 %v17371_v62  ;;  %v18722_v62 = vrot.slane %v1012_v41, %v22813_v51 }
 0x2aa   : > { %4749 = vmatprep.mubr.bf16.mxu0 %v17373_v63  ;;  %5521 = vmatprep.mubr.bf16.mxu1 %v17373_v63 }
 0x2ac   : > { %v3676_v22 = vpop.f32.mrb[0].mxu0  ;;  %v4448_v26 = vpop.f32.mrb[0].mxu1 }
 0x2ad   : > { %v3678_v14 = vpop.f32.mrb[1].mxu0  ;;  %v4450_v60 = vpop.f32.mrb[1].mxu1  ;;  %v18725_v59 = vadd.f32 %v3676_v22, %v18709_v52  ;;  %v18731_v61 = vadd.f32 %v4448_v26, %v18714_v31 }
 0x2ae   : > { %v3680_v35 = vpop.f32.mrb[2].mxu0  ;;  %v4452_v23 = vpop.f32.mrb[2].mxu1  ;;  %v18734_v1 = vadd.f32 %v3678_v14, %v18718_v47  ;;  %v18743_v45 = vadd.f32 %v4450_v60, %v18722_v62 }
 0x2af   : > { %v18728_v63 = vadd.f32 %v3680_v35, %v18709_v52  ;;  %v3682_v29 = vpop.f32.mrb[3].mxu0  ;;  %23072 = vst [vmem:[#allocation74_spill] sm:$0xff] %v18731_v61  ;;  %v18737_v0 = vadd.f32 %v4452_v23, %v18714_v31  ;;  %v4454_v37 = vpop.f32.mrb[3].mxu1 }
 0x2b0   : > { %v18740_v53 = vadd.f32 %v3682_v29, %v18718_v47  ;;  %23074 = vst [vmem:[#allocation76_spill] sm:$0xff] %v18743_v45  ;;  %v18748_v28 = vadd.f32 %v4454_v37, %v18722_v62  ;;  %v18966_v45 = vld [vmem:[%s22668_s1 + $0xc10] sm:$0xff] }
 0x2b1   : > { %23073 = vst [vmem:[#allocation75_spill] sm:$0xff] %v18737_v0  ;;  %4750 = vmatmul.mubr.bf16.gmra.mrb[108].mxu0 %v17383_v5  ;;  %5522 = vmatmul.mubr.bf16.gmra.mrb[108].mxu1 %v17383_v5  ;;  %v18986_v0 = vld [vmem:[%s22668_s1 + $0xc18] sm:$0xff] }
 0x2b2   : > { %23075 = vst [vmem:[#allocation77_spill] sm:$0xff] %v18748_v28  ;;  %4759 = vmatprep.mubr.bf16.mxu0 %v17385_v7  ;;  %5531 = vmatprep.mubr.bf16.mxu1 %v17385_v7  ;;  %v23099_v28 = vcombine.low %v18505_v21, %v18510_v15  ;;  %v23100_v21 = vcombine.low %v18515_v58, %v18523_v36  ;;  %v19012_v58 = vld [vmem:[%s22668_s1 + $0x8f0] sm:$0xff]  ;;  %v907_v36 = vld [vmem:[%s22668_s1 + $0x8f8] sm:$0xff] }
 0x2b4   : > { %v3686_v8 = vpop.f32.mrb[4].mxu0  ;;  %v4458_v46 = vpop.f32.mrb[4].mxu1 }
 0x2b5   : > { %v3688_v4 = vpop.f32.mrb[5].mxu0  ;;  %v4460_v16 = vpop.f32.mrb[5].mxu1  ;;  %v18761_v17 = vadd.f32 %v3686_v8, %v18709_v52  ;;  %v18767_v26 = vadd.f32 %v4458_v46, %v18714_v31 }
 0x2b6   : > { %v3690_v20 = vpop.f32.mrb[6].mxu0  ;;  %v4462_v22 = vpop.f32.mrb[6].mxu1  ;;  %v18770_v14 = vadd.f32 %v3688_v4, %v18718_v47  ;;  %v18779_v23 = vadd.f32 %v4460_v16, %v18722_v62 }
 0x2b7   : > { %v18764_v41 = vadd.f32 %v3690_v20, %v18709_v52  ;;  %v3692_v5 = vpop.f32.mrb[7].mxu0  ;;  %23076 = vst [vmem:[#allocation78_spill] sm:$0xff] %v18767_v26  ;;  %v18773_v7 = vadd.f32 %v4462_v22, %v18714_v31  ;;  %v4464_v35 = vpop.f32.mrb[7].mxu1 }
 0x2b8   : > { %v18776_v60 = vadd.f32 %v3692_v5, %v18718_v47  ;;  %23078 = vst [vmem:[#allocation80_spill] sm:$0xff] %v18779_v23  ;;  %v18784_v37 = vadd.f32 %v4464_v35, %v18722_v62 }
 0x2b9   : > { %23077 = vst [vmem:[#allocation79_spill] sm:$0xff] %v18773_v7  ;;  %4760 = vmatmul.mubr.bf16.gmra.mrb[112].mxu0 %v17395_v12  ;;  %5532 = vmatmul.mubr.bf16.gmra.mrb[112].mxu1 %v17395_v12  ;;  %v18961_v7 = vld [vmem:[%s22668_s1 + $0x8b8] sm:$0xff] }
 0x2ba   : > { %23079 = vst [vmem:[#allocation81_spill] sm:$0xff] %v18784_v37  ;;  %4769 = vmatprep.mubr.bf16.mxu0 %v17397_v13  ;;  %5541 = vmatprep.mubr.bf16.mxu1 %v17397_v13 }
 0x2bc   : > { %v3696_v16 = vpop.f32.mrb[8].mxu0  ;;  %v4468_v20 = vpop.f32.mrb[8].mxu1 }
 0x2bd   : > { %v3698_v22 = vpop.f32.mrb[9].mxu0  ;;  %v4470_v5 = vpop.f32.mrb[9].mxu1  ;;  %v18797_v51 = vadd.f32 %v3696_v16, %v18709_v52  ;;  %v18803_v43 = vadd.f32 %v4468_v20, %v18714_v31 }
 0x2be   : > { %v3700_v35 = vpop.f32.mrb[10].mxu0  ;;  %v4472_v6 = vpop.f32.mrb[10].mxu1  ;;  %v18806_v4 = vadd.f32 %v3698_v22, %v18718_v47  ;;  %v18815_v16 = vadd.f32 %v4470_v5, %v18722_v62 }
 0x2bf   : > { %v18800_v44 = vadd.f32 %v3700_v35, %v18709_v52  ;;  %v3702_v12 = vpop.f32.mrb[11].mxu0  ;;  %23080 = vst [vmem:[#allocation82_spill] sm:$0xff] %v18803_v43  ;;  %v18809_v13 = vadd.f32 %v4472_v6, %v18714_v31  ;;  %v4474_v30 = vpop.f32.mrb[11].mxu1 }
 0x2c0   : > { %v18812_v8 = vadd.f32 %v3702_v12, %v18718_v47  ;;  %23082 = vst [vmem:[#allocation84_spill] sm:$0xff] %v18815_v16  ;;  %v18820_v33 = vadd.f32 %v4474_v30, %v18722_v62 }
 0x2c1   : > { %23081 = vst [vmem:[#allocation83_spill] sm:$0xff] %v18809_v13  ;;  %4770 = vmatmul.mubr.bf16.gmra.mrb[116].mxu0 %v17407_v24  ;;  %5542 = vmatmul.mubr.bf16.gmra.mrb[116].mxu1 %v17407_v24 }
 0x2c2   : > { %23083 = vst [vmem:[#allocation85_spill] sm:$0xff] %v18820_v33  ;;  %4779 = vmatprep.mubr.bf16.mxu0 %v17409_v25  ;;  %5551 = vmatprep.mubr.bf16.mxu1 %v17409_v25 }
 0x2c4   : > { %v3706_v5 = vpop.f32.mrb[12].mxu0  ;;  %v4478_v30 = vpop.f32.mrb[12].mxu1 }
 0x2c5   : > { %v3708_v12 = vpop.f32.mrb[13].mxu0  ;;  %v4480_v35 = vpop.f32.mrb[13].mxu1  ;;  %v18833_v29 = vadd.f32 %v3706_v5, %v18709_v52  ;;  %v18836_v6 = vadd.f32 %v4478_v30, %v18714_v31 }
 0x2c6   : > { %v3710_v20 = vpop.f32.mrb[14].mxu0  ;;  %v4482_v46 = vpop.f32.mrb[14].mxu1  ;;  %v18839_v24 = vadd.f32 %v3708_v12, %v18718_v47  ;;  %v18849_v5 = vadd.f32 %v4480_v35, %v18722_v62 }
 0x2c7   : > { %23084 = vst [vmem:[#allocation86_spill] sm:$0xff] %v18836_v6  ;;  %v18842_v55 = vadd.f32 %v3710_v20, %v18709_v52  ;;  %v18845_v25 = vadd.f32 %v4482_v46, %v18714_v31  ;;  %v3712_v22 = vpop.f32.mrb[15].mxu0  ;;  %v4484_v11 = vpop.f32.mrb[15].mxu1 }
 0x2c8   : > { %23086 = vst [vmem:[#allocation88_spill] sm:$0xff] %v18849_v5  ;;  %v18852_v18 = vadd.f32 %v3712_v22, %v18718_v47  ;;  %v18855_v30 = vadd.f32 %v4484_v11, %v18722_v62 }
 0x2c9   : > { %23085 = vst [vmem:[#allocation87_spill] sm:$0xff] %v18845_v25  ;;  %4780 = vmatmul.mubr.bf16.gmra.mrb[120].mxu0 %v17419_v34  ;;  %5552 = vmatmul.mubr.bf16.gmra.mrb[120].mxu1 %v17419_v34 }
 0x2ca   : > { %23087 = vst [vmem:[#allocation89_spill] sm:$0xff] %v18855_v30  ;;  %4789 = vmatprep.mubr.bf16.mxu0 %v17421_v38  ;;  %5561 = vmatprep.mubr.bf16.mxu1 %v17421_v38 }
 0x2cc   : > { %v3716_v11 = vpop.f32.mrb[16].mxu0  ;;  %v4488_v12 = vpop.f32.mrb[16].mxu1 }
 0x2cd   : > { %v3718_v54 = vpop.f32.mrb[17].mxu0  ;;  %v4490_v34 = vpop.f32.mrb[17].mxu1  ;;  %v18869_v46 = vadd.f32 %v3716_v11, %v18709_v52  ;;  %v18872_v20 = vadd.f32 %v4488_v12, %v18714_v31  ;;  %v886_v12 = vld [vmem:[%s22668_s1 + $0x850] sm:$0xff] }
 0x2ce   : > { %v3720_v19 = vpop.f32.mrb[18].mxu0  ;;  %v4492_v16 = vpop.f32.mrb[18].mxu1  ;;  %v18881_v5 = vadd.f32 %v3718_v54, %v18718_v47  ;;  %v18884_v30 = vadd.f32 %v4490_v34, %v18722_v62  ;;  %v890_v34 = vld [vmem:[%s22668_s1 + $0x870] sm:$0xff]  ;;  %v887_v54 = vld [vmem:[%s22668_s1 + $0x858] sm:$0xff] }
 0x2cf   : > { %v3722_v33 = vpop.f32.mrb[19].mxu0  ;;  %23088 = vst [vmem:[#allocation90_spill] sm:$0xff] %v18872_v20  ;;  %v18875_v38 = vadd.f32 %v3720_v19, %v18709_v52  ;;  %v18878_v35 = vadd.f32 %v4492_v16, %v18714_v31  ;;  %v4494_v22 = vpop.f32.mrb[19].mxu1  ;;  %v12653_v25 = vcombine.low %v886_v12, %v890_v34  ;;  %v12654_v43 = vcombine.high %v886_v12, %v890_v34  ;;  %v18942_v12 = vld [vmem:[%s22668_s1 + $0x8b0] sm:$0xff] }
 0x2d0   : > { %23090 = vst [vmem:[#allocation92_spill] sm:$0xff] %v18884_v30  ;;  %v18887_v6 = vadd.f32 %v3722_v33, %v18718_v47  ;;  %v18890_v11 = vadd.f32 %v4494_v22, %v18722_v62 }
 0x2d1   : > { %23089 = vst [vmem:[#allocation91_spill] sm:$0xff] %v18878_v35  ;;  %4790 = vmatmul.mubr.bf16.gmra.mrb[124].mxu0 %v17431_v48  ;;  %5562 = vmatmul.mubr.bf16.gmra.mrb[124].mxu1 %v17431_v48 }
 0x2d2   : > { %23091 = vst [vmem:[#allocation93_spill] sm:$0xff] %v18890_v11  ;;  %4832 = vmatprep.mubr.bf16.mxu0 %v17433_v49  ;;  %5604 = vmatprep.mubr.bf16.mxu1 %v17433_v49  ;;  %v891_v49 = vld [vmem:[%s22668_s1 + $0x878] sm:$0xff] }
 0x2d3   : > { %v12655_v15 = vcombine.low %v887_v54, %v891_v49 }
 0x2d4   : > { %v3726_v22 = vpop.f32.mrb[20].mxu0  ;;  %v4498_v48 = vpop.f32.mrb[20].mxu1 }
 0x2d5   : > { %v3728_v16 = vpop.f32.mrb[21].mxu0  ;;  %v4500_v19 = vpop.f32.mrb[21].mxu1  ;;  %v18917_v33 = vadd.f32 %v3726_v22, %v18709_v52  ;;  %v18923_v13 = vadd.f32 %v4498_v48, %v18714_v31  ;;  %v12656_v48 = vcombine.high %v887_v54, %v891_v49 }
 0x2d6   : > { %v3730_v20 = vpop.f32.mrb[22].mxu0  ;;  %v4502_v11 = vpop.f32.mrb[22].mxu1  ;;  %v18926_v23 = vadd.f32 %v3728_v16, %v18718_v47  ;;  %v18947_v16 = vld [vmem:[%s22668_s1 + $0x898] sm:$0xff] }
 0x2d7   : > { %23092 = vst [vmem:[#allocation94_spill] sm:$0xff] %v18917_v33  ;;  %v18920_v30 = vadd.f32 %v3730_v20, %v18709_v52  ;;  %v3732_v35 = vpop.f32.mrb[23].mxu0  ;;  %23094 = vst [vmem:[#allocation96_spill] sm:$0xff] %v18923_v13  ;;  %v18929_v37 = vadd.f32 %v4502_v11, %v18714_v31  ;;  %v4504_v22 = vpop.f32.mrb[23].mxu1  ;;  %v18937_v20 = vld [vmem:[%s22668_s1 + $0x890] sm:$0xff]  ;;  %v18950_v11 = vadd.f32 %v4500_v19, %v18722_v62 }
 0x2d8   : > { %23095 = vst [vmem:[#allocation97_spill] sm:$0xff] %v18926_v23  ;;  %v18932_v26 = vadd.f32 %v3732_v35, %v18718_v47  ;;  %v18955_v34 = vadd.f32 %v4504_v22, %v18722_v62  ;;  %v18971_v19 = vld [vmem:[%s22668_s1 + $0xc30] sm:$0xff]  ;;  %v18991_v22 = vld [vmem:[%s22668_s1 + $0xc38] sm:$0xff]  ;;  %v12664_v61 = vcombine.high %v18947_v16, %v18961_v7 }
 0x2d9   : > { %23093 = vst [vmem:[#allocation95_spill] sm:$0xff] %v18920_v30  ;;  %23096 = vst [vmem:[#allocation98_spill] sm:$0xff] %v18929_v37  ;;  %4833 = vmatmul.mubr.bf16.vlgmr.msra.gmra.mrb[64].mxu0 %v17455_v3  ;;  %5605 = vmatmul.mubr.bf16.vlgmr.msra.gmra.mrb[64].mxu1 %v17455_v3  ;;  %v19007_v3 = vld [vmem:[%s22668_s1 + $0x8d0] sm:$0xff] }
 0x2da   : > { %23097 = vst [vmem:[#allocation99_spill] sm:$0xff] %v18950_v11  ;;  %23098 = vst [vmem:[#allocation100_spill] sm:$0xff] %v18955_v34  ;;  %4994 = vmatpush1.bf16.msra.mxu0 %v23099_v28  ;;  %5766 = vmatpush1.bf16.msra.mxu1 %v23100_v21  ;;  %v12662_v28 = vcombine.high %v18937_v20, %v18942_v12  ;;  %v12661_v21 = vcombine.low %v18937_v20, %v18942_v12  ;;  %v903_v34 = vld [vmem:[%s22668_s1 + $0x8d8] sm:$0xff] }
 0x2db   : > { %4842 = vmatprep.mubr.bf16.mxu0 %v17463_v10  ;;  %5614 = vmatprep.mubr.bf16.mxu1 %v17463_v10  ;;  %v12663_v11 = vcombine.low %v18947_v16, %v18961_v7  ;;  %v12670_v7 = vcombine.high %v19007_v3, %v19012_v58 }
 0x2dc   : > { %v3736_v35 = vpop.f32.mrb[24].mxu0  ;;  %4995 = vmatprep.subr.bf16.mxu0 %v12654_v43  ;;  %v4508_v54 = vpop.f32.mrb[24].mxu1  ;;  %5767 = vmatprep.subr.bf16.mxu1 %v12656_v48 }
 0x2dd   : > { %v3738_v49 = vpop.f32.mrb[25].mxu0  ;;  %v4510_v10 = vpop.f32.mrb[25].mxu1  ;;  %v19027_v13 = vadd.f32 %v3736_v35, %v18709_v52  ;;  %v19035_v20 = vadd.f32 %v4508_v54, %v18714_v31 }
 0x2de   : > { %v3740_v43 = vpop.f32.mrb[26].mxu0  ;;  %4996 = vmatpush1.bf16.msra.mxu0 %v12653_v25  ;;  %v4512_v25 = vpop.f32.mrb[26].mxu1  ;;  %5768 = vmatpush1.bf16.msra.mxu1 %v12655_v15  ;;  %v19038_v12 = vadd.f32 %v3738_v49, %v18718_v47  ;;  %v19047_v15 = vadd.f32 %v4510_v10, %v18722_v62  ;;  %v12672_v49 = vcombine.high %v903_v34, %v907_v36  ;;  %v19086_v10 = vld [vmem:[%s22668_s1 + $0x970] sm:$0xff] }
 0x2df   : > { %23101 = vst [vmem:[#allocation101_spill] sm:$0xff] %v19027_v13  ;;  %v19030_v48 = vadd.f32 %v3740_v43, %v18709_v52  ;;  %v3742_v37 = vpop.f32.mrb[27].mxu0  ;;  %4997 = vmatprep.subr.bf16.mxu0 %v12662_v28  ;;  %23103 = vst [vmem:[#allocation103_spill] sm:$0xff] %v19035_v20  ;;  %v19041_v16 = vadd.f32 %v4512_v25, %v18714_v31  ;;  %v4514_v43 = vpop.f32.mrb[27].mxu1  ;;  %5769 = vmatprep.subr.bf16.mxu1 %v12664_v61  ;;  %v910_v25 = vld [vmem:[%s22668_s1 + $0x910] sm:$0xff]  ;;  %v911_v28 = vld [vmem:[%s22668_s1 + $0x918] sm:$0xff] }
 0x2e0   : > { %23104 = vst [vmem:[#allocation104_spill] sm:$0xff] %v19038_v12  ;;  %v19044_v35 = vadd.f32 %v3742_v37, %v18718_v47  ;;  %23107 = vst [vmem:[#allocation107_spill] sm:$0xff] %v19047_v15  ;;  %v19052_v54 = vadd.f32 %v4514_v43, %v18722_v62  ;;  %v914_v61 = vld [vmem:[%s22668_s1 + $0x930] sm:$0xff]  ;;  %v23109_v43 = vld [vmem:[#allocation5_spill] sm:$0xff]  ;;  %v12669_v37 = vcombine.low %v19007_v3, %v19012_v58 }
 0x2e1   : > { %23102 = vst [vmem:[#allocation102_spill] sm:$0xff] %v19030_v48  ;;  %23105 = vst [vmem:[#allocation105_spill] sm:$0xff] %v19041_v16  ;;  %4843 = vmatmul.mubr.bf16.gmra.mrb[68].mxu0 %v17521_v57  ;;  %5615 = vmatmul.mubr.bf16.gmra.mrb[68].mxu1 %v17521_v57  ;;  %v915_v13 = vld [vmem:[%s22668_s1 + $0x938] sm:$0xff]  ;;  %v19081_v57 = vld [vmem:[%s22668_s1 + $0x950] sm:$0xff]  ;;  %v12671_v48 = vcombine.low %v903_v34, %v907_v36  ;;  %v12678_v15 = vcombine.high %v910_v25, %v914_v61 }
 0x2e2   : > { %23106 = vst [vmem:[#allocation106_spill] sm:$0xff] %v19044_v35  ;;  %23108 = vst [vmem:[#allocation108_spill] sm:$0xff] %v19052_v54  ;;  %4852 = vmatprep.mubr.bf16.mxu0 %v23109_v43  ;;  %5624 = vmatprep.mubr.bf16.mxu1 %v23109_v43  ;;  %v19096_v3 = vld [vmem:[%s22668_s1 + $0x978] sm:$0xff]  ;;  %v12680_v54 = vcombine.high %v911_v28, %v915_v13  ;;  %v12686_v34 = vcombine.high %v19081_v57, %v19086_v10 }
 0x2e3   : > { %4998 = vmatpush1.bf16.msra.mxu0 %v12661_v21  ;;  %5770 = vmatpush1.bf16.msra.mxu1 %v12663_v11  ;;  %v19091_v21 = vld [vmem:[%s22668_s1 + $0x958] sm:$0xff]  ;;  %v12677_v11 = vcombine.low %v910_v25, %v914_v61  ;;  %v19160_v61 = vld [vmem:[%s22668_s1 + $0x9f0] sm:$0xff] }
 0x2e4   : > { %v3746_v20 = vpop.f32.mrb[28].mxu0  ;;  %4999 = vmatprep.subr.bf16.mxu0 %v12670_v7  ;;  %v4518_v58 = vpop.f32.mrb[28].mxu1  ;;  %5771 = vmatprep.subr.bf16.mxu1 %v12672_v49  ;;  %v12679_v7 = vcombine.low %v911_v28, %v915_v13  ;;  %v12688_v49 = vcombine.high %v19091_v21, %v19096_v3 }
 0x2e5   : > { %v3748_v43 = vpop.f32.mrb[29].mxu0  ;;  %v4520_v16 = vpop.f32.mrb[29].mxu1  ;;  %v19101_v36 = vadd.f32 %v3746_v20, %v18709_v52  ;;  %v19104_v35 = vadd.f32 %v4518_v58, %v18714_v31  ;;  %v23118_v58 = vld [vmem:[#allocation6_spill] sm:$0xff] }
 0x2e6   : > { %v3750_v12 = vpop.f32.mrb[30].mxu0  ;;  %v4522_v30 = vpop.f32.mrb[30].mxu1  ;;  %v19112_v13 = vadd.f32 %v3748_v43, %v18718_v47  ;;  %v931_v43 = vld [vmem:[%s22668_s1 + $0x9b8] sm:$0xff] }
 0x2e7   : > { %23110 = vst [vmem:[#allocation5_spill] sm:$0xff] %v19101_v36  ;;  %23111 = vst [vmem:[#allocation109_spill] sm:$0xff] %v19104_v35  ;;  %v19107_v33 = vadd.f32 %v3750_v12, %v18709_v52  ;;  %v3752_v23 = vpop.f32.mrb[31].mxu0  ;;  %5000 = vmatpush1.bf16.msra.mxu0 %v12669_v37  ;;  %v19115_v28 = vadd.f32 %v4522_v30, %v18714_v31  ;;  %v4524_v25 = vpop.f32.mrb[31].mxu1  ;;  %5772 = vmatpush1.bf16.msra.mxu1 %v12671_v48  ;;  %v930_v30 = vld [vmem:[%s22668_s1 + $0x9b0] sm:$0xff] }
 0x2e8   : > { %23113 = vst [vmem:[#allocation111_spill] sm:$0xff] %v19112_v13  ;;  %v19118_v20 = vadd.f32 %v3752_v23, %v18718_v47  ;;  %5001 = vmatprep.subr.bf16.mxu0 %v12678_v15  ;;  %v19121_v12 = vadd.f32 %v4520_v16, %v18722_v62  ;;  %v19126_v37 = vadd.f32 %v4524_v25, %v18722_v62  ;;  %v926_v23 = vld [vmem:[%s22668_s1 + $0x990] sm:$0xff] }
 0x2e9   : > { %23112 = vst [vmem:[#allocation110_spill] sm:$0xff] %v19107_v33  ;;  %23114 = vst [vmem:[#allocation112_spill] sm:$0xff] %v19115_v28  ;;  %4853 = vmatmul.mubr.bf16.gmra.mrb[72].mxu0 %v23118_v58  ;;  %5773 = vmatprep.subr.bf16.mxu1 %v12680_v54  ;;  %v23119_v15 = vld [vmem:[#allocation7_spill] sm:$0xff]  ;;  %v927_v54 = vld [vmem:[%s22668_s1 + $0x998] sm:$0xff]  ;;  %v12685_v48 = vcombine.low %v19081_v57, %v19086_v10  ;;  %v12693_v35 = vcombine.low %v926_v23, %v930_v30 }
 0x2ea   : > { %23115 = vst [vmem:[#allocation113_spill] sm:$0xff] %v19118_v20  ;;  %23116 = vst [vmem:[#allocation114_spill] sm:$0xff] %v19121_v12  ;;  %5625 = vmatmul.mubr.bf16.gmra.mrb[72].mxu1 %v23118_v58  ;;  %4862 = vmatprep.mubr.bf16.mxu0 %v23119_v15  ;;  %v19155_v58 = vld [vmem:[%s22668_s1 + $0x9d0] sm:$0xff]  ;;  %v19167_v10 = vld [vmem:[%s22668_s1 + $0x9d8] sm:$0xff]  ;;  %v12695_v28 = vcombine.low %v927_v54, %v931_v43 }
 0x2eb   : > { %23117 = vst [vmem:[#allocation115_spill] sm:$0xff] %v19126_v37  ;;  %5634 = vmatprep.mubr.bf16.mxu1 %v23119_v15  ;;  %5002 = vmatpush1.bf16.msra.mxu0 %v12677_v11  ;;  %v12687_v15 = vcombine.low %v19091_v21, %v19096_v3  ;;  %v12694_v11 = vcombine.high %v926_v23, %v930_v30  ;;  %v19172_v57 = vld [vmem:[%s22668_s1 + $0x9f8] sm:$0xff] }
 0x2ec   : > { %v3756_v16 = vpop.f32.mrb[32].mxu0  ;;  %5774 = vmatpush1.bf16.msra.mxu1 %v12679_v7  ;;  %5003 = vmatprep.subr.bf16.mxu0 %v12686_v34  ;;  %v4528_v25 = vpop.f32.mrb[32].mxu1  ;;  %v12696_v37 = vcombine.high %v927_v54, %v931_v43  ;;  %v12702_v21 = vcombine.high %v19155_v58, %v19160_v61 }
 0x2ed   : > { %v3758_v12 = vpop.f32.mrb[33].mxu0  ;;  %5775 = vmatprep.subr.bf16.mxu1 %v12688_v49  ;;  %v4530_v7 = vpop.f32.mrb[33].mxu1  ;;  %v19177_v3 = vadd.f32 %v3756_v16, %v18709_v52  ;;  %v19180_v36 = vadd.f32 %v4528_v25, %v18714_v31  ;;  %v12704_v49 = vcombine.high %v19167_v10, %v19172_v57 }
 0x2ee   : > { %v3760_v34 = vpop.f32.mrb[34].mxu0  ;;  %v4532_v13 = vpop.f32.mrb[34].mxu1  ;;  %v19188_v23 = vadd.f32 %v3758_v12, %v18718_v47  ;;  %v19197_v43 = vadd.f32 %v4530_v7, %v18722_v62  ;;  %v23128_v12 = vld [vmem:[#allocation8_spill] sm:$0xff]  ;;  %v23129_v7 = vld [vmem:[#allocation9_spill] sm:$0xff] }
 0x2ef   : > { %23120 = vst [vmem:[#allocation6_spill] sm:$0xff] %v19177_v3  ;;  %23121 = vst [vmem:[#allocation7_spill] sm:$0xff] %v19180_v36  ;;  %v19183_v33 = vadd.f32 %v3760_v34, %v18709_v52  ;;  %v3762_v20 = vpop.f32.mrb[35].mxu0  ;;  %5004 = vmatpush1.bf16.msra.mxu0 %v12685_v48  ;;  %v19191_v30 = vadd.f32 %v4532_v13, %v18714_v31  ;;  %v4534_v54 = vpop.f32.mrb[35].mxu1  ;;  %v942_v13 = vld [vmem:[%s22668_s1 + $0xa10] sm:$0xff]  ;;  %v947_v34 = vld [vmem:[%s22668_s1 + $0xa38] sm:$0xff] }
 0x2f0   : > { %23123 = vst [vmem:[#allocation117_spill] sm:$0xff] %v19188_v23  ;;  %v19194_v16 = vadd.f32 %v3762_v20, %v18718_v47  ;;  %5776 = vmatpush1.bf16.msra.mxu1 %v12687_v15  ;;  %5005 = vmatprep.subr.bf16.mxu0 %v12694_v11  ;;  %23126 = vst [vmem:[#allocation120_spill] sm:$0xff] %v19197_v43  ;;  %v19202_v25 = vadd.f32 %v4534_v54, %v18722_v62  ;;  %v946_v20 = vld [vmem:[%s22668_s1 + $0xa30] sm:$0xff] }
 0x2f1   : > { %23122 = vst [vmem:[#allocation116_spill] sm:$0xff] %v19183_v33  ;;  %23124 = vst [vmem:[#allocation118_spill] sm:$0xff] %v19191_v30  ;;  %4863 = vmatmul.mubr.bf16.gmra.mrb[76].mxu0 %v23128_v12  ;;  %5777 = vmatprep.subr.bf16.mxu1 %v12696_v37  ;;  %v943_v37 = vld [vmem:[%s22668_s1 + $0xa18] sm:$0xff]  ;;  %v12701_v15 = vcombine.low %v19155_v58, %v19160_v61  ;;  %v19236_v48 = vld [vmem:[%s22668_s1 + $0xa70] sm:$0xff]  ;;  %v12709_v36 = vcombine.low %v942_v13, %v946_v20 }
 0x2f2   : > { %23125 = vst [vmem:[#allocation119_spill] sm:$0xff] %v19194_v16  ;;  %23127 = vst [vmem:[#allocation121_spill] sm:$0xff] %v19202_v25  ;;  %5635 = vmatmul.mubr.bf16.gmra.mrb[76].mxu1 %v23128_v12  ;;  %4872 = vmatprep.mubr.bf16.mxu0 %v23129_v7  ;;  %v19231_v12 = vld [vmem:[%s22668_s1 + $0xa50] sm:$0xff]  ;;  %v19243_v61 = vld [vmem:[%s22668_s1 + $0xa58] sm:$0xff]  ;;  %v12712_v25 = vcombine.high %v943_v37, %v947_v34  ;;  %v12711_v30 = vcombine.low %v943_v37, %v947_v34 }
 0x2f3   : > { %5644 = vmatprep.mubr.bf16.mxu1 %v23129_v7  ;;  %5006 = vmatpush1.bf16.msra.mxu0 %v12693_v35  ;;  %v12703_v7 = vcombine.low %v19167_v10, %v19172_v57  ;;  %v12710_v35 = vcombine.high %v942_v13, %v946_v20  ;;  %v19248_v58 = vld [vmem:[%s22668_s1 + $0xa78] sm:$0xff]  ;;  %v12718_v10 = vcombine.high %v19231_v12, %v19236_v48 }
 0x2f4   : > { %v3766_v11 = vpop.f32.mrb[36].mxu0  ;;  %5778 = vmatpush1.bf16.msra.mxu1 %v12695_v28  ;;  %5007 = vmatprep.subr.bf16.mxu0 %v12702_v21  ;;  %v4538_v54 = vpop.f32.mrb[36].mxu1 }
 0x2f5   : > { %v3768_v43 = vpop.f32.mrb[37].mxu0  ;;  %5779 = vmatprep.subr.bf16.mxu1 %v12704_v49  ;;  %v4540_v28 = vpop.f32.mrb[37].mxu1  ;;  %v19253_v57 = vadd.f32 %v3766_v11, %v18709_v52  ;;  %v19256_v3 = vadd.f32 %v4538_v54, %v18714_v31  ;;  %v12720_v49 = vcombine.high %v19243_v61, %v19248_v58 }
 0x2f6   : > { %v3770_v21 = vpop.f32.mrb[38].mxu0  ;;  %v4542_v23 = vpop.f32.mrb[38].mxu1  ;;  %v19264_v13 = vadd.f32 %v3768_v43, %v18718_v47  ;;  %v19273_v34 = vadd.f32 %v4540_v28, %v18722_v62  ;;  %v23138_v43 = vld [vmem:[#allocation10_spill] sm:$0xff]  ;;  %v23139_v28 = vld [vmem:[#allocation11_spill] sm:$0xff] }
 0x2f7   : > { %23130 = vst [vmem:[#allocation8_spill] sm:$0xff] %v19253_v57  ;;  %23131 = vst [vmem:[#allocation9_spill] sm:$0xff] %v19256_v3  ;;  %v19259_v33 = vadd.f32 %v3770_v21, %v18709_v52  ;;  %v3772_v16 = vpop.f32.mrb[39].mxu0  ;;  %5008 = vmatpush1.bf16.msra.mxu0 %v12701_v15  ;;  %v19267_v20 = vadd.f32 %v4542_v23, %v18714_v31  ;;  %v4544_v37 = vpop.f32.mrb[39].mxu1  ;;  %v958_v23 = vld [vmem:[%s22668_s1 + $0xa90] sm:$0xff]  ;;  %v963_v21 = vld [vmem:[%s22668_s1 + $0xab8] sm:$0xff] }
 0x2f8   : > { %23133 = vst [vmem:[#allocation123_spill] sm:$0xff] %v19264_v13  ;;  %v19270_v11 = vadd.f32 %v3772_v16, %v18718_v47  ;;  %5780 = vmatpush1.bf16.msra.mxu1 %v12703_v7  ;;  %5009 = vmatprep.subr.bf16.mxu0 %v12710_v35  ;;  %23136 = vst [vmem:[#allocation126_spill] sm:$0xff] %v19273_v34  ;;  %v19278_v54 = vadd.f32 %v4544_v37, %v18722_v62  ;;  %v962_v16 = vld [vmem:[%s22668_s1 + $0xab0] sm:$0xff] }
 0x2f9   : > { %23132 = vst [vmem:[#allocation122_spill] sm:$0xff] %v19259_v33  ;;  %23134 = vst [vmem:[#allocation124_spill] sm:$0xff] %v19267_v20  ;;  %4873 = vmatmul.mubr.bf16.gmra.mrb[80].mxu0 %v23138_v43  ;;  %5781 = vmatprep.subr.bf16.mxu1 %v12712_v25  ;;  %v959_v25 = vld [vmem:[%s22668_s1 + $0xa98] sm:$0xff]  ;;  %v12717_v7 = vcombine.low %v19231_v12, %v19236_v48  ;;  %v19312_v15 = vld [vmem:[%s22668_s1 + $0xaf0] sm:$0xff]  ;;  %v12725_v3 = vcombine.low %v958_v23, %v962_v16 }
 0x2fa   : > { %23135 = vst [vmem:[#allocation125_spill] sm:$0xff] %v19270_v11  ;;  %23137 = vst [vmem:[#allocation127_spill] sm:$0xff] %v19278_v54  ;;  %5645 = vmatmul.mubr.bf16.gmra.mrb[80].mxu1 %v23138_v43  ;;  %4882 = vmatprep.mubr.bf16.mxu0 %v23139_v28  ;;  %v19307_v43 = vld [vmem:[%s22668_s1 + $0xad0] sm:$0xff]  ;;  %v19319_v48 = vld [vmem:[%s22668_s1 + $0xad8] sm:$0xff]  ;;  %v12728_v54 = vcombine.high %v959_v25, %v963_v21  ;;  %v12727_v20 = vcombine.low %v959_v25, %v963_v21 }
 0x2fb   : > { %5654 = vmatprep.mubr.bf16.mxu1 %v23139_v28  ;;  %5010 = vmatpush1.bf16.msra.mxu0 %v12709_v36  ;;  %v12719_v28 = vcombine.low %v19243_v61, %v19248_v58  ;;  %v12726_v36 = vcombine.high %v958_v23, %v962_v16  ;;  %v19324_v12 = vld [vmem:[%s22668_s1 + $0xaf8] sm:$0xff]  ;;  %v12734_v61 = vcombine.high %v19307_v43, %v19312_v15 }
 0x2fc   : > { %v3776_v35 = vpop.f32.mrb[40].mxu0  ;;  %5782 = vmatpush1.bf16.msra.mxu1 %v12711_v30  ;;  %5011 = vmatprep.subr.bf16.mxu0 %v12718_v10  ;;  %v4548_v37 = vpop.f32.mrb[40].mxu1 }
 0x2fd   : > { %v3778_v34 = vpop.f32.mrb[41].mxu0  ;;  %5783 = vmatprep.subr.bf16.mxu1 %v12720_v49  ;;  %v4550_v30 = vpop.f32.mrb[41].mxu1  ;;  %v19329_v58 = vadd.f32 %v3776_v35, %v18709_v52  ;;  %v19332_v57 = vadd.f32 %v4548_v37, %v18714_v31  ;;  %v12736_v49 = vcombine.high %v19319_v48, %v19324_v12 }
 0x2fe   : > { %v3780_v10 = vpop.f32.mrb[42].mxu0  ;;  %v4552_v13 = vpop.f32.mrb[42].mxu1  ;;  %v19340_v23 = vadd.f32 %v3778_v34, %v18718_v47  ;;  %v19349_v21 = vadd.f32 %v4550_v30, %v18722_v62  ;;  %v23148_v34 = vld [vmem:[#allocation12_spill] sm:$0xff]  ;;  %v23149_v30 = vld [vmem:[#allocation13_spill] sm:$0xff] }
 0x2ff   : > { %23140 = vst [vmem:[#allocation10_spill] sm:$0xff] %v19329_v58  ;;  %23141 = vst [vmem:[#allocation11_spill] sm:$0xff] %v19332_v57  ;;  %v19335_v33 = vadd.f32 %v3780_v10, %v18709_v52  ;;  %v3782_v11 = vpop.f32.mrb[43].mxu0  ;;  %5012 = vmatpush1.bf16.msra.mxu0 %v12717_v7  ;;  %v19343_v16 = vadd.f32 %v4552_v13, %v18714_v31  ;;  %v4554_v25 = vpop.f32.mrb[43].mxu1  ;;  %v974_v13 = vld [vmem:[%s22668_s1 + $0xb10] sm:$0xff]  ;;  %v979_v10 = vld [vmem:[%s22668_s1 + $0xb38] sm:$0xff] }
 0x300   : > { %23143 = vst [vmem:[#allocation129_spill] sm:$0xff] %v19340_v23  ;;  %v19346_v35 = vadd.f32 %v3782_v11, %v18718_v47  ;;  %5784 = vmatpush1.bf16.msra.mxu1 %v12719_v28  ;;  %5013 = vmatprep.subr.bf16.mxu0 %v12726_v36  ;;  %23146 = vst [vmem:[#allocation132_spill] sm:$0xff] %v19349_v21  ;;  %v19354_v37 = vadd.f32 %v4554_v25, %v18722_v62  ;;  %v978_v11 = vld [vmem:[%s22668_s1 + $0xb30] sm:$0xff] }
 0x301   : > { %23142 = vst [vmem:[#allocation128_spill] sm:$0xff] %v19335_v33  ;;  %23144 = vst [vmem:[#allocation130_spill] sm:$0xff] %v19343_v16  ;;  %4883 = vmatmul.mubr.bf16.gmra.mrb[84].mxu0 %v23148_v34  ;;  %5785 = vmatprep.subr.bf16.mxu1 %v12728_v54  ;;  %v975_v54 = vld [vmem:[%s22668_s1 + $0xb18] sm:$0xff]  ;;  %v12733_v28 = vcombine.low %v19307_v43, %v19312_v15  ;;  %v19388_v7 = vld [vmem:[%s22668_s1 + $0xb70] sm:$0xff]  ;;  %v12741_v57 = vcombine.low %v974_v13, %v978_v11 }
 0x302   : > { %23145 = vst [vmem:[#allocation131_spill] sm:$0xff] %v19346_v35  ;;  %23147 = vst [vmem:[#allocation133_spill] sm:$0xff] %v19354_v37  ;;  %5655 = vmatmul.mubr.bf16.gmra.mrb[84].mxu1 %v23148_v34  ;;  %4892 = vmatprep.mubr.bf16.mxu0 %v23149_v30  ;;  %v19383_v34 = vld [vmem:[%s22668_s1 + $0xb50] sm:$0xff]  ;;  %v19395_v15 = vld [vmem:[%s22668_s1 + $0xb58] sm:$0xff]  ;;  %v12744_v37 = vcombine.high %v975_v54, %v979_v10  ;;  %v12743_v16 = vcombine.low %v975_v54, %v979_v10 }
 0x303   : > { %5664 = vmatprep.mubr.bf16.mxu1 %v23149_v30  ;;  %5014 = vmatpush1.bf16.msra.mxu0 %v12725_v3  ;;  %v12735_v30 = vcombine.low %v19319_v48, %v19324_v12  ;;  %v12742_v3 = vcombine.high %v974_v13, %v978_v11  ;;  %v19400_v43 = vld [vmem:[%s22668_s1 + $0xb78] sm:$0xff]  ;;  %v12750_v48 = vcombine.high %v19383_v34, %v19388_v7 }
 0x304   : > { %v3786_v36 = vpop.f32.mrb[44].mxu0  ;;  %5786 = vmatpush1.bf16.msra.mxu1 %v12727_v20  ;;  %5015 = vmatprep.subr.bf16.mxu0 %v12734_v61  ;;  %v4558_v25 = vpop.f32.mrb[44].mxu1 }
 0x305   : > { %v3788_v21 = vpop.f32.mrb[45].mxu0  ;;  %5787 = vmatprep.subr.bf16.mxu1 %v12736_v49  ;;  %v4560_v20 = vpop.f32.mrb[45].mxu1  ;;  %v19405_v12 = vadd.f32 %v3786_v36, %v18709_v52  ;;  %v19408_v58 = vadd.f32 %v4558_v25, %v18714_v31  ;;  %v12752_v49 = vcombine.high %v19395_v15, %v19400_v43 }
 0x306   : > { %v3790_v61 = vpop.f32.mrb[46].mxu0  ;;  %v4562_v23 = vpop.f32.mrb[46].mxu1  ;;  %v19416_v13 = vadd.f32 %v3788_v21, %v18718_v47  ;;  %v19425_v10 = vadd.f32 %v4560_v20, %v18722_v62  ;;  %v995_v20 = vld [vmem:[%s22668_s1 + $0xbb8] sm:$0xff]  ;;  %v1002_v21 = vld [vmem:[%s22668_s1 + $0xbf0] sm:$0xff] }
 0x307   : > { %23150 = vst [vmem:[#allocation12_spill] sm:$0xff] %v19405_v12  ;;  %23151 = vst [vmem:[#allocation13_spill] sm:$0xff] %v19408_v58  ;;  %v19411_v33 = vadd.f32 %v3790_v61, %v18709_v52  ;;  %v3792_v35 = vpop.f32.mrb[47].mxu0  ;;  %5016 = vmatpush1.bf16.msra.mxu0 %v12733_v28  ;;  %v19419_v11 = vadd.f32 %v4562_v23, %v18714_v31  ;;  %v4564_v54 = vpop.f32.mrb[47].mxu1  ;;  %v990_v23 = vld [vmem:[%s22668_s1 + $0xb90] sm:$0xff]  ;;  %v12751_v61 = vcombine.low %v19395_v15, %v19400_v43 }
 0x308   : > { %23153 = vst [vmem:[#allocation135_spill] sm:$0xff] %v19416_v13  ;;  %v19422_v36 = vadd.f32 %v3792_v35, %v18718_v47  ;;  %5788 = vmatpush1.bf16.msra.mxu1 %v12735_v30  ;;  %5017 = vmatprep.subr.bf16.mxu0 %v12742_v3  ;;  %23156 = vst [vmem:[#allocation138_spill] sm:$0xff] %v19425_v10  ;;  %v19430_v25 = vadd.f32 %v4564_v54, %v18722_v62  ;;  %v994_v35 = vld [vmem:[%s22668_s1 + $0xbb0] sm:$0xff]  ;;  %v23158_v3 = vld [vmem:[#allocation14_spill] sm:$0xff] }
 0x309   : > { %23152 = vst [vmem:[#allocation134_spill] sm:$0xff] %v19411_v33  ;;  %23154 = vst [vmem:[#allocation136_spill] sm:$0xff] %v19419_v11  ;;  %4893 = vmatmul.mubr.bf16.gmra.mrb[88].mxu0 %v17689_v2  ;;  %5789 = vmatprep.subr.bf16.mxu1 %v12744_v37  ;;  %v991_v37 = vld [vmem:[%s22668_s1 + $0xb98] sm:$0xff]  ;;  %v12749_v54 = vcombine.low %v19383_v34, %v19388_v7  ;;  %v12758_v30 = vcombine.high %v990_v23, %v994_v35 }
 0x30a   : > { %23155 = vst [vmem:[#allocation137_spill] sm:$0xff] %v19422_v36  ;;  %23157 = vst [vmem:[#allocation139_spill] sm:$0xff] %v19430_v25  ;;  %5665 = vmatmul.mubr.bf16.gmra.mrb[88].mxu1 %v17689_v2  ;;  %4902 = vmatprep.mubr.bf16.mxu0 %v23158_v3  ;;  %v998_v2 = vld [vmem:[%s22668_s1 + $0xbd0] sm:$0xff]  ;;  %v1003_v7 = vld [vmem:[%s22668_s1 + $0xbf8] sm:$0xff]  ;;  %v12760_v10 = vcombine.high %v991_v37, %v995_v20 }
 0x30b   : > { %5674 = vmatprep.mubr.bf16.mxu1 %v23158_v3  ;;  %5018 = vmatpush1.bf16.msra.mxu0 %v12741_v57  ;;  %v999_v57 = vld [vmem:[%s22668_s1 + $0xbd8] sm:$0xff]  ;;  %v12766_v11 = vcombine.high %v998_v2, %v1002_v21 }
 0x30c   : > { %v3796_v28 = vpop.f32.mrb[48].mxu0  ;;  %5790 = vmatpush1.bf16.msra.mxu1 %v12743_v16  ;;  %5019 = vmatprep.subr.bf16.mxu0 %v12750_v48  ;;  %v4568_v34 = vpop.f32.mrb[48].mxu1  ;;  %v12757_v16 = vcombine.low %v990_v23, %v994_v35  ;;  %v12759_v48 = vcombine.low %v991_v37, %v995_v20  ;;  %v12768_v36 = vcombine.high %v999_v57, %v1003_v7 }
 0x30d   : > { %v3798_v3 = vpop.f32.mrb[49].mxu0  ;;  %5791 = vmatprep.subr.bf16.mxu1 %v12752_v49  ;;  %v4570_v25 = vpop.f32.mrb[49].mxu1  ;;  %v19471_v15 = vadd.f32 %v3796_v28, %v18709_v52  ;;  %v19474_v43 = vadd.f32 %v4568_v34, %v18714_v31  ;;  %v12774_v34 = vcombine.high %v18966_v45, %v18971_v19 }
 0x30e   : > { %v3800_v58 = vpop.f32.mrb[50].mxu0  ;;  %v4572_v33 = vpop.f32.mrb[50].mxu1  ;;  %v19480_v49 = vadd.f32 %v3798_v3, %v18718_v47  ;;  %v19489_v37 = vadd.f32 %v4570_v25, %v18722_v62 }
 0x30f   : > { %23159 = vst [vmem:[#allocation14_spill] sm:$0xff] %v19474_v43  ;;  %v19477_v12 = vadd.f32 %v3800_v58, %v18709_v52  ;;  %v3802_v13 = vpop.f32.mrb[51].mxu0  ;;  %5020 = vmatpush1.bf16.msra.mxu0 %v12749_v54  ;;  %v19483_v23 = vadd.f32 %v4572_v33, %v18714_v31  ;;  %v4574_v28 = vpop.f32.mrb[51].mxu1 }
 0x310   : > { %v19486_v35 = vadd.f32 %v3802_v13, %v18718_v47  ;;  %5792 = vmatpush1.bf16.msra.mxu1 %v12751_v61  ;;  %5021 = vmatprep.subr.bf16.mxu0 %v12758_v30  ;;  %23160 = vst [vmem:[#allocation140_spill] sm:$0xff] %v19489_v37  ;;  %v19494_v20 = vadd.f32 %v4574_v28, %v18722_v62  ;;  %v23162_v30 = vld [vmem:[#allocation15_spill] sm:$0xff] }
 0x311   : > { %4903 = vmatmul.mubr.bf16.gmra.mrb[92].mxu0 %v17725_v27  ;;  %5793 = vmatprep.subr.bf16.mxu1 %v12760_v10  ;;  %v12765_v61 = vcombine.low %v998_v2, %v1002_v21  ;;  %v12767_v10 = vcombine.low %v999_v57, %v1003_v7 }
 0x312   : > { %23161 = vst [vmem:[#allocation141_spill] sm:$0xff] %v19494_v20  ;;  %5675 = vmatmul.mubr.bf16.gmra.mrb[92].mxu1 %v17725_v27  ;;  %4912 = vmatprep.mubr.bf16.mxu0 %v23162_v30  ;;  %v12776_v27 = vcombine.high %v18986_v0, %v18991_v22 }
 0x313   : > { %5684 = vmatprep.mubr.bf16.mxu1 %v23162_v30  ;;  %5022 = vmatpush1.bf16.msra.mxu0 %v12757_v16 }
 0x314   : > { %v3806_v54 = vpop.f32.mrb[52].mxu0  ;;  %5794 = vmatpush1.bf16.msra.mxu1 %v12759_v48  ;;  %5023 = vmatprep.subr.bf16.mxu0 %v12766_v11  ;;  %v4578_v3 = vpop.f32.mrb[52].mxu1 }
 0x315   : > { %v3808_v28 = vpop.f32.mrb[53].mxu0  ;;  %5795 = vmatprep.subr.bf16.mxu1 %v12768_v36  ;;  %v4580_v33 = vpop.f32.mrb[53].mxu1  ;;  %v19511_v25 = vadd.f32 %v3806_v54, %v18709_v52  ;;  %v19514_v21 = vadd.f32 %v4578_v3, %v18714_v31  ;;  %v23167_v54 = vld [vmem:[#allocation16_spill] sm:$0xff] }
 0x316   : > { %v3810_v58 = vpop.f32.mrb[54].mxu0  ;;  %v4582_v2 = vpop.f32.mrb[54].mxu1  ;;  %v19520_v7 = vadd.f32 %v3808_v28, %v18718_v47  ;;  %v19529_v30 = vadd.f32 %v4580_v33, %v18722_v62 }
 0x317   : > { %23163 = vst [vmem:[#allocation15_spill] sm:$0xff] %v19514_v21  ;;  %v19517_v11 = vadd.f32 %v3810_v58, %v18709_v52  ;;  %v3812_v57 = vpop.f32.mrb[55].mxu0  ;;  %5024 = vmatpush1.bf16.msra.mxu0 %v12765_v61  ;;  %v19523_v36 = vadd.f32 %v4582_v2, %v18714_v31  ;;  %v4584_v48 = vpop.f32.mrb[55].mxu1 }
 0x318   : > { %v19526_v16 = vadd.f32 %v3812_v57, %v18718_v47  ;;  %5796 = vmatpush1.bf16.msra.mxu1 %v12767_v10  ;;  %5186 = vmatprep.subr.bf16.mxu0 %v12774_v34  ;;  %23165 = vst [vmem:[#allocation143_spill] sm:$0xff] %v19529_v30  ;;  %v19534_v61 = vadd.f32 %v4584_v48, %v18722_v62  ;;  %v23168_v10 = vld [vmem:[#allocation17_spill] sm:$0xff] }
 0x319   : > { %23164 = vst [vmem:[#allocation142_spill] sm:$0xff] %v19523_v36  ;;  %4913 = vmatmul.mubr.bf16.gmra.mrb[96].mxu0 %v23167_v54  ;;  %5958 = vmatprep.subr.bf16.mxu1 %v12776_v27 }
 0x31a   : > { %23166 = vst [vmem:[#allocation144_spill] sm:$0xff] %v19534_v61  ;;  %5685 = vmatmul.mubr.bf16.gmra.mrb[96].mxu1 %v23167_v54  ;;  %4922 = vmatprep.mubr.bf16.mxu0 %v23168_v10 }
 0x31b   : > { %5694 = vmatprep.mubr.bf16.mxu1 %v23168_v10 }
 0x31c   : > { %v3816_v34 = vpop.f32.mrb[56].mxu0  ;;  %v4588_v2 = vpop.f32.mrb[56].mxu1 }
 0x31d   : > { %v3818_v57 = vpop.f32.mrb[57].mxu0  ;;  %v4590_v48 = vpop.f32.mrb[57].mxu1  ;;  %v19547_v58 = vadd.f32 %v3816_v34, %v18709_v52  ;;  %v19553_v13 = vadd.f32 %v4588_v2, %v18714_v31  ;;  %v23172_v2 = vld [vmem:[#allocation18_spill] sm:$0xff] }
 0x31e   : > { %v3820_v27 = vpop.f32.mrb[58].mxu0  ;;  %v4592_v28 = vpop.f32.mrb[58].mxu1  ;;  %v19556_v33 = vadd.f32 %v3818_v57, %v18718_v47  ;;  %v19565_v34 = vadd.f32 %v4590_v48, %v18722_v62 }
 0x31f   : > { %v19550_v3 = vadd.f32 %v3820_v27, %v18709_v52  ;;  %v3822_v54 = vpop.f32.mrb[59].mxu0  ;;  %23169 = vst [vmem:[#allocation16_spill] sm:$0xff] %v19553_v13  ;;  %v19559_v10 = vadd.f32 %v4592_v28, %v18714_v31  ;;  %v4594_v61 = vpop.f32.mrb[59].mxu1 }
 0x320   : > { %v19562_v30 = vadd.f32 %v3822_v54, %v18718_v47  ;;  %23170 = vst [vmem:[#allocation17_spill] sm:$0xff] %v19565_v34  ;;  %v19570_v21 = vadd.f32 %v4594_v61, %v18722_v62  ;;  %v23173_v54 = vld [vmem:[#allocation19_spill] sm:$0xff] }
 0x321   : > { %4923 = vmatmul.mubr.bf16.gmra.mrb[100].mxu0 %v23172_v2 }
 0x322   : > { %23171 = vst [vmem:[#allocation145_spill] sm:$0xff] %v19570_v21  ;;  %5695 = vmatmul.mubr.bf16.gmra.mrb[100].mxu1 %v23172_v2  ;;  %4932 = vmatprep.mubr.bf16.mxu0 %v23173_v54 }
 0x323   : > { %5704 = vmatprep.mubr.bf16.mxu1 %v23173_v54 }
 0x324   : > { %v3826_v27 = vpop.f32.mrb[60].mxu0  ;;  %v4598_v61 = vpop.f32.mrb[60].mxu1 }
 0x325   : > { %v3828_v36 = vpop.f32.mrb[61].mxu0  ;;  %v4600_v37 = vpop.f32.mrb[61].mxu1  ;;  %v19583_v43 = vadd.f32 %v3826_v27, %v18709_v52  ;;  %v19589_v13 = vadd.f32 %v4598_v61, %v18714_v31  ;;  %v23174_v61 = vld [vmem:[#allocation20_spill] sm:$0xff] }
 0x326   : > { %v3830_v20 = vpop.f32.mrb[62].mxu0  ;;  %v4602_v28 = vpop.f32.mrb[62].mxu1  ;;  %v19592_v48 = vadd.f32 %v3828_v36, %v18718_v47  ;;  %v19601_v27 = vadd.f32 %v4600_v37, %v18722_v62  ;;  %v23344_v36 = vld [vmem:[#allocation7_spill] sm:$0xff] }
 0x327   : > { %v19586_v57 = vadd.f32 %v3830_v20, %v18709_v52  ;;  %v3832_v2 = vpop.f32.mrb[63].mxu0  ;;  %v19595_v54 = vadd.f32 %v4602_v28, %v18714_v31  ;;  %v4604_v21 = vpop.f32.mrb[63].mxu1  ;;  %v23176_v28 = vld [vmem:[#allocation22_spill] sm:$0xff] }
 0x328   : > { %v19598_v34 = vadd.f32 %v3832_v2, %v18718_v47  ;;  %v19606_v20 = vadd.f32 %v4604_v21, %v18722_v62  ;;  %v23175_v47 = vld [vmem:[#allocation21_spill] sm:$0xff]  ;;  %v23177_v62 = vld [vmem:[#allocation23_spill] sm:$0xff]  ;;  %v23178_v21 = vld [vmem:[#allocation24_spill] sm:$0xff] }
 0x329   : > { %v6271_v52 = vpack.c.bf16 %v19586_v57, %v19583_v43  ;;  %4933 = vmatmul.mubr.bf16.gmra.mrb[104].mxu0 %v23174_v61  ;;  %v23179_v2 = vld [vmem:[#allocation25_spill] sm:$0xff] }
 0x32a   : > { %v6272_v31 = vpack.c.bf16 %v19598_v34, %v19592_v48  ;;  %5705 = vmatmul.mubr.bf16.gmra.mrb[104].mxu1 %v23174_v61  ;;  %4942 = vmatprep.mubr.bf16.mxu0 %v23175_v47  ;;  %v23180_v61 = vld [vmem:[#allocation26_spill] sm:$0xff] }
 0x32b   : > { %5714 = vmatprep.mubr.bf16.mxu1 %v23175_v47  ;;  %v23181_v47 = vld [vmem:[#allocation27_spill] sm:$0xff] }
 0x331   : > { %4943 = vmatmul.mubr.bf16.gmra.mrb[108].mxu0 %v23176_v28 }
 0x332   : > { %5715 = vmatmul.mubr.bf16.gmra.mrb[108].mxu1 %v23176_v28  ;;  %4952 = vmatprep.mubr.bf16.mxu0 %v23177_v62  ;;  %v23182_v28 = vld [vmem:[#allocation28_spill] sm:$0xff] }
 0x333   : > { %5724 = vmatprep.mubr.bf16.mxu1 %v23177_v62  ;;  %v23183_v62 = vld [vmem:[#allocation29_spill] sm:$0xff] }
 0x339   : > { %4953 = vmatmul.mubr.bf16.gmra.mrb[112].mxu0 %v23178_v21 }
 0x33a   : > { %5725 = vmatmul.mubr.bf16.gmra.mrb[112].mxu1 %v23178_v21  ;;  %4962 = vmatprep.mubr.bf16.mxu0 %v23179_v2  ;;  %v23184_v21 = vld [vmem:[#allocation30_spill] sm:$0xff] }
 0x33b   : > { %5734 = vmatprep.mubr.bf16.mxu1 %v23179_v2  ;;  %v23185_v2 = vld [vmem:[#allocation31_spill] sm:$0xff] }
 0x341   : > { %4963 = vmatmul.mubr.bf16.gmra.mrb[116].mxu0 %v23180_v61 }
 0x342   : > { %5735 = vmatmul.mubr.bf16.gmra.mrb[116].mxu1 %v23180_v61  ;;  %4972 = vmatprep.mubr.bf16.mxu0 %v23181_v47  ;;  %v23186_v61 = vld [vmem:[#allocation32_spill] sm:$0xff] }
 0x343   : > { %5744 = vmatprep.mubr.bf16.mxu1 %v23181_v47  ;;  %v23187_v47 = vcombine.low %v18966_v45, %v18971_v19  ;;  %v23190_v45 = vld [vmem:[#allocation34_spill] sm:$0xff]  ;;  %v23191_v19 = vld [vmem:[#allocation35_spill] sm:$0xff] }
 0x349   : > { %4973 = vmatmul.mubr.bf16.gmra.mrb[120].mxu0 %v23182_v28 }
 0x34a   : > { %5745 = vmatmul.mubr.bf16.gmra.mrb[120].mxu1 %v23182_v28  ;;  %4982 = vmatprep.mubr.bf16.mxu0 %v23183_v62  ;;  %v15100_v28 = vld [vmem:[%s22670_s3 + $0x4] ss:$16 sps:$4 sm:$0xff]  }
 0x34b   : > { %5754 = vmatprep.mubr.bf16.mxu1 %v23183_v62  ;;  %v23188_v62 = vcombine.low %v18986_v0, %v18991_v22  ;;  %v23192_v0 = vld [vmem:[#allocation36_spill] sm:$0xff]  ;;  %v23193_v22 = vld [vmem:[#allocation37_spill] sm:$0xff] }
 0x351   : > { %4983 = vmatmul.mubr.bf16.gmra.mrb[124].mxu0 %v23184_v21 }
 0x352   : > { %5755 = vmatmul.mubr.bf16.gmra.mrb[124].mxu1 %v23184_v21  ;;  %5025 = vmatprep.mubr.bf16.mxu0 %v23185_v2  ;;  %v23189_v21 = vld [vmem:[#allocation33_spill] sm:$0xff] }
 0x353   : > { %5797 = vmatprep.mubr.bf16.mxu1 %v23185_v2  ;;  %v15103_v2 = vld [vmem:[%s22670_s3 + $0xc] ss:$16 sps:$4 sm:$0xff]  }
 0x359   : > { %5026 = vmatmul.mubr.bf16.vlgmr.msra.gmra.mrb[64].mxu0 %v23186_v61 }
 0x35a   : > { %5798 = vmatmul.mubr.bf16.vlgmr.msra.gmra.mrb[64].mxu1 %v23186_v61  ;;  %5187 = vmatpush1.bf16.msra.mxu0 %v23187_v47  ;;  %v23194_v61 = vld [vmem:[#allocation38_spill] sm:$0xff]  ;;  %v23195_v47 = vld [vmem:[#allocation39_spill] sm:$0xff] }
 0x35b   : > { %5959 = vmatpush1.bf16.msra.mxu1 %v23188_v62  ;;  %5035 = vmatprep.mubr.bf16.mxu0 %v23189_v21  ;;  %v23197_v62 = vld [vmem:[#allocation41_spill] sm:$0xff] }
 0x35c   : > { %5807 = vmatprep.mubr.bf16.mxu1 %v23189_v21  ;;  %9245 = vmatprep.subr.bf16.mxu0 %v15100_v28  ;;  %v23196_v28 = vld [vmem:[#allocation40_spill] sm:$0xff]  ;;  %v23198_v21 = vld [vmem:[#allocation42_spill] sm:$0xff] }
 0x35d   : > { %10017 = vmatprep.subr.bf16.mxu1 %v15103_v2  ;;  %v23199_v2 = vld [vmem:[#allocation43_spill] sm:$0xff] }
 0x361   : > { %5036 = vmatmul.mubr.bf16.gmra.mrb[68].mxu0 %v23190_v45 }
 0x362   : > { %5808 = vmatmul.mubr.bf16.gmra.mrb[68].mxu1 %v23190_v45  ;;  %5045 = vmatprep.mubr.bf16.mxu0 %v23191_v19  ;;  %v23200_v45 = vld [vmem:[#allocation44_spill] sm:$0xff] }
 0x363   : > { %5817 = vmatprep.mubr.bf16.mxu1 %v23191_v19  ;;  %v23201_v19 = vld [vmem:[#allocation45_spill] sm:$0xff] }
 0x369   : > { %5046 = vmatmul.mubr.bf16.gmra.mrb[72].mxu0 %v23192_v0 }
 0x36a   : > { %5818 = vmatmul.mubr.bf16.gmra.mrb[72].mxu1 %v23192_v0  ;;  %5055 = vmatprep.mubr.bf16.mxu0 %v23193_v22  ;;  %v23202_v0 = vld [vmem:[#allocation46_spill] sm:$0xff] }
 0x36b   : > { %5827 = vmatprep.mubr.bf16.mxu1 %v23193_v22  ;;  %v23203_v22 = vld [vmem:[#allocation47_spill] sm:$0xff] }
 0x371   : > { %5056 = vmatmul.mubr.bf16.gmra.mrb[76].mxu0 %v23194_v61 }
 0x372   : > { %5828 = vmatmul.mubr.bf16.gmra.mrb[76].mxu1 %v23194_v61  ;;  %5065 = vmatprep.mubr.bf16.mxu0 %v23195_v47  ;;  %v23204_v61 = vld [vmem:[#allocation48_spill] sm:$0xff] }
 0x373   : > { %5837 = vmatprep.mubr.bf16.mxu1 %v23195_v47  ;;  %v23205_v47 = vld [vmem:[#allocation49_spill] sm:$0xff] }
 0x379   : > { %5066 = vmatmul.mubr.bf16.gmra.mrb[80].mxu0 %v23196_v28 }
 0x37a   : > { %5838 = vmatmul.mubr.bf16.gmra.mrb[80].mxu1 %v23196_v28  ;;  %5075 = vmatprep.mubr.bf16.mxu0 %v23197_v62  ;;  %v23206_v28 = vld [vmem:[#allocation50_spill] sm:$0xff] }
 0x37b   : > { %5847 = vmatprep.mubr.bf16.mxu1 %v23197_v62  ;;  %v23207_v62 = vld [vmem:[#allocation51_spill] sm:$0xff] }
 0x381   : > { %5076 = vmatmul.mubr.bf16.gmra.mrb[84].mxu0 %v23198_v21 }
 0x382   : > { %5848 = vmatmul.mubr.bf16.gmra.mrb[84].mxu1 %v23198_v21  ;;  %5085 = vmatprep.mubr.bf16.mxu0 %v23199_v2  ;;  %v23208_v21 = vld [vmem:[#allocation52_spill] sm:$0xff] }
 0x383   : > { %5857 = vmatprep.mubr.bf16.mxu1 %v23199_v2  ;;  %v23209_v2 = vld [vmem:[#allocation53_spill] sm:$0xff] }
 0x389   : > { %5086 = vmatmul.mubr.bf16.gmra.mrb[88].mxu0 %v23200_v45 }
 0x38a   : > { %5858 = vmatmul.mubr.bf16.gmra.mrb[88].mxu1 %v23200_v45  ;;  %5095 = vmatprep.mubr.bf16.mxu0 %v23201_v19  ;;  %v23210_v45 = vld [vmem:[#allocation54_spill] sm:$0xff] }
 0x38b   : > { %5867 = vmatprep.mubr.bf16.mxu1 %v23201_v19  ;;  %v23211_v19 = vld [vmem:[#allocation55_spill] sm:$0xff] }
 0x391   : > { %5096 = vmatmul.mubr.bf16.gmra.mrb[92].mxu0 %v23202_v0 }
 0x392   : > { %5868 = vmatmul.mubr.bf16.gmra.mrb[92].mxu1 %v23202_v0  ;;  %5105 = vmatprep.mubr.bf16.mxu0 %v23203_v22  ;;  %v23212_v0 = vld [vmem:[#allocation56_spill] sm:$0xff] }
 0x393   : > { %5877 = vmatprep.mubr.bf16.mxu1 %v23203_v22  ;;  %v23213_v22 = vld [vmem:[#allocation57_spill] sm:$0xff] }
 0x399   : > { %5106 = vmatmul.mubr.bf16.gmra.mrb[96].mxu0 %v23204_v61 }
 0x39a   : > { %5878 = vmatmul.mubr.bf16.gmra.mrb[96].mxu1 %v23204_v61  ;;  %5115 = vmatprep.mubr.bf16.mxu0 %v23205_v47  ;;  %v23214_v61 = vld [vmem:[#allocation58_spill] sm:$0xff] }
 0x39b   : > { %5887 = vmatprep.mubr.bf16.mxu1 %v23205_v47  ;;  %v23215_v47 = vld [vmem:[#allocation59_spill] sm:$0xff] }
 0x3a1   : > { %5116 = vmatmul.mubr.bf16.gmra.mrb[100].mxu0 %v23206_v28 }
 0x3a2   : > { %5888 = vmatmul.mubr.bf16.gmra.mrb[100].mxu1 %v23206_v28  ;;  %5125 = vmatprep.mubr.bf16.mxu0 %v23207_v62  ;;  %v23216_v28 = vld [vmem:[#allocation60_spill] sm:$0xff] }
 0x3a3   : > { %5897 = vmatprep.mubr.bf16.mxu1 %v23207_v62  ;;  %v23217_v62 = vld [vmem:[#allocation61_spill] sm:$0xff] }
 0x3a9   : > { %5126 = vmatmul.mubr.bf16.gmra.mrb[104].mxu0 %v23208_v21 }
 0x3aa   : > { %5898 = vmatmul.mubr.bf16.gmra.mrb[104].mxu1 %v23208_v21  ;;  %5135 = vmatprep.mubr.bf16.mxu0 %v23209_v2  ;;  %v23218_v21 = vld [vmem:[#allocation62_spill] sm:$0xff] }
 0x3ab   : > { %5907 = vmatprep.mubr.bf16.mxu1 %v23209_v2  ;;  %v15098_v2 = vld [vmem:[%s22670_s3] ss:$16 sps:$4 sm:$0xff]  }
 0x3b1   : > { %5136 = vmatmul.mubr.bf16.gmra.mrb[108].mxu0 %v23210_v45 }
 0x3b2   : > { %5908 = vmatmul.mubr.bf16.gmra.mrb[108].mxu1 %v23210_v45  ;;  %5145 = vmatprep.mubr.bf16.mxu0 %v23211_v19  ;;  %v15101_v45 = vld [vmem:[%s22670_s3 + $0x8] ss:$16 sps:$4 sm:$0xff]  }
 0x3b3   : > { %5917 = vmatprep.mubr.bf16.mxu1 %v23211_v19  ;;  %v15106_v19 = vld [vmem:[%s22670_s3 + $0x24] ss:$16 sps:$4 sm:$0xff]  }
 0x3b9   : > { %5146 = vmatmul.mubr.bf16.gmra.mrb[112].mxu0 %v23212_v0 }
 0x3ba   : > { %5918 = vmatmul.mubr.bf16.gmra.mrb[112].mxu1 %v23212_v0  ;;  %5155 = vmatprep.mubr.bf16.mxu0 %v23213_v22  ;;  %v23219_v0 = vld [vmem:[#allocation63_spill] sm:$0xff] }
 0x3bb   : > { %5927 = vmatprep.mubr.bf16.mxu1 %v23213_v22  ;;  %v15109_v22 = vld [vmem:[%s22670_s3 + $0x2c] ss:$16 sps:$4 sm:$0xff]  }
 0x3c1   : > { %5156 = vmatmul.mubr.bf16.gmra.mrb[116].mxu0 %v23214_v61 }
 0x3c2   : > { %5928 = vmatmul.mubr.bf16.gmra.mrb[116].mxu1 %v23214_v61  ;;  %5165 = vmatprep.mubr.bf16.mxu0 %v23215_v47  ;;  %v15104_v61 = vld [vmem:[%s22670_s3 + $0x20] ss:$16 sps:$4 sm:$0xff]  }
 0x3c3   : > { %5937 = vmatprep.mubr.bf16.mxu1 %v23215_v47  ;;  %v15107_v47 = vld [vmem:[%s22670_s3 + $0x28] ss:$16 sps:$4 sm:$0xff]  }
 0x3c9   : > { %5166 = vmatmul.mubr.bf16.gmra.mrb[120].mxu0 %v23216_v28 }
 0x3ca   : > { %5938 = vmatmul.mubr.bf16.gmra.mrb[120].mxu1 %v23216_v28  ;;  %5175 = vmatprep.mubr.bf16.mxu0 %v23217_v62  ;;  %v15112_v28 = vld [vmem:[%s22670_s3 + $0x44] ss:$16 sps:$4 sm:$0xff]  }
 0x3cb   : > { %5947 = vmatprep.mubr.bf16.mxu1 %v23217_v62  ;;  %v15115_v62 = vld [vmem:[%s22670_s3 + $0x4c] ss:$16 sps:$4 sm:$0xff]  }
 0x3d1   : > { %5176 = vmatmul.mubr.bf16.gmra.mrb[124].mxu0 %v23218_v21 }
 0x3d2   : > { %5948 = vmatmul.mubr.bf16.gmra.mrb[124].mxu1 %v23218_v21  ;;  %5218 = vmatprep.mubr.bf16.mxu0 %v23059_v56  ;;  %v15110_v21 = vld [vmem:[%s22670_s3 + $0x40] ss:$16 sps:$4 sm:$0xff]  }
 0x3d3   : > { %5990 = vmatprep.mubr.bf16.mxu1 %v23059_v56 }
 0x3d9   : > { %12809 = vmatmul.mubr.msk.bf16.vlgmr.msra.gmra.mrb[64].mxu0 %vm3014_vm0, %v23219_v0 }
 0x3da   : > { %12825 = vmatmul.mubr.msk.bf16.vlgmr.msra.gmra.mrb[64].mxu1 %vm3014_vm0, %v23219_v0  ;;  %9246 = vmatpush1.bf16.msra.mxu0 %v15098_v2  ;;  %v15113_v2 = vld [vmem:[%s22670_s3 + $0x48] ss:$16 sps:$4 sm:$0xff]   ;;  %v15121_v0 = vld [vmem:[%s22670_s3 + $0x6c] ss:$16 sps:$4 sm:$0xff]  }
 0x3db   : > { %10018 = vmatpush1.bf16.msra.mxu1 %v15101_v45  ;;  %5228 = vmatprep.mubr.bf16.mxu0 %v23059_v56  ;;  %v15118_v45 = vld [vmem:[%s22670_s3 + $0x64] ss:$16 sps:$4 sm:$0xff]  }
 0x3dc   : > { %6000 = vmatprep.mubr.bf16.mxu1 %v23059_v56  ;;  %9247 = vmatprep.subr.bf16.mxu0 %v15106_v19  ;;  %v23220_v19 = vld [vmem:[#allocation64_spill] sm:$0xff] }
 0x3dd   : > { %10019 = vmatprep.subr.bf16.mxu1 %v15109_v22  ;;  %v15116_v22 = vld [vmem:[%s22670_s3 + $0x60] ss:$16 sps:$4 sm:$0xff]  }
 0x3de   : > { %9248 = vmatpush1.bf16.msra.mxu0 %v15104_v61  ;;  %v15119_v61 = vld [vmem:[%s22670_s3 + $0x68] ss:$16 sps:$4 sm:$0xff]  }
 0x3df   : > { %10020 = vmatpush1.bf16.msra.mxu1 %v15107_v47  ;;  %9249 = vmatprep.subr.bf16.mxu0 %v15112_v28  ;;  %v15124_v47 = vld [vmem:[%s22670_s3 + $0x84] ss:$16 sps:$4 sm:$0xff]   ;;  %v15127_v28 = vld [vmem:[%s22670_s3 + $0x8c] ss:$16 sps:$4 sm:$0xff]  }
 0x3e0   : > { %10021 = vmatprep.subr.bf16.mxu1 %v15115_v62  ;;  %v15122_v62 = vld [vmem:[%s22670_s3 + $0x80] ss:$16 sps:$4 sm:$0xff]  }
 0x3e1   : > { %12810 = vmatmul.mubr.msk.bf16.gmra.mrb[68].mxu0 %vm3014_vm0, %v23220_v19 }
 0x3e2   : > { %12826 = vmatmul.mubr.msk.bf16.gmra.mrb[68].mxu1 %vm3014_vm0, %v23220_v19  ;;  %5238 = vmatprep.mubr.bf16.mxu0 %v23059_v56  ;;  %v15133_v19 = vld [vmem:[%s22670_s3 + $0xac] ss:$16 sps:$4 sm:$0xff]  }
 0x3e3   : > { %6010 = vmatprep.mubr.bf16.mxu1 %v23059_v56  ;;  %9250 = vmatpush1.bf16.msra.mxu0 %v15110_v21  ;;  %v15125_v21 = vld [vmem:[%s22670_s3 + $0x88] ss:$16 sps:$4 sm:$0xff]  }
 0x3e4   : > { %10022 = vmatpush1.bf16.msra.mxu1 %v15113_v2  ;;  %9251 = vmatprep.subr.bf16.mxu0 %v15118_v45  ;;  %v15130_v2 = vld [vmem:[%s22670_s3 + $0xa4] ss:$16 sps:$4 sm:$0xff]  }
 0x3e5   : > { %10023 = vmatprep.subr.bf16.mxu1 %v15121_v0  ;;  %v23221_v45 = vld [vmem:[#allocation65_spill] sm:$0xff] }
 0x3e6   : > { %v15128_v0 = vld [vmem:[%s22670_s3 + $0xa0] ss:$16 sps:$4 sm:$0xff]  }
 0x3e7   : > { %9252 = vmatpush1.bf16.msra.mxu0 %v15116_v22  ;;  %v15131_v22 = vld [vmem:[%s22670_s3 + $0xa8] ss:$16 sps:$4 sm:$0xff]  }
 0x3e8   : > { %10024 = vmatpush1.bf16.msra.mxu1 %v15119_v61  ;;  %9253 = vmatprep.subr.bf16.mxu0 %v15124_v47  ;;  %v15136_v61 = vld [vmem:[%s22670_s3 + $0xc4] ss:$16 sps:$4 sm:$0xff]   ;;  %v15139_v47 = vld [vmem:[%s22670_s3 + $0xcc] ss:$16 sps:$4 sm:$0xff]  }
 0x3e9   : > { %12811 = vmatmul.mubr.msk.bf16.gmra.mrb[72].mxu0 %vm3014_vm0, %v23221_v45  ;;  %10025 = vmatprep.subr.bf16.mxu1 %v15127_v28  ;;  %v15134_v28 = vld [vmem:[%s22670_s3 + $0xc0] ss:$16 sps:$4 sm:$0xff]  }
 0x3ea   : > { %12827 = vmatmul.mubr.msk.bf16.gmra.mrb[72].mxu1 %vm3014_vm0, %v23221_v45  ;;  %5248 = vmatprep.mubr.bf16.mxu0 %v23059_v56  ;;  %v15145_v45 = vld [vmem:[%s22670_s3 + $0xec] ss:$16 sps:$4 sm:$0xff]  }
 0x3eb   : > { %6020 = vmatprep.mubr.bf16.mxu1 %v23059_v56  ;;  %9254 = vmatpush1.bf16.msra.mxu0 %v15122_v62  ;;  %v15137_v62 = vld [vmem:[%s22670_s3 + $0xc8] ss:$16 sps:$4 sm:$0xff]  }
 0x3ec   : > { %10026 = vmatpush1.bf16.msra.mxu1 %v15125_v21  ;;  %9255 = vmatprep.subr.bf16.mxu0 %v15130_v2  ;;  %v15142_v21 = vld [vmem:[%s22670_s3 + $0xe4] ss:$16 sps:$4 sm:$0xff]   ;;  %v23222_v2 = vld [vmem:[#allocation66_spill] sm:$0xff] }
 0x3ed   : > { %10027 = vmatprep.subr.bf16.mxu1 %v15133_v19  ;;  %v15140_v19 = vld [vmem:[%s22670_s3 + $0xe0] ss:$16 sps:$4 sm:$0xff]  }
 0x3ef   : > { %9256 = vmatpush1.bf16.msra.mxu0 %v15128_v0  ;;  %v15143_v0 = vld [vmem:[%s22670_s3 + $0xe8] ss:$16 sps:$4 sm:$0xff]  }
 0x3f0   : > { %10028 = vmatpush1.bf16.msra.mxu1 %v15131_v22  ;;  %9257 = vmatprep.subr.bf16.mxu0 %v15136_v61  ;;  %v15148_v22 = vld [vmem:[%s22670_s3 + $0x104] ss:$16 sps:$4 sm:$0xff]   ;;  %v15151_v61 = vld [vmem:[%s22670_s3 + $0x10c] ss:$16 sps:$4 sm:$0xff]  }
 0x3f1   : > { %12812 = vmatmul.mubr.msk.bf16.gmra.mrb[76].mxu0 %vm3014_vm0, %v23222_v2  ;;  %10029 = vmatprep.subr.bf16.mxu1 %v15139_v47  ;;  %v15146_v47 = vld [vmem:[%s22670_s3 + $0x100] ss:$16 sps:$4 sm:$0xff]  }
 0x3f2   : > { %12828 = vmatmul.mubr.msk.bf16.gmra.mrb[76].mxu1 %vm3014_vm0, %v23222_v2  ;;  %5258 = vmatprep.mubr.bf16.mxu0 %v23059_v56  ;;  %v15157_v2 = vld [vmem:[%s22670_s3 + $0x12c] ss:$16 sps:$4 sm:$0xff]  }
 0x3f3   : > { %6030 = vmatprep.mubr.bf16.mxu1 %v23059_v56  ;;  %9258 = vmatpush1.bf16.msra.mxu0 %v15134_v28  ;;  %v15149_v28 = vld [vmem:[%s22670_s3 + $0x108] ss:$16 sps:$4 sm:$0xff]  }
 0x3f4   : > { %10030 = vmatpush1.bf16.msra.mxu1 %v15137_v62  ;;  %9259 = vmatprep.subr.bf16.mxu0 %v15142_v21  ;;  %v15154_v62 = vld [vmem:[%s22670_s3 + $0x124] ss:$16 sps:$4 sm:$0xff]  }
 0x3f5   : > { %10031 = vmatprep.subr.bf16.mxu1 %v15145_v45  ;;  %v23223_v21 = vld [vmem:[#allocation67_spill] sm:$0xff] }
 0x3f6   : > { %v15152_v45 = vld [vmem:[%s22670_s3 + $0x120] ss:$16 sps:$4 sm:$0xff]  }
 0x3f7   : > { %9260 = vmatpush1.bf16.msra.mxu0 %v15140_v19  ;;  %v15155_v19 = vld [vmem:[%s22670_s3 + $0x128] ss:$16 sps:$4 sm:$0xff]  }
 0x3f8   : > { %10032 = vmatpush1.bf16.msra.mxu1 %v15143_v0  ;;  %9261 = vmatprep.subr.bf16.mxu0 %v15148_v22  ;;  %v15160_v0 = vld [vmem:[%s22670_s3 + $0x144] ss:$16 sps:$4 sm:$0xff]   ;;  %v15163_v22 = vld [vmem:[%s22670_s3 + $0x14c] ss:$16 sps:$4 sm:$0xff]  }
 0x3f9   : > { %12813 = vmatmul.mubr.msk.bf16.gmra.mrb[80].mxu0 %vm3014_vm0, %v23223_v21  ;;  %10033 = vmatprep.subr.bf16.mxu1 %v15151_v61  ;;  %v15158_v61 = vld [vmem:[%s22670_s3 + $0x140] ss:$16 sps:$4 sm:$0xff]  }
 0x3fa   : > { %12829 = vmatmul.mubr.msk.bf16.gmra.mrb[80].mxu1 %vm3014_vm0, %v23223_v21  ;;  %5268 = vmatprep.mubr.bf16.mxu0 %v23059_v56  ;;  %v15169_v21 = vld [vmem:[%s22670_s3 + $0x16c] ss:$16 sps:$4 sm:$0xff]  }
 0x3fb   : > { %6040 = vmatprep.mubr.bf16.mxu1 %v23059_v56  ;;  %9262 = vmatpush1.bf16.msra.mxu0 %v15146_v47  ;;  %v15161_v47 = vld [vmem:[%s22670_s3 + $0x148] ss:$16 sps:$4 sm:$0xff]  }
 0x3fc   : > { %10034 = vmatpush1.bf16.msra.mxu1 %v15149_v28  ;;  %9263 = vmatprep.subr.bf16.mxu0 %v15154_v62  ;;  %v15166_v28 = vld [vmem:[%s22670_s3 + $0x164] ss:$16 sps:$4 sm:$0xff]   ;;  %v23224_v62 = vld [vmem:[#allocation68_spill] sm:$0xff] }
 0x3fd   : > { %10035 = vmatprep.subr.bf16.mxu1 %v15157_v2  ;;  %v15164_v2 = vld [vmem:[%s22670_s3 + $0x160] ss:$16 sps:$4 sm:$0xff]  }
 0x3ff   : > { %9264 = vmatpush1.bf16.msra.mxu0 %v15152_v45  ;;  %v15167_v45 = vld [vmem:[%s22670_s3 + $0x168] ss:$16 sps:$4 sm:$0xff]  }
 0x400   : > { %10036 = vmatpush1.bf16.msra.mxu1 %v15155_v19  ;;  %9265 = vmatprep.subr.bf16.mxu0 %v15160_v0  ;;  %v15172_v19 = vld [vmem:[%s22670_s3 + $0x184] ss:$16 sps:$4 sm:$0xff]   ;;  %v15175_v0 = vld [vmem:[%s22670_s3 + $0x18c] ss:$16 sps:$4 sm:$0xff]  }
 0x401   : > { %12814 = vmatmul.mubr.msk.bf16.gmra.mrb[84].mxu0 %vm3014_vm0, %v23224_v62  ;;  %10037 = vmatprep.subr.bf16.mxu1 %v15163_v22  ;;  %v15170_v22 = vld [vmem:[%s22670_s3 + $0x180] ss:$16 sps:$4 sm:$0xff]  }
 0x402   : > { %12830 = vmatmul.mubr.msk.bf16.gmra.mrb[84].mxu1 %vm3014_vm0, %v23224_v62  ;;  %5278 = vmatprep.mubr.bf16.mxu0 %v23059_v56  ;;  %v15181_v62 = vld [vmem:[%s22670_s3 + $0x1ac] ss:$16 sps:$4 sm:$0xff]  }
 0x403   : > { %6050 = vmatprep.mubr.bf16.mxu1 %v23059_v56  ;;  %9266 = vmatpush1.bf16.msra.mxu0 %v15158_v61  ;;  %v15173_v61 = vld [vmem:[%s22670_s3 + $0x188] ss:$16 sps:$4 sm:$0xff]  }
 0x404   : > { %10038 = vmatpush1.bf16.msra.mxu1 %v15161_v47  ;;  %9267 = vmatprep.subr.bf16.mxu0 %v15166_v28  ;;  %v15178_v47 = vld [vmem:[%s22670_s3 + $0x1a4] ss:$16 sps:$4 sm:$0xff]  }
 0x405   : > { %10039 = vmatprep.subr.bf16.mxu1 %v15169_v21  ;;  %v23225_v28 = vld [vmem:[#allocation69_spill] sm:$0xff] }
 0x406   : > { %v15176_v21 = vld [vmem:[%s22670_s3 + $0x1a0] ss:$16 sps:$4 sm:$0xff]  }
 0x407   : > { %9268 = vmatpush1.bf16.msra.mxu0 %v15164_v2  ;;  %v15179_v2 = vld [vmem:[%s22670_s3 + $0x1a8] ss:$16 sps:$4 sm:$0xff]  }
 0x408   : > { %10040 = vmatpush1.bf16.msra.mxu1 %v15167_v45  ;;  %9269 = vmatprep.subr.bf16.mxu0 %v15172_v19  ;;  %v15184_v45 = vld [vmem:[%s22670_s3 + $0x1c4] ss:$16 sps:$4 sm:$0xff]   ;;  %v15187_v19 = vld [vmem:[%s22670_s3 + $0x1cc] ss:$16 sps:$4 sm:$0xff]  }
 0x409   : > { %12815 = vmatmul.mubr.msk.bf16.gmra.mrb[88].mxu0 %vm3014_vm0, %v23225_v28  ;;  %10041 = vmatprep.subr.bf16.mxu1 %v15175_v0  ;;  %v15182_v0 = vld [vmem:[%s22670_s3 + $0x1c0] ss:$16 sps:$4 sm:$0xff]  }
 0x40a   : > { %12831 = vmatmul.mubr.msk.bf16.gmra.mrb[88].mxu1 %vm3014_vm0, %v23225_v28  ;;  %5288 = vmatprep.mubr.bf16.mxu0 %v23059_v56  ;;  %v15188_v28 = vld [vmem:[%s22670_s3 + $0x1e0] ss:$16 sps:$4 sm:$0xff]  }
 0x40b   : > { %6060 = vmatprep.mubr.bf16.mxu1 %v23059_v56  ;;  %9270 = vmatpush1.bf16.msra.mxu0 %v15170_v22  ;;  %v15185_v22 = vld [vmem:[%s22670_s3 + $0x1c8] ss:$16 sps:$4 sm:$0xff]  }
 0x40c   : > { %10042 = vmatpush1.bf16.msra.mxu1 %v15173_v61  ;;  %9271 = vmatprep.subr.bf16.mxu0 %v15178_v47  ;;  %v15190_v61 = vld [vmem:[%s22670_s3 + $0x1e4] ss:$16 sps:$4 sm:$0xff]   ;;  %v15193_v47 = vld [vmem:[%s22670_s3 + $0x1ec] ss:$16 sps:$4 sm:$0xff]  }
 0x40d   : > { %10043 = vmatprep.subr.bf16.mxu1 %v15181_v62  ;;  %v15191_v62 = vld [vmem:[%s22670_s3 + $0x1e8] ss:$16 sps:$4 sm:$0xff]  }
 0x40f   : > { %9272 = vmatpush1.bf16.msra.mxu0 %v15176_v21  ;;  %v15196_v21 = vld [vmem:[%s22670_s3 + $0x204] ss:$16 sps:$4 sm:$0xff]  }
 0x410   : > { %10044 = vmatpush1.bf16.msra.mxu1 %v15179_v2  ;;  %9273 = vmatprep.subr.bf16.mxu0 %v15184_v45  ;;  %v23226_v2 = vpack.c.bf16 %v18740_v53, %v18734_v1 }
 0x411   : > { %12816 = vmatmul.mubr.msk.bf16.gmra.mrb[92].mxu0 %vm3014_vm0, %v18337_v39  ;;  %10045 = vmatprep.subr.bf16.mxu1 %v15187_v19 }
 0x412   : > { %12832 = vmatmul.mubr.msk.bf16.gmra.mrb[92].mxu1 %vm3014_vm0, %v18337_v39  ;;  %5298 = vmatprep.mubr.bf16.mxu0 %v23059_v56  ;;  %v15199_v39 = vld [vmem:[%s22670_s3 + $0x20c] ss:$16 sps:$4 sm:$0xff]   ;;  %v6280_v45 = vsub.bf16 0, %v23226_v2 }
 0x413   : > { %6070 = vmatprep.mubr.bf16.mxu1 %v23059_v56  ;;  %9274 = vmatpush1.bf16.msra.mxu0 %v15182_v0 }
 0x414   : > { %10046 = vmatpush1.bf16.msra.mxu1 %v15185_v22  ;;  %9275 = vmatprep.subr.bf16.mxu0 %v15190_v61  ;;  %v6411_v19 = vmul.bf16 1069105081, %v6280_v45 }
 0x415   : > { %10047 = vmatprep.subr.bf16.mxu1 %v15193_v47 }
 0x416   : > { %15514 = vpow.bf16 %v6411_v19 }
 0x417   : > { %9276 = vmatpush1.bf16.msra.mxu0 %v15188_v28  ;;  %v23231_v28 = vpack.c.bf16 %v18800_v44, %v18797_v51 }
 0x418   : > { %10048 = vmatpush1.bf16.msra.mxu1 %v15191_v62  ;;  %9438 = vmatprep.subr.bf16.mxu0 %v15196_v21 }
 0x419   : > { %12817 = vmatmul.mubr.msk.bf16.gmra.mrb[96].mxu0 %vm3014_vm0, %v18361_v42  ;;  %10210 = vmatprep.subr.bf16.mxu1 %v15199_v39 }
 0x41a   : > { %12833 = vmatmul.mubr.msk.bf16.gmra.mrb[96].mxu1 %vm3014_vm0, %v18361_v42  ;;  %5308 = vmatprep.mubr.bf16.mxu0 %v23059_v56  ;;  %v23227_v42 = vpack.c.bf16 %v18728_v63, %v18725_v59  ;;  %v23229_v59 = vpack.c.bf16 %v18764_v41, %v18761_v17  ;;  %v6295_v17 = vsub.bf16 0, %v23231_v28  ;;  %v23237_v28 = vld [vmem:[#allocation71_spill] sm:$0xff] }
 0x41b   : > { %6080 = vmatprep.mubr.bf16.mxu1 %v23059_v56 }
 0x41c   : > { %v6279_v0 = vsub.bf16 0, %v23227_v42  ;;  %v6287_v63 = vsub.bf16 0, %v23229_v59  ;;  %v6456_v51 = vmul.bf16 1069105081, %v6295_v17 }
 0x41e   : > { %v6408_v53 = vmul.bf16 1069105081, %v6279_v0  ;;  %v23234_v0 = vld [vmem:[#allocation70_spill] sm:$0xff] }
 0x420   : > { %15516 = vpow.bf16 %v6408_v53 }
 0x421   : > { %12818 = vmatmul.mubr.msk.bf16.gmra.mrb[100].mxu0 %vm3014_vm0, %v18373_v40  ;;  %v15515_v61 = vpop.eup %15514 }
 0x422   : > { %12834 = vmatmul.mubr.msk.bf16.gmra.mrb[100].mxu1 %vm3014_vm0, %v18373_v40  ;;  %5318 = vmatprep.mubr.bf16.mxu0 %v23059_v56  ;;  %v23228_v40 = vpack.c.bf16 %v18776_v60, %v18770_v14  ;;  %v6432_v60 = vmul.bf16 1069105081, %v6287_v63  ;;  %v6800_v41 = vunpack.c.h.bf16 %v15515_v61 }
 0x423   : > { %6090 = vmatprep.mubr.bf16.mxu1 %v23059_v56 }
 0x424   : > { %v6288_v1 = vsub.bf16 0, %v23228_v40  ;;  %v7056_v2 = vadd.f32 1.0, %v6800_v41  ;;  %v23238_v41 = vld [vmem:[#allocation97_spill] sm:$0xff] }
 0x426   : > { %v6435_v22 = vmul.bf16 1069105081, %v6288_v1 }
 0x428   : > { %15518 = vpow.bf16 %v6435_v22 }
 0x429   : > { %12819 = vmatmul.mubr.msk.bf16.gmra.mrb[104].mxu0 %vm3014_vm0, %v18383_v9  ;;  %15520 = vpow.bf16 %v6432_v60 }
 0x42a   : > { %12835 = vmatmul.mubr.msk.bf16.gmra.mrb[104].mxu1 %vm3014_vm0, %v18383_v9  ;;  %5328 = vmatprep.mubr.bf16.mxu0 %v23059_v56  ;;  %v23230_v9 = vpack.c.bf16 %v18812_v8, %v18806_v4  ;;  %v23232_v4 = vpack.c.bf16 %v18852_v18, %v18839_v24 }
 0x42b   : > { %6100 = vmatprep.mubr.bf16.mxu1 %v23059_v56  ;;  %v15517_v8 = vpop.eup %15516 }
 0x42c   : > { %v6296_v14 = vsub.bf16 0, %v23230_v9  ;;  %v6304_v44 = vsub.bf16 0, %v23232_v4  ;;  %v6791_v39 = vunpack.c.l.bf16 %v15517_v8  ;;  %v6799_v45 = vunpack.c.h.bf16 %v15517_v8 }
 0x42d   : > { %v23236_v9 = vpack.c.bf16 %v18875_v38, %v18869_v46  ;;  %v23239_v8 = vpack.c.bf16 %v18932_v26, %v23238_v41 }
 0x42e   : > { %v6459_v47 = vmul.bf16 1069105081, %v6296_v14  ;;  %v6483_v19 = vmul.bf16 1069105081, %v6304_v44  ;;  %v7047_v24 = vadd.f32 1.0, %v6791_v39  ;;  %v7055_v1 = vadd.f32 1.0, %v6799_v45 }
 0x42f   : > { %v6311_v14 = vsub.bf16 0, %v23236_v9  ;;  %v6320_v4 = vsub.bf16 0, %v23239_v8  ;;  %v23241_v45 = vld [vmem:[#allocation94_spill] sm:$0xff]  ;;  %v23245_v9 = vld [vmem:[#allocation104_spill] sm:$0xff]  ;;  %v15194_v8 = vld [vmem:[%s22670_s3 + $0x200] ss:$16 sps:$4 sm:$0xff]  }
 0x430   : > { %15522 = vpow.bf16 %v6459_v47 }
 0x431   : > { %12820 = vmatmul.mubr.msk.bf16.gmra.mrb[108].mxu0 %vm3014_vm0, %v18393_v32  ;;  %15524 = vpow.bf16 %v6456_v51 }
 0x432   : > { %12836 = vmatmul.mubr.msk.bf16.gmra.mrb[108].mxu1 %vm3014_vm0, %v18393_v32  ;;  %5338 = vmatprep.mubr.bf16.mxu0 %v23059_v56  ;;  %v6792_v32 = vunpack.c.l.bf16 %v15515_v61 }
 0x433   : > { %6110 = vmatprep.mubr.bf16.mxu1 %v23059_v56  ;;  %v15519_v21 = vpop.eup %15518 }
 0x434   : > { %v7048_v62 = vadd.f32 1.0, %v6792_v32  ;;  %v6808_v18 = vunpack.c.l.bf16 %v15519_v21  ;;  %v6816_v40 = vunpack.c.h.bf16 %v15519_v21  ;;  %v15521_v53 = vpop.eup %15520 }
 0x435   : > { %v6807_v47 = vunpack.c.l.bf16 %v15521_v53  ;;  %v6815_v17 = vunpack.c.h.bf16 %v15521_v53 }
 0x436   : > { %15526 = vrcp.f32 %v7048_v62  ;;  %v7064_v59 = vadd.f32 1.0, %v6808_v18  ;;  %v7072_v60 = vadd.f32 1.0, %v6816_v40  ;;  %v23243_v40 = vld [vmem:[#allocation72_spill] sm:$0xff] }
 0x437   : > { %15528 = vrcp.f32 %v7056_v2  ;;  %v7063_v44 = vadd.f32 1.0, %v6807_v47  ;;  %v7071_v62 = vadd.f32 1.0, %v6815_v17  ;;  %v23240_v2 = vld [vmem:[#allocation95_spill] sm:$0xff] }
 0x438   : > { %15530 = vpow.bf16 %v6483_v19  ;;  %v23242_v19 = vpack.c.bf16 %v23240_v2, %v23241_v45  ;;  %v15205_v2 = vld [vmem:[%s22670_s3 + $0x22c] ss:$16 sps:$4 sm:$0xff]  }
 0x439   : > { %12821 = vmatmul.mubr.msk.bf16.gmra.mrb[112].mxu0 %vm3014_vm0, %v18403_v50  ;;  %15532 = vrcp.f32 %v7047_v24 }
 0x43a   : > { %12837 = vmatmul.mubr.msk.bf16.gmra.mrb[112].mxu1 %vm3014_vm0, %v18403_v50  ;;  %5348 = vmatprep.mubr.bf16.mxu0 %v23059_v56  ;;  %v23233_v50 = vpack.c.bf16 %v18842_v55, %v18833_v29  ;;  %v23235_v55 = vpack.c.bf16 %v18887_v6, %v18881_v5  ;;  %15534 = vrcp.f32 %v7055_v1  ;;  %v6504_v5 = vmul.bf16 1069105081, %v6311_v14 }
 0x43b   : > { %6120 = vmatprep.mubr.bf16.mxu1 %v23059_v56  ;;  %v15523_v63 = vpop.eup %15522 }
 0x43c   : > { %v6303_v42 = vsub.bf16 0, %v23233_v50  ;;  %v6312_v29 = vsub.bf16 0, %v23235_v55  ;;  %v6824_v6 = vunpack.c.l.bf16 %v15523_v63  ;;  %v6832_v46 = vunpack.c.h.bf16 %v15523_v63  ;;  %v15525_v38 = vpop.eup %15524  ;;  %v23244_v63 = vld [vmem:[#allocation106_spill] sm:$0xff] }
 0x43d   : > { %v6319_v50 = vsub.bf16 0, %v23242_v19  ;;  %v6823_v18 = vunpack.c.l.bf16 %v15525_v38  ;;  %v6831_v26 = vunpack.c.h.bf16 %v15525_v38  ;;  %v23246_v14 = vpack.c.bf16 %v23244_v63, %v23245_v9  ;;  %v15211_v9 = vld [vmem:[%s22670_s3 + $0x24c] ss:$16 sps:$4 sm:$0xff]  }
 0x43e   : > { %v6480_v22 = vmul.bf16 1069105081, %v6303_v42  ;;  %v6507_v61 = vmul.bf16 1069105081, %v6312_v29  ;;  %v7080_v21 = vadd.f32 1.0, %v6824_v6 }
 0x43f   : > { %v6531_v42 = vmul.bf16 1069105081, %v6320_v4  ;;  %v6528_v29 = vmul.bf16 1069105081, %v6319_v50 }
 0x440   : > { %15536 = vpow.bf16 %v6480_v22  ;;  %v15527_v32 = vpop.eup %15526 }
 0x441   : > { %12822 = vmatmul.mubr.msk.bf16.gmra.mrb[116].mxu0 %vm3014_vm0, %v23234_v0  ;;  %15538 = vrcp.f32 %v7064_v59  ;;  %v15529_v51 = vpop.eup %15528 }
 0x442   : > { %12838 = vmatmul.mubr.msk.bf16.gmra.mrb[116].mxu1 %vm3014_vm0, %v23234_v0  ;;  %5358 = vmatprep.mubr.bf16.mxu0 %v23059_v56  ;;  %15540 = vrcp.f32 %v7072_v60  ;;  %v7560_v0 = vpack.c.bf16 %v15529_v51, %v15527_v32  ;;  %v6328_v60 = vsub.bf16 0, %v23246_v14 }
 0x443   : > { %6130 = vmatprep.mubr.bf16.mxu1 %v23059_v56  ;;  %15542 = vpow.bf16 %v6507_v61  ;;  %v15531_v39 = vpop.eup %15530  ;;  %v7079_v61 = vadd.f32 1.0, %v6823_v18  ;;  %v15200_v18 = vld [vmem:[%s22670_s3 + $0x220] ss:$16 sps:$4 sm:$0xff]  }
 0x444   : > { %15544 = vpow.bf16 %v6504_v5  ;;  %v15533_v24 = vpop.eup %15532  ;;  %v6840_v55 = vunpack.c.l.bf16 %v15531_v39  ;;  %v6848_v53 = vunpack.c.h.bf16 %v15531_v39  ;;  %v23247_v5 = vld [vmem:[#allocation102_spill] sm:$0xff] }
 0x445   : > { %15546 = vrcp.f32 %v7063_v44  ;;  %v15535_v1 = vpop.eup %15534  ;;  %v6555_v44 = vmul.bf16 1069105081, %v6328_v60 }
 0x446   : > { %15548 = vrcp.f32 %v7071_v62  ;;  %v7096_v17 = vadd.f32 1.0, %v6840_v55  ;;  %v7559_v41 = vpack.c.bf16 %v15535_v1, %v15533_v24  ;;  %v7104_v4 = vadd.f32 1.0, %v6848_v53  ;;  %v15197_v62 = vld [vmem:[%s22670_s3 + $0x208] ss:$16 sps:$4 sm:$0xff]   ;;  %v23251_v1 = vld [vmem:[#allocation111_spill] sm:$0xff] }
 0x447   : > { %15550 = vrcp.f32 %v7080_v21  ;;  %v15202_v21 = vld [vmem:[%s22670_s3 + $0x224] ss:$16 sps:$4 sm:$0xff]   ;;  %v15203_v53 = vld [vmem:[%s22670_s3 + $0x228] ss:$16 sps:$4 sm:$0xff]  }
 0x449   : > { %12823 = vmatmul.mubr.msk.bf16.gmra.mrb[120].mxu0 %vm3014_vm0, %v23237_v28 }
 0x44a   : > { %12839 = vmatmul.mubr.msk.bf16.gmra.mrb[120].mxu1 %vm3014_vm0, %v23237_v28  ;;  %5368 = vmatprep.mubr.bf16.mxu0 %v23059_v56  ;;  %v7087_v28 = vadd.f32 1.0, %v6831_v26  ;;  %v23250_v26 = vld [vmem:[#allocation113_spill] sm:$0xff] }
 0x44b   : > { %6140 = vmatprep.mubr.bf16.mxu1 %v23059_v56  ;;  %v7088_v56 = vadd.f32 1.0, %v6832_v46  ;;  %v15537_v22 = vpop.eup %15536  ;;  %v23248_v46 = vld [vmem:[#allocation101_spill] sm:$0xff]  ;;  %v23252_v55 = vpack.c.bf16 %v23250_v26, %v23251_v1  ;;  %v15215_v26 = vld [vmem:[%s22670_s3 + $0x268] ss:$16 sps:$4 sm:$0xff]  }
 0x44c   : > { %v15539_v59 = vpop.eup %15538  ;;  %v23249_v38 = vpack.c.bf16 %v23247_v5, %v23248_v46  ;;  %v6839_v39 = vunpack.c.l.bf16 %v15537_v22  ;;  %v6847_v45 = vunpack.c.h.bf16 %v15537_v22  ;;  %v15208_v22 = vld [vmem:[%s22670_s3 + $0x244] ss:$16 sps:$4 sm:$0xff]   ;;  %v15206_v46 = vld [vmem:[%s22670_s3 + $0x240] ss:$16 sps:$4 sm:$0xff]  }
 0x44d   : > { %15552 = vrcp.f32 %v7088_v56  ;;  %v15541_v47 = vpop.eup %15540 }
 0x44e   : > { %15554 = vpow.bf16 %v6531_v42  ;;  %v15543_v6 = vpop.eup %15542  ;;  %v6327_v32 = vsub.bf16 0, %v23249_v38  ;;  %v7568_v51 = vpack.c.bf16 %v15541_v47, %v15539_v59  ;;  %v7095_v59 = vadd.f32 1.0, %v6839_v39  ;;  %v23253_v47 = vld [vmem:[#allocation110_spill] sm:$0xff] }
 0x44f   : > { %15556 = vpow.bf16 %v6528_v29  ;;  %v20054_v19 = vpop.eup %15544  ;;  %v6856_v56 = vunpack.c.l.bf16 %v15543_v6  ;;  %v6864_v24 = vunpack.c.h.bf16 %v15543_v6  ;;  %v6336_v29 = vsub.bf16 0, %v23252_v55  ;;  %v15220_v55 = vld [vmem:[%s22670_s3 + $0x284] ss:$16 sps:$4 sm:$0xff]  }
 0x450   : > { %15558 = vrcp.f32 %v7079_v61  ;;  %v15547_v50 = vpop.eup %15546  ;;  %v7103_v14 = vadd.f32 1.0, %v6847_v45 }
 0x451   : > { %12824 = vmatmul.mubr.msk.bf16.gmra.mrb[124].mxu0 %vm3014_vm0, %v23243_v40  ;;  %15560 = vrcp.f32 %v7087_v28  ;;  %v15549_v42 = vpop.eup %15548  ;;  %v7112_v60 = vadd.f32 1.0, %v6856_v56  ;;  %v23254_v28 = vld [vmem:[#allocation5_spill] sm:$0xff]  ;;  %v7120_v38 = vadd.f32 1.0, %v6864_v24 }
 0x452   : > { %12840 = vmatmul.mubr.msk.bf16.gmra.mrb[124].mxu1 %vm3014_vm0, %v23243_v40  ;;  %9277 = vmatprep.mubr.bf16.mxu0 %v7560_v0  ;;  %15562 = vrcp.f32 %v7096_v17  ;;  %v15551_v40 = vpop.eup %15550  ;;  %v23255_v17 = vpack.c.bf16 %v23253_v47, %v23254_v28  ;;  %v7567_v5 = vpack.c.bf16 %v15549_v42, %v15547_v50  ;;  %v15212_v56 = vld [vmem:[%s22670_s3 + $0x260] ss:$16 sps:$4 sm:$0xff]  }
 0x453   : > { %10049 = vmatprep.mubr.bf16.mxu1 %v7560_v0  ;;  %v6552_v0 = vmul.bf16 1069105081, %v6327_v32  ;;  %15564 = vrcp.f32 %v7104_v4  ;;  %v6579_v32 = vmul.bf16 1069105081, %v6336_v29  ;;  %v15214_v4 = vld [vmem:[%s22670_s3 + $0x264] ss:$16 sps:$4 sm:$0xff]  }
 0x454   : > { %15566 = vpow.bf16 %v6555_v44  ;;  %v6335_v6 = vsub.bf16 0, %v23255_v17  ;;  %v6855_v44 = vunpack.c.l.bf16 %v20054_v19  ;;  %v15218_v28 = vld [vmem:[%s22670_s3 + $0x280] ss:$16 sps:$4 sm:$0xff]  }
 0x455   : > { %15568 = vpow.bf16 %v6552_v0 }
 0x456   : > { %15570 = vrcp.f32 %v7095_v59  ;;  %v6576_v50 = vmul.bf16 1069105081, %v6335_v6  ;;  %v7111_v1 = vadd.f32 1.0, %v6855_v44 }
 0x457   : > { %v15553_v63 = vpop.eup %15552  ;;  %15572 = vrcp.f32 %v7103_v14  ;;  %v23260_v14 = vld [vmem:[#allocation6_spill] sm:$0xff] }
 0x458   : > { %15574 = vrcp.f32 %v7112_v60 }
 0x459   : > { %9278 = vmatmul.mubr.bf16.vlgmr.msra.gmra.mrb[128].mxu0 %v7559_v41  ;;  %v15555_v61 = vpop.eup %15554  ;;  %15576 = vrcp.f32 %v7120_v38 }
 0x45a   : > { %10050 = vmatmul.mubr.bf16.vlgmr.msra.gmra.mrb[128].mxu1 %v7559_v41  ;;  %9287 = vmatprep.mubr.bf16.mxu0 %v7568_v51  ;;  %v7576_v41 = vpack.c.bf16 %v15553_v63, %v15551_v40  ;;  %v6880_v42 = vunpack.c.h.bf16 %v15555_v61  ;;  %15578 = vpow.bf16 %v6579_v32  ;;  %v15226_v32 = vld [vmem:[%s22670_s3 + $0x2a4] ss:$16 sps:$4 sm:$0xff]  }
 0x45b   : > { %9439 = vmatpush1.bf16.msra.mxu0 %v15194_v8  ;;  %10059 = vmatprep.mubr.bf16.mxu1 %v7568_v51  ;;  %v15209_v8 = vld [vmem:[%s22670_s3 + $0x248] ss:$16 sps:$4 sm:$0xff]   ;;  %v15217_v51 = vld [vmem:[%s22670_s3 + $0x26c] ss:$16 sps:$4 sm:$0xff]   ;;  %15580 = vpow.bf16 %v6576_v50  ;;  %v23262_v50 = vld [vmem:[#allocation125_spill] sm:$0xff] }
 0x45c   : > { %10211 = vmatpush1.bf16.msra.mxu1 %v15197_v62  ;;  %9440 = vmatprep.subr.bf16.mxu0 %v15202_v21  ;;  %v6863_v62 = vunpack.c.h.bf16 %v20054_v19  ;;  %v20088_v21 = vpop.eup %15556  ;;  %v23256_v19 = vld [vmem:[#allocation119_spill] sm:$0xff]  ;;  %v7136_v17 = vadd.f32 1.0, %v6880_v42  ;;  %15582 = vrcp.f32 %v7111_v1  ;;  %v15235_v1 = vld [vmem:[%s22670_s3 + $0x2cc] ss:$16 sps:$4 sm:$0xff]  }
 0x45d   : > { %10212 = vmatprep.subr.bf16.mxu1 %v15205_v2  ;;  %v15559_v39 = vpop.eup %15558  ;;  %v6872_v2 = vunpack.c.l.bf16 %v15555_v61  ;;  %v6871_v38 = vunpack.c.l.bf16 %v20088_v21 }
 0x45e   : > { %v15561_v45 = vpop.eup %15560 }
 0x45f   : > { %9441 = vmatpush1.bf16.msra.mxu0 %v15200_v18  ;;  %v15563_v0 = vpop.eup %15562  ;;  %v23257_v18 = vld [vmem:[#allocation117_spill] sm:$0xff]  ;;  %v7128_v59 = vadd.f32 1.0, %v6872_v2  ;;  %v7575_v47 = vpack.c.bf16 %v15561_v45, %v15559_v39 }
 0x460   : > { %10213 = vmatpush1.bf16.msra.mxu1 %v15203_v53  ;;  %9442 = vmatprep.subr.bf16.mxu0 %v15208_v22  ;;  %v23258_v24 = vpack.c.bf16 %v23256_v19, %v23257_v18  ;;  %v15565_v29 = vpop.eup %15564  ;;  %v7119_v53 = vadd.f32 1.0, %v6863_v62  ;;  %v15223_v22 = vld [vmem:[%s22670_s3 + $0x28c] ss:$16 sps:$4 sm:$0xff]   ;;  %v7127_v19 = vadd.f32 1.0, %v6871_v38  ;;  %v15227_v18 = vld [vmem:[%s22670_s3 + $0x2a8] ss:$16 sps:$4 sm:$0xff]  }
 0x461   : > { %9288 = vmatmul.mubr.bf16.gmra.mrb[132].mxu0 %v7567_v5  ;;  %10214 = vmatprep.subr.bf16.mxu1 %v15211_v9  ;;  %v15567_v63 = vpop.eup %15566  ;;  %v23259_v9 = vld [vmem:[#allocation116_spill] sm:$0xff] }
 0x462   : > { %10060 = vmatmul.mubr.bf16.gmra.mrb[132].mxu1 %v7567_v5  ;;  %9297 = vmatprep.mubr.bf16.mxu0 %v7576_v41  ;;  %v6344_v40 = vsub.bf16 0, %v23258_v24  ;;  %v23261_v60 = vpack.c.bf16 %v23259_v9, %v23260_v14  ;;  %v7584_v5 = vpack.c.bf16 %v15565_v29, %v15563_v0  ;;  %15584 = vrcp.f32 %v7119_v53  ;;  %v15232_v24 = vld [vmem:[%s22670_s3 + $0x2c4] ss:$16 sps:$4 sm:$0xff]   ;;  %v23266_v29 = vld [vmem:[#allocation74_spill] sm:$0xff]  ;;  %v23269_v14 = vld [vmem:[#allocation8_spill] sm:$0xff] }
 0x463   : > { %10069 = vmatprep.mubr.bf16.mxu1 %v7576_v41  ;;  %9443 = vmatpush1.bf16.msra.mxu0 %v15206_v46  ;;  %v15221_v46 = vld [vmem:[%s22670_s3 + $0x288] ss:$16 sps:$4 sm:$0xff]   ;;  %v6879_v41 = vunpack.c.h.bf16 %v20088_v21  ;;  %15586 = vrcp.f32 %v7128_v59  ;;  %v15224_v21 = vld [vmem:[%s22670_s3 + $0x2a0] ss:$16 sps:$4 sm:$0xff]   ;;  %v6896_v2 = vunpack.c.h.bf16 %v15567_v63 }
 0x464   : > { %10215 = vmatpush1.bf16.msra.mxu1 %v15209_v8  ;;  %9444 = vmatprep.subr.bf16.mxu0 %v15214_v4  ;;  %v6343_v61 = vsub.bf16 0, %v23261_v60  ;;  %v6603_v6 = vmul.bf16 1069105081, %v6344_v40  ;;  %v15229_v8 = vld [vmem:[%s22670_s3 + $0x2ac] ss:$16 sps:$4 sm:$0xff]   ;;  %v20122_v4 = vpop.eup %15568  ;;  %15588 = vrcp.f32 %v7136_v17 }
 0x465   : > { %10216 = vmatprep.subr.bf16.mxu1 %v15217_v51  ;;  %v15571_v44 = vpop.eup %15570  ;;  %v6888_v51 = vunpack.c.l.bf16 %v15567_v63  ;;  %v23268_v9 = vld [vmem:[#allocation122_spill] sm:$0xff]  ;;  %v15230_v17 = vld [vmem:[%s22670_s3 + $0x2c0] ss:$16 sps:$4 sm:$0xff]  }
 0x466   : > { %v15573_v62 = vpop.eup %15572  ;;  %v6600_v39 = vmul.bf16 1069105081, %v6343_v61  ;;  %15590 = vpow.bf16 %v6603_v6  ;;  %v23270_v60 = vpack.c.bf16 %v23268_v9, %v23269_v14  ;;  %v15233_v38 = vld [vmem:[%s22670_s3 + $0x2c8] ss:$16 sps:$4 sm:$0xff]  }
 0x467   : > { %9445 = vmatpush1.bf16.msra.mxu0 %v15212_v56  ;;  %v15575_v45 = vpop.eup %15574  ;;  %v23263_v56 = vld [vmem:[#allocation123_spill] sm:$0xff]  ;;  %v7144_v59 = vadd.f32 1.0, %v6888_v51  ;;  %v23277_v14 = vld [vmem:[#allocation128_spill] sm:$0xff] }
 0x468   : > { %10217 = vmatpush1.bf16.msra.mxu1 %v15215_v26  ;;  %9446 = vmatprep.subr.bf16.mxu0 %v15220_v55  ;;  %v23264_v42 = vpack.c.bf16 %v23262_v50, %v23263_v56  ;;  %v15577_v40 = vpop.eup %15576  ;;  %v7135_v26 = vadd.f32 1.0, %v6879_v41  ;;  %v23265_v55 = vld [vmem:[#allocation75_spill] sm:$0xff]  ;;  %15592 = vpow.bf16 %v6600_v39  ;;  %v6351_v61 = vsub.bf16 0, %v23270_v60  ;;  %v23278_v60 = vld [vmem:[#allocation10_spill] sm:$0xff] }
 0x469   : > { %9298 = vmatmul.mubr.bf16.gmra.mrb[136].mxu0 %v7575_v47  ;;  %10218 = vmatprep.subr.bf16.mxu1 %v15223_v22  ;;  %v23267_v53 = vpack.c.bf16 %v23265_v55, %v23266_v29  ;;  %v15579_v63 = vpop.eup %15578  ;;  %15594 = vrcp.f32 %v7127_v19  ;;  %v6895_v41 = vunpack.c.h.bf16 %v20122_v4  ;;  %v23271_v56 = vld [vmem:[#allocation131_spill] sm:$0xff]  ;;  %v15247_v55 = vld [vmem:[%s22670_s3 + $0x30c] ss:$16 sps:$4 sm:$0xff]   ;;  %v23274_v29 = vld [vmem:[#allocation77_spill] sm:$0xff] }
 0x46a   : > { %10070 = vmatmul.mubr.bf16.gmra.mrb[136].mxu1 %v7575_v47  ;;  %9307 = vmatprep.mubr.bf16.mxu0 %v7584_v5  ;;  %v6352_v0 = vsub.bf16 0, %v23264_v42  ;;  %v7583_v47 = vpack.c.bf16 %v15573_v62, %v15571_v44  ;;  %15596 = vrcp.f32 %v7135_v26  ;;  %v20159_v44 = vpop.eup %15580  ;;  %v6904_v39 = vunpack.c.l.bf16 %v15579_v63  ;;  %v23272_v42 = vld [vmem:[#allocation129_spill] sm:$0xff] }
 0x46b   : > { %10079 = vmatprep.mubr.bf16.mxu1 %v7584_v5  ;;  %9447 = vmatpush1.bf16.msra.mxu0 %v15218_v28  ;;  %v6281_v22 = vsub.bf16 0, %v23267_v53  ;;  %v7152_v28 = vadd.f32 1.0, %v6896_v2  ;;  %v7592_v5 = vpack.c.bf16 %v15577_v40, %v15575_v45  ;;  %v15583_v51 = vpop.eup %15582  ;;  %15598 = vrcp.f32 %v7144_v59  ;;  %v15244_v40 = vld [vmem:[%s22670_s3 + $0x304] ss:$16 sps:$4 sm:$0xff]   ;;  %v23275_v53 = vld [vmem:[#allocation76_spill] sm:$0xff] }
 0x46c   : > { %10219 = vmatpush1.bf16.msra.mxu1 %v15221_v46  ;;  %9448 = vmatprep.subr.bf16.mxu0 %v15226_v32  ;;  %v6627_v6 = vmul.bf16 1069105081, %v6352_v0  ;;  %v6887_v46 = vunpack.c.l.bf16 %v20122_v4  ;;  %v15238_v32 = vld [vmem:[%s22670_s3 + $0x2e4] ss:$16 sps:$4 sm:$0xff]   ;;  %v6624_v2 = vmul.bf16 1069105081, %v6351_v61  ;;  %v6912_v45 = vunpack.c.h.bf16 %v15579_v63 }
 0x46d   : > { %10220 = vmatprep.subr.bf16.mxu1 %v15229_v8  ;;  %v15241_v8 = vld [vmem:[%s22670_s3 + $0x2ec] ss:$16 sps:$4 sm:$0xff]   ;;  %v6414_v62 = vmul.bf16 1069105081, %v6281_v22  ;;  %15600 = vrcp.f32 %v7152_v28  ;;  %v15236_v4 = vld [vmem:[%s22670_s3 + $0x2e0] ss:$16 sps:$4 sm:$0xff]   ;;  %v23273_v0 = vpack.c.bf16 %v23271_v56, %v23272_v42  ;;  %v23276_v22 = vpack.c.bf16 %v23274_v29, %v23275_v53 }
 0x46e   : > { %15602 = vpow.bf16 %v6627_v6  ;;  %v7160_v63 = vadd.f32 1.0, %v6904_v39  ;;  %v23279_v61 = vpack.c.bf16 %v23277_v14, %v23278_v60  ;;  %v15242_v6 = vld [vmem:[%s22670_s3 + $0x300] ss:$16 sps:$4 sm:$0xff]   ;;  %v23284_v29 = vld [vmem:[#allocation78_spill] sm:$0xff]  ;;  %v23287_v14 = vld [vmem:[#allocation12_spill] sm:$0xff] }
 0x46f   : > { %9449 = vmatpush1.bf16.msra.mxu0 %v15224_v21  ;;  %v15585_v21 = vpop.eup %15584  ;;  %v6360_v19 = vsub.bf16 0, %v23273_v0  ;;  %15604 = vpow.bf16 %v6414_v62  ;;  %v6282_v59 = vsub.bf16 0, %v23276_v22  ;;  %v23280_v42 = vld [vmem:[#allocation137_spill] sm:$0xff]  ;;  %v23281_v0 = vld [vmem:[#allocation135_spill] sm:$0xff] }
 0x470   : > { %10221 = vmatpush1.bf16.msra.mxu1 %v15227_v18  ;;  %9450 = vmatprep.subr.bf16.mxu0 %v15232_v24  ;;  %v15587_v50 = vpop.eup %15586  ;;  %v7143_v18 = vadd.f32 1.0, %v6887_v46  ;;  %v15239_v24 = vld [vmem:[%s22670_s3 + $0x2e8] ss:$16 sps:$4 sm:$0xff]   ;;  %15606 = vpow.bf16 %v6624_v2  ;;  %v7591_v28 = vpack.c.bf16 %v15585_v21, %v15583_v51  ;;  %v15253_v51 = vld [vmem:[%s22670_s3 + $0x32c] ss:$16 sps:$4 sm:$0xff]  }
 0x471   : > { %9308 = vmatmul.mubr.bf16.gmra.mrb[140].mxu0 %v7583_v47  ;;  %10222 = vmatprep.subr.bf16.mxu1 %v15235_v1  ;;  %v15589_v26 = vpop.eup %15588  ;;  %v7151_v1 = vadd.f32 1.0, %v6895_v41  ;;  %v15250_v41 = vld [vmem:[%s22670_s3 + $0x324] ss:$16 sps:$4 sm:$0xff]   ;;  %v6417_v21 = vmul.bf16 1069105081, %v6282_v59 }
 0x472   : > { %10080 = vmatmul.mubr.bf16.gmra.mrb[140].mxu1 %v7583_v47  ;;  %9317 = vmatprep.mubr.bf16.mxu0 %v7592_v5  ;;  %v15591_v9 = vpop.eup %15590  ;;  %v6359_v47 = vsub.bf16 0, %v23279_v61  ;;  %v7600_v46 = vpack.c.bf16 %v15589_v26, %v15587_v50  ;;  %15608 = vrcp.f32 %v7143_v18  ;;  %v15256_v26 = vld [vmem:[%s22670_s3 + $0x344] ss:$16 sps:$4 sm:$0xff]  }
 0x473   : > { %10089 = vmatprep.mubr.bf16.mxu1 %v7592_v5  ;;  %9451 = vmatpush1.bf16.msra.mxu0 %v15230_v17  ;;  %v7168_v17 = vadd.f32 1.0, %v6912_v45  ;;  %v6651_v5 = vmul.bf16 1069105081, %v6360_v19  ;;  %15610 = vrcp.f32 %v7151_v1  ;;  %v20196_v62 = vpop.eup %15592  ;;  %v6920_v2 = vunpack.c.l.bf16 %v15591_v9 }
 0x474   : > { %10223 = vmatpush1.bf16.msra.mxu1 %v15233_v38  ;;  %9452 = vmatprep.subr.bf16.mxu0 %v15238_v32  ;;  %v6903_v38 = vunpack.c.l.bf16 %v20159_v44  ;;  %v15245_v32 = vld [vmem:[%s22670_s3 + $0x308] ss:$16 sps:$4 sm:$0xff]   ;;  %v15595_v39 = vpop.eup %15594  ;;  %15612 = vrcp.f32 %v7160_v63  ;;  %v6928_v50 = vunpack.c.h.bf16 %v15591_v9  ;;  %v23282_v19 = vpack.c.bf16 %v23280_v42, %v23281_v0  ;;  %v15259_v63 = vld [vmem:[%s22670_s3 + $0x34c] ss:$16 sps:$4 sm:$0xff]  }
 0x475   : > { %10224 = vmatprep.subr.bf16.mxu1 %v15241_v8  ;;  %v6911_v8 = vunpack.c.h.bf16 %v20159_v44  ;;  %v15597_v45 = vpop.eup %15596  ;;  %15614 = vrcp.f32 %v7168_v17  ;;  %v15248_v44 = vld [vmem:[%s22670_s3 + $0x320] ss:$16 sps:$4 sm:$0xff]   ;;  %v23286_v9 = vld [vmem:[#allocation134_spill] sm:$0xff]  ;;  %v23289_v17 = vpack.c.bf16 %v19486_v35, %v19480_v49  ;;  %v15262_v49 = vld [vmem:[%s22670_s3 + $0x364] ss:$16 sps:$4 sm:$0xff]  }
 0x476   : > { %v15599_v56 = vpop.eup %15598  ;;  %15616 = vpow.bf16 %v6651_v5  ;;  %v6368_v18 = vsub.bf16 0, %v23282_v19  ;;  %v23288_v60 = vpack.c.bf16 %v23286_v9, %v23287_v14  ;;  %v7599_v5 = vpack.c.bf16 %v15597_v45, %v15595_v39 }
 0x477   : > { %9453 = vmatpush1.bf16.msra.mxu0 %v15236_v4  ;;  %v6648_v4 = vmul.bf16 1069105081, %v6359_v47  ;;  %v15601_v1 = vpop.eup %15600  ;;  %v7167_v59 = vadd.f32 1.0, %v6911_v8  ;;  %15618 = vpow.bf16 %v6417_v21  ;;  %v7176_v47 = vadd.f32 1.0, %v6920_v2  ;;  %v15265_v2 = vld [vmem:[%s22670_s3 + $0x36c] ss:$16 sps:$4 sm:$0xff]  }
 0x478   : > { %10225 = vmatpush1.bf16.msra.mxu1 %v15239_v24  ;;  %9454 = vmatprep.subr.bf16.mxu0 %v15244_v40  ;;  %v7159_v24 = vadd.f32 1.0, %v6903_v38  ;;  %v15251_v40 = vld [vmem:[%s22670_s3 + $0x328] ss:$16 sps:$4 sm:$0xff]   ;;  %v6367_v61 = vsub.bf16 0, %v23288_v60  ;;  %v15254_v38 = vld [vmem:[%s22670_s3 + $0x340] ss:$16 sps:$4 sm:$0xff]   ;;  %v6919_v8 = vunpack.c.l.bf16 %v20196_v62  ;;  %v6927_v21 = vunpack.c.h.bf16 %v20196_v62 }
 0x479   : > { %9318 = vmatmul.mubr.bf16.gmra.mrb[144].mxu0 %v7591_v28  ;;  %10226 = vmatprep.subr.bf16.mxu1 %v15247_v55  ;;  %v23283_v55 = vld [vmem:[#allocation79_spill] sm:$0xff]  ;;  %15620 = vpow.bf16 %v6648_v4  ;;  %v23293_v9 = vpack.c.bf16 %v19477_v12, %v19471_v15  ;;  %v15269_v15 = vld [vmem:[%s22670_s3 + $0x388] ss:$16 sps:$4 sm:$0xff]  }
 0x47a   : > { %10090 = vmatmul.mubr.bf16.gmra.mrb[144].mxu1 %v7591_v28  ;;  %9327 = vmatprep.mubr.bf16.mxu0 %v7600_v46  ;;  %v23285_v53 = vpack.c.bf16 %v23283_v55, %v23284_v29  ;;  %v15603_v28 = vpop.eup %15602  ;;  %15622 = vrcp.f32 %v7159_v24  ;;  %v15260_v62 = vld [vmem:[%s22670_s3 + $0x360] ss:$16 sps:$4 sm:$0xff]   ;;  %v23291_v24 = vld [vmem:[#allocation80_spill] sm:$0xff]  ;;  %v15268_v29 = vld [vmem:[%s22670_s3 + $0x384] ss:$16 sps:$4 sm:$0xff]  }
 0x47b   : > { %10099 = vmatprep.mubr.bf16.mxu1 %v7600_v46  ;;  %9455 = vmatpush1.bf16.msra.mxu0 %v15242_v6  ;;  %v6376_v6 = vsub.bf16 0, %v23289_v17  ;;  %v7184_v46 = vadd.f32 1.0, %v6928_v50  ;;  %v20232_v35 = vpop.eup %15604  ;;  %15624 = vrcp.f32 %v7167_v59  ;;  %v6672_v50 = vmul.bf16 1069105081, %v6367_v61  ;;  %v15263_v55 = vld [vmem:[%s22670_s3 + $0x368] ss:$16 sps:$4 sm:$0xff]  }
 0x47c   : > { %10227 = vmatpush1.bf16.msra.mxu1 %v15245_v32  ;;  %9456 = vmatprep.subr.bf16.mxu0 %v15250_v41  ;;  %v6289_v22 = vsub.bf16 0, %v23285_v53  ;;  %v6675_v32 = vmul.bf16 1069105081, %v6368_v18  ;;  %v7608_v41 = vpack.c.bf16 %v15601_v1, %v15599_v56  ;;  %v20238_v45 = vpop.eup %15606  ;;  %15626 = vrcp.f32 %v7176_v47  ;;  %v23290_v18 = vld [vmem:[#allocation81_spill] sm:$0xff] }
 0x47d   : > { %10228 = vmatprep.subr.bf16.mxu1 %v15253_v51  ;;  %v15257_v51 = vld [vmem:[%s22670_s3 + $0x348] ss:$16 sps:$4 sm:$0xff]   ;;  %v15609_v4 = vpop.eup %15608  ;;  %v6699_v42 = vmul.bf16 1069105081, %v6376_v6  ;;  %15628 = vrcp.f32 %v7184_v46  ;;  %v6944_v0 = vunpack.c.h.bf16 %v15603_v28  ;;  %v7175_v1 = vadd.f32 1.0, %v6919_v8 }
 0x47e   : > { %v6438_v39 = vmul.bf16 1069105081, %v6289_v22  ;;  %v15611_v56 = vpop.eup %15610  ;;  %15630 = vpow.bf16 %v6675_v32  ;;  %v6793_v22 = vunpack.c.l.bf16 %v20232_v35  ;;  %v7183_v59 = vadd.f32 1.0, %v6927_v21  ;;  %v15277_v8 = vld [vmem:[%s22670_s3 + $0x3ac] ss:$16 sps:$4 sm:$0xff]  }
 0x47f   : > { %9457 = vmatpush1.bf16.msra.mxu0 %v15248_v44  ;;  %v6936_v44 = vunpack.c.l.bf16 %v15603_v28  ;;  %v15613_v19 = vpop.eup %15612  ;;  %v6375_v14 = vsub.bf16 0, %v23293_v9  ;;  %v23294_v47 = vpack.c.bf16 %v19526_v16, %v19520_v7  ;;  %v7607_v17 = vpack.c.bf16 %v15611_v56, %v15609_v4  ;;  %v15274_v7 = vld [vmem:[%s22670_s3 + $0x3a4] ss:$16 sps:$4 sm:$0xff]   ;;  %v15278_v9 = vld [vmem:[%s22670_s3 + $0x3c0] ss:$16 sps:$4 sm:$0xff]  }
 0x480   : > { %10229 = vmatpush1.bf16.msra.mxu1 %v15251_v40  ;;  %9458 = vmatprep.subr.bf16.mxu0 %v15256_v26  ;;  %v23292_v40 = vpack.c.bf16 %v23290_v18, %v23291_v24  ;;  %v15615_v53 = vpop.eup %15614  ;;  %15632 = vpow.bf16 %v6438_v39  ;;  %v7200_v6 = vadd.f32 1.0, %v6944_v0  ;;  %v6935_v12 = vunpack.c.l.bf16 %v20238_v45  ;;  %v15275_v0 = vld [vmem:[%s22670_s3 + $0x3a8] ss:$16 sps:$4 sm:$0xff]  }
 0x481   : > { %9328 = vmatmul.mubr.bf16.gmra.mrb[148].mxu0 %v7599_v5  ;;  %10230 = vmatprep.subr.bf16.mxu1 %v15259_v63  ;;  %v15271_v63 = vld [vmem:[%s22670_s3 + $0x38c] ss:$16 sps:$4 sm:$0xff]   ;;  %15634 = vpow.bf16 %v6672_v50  ;;  %v7192_v60 = vadd.f32 1.0, %v6936_v44  ;;  %v15617_v61 = vpop.eup %15616  ;;  %v6384_v28 = vsub.bf16 0, %v23294_v47  ;;  %v7049_v32 = vadd.f32 1.0, %v6793_v22 }
 0x482   : > { %10100 = vmatmul.mubr.bf16.gmra.mrb[148].mxu1 %v7599_v5  ;;  %9337 = vmatprep.mubr.bf16.mxu0 %v7608_v41  ;;  %v6290_v26 = vsub.bf16 0, %v23292_v40  ;;  %15636 = vpow.bf16 %v6699_v42  ;;  %v15266_v5 = vld [vmem:[%s22670_s3 + $0x380] ss:$16 sps:$4 sm:$0xff]   ;;  %v20272_v16 = vpop.eup %15618  ;;  %v6696_v39 = vmul.bf16 1069105081, %v6375_v14  ;;  %v6952_v21 = vunpack.c.l.bf16 %v15617_v61 }
 0x483   : > { %10109 = vmatprep.mubr.bf16.mxu1 %v7608_v41  ;;  %9459 = vmatpush1.bf16.msra.mxu0 %v15254_v38  ;;  %v7616_v38 = vpack.c.bf16 %v15615_v53, %v15613_v19  ;;  %15638 = vrcp.f32 %v7175_v1  ;;  %v6943_v41 = vunpack.c.h.bf16 %v20238_v45  ;;  %v6723_v4 = vmul.bf16 1069105081, %v6384_v28  ;;  %v15272_v45 = vld [vmem:[%s22670_s3 + $0x3a0] ss:$16 sps:$4 sm:$0xff]   ;;  %v23297_v1 = vld [vmem:[#allocation82_spill] sm:$0xff] }
 0x484   : > { %10231 = vmatpush1.bf16.msra.mxu1 %v15257_v51  ;;  %9460 = vmatprep.subr.bf16.mxu0 %v15262_v49  ;;  %v6441_v46 = vmul.bf16 1069105081, %v6290_v26  ;;  %15640 = vrcp.f32 %v7183_v59  ;;  %v20278_v51 = vpop.eup %15620  ;;  %v6960_v50 = vunpack.c.h.bf16 %v15617_v61  ;;  %v6801_v56 = vunpack.c.h.bf16 %v20232_v35  ;;  %v15283_v35 = vld [vmem:[%s22670_s3 + $0x3cc] ss:$16 sps:$4 sm:$0xff]   ;;  %v23296_v26 = vld [vmem:[#allocation83_spill] sm:$0xff] }
 0x485   : > { %10232 = vmatprep.subr.bf16.mxu1 %v15265_v2  ;;  %v15623_v49 = vpop.eup %15622  ;;  %15642 = vrcp.f32 %v7192_v60  ;;  %v7191_v42 = vadd.f32 1.0, %v6935_v12  ;;  %v23295_v18 = vpack.c.bf16 %v19517_v11, %v19511_v25  ;;  %v7199_v40 = vadd.f32 1.0, %v6943_v41 }
 0x486   : > { %v15625_v2 = vpop.eup %15624  ;;  %15644 = vrcp.f32 %v7200_v6  ;;  %v7208_v53 = vadd.f32 1.0, %v6952_v21  ;;  %v23299_v59 = vpack.c.bf16 %v19562_v30, %v19556_v33  ;;  %v7216_v11 = vadd.f32 1.0, %v6960_v50  ;;  %v15281_v30 = vld [vmem:[%s22670_s3 + $0x3c8] ss:$16 sps:$4 sm:$0xff]   ;;  %v15286_v33 = vld [vmem:[%s22670_s3 + $0x3e4] ss:$16 sps:$4 sm:$0xff]  }
 0x487   : > { %9461 = vmatpush1.bf16.msra.mxu0 %v15260_v62  ;;  %v15627_v44 = vpop.eup %15626  ;;  %15646 = vpow.bf16 %v6441_v46  ;;  %v15280_v62 = vld [vmem:[%s22670_s3 + $0x3c4] ss:$16 sps:$4 sm:$0xff]   ;;  %v6383_v24 = vsub.bf16 0, %v23295_v18  ;;  %v7615_v25 = vpack.c.bf16 %v15625_v2, %v15623_v49  ;;  %v7057_v60 = vadd.f32 1.0, %v6801_v56  ;;  %v15287_v2 = vld [vmem:[%s22670_s3 + $0x3e8] ss:$16 sps:$4 sm:$0xff]  }
 0x488   : > { %10233 = vmatpush1.bf16.msra.mxu1 %v15263_v55  ;;  %9462 = vmatprep.subr.bf16.mxu0 %v15268_v29  ;;  %v15629_v19 = vpop.eup %15628  ;;  %15648 = vrcp.f32 %v7049_v32  ;;  %v23298_v55 = vpack.c.bf16 %v23296_v26, %v23297_v1  ;;  %v6951_v47 = vunpack.c.l.bf16 %v20278_v51  ;;  %v6959_v6 = vunpack.c.h.bf16 %v20278_v51 }
 0x489   : > { %9338 = vmatmul.mubr.bf16.gmra.mrb[152].mxu0 %v7607_v17  ;;  %10234 = vmatprep.subr.bf16.mxu1 %v15271_v63  ;;  %15650 = vpow.bf16 %v6696_v39  ;;  %v15631_v22 = vpop.eup %15630  ;;  %v6392_v63 = vsub.bf16 0, %v23299_v59  ;;  %v7624_v61 = vpack.c.bf16 %v15629_v19, %v15627_v44  ;;  %v23300_v49 = vpack.c.bf16 %v19550_v3, %v19547_v58  ;;  %v23302_v44 = vld [vmem:[#allocation84_spill] sm:$0xff] }
 0x48a   : > { %10110 = vmatmul.mubr.bf16.gmra.mrb[152].mxu1 %v7607_v17  ;;  %9347 = vmatprep.mubr.bf16.mxu0 %v7616_v38  ;;  %v6297_v29 = vsub.bf16 0, %v23298_v55  ;;  %15652 = vpow.bf16 %v6723_v4  ;;  %v6720_v17 = vmul.bf16 1069105081, %v6383_v24  ;;  %v6976_v41 = vunpack.c.h.bf16 %v15631_v22  ;;  %v15292_v4 = vld [vmem:[%s22670_s3 + $0x404] ss:$16 sps:$4 sm:$0xff]  }
 0x48b   : > { %10119 = vmatprep.mubr.bf16.mxu1 %v7616_v38  ;;  %9463 = vmatpush1.bf16.msra.mxu0 %v15266_v5  ;;  %v20305_v14 = vpop.eup %15632  ;;  %15654 = vrcp.f32 %v7191_v42  ;;  %v15289_v5 = vld [vmem:[%s22670_s3 + $0x3ec] ss:$16 sps:$4 sm:$0xff]   ;;  %v6747_v32 = vmul.bf16 1069105081, %v6392_v63  ;;  %v6391_v39 = vsub.bf16 0, %v23300_v49  ;;  %v7207_v21 = vadd.f32 1.0, %v6951_v47 }
 0x48c   : > { %10235 = vmatpush1.bf16.msra.mxu1 %v15269_v15  ;;  %9464 = vmatprep.subr.bf16.mxu0 %v15274_v7  ;;  %v20314_v28 = vpop.eup %15634  ;;  %15656 = vrcp.f32 %v7199_v40  ;;  %v6462_v12 = vmul.bf16 1069105081, %v6297_v29  ;;  %v6968_v15 = vunpack.c.l.bf16 %v15631_v22  ;;  %v15295_v58 = vld [vmem:[%s22670_s3 + $0x40c] ss:$16 sps:$4 sm:$0xff]   ;;  %v6400_v3 = vsub.bf16 0, %v6272_v31 }
 0x48d   : > { %10236 = vmatprep.subr.bf16.mxu1 %v15277_v8  ;;  %v20320_v46 = vpop.eup %15636  ;;  %15658 = vrcp.f32 %v7208_v53  ;;  %v15284_v8 = vld [vmem:[%s22670_s3 + $0x3e0] ss:$16 sps:$4 sm:$0xff]   ;;  %v7232_v40 = vadd.f32 1.0, %v6976_v41  ;;  %v6744_v26 = vmul.bf16 1069105081, %v6391_v39  ;;  %v6975_v55 = vunpack.c.h.bf16 %v20314_v28 }
 0x48e   : > { %v15639_v38 = vpop.eup %15638  ;;  %15660 = vrcp.f32 %v7216_v11  ;;  %v6984_v31 = vunpack.c.l.bf16 %v20320_v46  ;;  %v6771_v22 = vmul.bf16 1069105081, %v6400_v3  ;;  %v6992_v59 = vunpack.c.h.bf16 %v20320_v46  ;;  %v23305_v11 = vld [vmem:[#allocation86_spill] sm:$0xff] }
 0x48f   : > { %9465 = vmatpush1.bf16.msra.mxu0 %v15272_v45  ;;  %v15641_v7 = vpop.eup %15640  ;;  %15662 = vrcp.f32 %v7057_v60  ;;  %v23301_v45 = vld [vmem:[#allocation85_spill] sm:$0xff] }
 0x490   : > { %10237 = vmatpush1.bf16.msra.mxu1 %v15275_v0  ;;  %9466 = vmatprep.subr.bf16.mxu0 %v15280_v62  ;;  %v15643_v51 = vpop.eup %15642  ;;  %v23303_v56 = vpack.c.bf16 %v23301_v45, %v23302_v44  ;;  %15664 = vpow.bf16 %v6720_v17  ;;  %v7215_v0 = vadd.f32 1.0, %v6959_v6  ;;  %v7224_v62 = vadd.f32 1.0, %v6968_v15  ;;  %v23307_v17 = vld [vmem:[#allocation89_spill] sm:$0xff]  ;;  %v23308_v6 = vld [vmem:[#allocation88_spill] sm:$0xff] }
 0x491   : > { %9348 = vmatmul.mubr.bf16.gmra.mrb[156].mxu0 %v7615_v25  ;;  %10238 = vmatprep.subr.bf16.mxu1 %v15283_v35  ;;  %v15645_v50 = vpop.eup %15644  ;;  %15666 = vpow.bf16 %v6462_v12  ;;  %v7623_v24 = vpack.c.bf16 %v15641_v7, %v15639_v38  ;;  %v6967_v35 = vunpack.c.l.bf16 %v20314_v28  ;;  %v7240_v38 = vadd.f32 1.0, %v6984_v31 }
 0x492   : > { %10120 = vmatmul.mubr.bf16.gmra.mrb[156].mxu1 %v7615_v25  ;;  %9357 = vmatprep.mubr.bf16.mxu0 %v7624_v61  ;;  %v6298_v42 = vsub.bf16 0, %v23303_v56  ;;  %v20343_v19 = vpop.eup %15646  ;;  %15668 = vpow.bf16 %v6747_v32  ;;  %v7632_v1 = vpack.c.bf16 %v15645_v50, %v15643_v51  ;;  %v23304_v25 = vld [vmem:[#allocation87_spill] sm:$0xff]  ;;  %v7248_v15 = vadd.f32 1.0, %v6992_v59  ;;  %v23311_v50 = vld [vmem:[#allocation90_spill] sm:$0xff] }
 0x493   : > { %10129 = vmatprep.mubr.bf16.mxu1 %v7624_v61  ;;  %9467 = vmatpush1.bf16.msra.mxu0 %v15278_v9  ;;  %v20345_v18 = vpop.eup %15648  ;;  %15670 = vrcp.f32 %v7207_v21  ;;  %v23306_v9 = vpack.c.bf16 %v23304_v25, %v23305_v11  ;;  %v7223_v61 = vadd.f32 1.0, %v6967_v35 }
 0x494   : > { %10239 = vmatpush1.bf16.msra.mxu1 %v15281_v30  ;;  %9468 = vmatprep.subr.bf16.mxu0 %v15286_v33  ;;  %v15651_v34 = vpop.eup %15650  ;;  %v6465_v48 = vmul.bf16 1069105081, %v6298_v42  ;;  %15672 = vrcp.f32 %v7215_v0  ;;  %v6399_v30 = vsub.bf16 0, %v6271_v52  ;;  %v7231_v33 = vadd.f32 1.0, %v6975_v55 }
 0x495   : > { %10240 = vmatprep.subr.bf16.mxu1 %v15289_v5  ;;  %v15653_v29 = vpop.eup %15652  ;;  %15674 = vrcp.f32 %v7224_v62  ;;  %v6305_v60 = vsub.bf16 0, %v23306_v9  ;;  %v23309_v5 = vpack.c.bf16 %v23307_v17, %v23308_v6  ;;  %v6983_v41 = vunpack.c.l.bf16 %v15651_v34 }
 0x496   : > { %v15655_v53 = vpop.eup %15654  ;;  %15676 = vrcp.f32 %v7232_v40  ;;  %v6768_v51 = vmul.bf16 1069105081, %v6399_v30  ;;  %v6991_v57 = vunpack.c.h.bf16 %v15651_v34  ;;  %v7000_v39 = vunpack.c.l.bf16 %v15653_v29 }
 0x497   : > { %9469 = vmatpush1.bf16.msra.mxu0 %v15284_v8  ;;  %v15657_v63 = vpop.eup %15656  ;;  %15678 = vpow.bf16 %v6744_v26  ;;  %v6306_v46 = vsub.bf16 0, %v23309_v5  ;;  %v6486_v7 = vmul.bf16 1069105081, %v6305_v60  ;;  %v7008_v56 = vunpack.c.h.bf16 %v15653_v29  ;;  %v23313_v26 = vld [vmem:[#allocation93_spill] sm:$0xff] }
 0x498   : > { %10241 = vmatpush1.bf16.msra.mxu1 %v15287_v2  ;;  %9631 = vmatprep.subr.bf16.mxu0 %v15292_v4  ;;  %v15659_v47 = vpop.eup %15658  ;;  %15680 = vpow.bf16 %v6465_v48  ;;  %v7631_v32 = vpack.c.bf16 %v15657_v63, %v15655_v53  ;;  %v23310_v4 = vld [vmem:[#allocation91_spill] sm:$0xff]  ;;  %v7239_v0 = vadd.f32 1.0, %v6983_v41  ;;  %v7247_v62 = vadd.f32 1.0, %v6991_v57  ;;  %v23317_v41 = vld [vmem:[#allocation98_spill] sm:$0xff] }
 0x499   : > { %9358 = vmatmul.mubr.bf16.gmra.mrb[160].mxu0 %v7623_v24  ;;  %10403 = vmatprep.subr.bf16.mxu1 %v15295_v58  ;;  %v15661_v28 = vpop.eup %15660  ;;  %15682 = vpow.bf16 %v6771_v22  ;;  %v6489_v49 = vmul.bf16 1069105081, %v6306_v46  ;;  %v23312_v45 = vpack.c.bf16 %v23310_v4, %v23311_v50  ;;  %v7256_v40 = vadd.f32 1.0, %v7000_v39  ;;  %v23316_v22 = vld [vmem:[#allocation73_spill] sm:$0xff] }
 0x49a   : > { %10130 = vmatmul.mubr.bf16.gmra.mrb[160].mxu1 %v7623_v24  ;;  %9367 = vmatprep.mubr.bf16.mxu0 %v7632_v1  ;;  %v20360_v12 = vpop.eup %15662  ;;  %15684 = vrcp.f32 %v7223_v61  ;;  %v7640_v43 = vpack.c.bf16 %v15661_v28, %v15659_v47  ;;  %v7264_v48 = vadd.f32 1.0, %v7008_v56  ;;  %v1032_v59 = vsub.s32 4, %v23316_v22 }
 0x49b   : > { %10139 = vmatprep.mubr.bf16.mxu1 %v7632_v1  ;;  %v15665_v8 = vpop.eup %15664  ;;  %15686 = vrcp.f32 %v7231_v33  ;;  %v6313_v44 = vsub.bf16 0, %v23312_v45  ;;  %v23314_v1 = vld [vmem:[#allocation92_spill] sm:$0xff]  ;;  %v1040_v9 = vsub.s32 6, %v23316_v22  ;;  %v1036_v60 = vsub.s32 5, %v23316_v22 }
 0x49c   : > { %v20362_v52 = vpop.eup %15666  ;;  %15688 = vrcp.f32 %v7240_v38  ;;  %v6999_v58 = vunpack.c.l.bf16 %v15665_v8  ;;  %v23315_v55 = vpack.c.bf16 %v23313_v26, %v23314_v1  ;;  %v7007_v31 = vunpack.c.h.bf16 %v15665_v8  ;;  %v23318_v8 = vld [vmem:[#allocation96_spill] sm:$0xff] }
 0x49d   : > { %v15669_v21 = vpop.eup %15668  ;;  %15690 = vrcp.f32 %v7248_v15  ;;  %v6510_v35 = vmul.bf16 1069105081, %v6313_v44  ;;  %v1044_v30 = vsub.s32 7, %v23316_v22  ;;  %v16666_v15 = vld [vmem:[%s22669_s2] sm:$0xff] }
 0x49e   : > { %v15671_v2 = vpop.eup %15670  ;;  %15692 = vpow.bf16 %v6486_v7  ;;  %v20370_v34 = vsub.bf16 0, %v23315_v55  ;;  %v7255_v63 = vadd.f32 1.0, %v6999_v58  ;;  %v7016_v33 = vunpack.c.l.bf16 %v15669_v21 }
 0x49f   : > { %v15673_v42 = vpop.eup %15672  ;;  %15694 = vpow.bf16 %v6768_v51  ;;  %v7024_v28 = vunpack.c.h.bf16 %v15669_v21  ;;  %v7263_v6 = vadd.f32 1.0, %v7007_v31  ;;  %v20387_v7 = vrot.slane %v16666_v15, %v1032_v59 }
 0x4a0   : > { %v15675_v3 = vpop.eup %15674  ;;  %15696 = vpow.bf16 %v6489_v49  ;;  %v7639_v53 = vpack.c.bf16 %v15673_v42, %v15671_v2  ;;  %v6513_v38 = vmul.bf16 1069105081, %v20370_v34  ;;  %v23319_v51 = vpack.c.bf16 %v23317_v41, %v23318_v8 }
 0x4a1   : > { %9368 = vmatmul.mubr.bf16.gmra.mrb[164].mxu0 %v7631_v32  ;;  %v15677_v24 = vpop.eup %15676  ;;  %15698 = vrcp.f32 %v7239_v0  ;;  %v20394_v49 = vrot.slane %v16666_v15, %v1040_v9  ;;  %v20396_v39 = vrot.slane %v16666_v15, %v1036_v60  ;;  %v20399_v50 = vrot.slane %v16666_v15, %v1044_v30  ;;  %v23324_v15 = vld [vmem:[#allocation100_spill] sm:$0xff] }
 0x4a2   : > { %10140 = vmatmul.mubr.bf16.gmra.mrb[164].mxu1 %v7631_v32  ;;  %9377 = vmatprep.mubr.bf16.mxu0 %v7640_v43  ;;  %v20372_v29 = vpop.eup %15678  ;;  %v7648_v11 = vpack.c.bf16 %v15677_v24, %v15675_v3  ;;  %15700 = vrcp.f32 %v7247_v62  ;;  %v7272_v45 = vadd.f32 1.0, %v7016_v33  ;;  %v7280_v44 = vadd.f32 1.0, %v7024_v28 }
 0x4a3   : > { %10149 = vmatprep.mubr.bf16.mxu1 %v7640_v43  ;;  %v20375_v25 = vpop.eup %15680  ;;  %15702 = vrcp.f32 %v7256_v40  ;;  %v7015_v5 = vunpack.c.l.bf16 %v20372_v29  ;;  %v20392_v43 = vsub.bf16 0, %v23319_v51  ;;  %v7023_v21 = vunpack.c.h.bf16 %v20372_v29  ;;  %v23327_v51 = vld [vmem:[#allocation105_spill] sm:$0xff] }
 0x4a4   : > { %v20379_v61 = vpop.eup %15682  ;;  %15704 = vrcp.f32 %v7264_v48 }
 0x4a5   : > { %v15685_v47 = vpop.eup %15684  ;;  %15706 = vpow.bf16 %v6510_v35  ;;  %v7271_v58 = vadd.f32 1.0, %v7015_v5  ;;  %v7032_v3 = vunpack.c.l.bf16 %v20379_v61  ;;  %v7040_v62 = vunpack.c.h.bf16 %v20379_v61 }
 0x4a6   : > { %v15687_v17 = vpop.eup %15686  ;;  %15708 = vrcp.f32 %v7255_v63 }
 0x4a7   : > { %v15689_v46 = vpop.eup %15688  ;;  %15710 = vrcp.f32 %v7263_v6  ;;  %v7647_v55 = vpack.c.bf16 %v15687_v17, %v15685_v47 }
 0x4a8   : > { %v15691_v32 = vpop.eup %15690  ;;  %15712 = vrcp.f32 %v7272_v45  ;;  %v23330_v45 = vld [vmem:[#allocation108_spill] sm:$0xff] }
 0x4a9   : > { %9378 = vmatmul.mubr.bf16.gmra.mrb[168].mxu0 %v7639_v53  ;;  %v20401_v56 = vpop.eup %15692  ;;  %v7656_v34 = vpack.c.bf16 %v15691_v32, %v15689_v46  ;;  %15714 = vrcp.f32 %v7280_v44  ;;  %v6534_v46 = vmul.bf16 1069105081, %v20392_v43  ;;  %v23325_v32 = vld [vmem:[#allocation99_spill] sm:$0xff]  ;;  %v7288_v43 = vadd.f32 1.0, %v7032_v3 }
 0x4aa   : > { %10150 = vmatmul.mubr.bf16.gmra.mrb[168].mxu1 %v7639_v53  ;;  %9387 = vmatprep.mubr.bf16.mxu0 %v7648_v11  ;;  %v20405_v24 = vpop.eup %15694  ;;  %15716 = vpow.bf16 %v6513_v38  ;;  %v23326_v41 = vpack.c.bf16 %v23324_v15, %v23325_v32  ;;  %v23331_v44 = vld [vmem:[#allocation107_spill] sm:$0xff] }
 0x4ab   : > { %10159 = vmatprep.mubr.bf16.mxu1 %v7648_v11  ;;  %v20413_v48 = vpop.eup %15696  ;;  %v7031_v28 = vunpack.c.l.bf16 %v20405_v24  ;;  %v23332_v38 = vpack.c.bf16 %v23330_v45, %v23331_v44  ;;  %15718 = vrcp.f32 %v7271_v58 }
 0x4ac   : > { %v5220_v57 = vpop.f32.mrb[64].mxu0  ;;  %v15699_v11 = vpop.eup %15698  ;;  %v20446_v8 = vsub.bf16 0, %v23326_v41 }
 0x4ad   : > { %v5992_v2 = vpop.f32.mrb[64].mxu1  ;;  %v5222_v4 = vpop.f32.mrb[65].mxu0  ;;  %v20408_v40 = vadd.f32 %v5220_v57, %v20387_v7  ;;  %v23328_v57 = vld [vmem:[#allocation103_spill] sm:$0xff] }
 0x4ae   : > { %v5994_v42 = vpop.f32.mrb[65].mxu1  ;;  %v5224_v0 = vpop.f32.mrb[66].mxu0  ;;  %v20416_v31 = vadd.f32 %v5992_v2, %v20394_v49  ;;  %v20419_v29 = vadd.f32 %v5222_v4, %v20396_v39  ;;  %v23329_v2 = vpack.c.bf16 %v23327_v51, %v23328_v57  ;;  %v7296_v51 = vadd.f32 1.0, %v7040_v62 }
 0x4af   : > { %v20411_v35 = vadd.f32 %v5224_v0, %v20387_v7  ;;  %v5996_v26 = vpop.f32.mrb[66].mxu1  ;;  %v5226_v1 = vpop.f32.mrb[67].mxu0  ;;  %v20428_v9 = vadd.f32 %v5994_v42, %v20399_v50  ;;  %v20456_v42 = vsub.bf16 0, %v23332_v38  ;;  %v7287_v57 = vadd.f32 1.0, %v7031_v28 }
 0x4b0   : > { %23320 = vst [vmem:[#allocation18_spill] sm:$0xff] %v20416_v31  ;;  %v20422_v53 = vadd.f32 %v5996_v26, %v20394_v49  ;;  %v20425_v59 = vadd.f32 %v5226_v1, %v20396_v39  ;;  %v5998_v63 = vpop.f32.mrb[67].mxu1  ;;  %v15701_v47 = vpop.eup %15700  ;;  %v20451_v4 = vsub.bf16 0, %v23329_v2  ;;  %v6802_v2 = vunpack.c.h.bf16 %v20272_v16 }
 0x4b1   : > { %23322 = vst [vmem:[#allocation20_spill] sm:$0xff] %v20428_v9  ;;  %v20433_v61 = vadd.f32 %v5998_v63, %v20399_v50  ;;  %9388 = vmatmul.mubr.bf16.gmra.mrb[172].mxu0 %v7647_v55  ;;  %v15703_v17 = vpop.eup %15702  ;;  %v6794_v63 = vunpack.c.l.bf16 %v20272_v16  ;;  %v7655_v38 = vpack.c.bf16 %v15701_v47, %v15699_v11  ;;  %v23370_v9 = vld [vmem:[#allocation11_spill] sm:$0xff] }
 0x4b2   : > { %23321 = vst [vmem:[#allocation19_spill] sm:$0xff] %v20422_v53  ;;  %10160 = vmatmul.mubr.bf16.gmra.mrb[172].mxu1 %v7647_v55  ;;  %9397 = vmatprep.mubr.bf16.mxu0 %v7656_v34  ;;  %v15705_v5 = vpop.eup %15704  ;;  %v7279_v55 = vadd.f32 1.0, %v7023_v21 }
 0x4b3   : > { %23323 = vst [vmem:[#allocation21_spill] sm:$0xff] %v20433_v61  ;;  %10169 = vmatprep.mubr.bf16.mxu1 %v7656_v34  ;;  %v7039_v34 = vunpack.c.h.bf16 %v20405_v24  ;;  %v20460_v15 = vpop.eup %15706  ;;  %v7664_v30 = vpack.c.bf16 %v15705_v5, %v15703_v17  ;;  %v23337_v17 = vld [vmem:[#allocation112_spill] sm:$0xff]  ;;  %v23341_v5 = vld [vmem:[#allocation114_spill] sm:$0xff] }
 0x4b4   : > { %v5230_v0 = vpop.f32.mrb[68].mxu0  ;;  %v15709_v45 = vpop.eup %15708  ;;  %15720 = vrcp.f32 %v7279_v55  ;;  %v6558_v55 = vmul.bf16 1069105081, %v20451_v4  ;;  %v23343_v4 = vld [vmem:[#allocation118_spill] sm:$0xff] }
 0x4b5   : > { %v6002_v26 = vpop.f32.mrb[68].mxu1  ;;  %v5232_v1 = vpop.f32.mrb[69].mxu0  ;;  %v20464_v44 = vadd.f32 %v5230_v0, %v20387_v7  ;;  %15722 = vrcp.f32 %v7288_v43 }
 0x4b6   : > { %v6004_v32 = vpop.f32.mrb[69].mxu1  ;;  %v5234_v41 = vpop.f32.mrb[70].mxu0  ;;  %v20470_v60 = vadd.f32 %v6002_v26, %v20394_v49  ;;  %v20473_v58 = vadd.f32 %v5232_v1, %v20396_v39  ;;  %v7295_v26 = vadd.f32 1.0, %v7039_v34  ;;  %15724 = vrcp.f32 %v7296_v51  ;;  %v23340_v34 = vld [vmem:[#allocation115_spill] sm:$0xff] }
 0x4b7   : > { %v20467_v21 = vadd.f32 %v5234_v41, %v20387_v7  ;;  %v6006_v3 = vpop.f32.mrb[70].mxu1  ;;  %v5236_v24 = vpop.f32.mrb[71].mxu0  ;;  %v20482_v0 = vadd.f32 %v6004_v32, %v20399_v50  ;;  %v6537_v32 = vmul.bf16 1069105081, %v20446_v8  ;;  %15726 = vpow.bf16 %v6534_v46 }
 0x4b8   : > { %v15711_v6 = vpop.eup %15710  ;;  %23333 = vst [vmem:[#allocation22_spill] sm:$0xff] %v20470_v60  ;;  %v20476_v16 = vadd.f32 %v6006_v3, %v20394_v49  ;;  %v20479_v62 = vadd.f32 %v5236_v24, %v20396_v39  ;;  %v6008_v28 = vpop.f32.mrb[71].mxu1  ;;  %v6561_v24 = vmul.bf16 1069105081, %v20456_v42  ;;  %v23342_v8 = vpack.c.bf16 %v23340_v34, %v23341_v5 }
 0x4b9   : > { %23335 = vst [vmem:[#allocation24_spill] sm:$0xff] %v20482_v0  ;;  %v20487_v47 = vadd.f32 %v6008_v28, %v20399_v50  ;;  %9398 = vmatmul.mubr.bf16.gmra.mrb[176].mxu0 %v7655_v38  ;;  %v15713_v1 = vpop.eup %15712  ;;  %15728 = vrcp.f32 %v7287_v57  ;;  %v7050_v51 = vadd.f32 1.0, %v6794_v63  ;;  %v23345_v42 = vpack.c.bf16 %v23343_v4, %v23344_v36 }
 0x4ba   : > { %23334 = vst [vmem:[#allocation23_spill] sm:$0xff] %v20476_v16  ;;  %10170 = vmatmul.mubr.bf16.gmra.mrb[176].mxu1 %v7655_v38  ;;  %9407 = vmatprep.mubr.bf16.mxu0 %v7664_v30  ;;  %v15715_v3 = vpop.eup %15714  ;;  %v23338_v38 = vld [vmem:[#allocation109_spill] sm:$0xff]  ;;  %v20506_v33 = vsub.bf16 0, %v23342_v8  ;;  %15730 = vrcp.f32 %v7295_v26  ;;  %v7663_v8 = vpack.c.bf16 %v15711_v6, %v15709_v45 }
 0x4bb   : > { %23336 = vst [vmem:[#allocation25_spill] sm:$0xff] %v20487_v47  ;;  %10179 = vmatprep.mubr.bf16.mxu1 %v7664_v30  ;;  %v23339_v11 = vpack.c.bf16 %v23337_v17, %v23338_v38  ;;  %v20508_v46 = vpop.eup %15716  ;;  %v20513_v37 = vsub.bf16 0, %v23345_v42  ;;  %v6810_v38 = vunpack.c.l.bf16 %v20343_v19  ;;  %v7672_v60 = vpack.c.bf16 %v15715_v3, %v15713_v1 }
 0x4bc   : > { %v5240_v28 = vpop.f32.mrb[72].mxu0  ;;  %v15719_v16 = vpop.eup %15718  ;;  %15732 = vrcp.f32 %v7050_v51  ;;  %v6817_v51 = vunpack.c.h.bf16 %v20305_v14 }
 0x4bd   : > { %v20501_v43 = vsub.bf16 0, %v23339_v11  ;;  %v6012_v41 = vpop.f32.mrb[72].mxu1  ;;  %v5242_v30 = vpop.f32.mrb[73].mxu0  ;;  %v7058_v11 = vadd.f32 1.0, %v6802_v2  ;;  %v20517_v5 = vadd.f32 %v5240_v28, %v20387_v7 }
 0x4be   : > { %v6014_v22 = vpop.f32.mrb[73].mxu1  ;;  %v5244_v17 = vpop.f32.mrb[74].mxu0  ;;  %v20523_v36 = vadd.f32 %v6012_v41, %v20394_v49  ;;  %v20526_v4 = vadd.f32 %v5242_v30, %v20396_v39  ;;  %v7073_v31 = vadd.f32 1.0, %v6817_v51  ;;  %v6826_v30 = vunpack.c.l.bf16 %v20375_v25 }
 0x4bf   : > { %23346 = vst [vmem:[#allocation26_spill] sm:$0xff] %v20517_v5  ;;  %v20520_v34 = vadd.f32 %v5244_v17, %v20387_v7  ;;  %v6016_v63 = vpop.f32.mrb[74].mxu1  ;;  %v5246_v57 = vpop.f32.mrb[75].mxu0  ;;  %v20535_v42 = vadd.f32 %v6014_v22, %v20399_v50  ;;  %15734 = vrcp.f32 %v7058_v11  ;;  %v6818_v22 = vunpack.c.h.bf16 %v20343_v19  ;;  %v15293_v5 = vld [vmem:[%s22670_s3 + $0x408] ss:$16 sps:$4 sm:$0xff]  }
 0x4c0   : > { %23348 = vst [vmem:[#allocation28_spill] sm:$0xff] %v20523_v36  ;;  %v20529_v2 = vadd.f32 %v6016_v63, %v20394_v49  ;;  %v20532_v26 = vadd.f32 %v5246_v57, %v20396_v39  ;;  %v6018_v28 = vpop.f32.mrb[75].mxu1  ;;  %v15721_v3 = vpop.eup %15720  ;;  %15736 = vpow.bf16 %v6537_v32  ;;  %v6809_v17 = vunpack.c.l.bf16 %v20305_v14  ;;  %v23353_v32 = vld [vmem:[#allocation120_spill] sm:$0xff]  ;;  %v23356_v14 = vld [vmem:[#allocation9_spill] sm:$0xff] }
 0x4c1   : > { %23347 = vst [vmem:[#allocation27_spill] sm:$0xff] %v20520_v34  ;;  %23350 = vst [vmem:[#allocation30_spill] sm:$0xff] %v20535_v42  ;;  %v20540_v45 = vadd.f32 %v6018_v28, %v20399_v50  ;;  %9408 = vmatmul.mubr.bf16.gmra.mrb[180].mxu0 %v7663_v8  ;;  %v15723_v63 = vpop.eup %15722  ;;  %15738 = vpow.bf16 %v6558_v55  ;;  %v7066_v28 = vadd.f32 1.0, %v6810_v38  ;;  %v23355_v36 = vld [vmem:[#allocation124_spill] sm:$0xff]  ;;  %v23358_v38 = vld [vmem:[#allocation127_spill] sm:$0xff]  ;;  %v7074_v11 = vadd.f32 1.0, %v6818_v22 }
 0x4c2   : > { %23349 = vst [vmem:[#allocation29_spill] sm:$0xff] %v20529_v2  ;;  %10180 = vmatmul.mubr.bf16.gmra.mrb[180].mxu1 %v7663_v8  ;;  %9417 = vmatprep.mubr.bf16.mxu0 %v7672_v60  ;;  %v15725_v1 = vpop.eup %15724  ;;  %15740 = vpow.bf16 %v6561_v24  ;;  %v23352_v8 = vld [vmem:[#allocation121_spill] sm:$0xff]  ;;  %v23357_v2 = vpack.c.bf16 %v23355_v36, %v23356_v14  ;;  %v23359_v42 = vld [vmem:[#allocation126_spill] sm:$0xff]  ;;  %v7065_v47 = vadd.f32 1.0, %v6809_v17  ;;  %v6834_v22 = vunpack.c.h.bf16 %v20375_v25 }
 0x4c3   : > { %23351 = vst [vmem:[#allocation31_spill] sm:$0xff] %v20540_v45  ;;  %10189 = vmatprep.mubr.bf16.mxu1 %v7672_v60  ;;  %v23354_v6 = vpack.c.bf16 %v23352_v8, %v23353_v32  ;;  %v23360_v24 = vpack.c.bf16 %v23358_v38, %v23359_v42  ;;  %v20569_v19 = vpop.eup %15726  ;;  %v7671_v32 = vpack.c.bf16 %v15721_v3, %v15719_v16  ;;  %15742 = vrcp.f32 %v7066_v28  ;;  %v23369_v28 = vld [vmem:[#allocation130_spill] sm:$0xff] }
 0x4c4   : > { %v5250_v57 = vpop.f32.mrb[76].mxu0  ;;  %v20562_v55 = vsub.bf16 0, %v23357_v2  ;;  %v15729_v0 = vpop.eup %15728  ;;  %v7680_v42 = vpack.c.bf16 %v15725_v1, %v15723_v63  ;;  %15744 = vrcp.f32 %v7074_v11 }
 0x4c5   : > { %v20556_v41 = vsub.bf16 0, %v23354_v6  ;;  %v6022_v60 = vpop.f32.mrb[76].mxu1  ;;  %v20567_v45 = vsub.bf16 0, %v23360_v24  ;;  %v5252_v8 = vpop.f32.mrb[77].mxu0  ;;  %v20573_v36 = vadd.f32 %v5250_v57, %v20387_v7  ;;  %15746 = vrcp.f32 %v7065_v47 }
 0x4c6   : > { %v6024_v6 = vpop.f32.mrb[77].mxu1  ;;  %v15731_v53 = vpop.eup %15730  ;;  %v20577_v38 = vadd.f32 %v6022_v60, %v20394_v49  ;;  %v20580_v24 = vadd.f32 %v5252_v8, %v20396_v39  ;;  %v23371_v60 = vpack.c.bf16 %v23369_v28, %v23370_v9  ;;  %v23372_v8 = vld [vmem:[#allocation133_spill] sm:$0xff]  ;;  %15748 = vrcp.f32 %v7073_v31 }
 0x4c7   : > { %23361 = vst [vmem:[#allocation32_spill] sm:$0xff] %v20573_v36  ;;  %v5254_v2 = vpop.f32.mrb[78].mxu0  ;;  %v6026_v14 = vpop.f32.mrb[78].mxu1  ;;  %v20589_v1 = vadd.f32 %v6024_v6, %v20399_v50  ;;  %v7082_v6 = vadd.f32 1.0, %v6826_v30  ;;  %v6833_v9 = vunpack.c.h.bf16 %v20362_v52  ;;  %v6842_v28 = vunpack.c.l.bf16 %v20413_v48 }
 0x4c8   : > { %23362 = vst [vmem:[#allocation33_spill] sm:$0xff] %v20577_v38  ;;  %23363 = vst [vmem:[#allocation34_spill] sm:$0xff] %v20580_v24  ;;  %v20583_v16 = vadd.f32 %v5254_v2, %v20387_v7  ;;  %v20586_v3 = vadd.f32 %v6026_v14, %v20394_v49  ;;  %v5256_v17 = vpop.f32.mrb[79].mxu0  ;;  %v6028_v51 = vpop.f32.mrb[79].mxu1  ;;  %v20611_v61 = vsub.bf16 0, %v23371_v60  ;;  %v6850_v47 = vunpack.c.h.bf16 %v20413_v48 }
 0x4c9   : > { %9418 = vmatmul.mubr.bf16.gmra.mrb[184].mxu0 %v7671_v32  ;;  %23366 = vst [vmem:[#allocation37_spill] sm:$0xff] %v20589_v1  ;;  %v20592_v25 = vadd.f32 %v5256_v17, %v20396_v39  ;;  %v20595_v63 = vadd.f32 %v6028_v51, %v20399_v50  ;;  %v15733_v57 = vpop.eup %15732  ;;  %v6825_v17 = vunpack.c.l.bf16 %v20362_v52  ;;  %v7090_v1 = vadd.f32 1.0, %v6834_v22 }
 0x4ca   : > { %23364 = vst [vmem:[#allocation35_spill] sm:$0xff] %v20583_v16  ;;  %23365 = vst [vmem:[#allocation36_spill] sm:$0xff] %v20586_v3  ;;  %10190 = vmatmul.mubr.bf16.gmra.mrb[184].mxu1 %v7671_v32  ;;  %9427 = vmatprep.mubr.bf16.mxu0 %v7680_v42  ;;  %v15735_v2 = vpop.eup %15734  ;;  %15750 = vrcp.f32 %v7082_v6 }
 0x4cb   : > { %23367 = vst [vmem:[#allocation38_spill] sm:$0xff] %v20592_v25  ;;  %23368 = vst [vmem:[#allocation39_spill] sm:$0xff] %v20595_v63  ;;  %10199 = vmatprep.mubr.bf16.mxu1 %v7680_v42  ;;  %v23373_v42 = vld [vmem:[#allocation132_spill] sm:$0xff]  ;;  %v20619_v32 = vpop.eup %15736  ;;  %v7562_v63 = vpack.c.bf16 %v15735_v2, %v15733_v57  ;;  %15752 = vrcp.f32 %v7090_v1  ;;  %v23386_v1 = vld [vmem:[#allocation139_spill] sm:$0xff] }
 0x4cc   : > { %v5260_v51 = vpop.f32.mrb[80].mxu0  ;;  %v23374_v30 = vpack.c.bf16 %v23372_v8, %v23373_v42  ;;  %v20623_v60 = vpop.eup %15738  ;;  %v23383_v2 = vld [vmem:[#allocation136_spill] sm:$0xff] }
 0x4cd   : > { %v6032_v14 = vpop.f32.mrb[80].mxu1  ;;  %v5262_v3 = vpop.f32.mrb[81].mxu0  ;;  %v20629_v24 = vadd.f32 %v5260_v51, %v20387_v7  ;;  %v7089_v51 = vadd.f32 1.0, %v6833_v9  ;;  %v7098_v9 = vadd.f32 1.0, %v6842_v28 }
 0x4ce   : > { %v20616_v38 = vsub.bf16 0, %v23374_v30  ;;  %v6034_v36 = vpop.f32.mrb[81].mxu1  ;;  %v5264_v11 = vpop.f32.mrb[82].mxu0  ;;  %v7679_v30 = vpack.c.bf16 %v15731_v53, %v15729_v0  ;;  %v20632_v31 = vadd.f32 %v6032_v14, %v20394_v49  ;;  %v20641_v53 = vadd.f32 %v5262_v3, %v20396_v39 }
 0x4cf   : > { %v6036_v8 = vpop.f32.mrb[82].mxu1  ;;  %v5266_v42 = vpop.f32.mrb[83].mxu0  ;;  %23375 = vst [vmem:[#allocation40_spill] sm:$0xff] %v20629_v24  ;;  %v20635_v52 = vadd.f32 %v5264_v11, %v20387_v7  ;;  %v20644_v48 = vadd.f32 %v6034_v36, %v20399_v50  ;;  %v7081_v3 = vadd.f32 1.0, %v6825_v17  ;;  %v23384_v24 = vld [vmem:[#allocation13_spill] sm:$0xff]  ;;  %v23387_v17 = vld [vmem:[#allocation138_spill] sm:$0xff]  ;;  %v7561_v11 = vpack.c.bf16 %v20360_v12, %v20345_v18 }
 0x4d0   : > { %v20626_v16 = vpop.eup %15740  ;;  %23376 = vst [vmem:[#allocation41_spill] sm:$0xff] %v20632_v31  ;;  %v20638_v22 = vadd.f32 %v6036_v8, %v20394_v49  ;;  %v6038_v25 = vpop.f32.mrb[83].mxu1  ;;  %23379 = vst [vmem:[#allocation44_spill] sm:$0xff] %v20641_v53  ;;  %v20647_v0 = vadd.f32 %v5266_v42, %v20396_v39  ;;  %v23385_v14 = vpack.c.bf16 %v23383_v2, %v23384_v24  ;;  %v6841_v42 = vunpack.c.l.bf16 %v20401_v56 }
 0x4d1   : > { %23377 = vst [vmem:[#allocation42_spill] sm:$0xff] %v20635_v52  ;;  %23380 = vst [vmem:[#allocation45_spill] sm:$0xff] %v20644_v48  ;;  %v20650_v57 = vadd.f32 %v6038_v25, %v20399_v50  ;;  %9428 = vmatmul.mubr.bf16.gmra.mrb[188].mxu0 %v7679_v30  ;;  %v15743_v6 = vpop.eup %15742  ;;  %v23388_v31 = vpack.c.bf16 %v23386_v1, %v23387_v17  ;;  %v7106_v48 = vadd.f32 1.0, %v6850_v47  ;;  %15754 = vrcp.f32 %v7081_v3 }
 0x4d2   : > { %23378 = vst [vmem:[#allocation43_spill] sm:$0xff] %v20638_v22  ;;  %23381 = vst [vmem:[#allocation46_spill] sm:$0xff] %v20647_v0  ;;  %10200 = vmatmul.mubr.bf16.gmra.mrb[188].mxu1 %v7679_v30  ;;  %9470 = vmatprep.mubr.bf16.mxu0 %v7562_v63  ;;  %v15745_v8 = vpop.eup %15744  ;;  %v20665_v30 = vsub.bf16 0, %v23385_v14  ;;  %v6858_v14 = vunpack.c.l.bf16 %v20508_v46  ;;  %v6857_v1 = vunpack.c.l.bf16 %v20460_v15  ;;  %15756 = vrcp.f32 %v7089_v51 }
 0x4d3   : > { %23382 = vst [vmem:[#allocation47_spill] sm:$0xff] %v20650_v57  ;;  %10242 = vmatprep.mubr.bf16.mxu1 %v7562_v63  ;;  %v20670_v36 = vsub.bf16 0, %v23388_v31  ;;  %v6849_v57 = vunpack.c.h.bf16 %v20401_v56  ;;  %v6866_v31 = vunpack.c.h.bf16 %v20508_v46  ;;  %v15747_v17 = vpop.eup %15746  ;;  %v15290_v56 = vld [vmem:[%s22670_s3 + $0x400] ss:$16 sps:$4 sm:$0xff]   ;;  %v7570_v3 = vpack.c.bf16 %v15745_v8, %v15743_v6  ;;  %v15298_v6 = vld [vmem:[%s22670_s3 + $0x424] ss:$16 sps:$4 sm:$0xff]  }
 0x4d4   : > { %v5270_v22 = vpop.f32.mrb[84].mxu0  ;;  %v15749_v52 = vpop.eup %15748  ;;  %15758 = vrcp.f32 %v7098_v9 }
 0x4d5   : > { %v6042_v25 = vpop.f32.mrb[84].mxu1  ;;  %v5272_v63 = vpop.f32.mrb[85].mxu0  ;;  %v20680_v18 = vadd.f32 %v5270_v22, %v20387_v7  ;;  %15760 = vrcp.f32 %v7106_v48  ;;  %v23397_v48 = vmul.bf16 1069105081, %v20501_v43  ;;  %v15307_v43 = vld [vmem:[%s22670_s3 + $0x44c] ss:$16 sps:$4 sm:$0xff]  }
 0x4d6   : > { %v6044_v24 = vpop.f32.mrb[85].mxu1  ;;  %v5274_v2 = vpop.f32.mrb[86].mxu0  ;;  %v20689_v46 = vadd.f32 %v6042_v25, %v20394_v49  ;;  %v20692_v53 = vadd.f32 %v5272_v63, %v20396_v39 }
 0x4d7   : > { %23389 = vst [vmem:[#allocation48_spill] sm:$0xff] %v20680_v18  ;;  %v20683_v12 = vadd.f32 %v5274_v2, %v20387_v7  ;;  %v6046_v28 = vpop.f32.mrb[86].mxu1  ;;  %v5276_v47 = vpop.f32.mrb[87].mxu0  ;;  %v20707_v51 = vadd.f32 %v6044_v24, %v20399_v50  ;;  %v7097_v24 = vadd.f32 1.0, %v6841_v42  ;;  %15762 = vpow.bf16 %v23397_v48 }
 0x4d8   : > { %23391 = vst [vmem:[#allocation50_spill] sm:$0xff] %v20689_v46  ;;  %v20695_v22 = vadd.f32 %v6046_v28, %v20394_v49  ;;  %v20698_v2 = vadd.f32 %v5276_v47, %v20396_v39  ;;  %v6048_v0 = vpop.f32.mrb[87].mxu1  ;;  %v15751_v25 = vpop.eup %15750  ;;  %v15301_v28 = vld [vmem:[%s22670_s3 + $0x42c] ss:$16 sps:$4 sm:$0xff]   ;;  %v15296_v47 = vld [vmem:[%s22670_s3 + $0x420] ss:$16 sps:$4 sm:$0xff]   ;;  %v7569_v46 = vpack.c.bf16 %v15749_v52, %v15747_v17 }
 0x4d9   : > { %23390 = vst [vmem:[#allocation49_spill] sm:$0xff] %v20683_v12  ;;  %23393 = vst [vmem:[#allocation52_spill] sm:$0xff] %v20707_v51  ;;  %v20712_v63 = vadd.f32 %v6048_v0, %v20399_v50  ;;  %9471 = vmatmul.mubr.bf16.vlgmr.msra.gmra.mrb[128].mxu0 %v7561_v11  ;;  %v23395_v0 = vld [vmem:[#allocation14_spill] sm:$0xff]  ;;  %v15753_v34 = vpop.eup %15752  ;;  %v20746_v48 = vadd.f32 1.0, %v6857_v1  ;;  %v15302_v52 = vld [vmem:[%s22670_s3 + $0x440] ss:$16 sps:$4 sm:$0xff]  }
 0x4da   : > { %23392 = vst [vmem:[#allocation51_spill] sm:$0xff] %v20695_v22  ;;  %10243 = vmatmul.mubr.bf16.vlgmr.msra.gmra.mrb[128].mxu1 %v7561_v11  ;;  %9480 = vmatprep.mubr.bf16.mxu0 %v7570_v3  ;;  %v23396_v18 = vpack.c.bf16 %v19483_v23, %v23395_v0  ;;  %v7105_v11 = vadd.f32 1.0, %v6849_v57  ;;  %v15299_v23 = vld [vmem:[%s22670_s3 + $0x428] ss:$16 sps:$4 sm:$0xff]   ;;  %v7578_v22 = vpack.c.bf16 %v15753_v34, %v15751_v25  ;;  %v15310_v25 = vld [vmem:[%s22670_s3 + $0x464] ss:$16 sps:$4 sm:$0xff]  }
 0x4db   : > { %23394 = vst [vmem:[#allocation53_spill] sm:$0xff] %v20712_v63  ;;  %9632 = vmatpush1.bf16.msra.mxu0 %v15290_v56  ;;  %10252 = vmatprep.mubr.bf16.mxu1 %v7570_v3  ;;  %v7114_v56 = vadd.f32 1.0, %v6858_v14  ;;  %v23398_v3 = vmul.bf16 1069105081, %v20506_v33  ;;  %v6874_v14 = vunpack.c.l.bf16 %v20619_v32  ;;  %v6882_v33 = vunpack.c.h.bf16 %v20619_v32  ;;  %v15755_v17 = vpop.eup %15754  ;;  %v15305_v34 = vld [vmem:[%s22670_s3 + $0x448] ss:$16 sps:$4 sm:$0xff]  }
 0x4dc   : > { %v20725_v12 = vsub.bf16 0, %v23396_v18  ;;  %v5280_v42 = vpop.f32.mrb[88].mxu0  ;;  %10404 = vmatpush1.bf16.msra.mxu1 %v15293_v5  ;;  %9633 = vmatprep.subr.bf16.mxu0 %v15298_v6  ;;  %v15304_v18 = vld [vmem:[%s22670_s3 + $0x444] ss:$16 sps:$4 sm:$0xff]   ;;  %v7122_v5 = vadd.f32 1.0, %v6866_v31  ;;  %v6865_v6 = vunpack.c.h.bf16 %v20460_v15 }
 0x4dd   : > { %15764 = vpow.bf16 %v23398_v3  ;;  %v6052_v57 = vpop.f32.mrb[88].mxu1  ;;  %v5282_v0 = vpop.f32.mrb[89].mxu0  ;;  %10405 = vmatprep.subr.bf16.mxu1 %v15301_v28  ;;  %v20751_v3 = vadd.f32 %v5280_v42, %v20387_v7 }
 0x4de   : > { %v6054_v9 = vpop.f32.mrb[89].mxu1  ;;  %v5284_v8 = vpop.f32.mrb[90].mxu0  ;;  %15766 = vrcp.f32 %v7097_v24  ;;  %v20754_v28 = vadd.f32 %v6052_v57, %v20394_v49  ;;  %v20763_v32 = vadd.f32 %v5282_v0, %v20396_v39  ;;  %v23407_v0 = vld [vmem:[#allocation140_spill] sm:$0xff] }
 0x4df   : > { %23399 = vst [vmem:[#allocation54_spill] sm:$0xff] %v20751_v3  ;;  %v20757_v31 = vadd.f32 %v5284_v8, %v20387_v7  ;;  %v6056_v15 = vpop.f32.mrb[90].mxu1  ;;  %v5286_v1 = vpop.f32.mrb[91].mxu0  ;;  %9634 = vmatpush1.bf16.msra.mxu0 %v15296_v47  ;;  %15768 = vrcp.f32 %v7105_v11  ;;  %v20778_v57 = vadd.f32 %v6054_v9, %v20399_v50  ;;  %v15313_v11 = vld [vmem:[%s22670_s3 + $0x46c] ss:$16 sps:$4 sm:$0xff]  }
 0x4e0   : > { %23400 = vst [vmem:[#allocation55_spill] sm:$0xff] %v20754_v28  ;;  %v20766_v24 = vadd.f32 %v6056_v15, %v20394_v49  ;;  %v20769_v42 = vadd.f32 %v5286_v1, %v20396_v39  ;;  %v6058_v8 = vpop.f32.mrb[91].mxu1  ;;  %10406 = vmatpush1.bf16.msra.mxu1 %v15299_v23  ;;  %9635 = vmatprep.subr.bf16.mxu0 %v15304_v18  ;;  %v15757_v47 = vpop.eup %15756  ;;  %15770 = vrcp.f32 %v7114_v56  ;;  %v6873_v18 = vunpack.c.l.bf16 %v20569_v19 }
 0x4e1   : > { %23402 = vst [vmem:[#allocation57_spill] sm:$0xff] %v20778_v57  ;;  %v20783_v15 = vadd.f32 %v6058_v8, %v20399_v50  ;;  %9481 = vmatmul.mubr.bf16.gmra.mrb[132].mxu0 %v7569_v46  ;;  %10407 = vmatprep.subr.bf16.mxu1 %v15307_v43  ;;  %15772 = vrcp.f32 %v7122_v5  ;;  %v15759_v1 = vpop.eup %15758  ;;  %v23404_v8 = vmul.bf16 1069105081, %v20513_v37  ;;  %v23405_v23 = vmul.bf16 1069105081, %v20556_v41 }
 0x4e2   : > { %23401 = vst [vmem:[#allocation56_spill] sm:$0xff] %v20766_v24  ;;  %10253 = vmatmul.mubr.bf16.gmra.mrb[132].mxu1 %v7569_v46  ;;  %9490 = vmatprep.mubr.bf16.mxu0 %v7578_v22  ;;  %v15308_v46 = vld [vmem:[%s22670_s3 + $0x460] ss:$16 sps:$4 sm:$0xff]   ;;  %v15761_v5 = vpop.eup %15760  ;;  %v15311_v37 = vld [vmem:[%s22670_s3 + $0x468] ss:$16 sps:$4 sm:$0xff]  }
 0x4e3   : > { %23403 = vst [vmem:[#allocation58_spill] sm:$0xff] %v20783_v15  ;;  %15774 = vpow.bf16 %v23404_v8  ;;  %10262 = vmatprep.mubr.bf16.mxu1 %v7578_v22  ;;  %9636 = vmatpush1.bf16.msra.mxu0 %v15302_v52  ;;  %v7121_v8 = vadd.f32 1.0, %v6865_v6  ;;  %v15316_v22 = vld [vmem:[%s22670_s3 + $0x484] ss:$16 sps:$4 sm:$0xff]   ;;  %v6890_v6 = vunpack.c.l.bf16 %v20626_v16  ;;  %v7577_v15 = vpack.c.bf16 %v15757_v47, %v15755_v17 }
 0x4e4   : > { %15776 = vpow.bf16 %v23405_v23  ;;  %v5290_v9 = vpop.f32.mrb[92].mxu0  ;;  %10408 = vmatpush1.bf16.msra.mxu1 %v15305_v34  ;;  %9637 = vmatprep.subr.bf16.mxu0 %v15310_v25  ;;  %v23406_v52 = vld [vmem:[#allocation141_spill] sm:$0xff]  ;;  %v7130_v23 = vadd.f32 1.0, %v6874_v14  ;;  %v15319_v34 = vld [vmem:[%s22670_s3 + $0x48c] ss:$16 sps:$4 sm:$0xff]   ;;  %v6881_v25 = vunpack.c.h.bf16 %v20569_v19  ;;  %v7586_v3 = vpack.c.bf16 %v15761_v5, %v15759_v1 }
 0x4e5   : > { %v23408_v43 = vpack.c.bf16 %v23406_v52, %v23407_v0  ;;  %v6062_v28 = vpop.f32.mrb[92].mxu1  ;;  %v5292_v41 = vpop.f32.mrb[93].mxu0  ;;  %10409 = vmatprep.subr.bf16.mxu1 %v15313_v11  ;;  %15778 = vrcp.f32 %v20746_v48  ;;  %v7138_v0 = vadd.f32 1.0, %v6882_v33  ;;  %v20826_v14 = vadd.f32 %v5290_v9, %v20387_v7  ;;  %v15314_v48 = vld [vmem:[%s22670_s3 + $0x480] ss:$16 sps:$4 sm:$0xff]  }
 0x4e6   : > { %v6064_v24 = vpop.f32.mrb[93].mxu1  ;;  %v5294_v57 = vpop.f32.mrb[94].mxu0  ;;  %v20829_v11 = vadd.f32 %v6062_v28, %v20394_v49  ;;  %v20840_v47 = vadd.f32 %v5292_v41, %v20396_v39  ;;  %15780 = vrcp.f32 %v7121_v8  ;;  %v15322_v1 = vld [vmem:[%s22670_s3 + $0x4a4] ss:$16 sps:$4 sm:$0xff]   ;;  %v15325_v5 = vld [vmem:[%s22670_s3 + $0x4ac] ss:$16 sps:$4 sm:$0xff]   ;;  %v6889_v8 = vunpack.c.l.bf16 %v20623_v60 }
 0x4e7   : > { %v20813_v56 = vsub.bf16 0, %v23408_v43  ;;  %v20821_v43 = vadd.f32 1.0, %v6873_v18  ;;  %v20823_v52 = vpop.eup %15762  ;;  %23409 = vst [vmem:[#allocation59_spill] sm:$0xff] %v20826_v14  ;;  %v20832_v19 = vadd.f32 %v5294_v57, %v20387_v7  ;;  %v6066_v51 = vpop.f32.mrb[94].mxu1  ;;  %9638 = vmatpush1.bf16.msra.mxu0 %v15308_v46  ;;  %v15317_v18 = vld [vmem:[%s22670_s3 + $0x488] ss:$16 sps:$4 sm:$0xff]   ;;  %v20855_v46 = vadd.f32 %v6064_v24, %v20399_v50 }
 0x4e8   : > { %23410 = vst [vmem:[#allocation60_spill] sm:$0xff] %v20829_v11  ;;  %v5296_v63 = vpop.f32.mrb[95].mxu0  ;;  %v20837_v33 = vpop.eup %15764  ;;  %23412 = vst [vmem:[#allocation62_spill] sm:$0xff] %v20840_v47  ;;  %v20843_v28 = vadd.f32 %v6066_v51, %v20394_v49  ;;  %10410 = vmatpush1.bf16.msra.mxu1 %v15311_v37  ;;  %9639 = vmatprep.subr.bf16.mxu0 %v15316_v22  ;;  %15782 = vrcp.f32 %v7130_v23  ;;  %v6898_v22 = vunpack.c.h.bf16 %v20626_v16  ;;  %v23417_v23 = vmul.bf16 1069105081, %v20562_v55  ;;  %v23419_v51 = vld [vmem:[#allocation15_spill] sm:$0xff] }
 0x4e9   : > { %23411 = vst [vmem:[#allocation61_spill] sm:$0xff] %v20832_v19  ;;  %v15767_v17 = vpop.eup %15766  ;;  %v20846_v57 = vadd.f32 %v5296_v63, %v20396_v39  ;;  %v6068_v9 = vpop.f32.mrb[95].mxu1  ;;  %23415 = vst [vmem:[#allocation65_spill] sm:$0xff] %v20855_v46  ;;  %9491 = vmatmul.mubr.bf16.gmra.mrb[136].mxu0 %v7577_v15  ;;  %10411 = vmatprep.subr.bf16.mxu1 %v15319_v34  ;;  %15784 = vrcp.f32 %v7138_v0  ;;  %v15320_v16 = vld [vmem:[%s22670_s3 + $0x4a0] ss:$16 sps:$4 sm:$0xff]  }
 0x4ea   : > { %23413 = vst [vmem:[#allocation63_spill] sm:$0xff] %v20843_v28  ;;  %v20860_v63 = vadd.f32 %v6068_v9, %v20399_v50  ;;  %v15769_v37 = vpop.eup %15768  ;;  %10263 = vmatmul.mubr.bf16.gmra.mrb[136].mxu1 %v7577_v15  ;;  %9500 = vmatprep.mubr.bf16.mxu0 %v7586_v3  ;;  %15786 = vpow.bf16 %v23417_v23  ;;  %v23418_v9 = vld [vmem:[#allocation142_spill] sm:$0xff]  ;;  %v23421_v55 = vmul.bf16 1069105081, %v20567_v45  ;;  %v7137_v23 = vadd.f32 1.0, %v6881_v25 }
 0x4eb   : > { %23414 = vst [vmem:[#allocation64_spill] sm:$0xff] %v20846_v57  ;;  %v15771_v41 = vpop.eup %15770  ;;  %v23420_v14 = vpack.c.bf16 %v23418_v9, %v23419_v51  ;;  %10272 = vmatprep.mubr.bf16.mxu1 %v7586_v3  ;;  %9640 = vmatpush1.bf16.msra.mxu0 %v15314_v48  ;;  %v15328_v3 = vld [vmem:[%s22670_s3 + $0x4c4] ss:$16 sps:$4 sm:$0xff]   ;;  %v7146_v9 = vadd.f32 1.0, %v6890_v6  ;;  %v6897_v45 = vunpack.c.h.bf16 %v20623_v60  ;;  %v15331_v25 = vld [vmem:[%s22670_s3 + $0x4cc] ss:$16 sps:$4 sm:$0xff]   ;;  %v7585_v34 = vpack.c.bf16 %v15769_v37, %v15767_v17 }
 0x4ec   : > { %23416 = vst [vmem:[#allocation66_spill] sm:$0xff] %v20860_v63  ;;  %v15773_v15 = vpop.eup %15772  ;;  %15788 = vpow.bf16 %v23421_v55  ;;  %v5300_v0 = vpop.f32.mrb[96].mxu0  ;;  %10412 = vmatpush1.bf16.msra.mxu1 %v15317_v18  ;;  %9641 = vmatprep.subr.bf16.mxu0 %v15322_v1  ;;  %v6906_v18 = vunpack.c.l.bf16 %v20837_v33  ;;  %v7154_v11 = vadd.f32 1.0, %v6898_v22  ;;  %v6914_v6 = vunpack.c.h.bf16 %v20837_v33 }
 0x4ed   : > { %v20876_v19 = vsub.bf16 0, %v23420_v14  ;;  %v15323_v14 = vld [vmem:[%s22670_s3 + $0x4a8] ss:$16 sps:$4 sm:$0xff]   ;;  %v6072_v48 = vpop.f32.mrb[96].mxu1  ;;  %v5302_v51 = vpop.f32.mrb[97].mxu0  ;;  %10413 = vmatprep.subr.bf16.mxu1 %v15325_v5  ;;  %15790 = vrcp.f32 %v20821_v43  ;;  %v20904_v60 = vadd.f32 %v5300_v0, %v20387_v7  ;;  %v7594_v57 = vpack.c.bf16 %v15773_v15, %v15771_v41 }
 0x4ee   : > { %v20897_v1 = vpop.eup %15774  ;;  %v6074_v55 = vpop.f32.mrb[97].mxu1  ;;  %v20907_v28 = vadd.f32 %v6072_v48, %v20394_v49  ;;  %v15326_v43 = vld [vmem:[%s22670_s3 + $0x4c0] ss:$16 sps:$4 sm:$0xff]   ;;  %v20916_v17 = vadd.f32 %v5302_v51, %v20396_v39  ;;  %15792 = vrcp.f32 %v7137_v23  ;;  %v15329_v41 = vld [vmem:[%s22670_s3 + $0x4c8] ss:$16 sps:$4 sm:$0xff]   ;;  %v7145_v48 = vadd.f32 1.0, %v6889_v8 }
 0x4ef   : > { %v5304_v24 = vpop.f32.mrb[98].mxu0  ;;  %v20901_v5 = vpop.eup %15776  ;;  %23422 = vst [vmem:[#allocation67_spill] sm:$0xff] %v20904_v60  ;;  %9642 = vmatpush1.bf16.msra.mxu0 %v15320_v16  ;;  %v15334_v16 = vld [vmem:[%s22670_s3 + $0x4e4] ss:$16 sps:$4 sm:$0xff]   ;;  %v20931_v15 = vadd.f32 %v6074_v55, %v20399_v50  ;;  %15794 = vrcp.f32 %v7146_v9  ;;  %v15337_v0 = vld [vmem:[%s22670_s3 + $0x4ec] ss:$16 sps:$4 sm:$0xff]   ;;  %v6905_v55 = vunpack.c.l.bf16 %v20823_v52 }
 0x4f0   : > { %23423 = vst [vmem:[#allocation68_spill] sm:$0xff] %v20907_v28  ;;  %v20910_v46 = vadd.f32 %v5304_v24, %v20387_v7  ;;  %v6076_v63 = vpop.f32.mrb[98].mxu1  ;;  %v5306_v47 = vpop.f32.mrb[99].mxu0  ;;  %23425 = vst [vmem:[#allocation70_spill] sm:$0xff] %v20916_v17  ;;  %10414 = vmatpush1.bf16.msra.mxu1 %v15323_v14  ;;  %9643 = vmatprep.subr.bf16.mxu0 %v15328_v3  ;;  %15796 = vrcp.f32 %v7154_v11  ;;  %v23429_v9 = vld [vmem:[#allocation144_spill] sm:$0xff]  ;;  %v7153_v3 = vadd.f32 1.0, %v6897_v45 }
 0x4f1   : > { %v15779_v33 = vpop.eup %15778  ;;  %v20919_v37 = vadd.f32 %v6076_v63, %v20394_v49  ;;  %v20922_v22 = vadd.f32 %v5306_v47, %v20396_v39  ;;  %v6078_v24 = vpop.f32.mrb[99].mxu1  ;;  %23427 = vst [vmem:[#allocation97_spill] sm:$0xff] %v20931_v15  ;;  %9501 = vmatmul.mubr.bf16.gmra.mrb[140].mxu0 %v7585_v34  ;;  %10415 = vmatprep.subr.bf16.mxu1 %v15331_v25  ;;  %v23430_v25 = vld [vmem:[#allocation143_spill] sm:$0xff]  ;;  %v23432_v11 = vmul.bf16 1069105081, %v20616_v38  ;;  %v7170_v60 = vadd.f32 1.0, %v6914_v6 }
 0x4f2   : > { %23424 = vst [vmem:[#allocation69_spill] sm:$0xff] %v20910_v46  ;;  %v20936_v47 = vadd.f32 %v6078_v24, %v20399_v50  ;;  %v15781_v23 = vpop.eup %15780  ;;  %10273 = vmatmul.mubr.bf16.gmra.mrb[140].mxu1 %v7585_v34  ;;  %9510 = vmatprep.mubr.bf16.mxu0 %v7594_v57  ;;  %v23431_v24 = vpack.c.bf16 %v23429_v9, %v23430_v25  ;;  %v15332_v34 = vld [vmem:[%s22670_s3 + $0x4e0] ss:$16 sps:$4 sm:$0xff]   ;;  %v15335_v9 = vld [vmem:[%s22670_s3 + $0x4e8] ss:$16 sps:$4 sm:$0xff]   ;;  %v6913_v38 = vunpack.c.h.bf16 %v20823_v52 }
 0x4f3   : > { %23426 = vst [vmem:[#allocation71_spill] sm:$0xff] %v20919_v37  ;;  %v15783_v51 = vpop.eup %15782  ;;  %10282 = vmatprep.mubr.bf16.mxu1 %v7594_v57  ;;  %9644 = vmatpush1.bf16.msra.mxu0 %v15326_v43  ;;  %15798 = vpow.bf16 %v23432_v11  ;;  %v15340_v57 = vld [vmem:[%s22670_s3 + $0x504] ss:$16 sps:$4 sm:$0xff]   ;;  %v15343_v45 = vld [vmem:[%s22670_s3 + $0x50c] ss:$16 sps:$4 sm:$0xff]   ;;  %v7593_v28 = vpack.c.bf16 %v15781_v23, %v15779_v33  ;;  %v6922_v37 = vunpack.c.l.bf16 %v20901_v5 }
 0x4f4   : > { %23428 = vst [vmem:[#allocation95_spill] sm:$0xff] %v20936_v47  ;;  %v20949_v63 = vsub.bf16 0, %v23431_v24  ;;  %v15785_v14 = vpop.eup %15784  ;;  %v5310_v8 = vpop.f32.mrb[100].mxu0  ;;  %10416 = vmatpush1.bf16.msra.mxu1 %v15329_v41  ;;  %9645 = vmatprep.subr.bf16.mxu0 %v15334_v16  ;;  %v7162_v24 = vadd.f32 1.0, %v6906_v18  ;;  %15800 = vrcp.f32 %v7145_v48  ;;  %v6930_v18 = vunpack.c.h.bf16 %v20901_v5  ;;  %v15338_v33 = vld [vmem:[%s22670_s3 + $0x500] ss:$16 sps:$4 sm:$0xff]  }
 0x4f5   : > { %v6082_v43 = vpop.f32.mrb[100].mxu1  ;;  %v5312_v25 = vpop.f32.mrb[101].mxu0  ;;  %10417 = vmatprep.subr.bf16.mxu1 %v15337_v0  ;;  %v20976_v15 = vadd.f32 %v5310_v8, %v20387_v7  ;;  %v7602_v17 = vpack.c.bf16 %v15785_v14, %v15783_v51  ;;  %15802 = vrcp.f32 %v7153_v3  ;;  %v15341_v14 = vld [vmem:[%s22670_s3 + $0x508] ss:$16 sps:$4 sm:$0xff]   ;;  %v15346_v51 = vld [vmem:[%s22670_s3 + $0x524] ss:$16 sps:$4 sm:$0xff]  }
 0x4f6   : > { %v20969_v41 = vpop.eup %15786  ;;  %v6084_v16 = vpop.f32.mrb[101].mxu1  ;;  %v20979_v52 = vadd.f32 %v6082_v43, %v20394_v49  ;;  %v20988_v23 = vadd.f32 %v5312_v25, %v20396_v39  ;;  %15804 = vrcp.f32 %v7162_v24  ;;  %v15349_v3 = vld [vmem:[%s22670_s3 + $0x52c] ss:$16 sps:$4 sm:$0xff]   ;;  %v6921_v25 = vunpack.c.l.bf16 %v20897_v1 }
 0x4f7   : > { %v5314_v11 = vpop.f32.mrb[102].mxu0  ;;  %v20973_v6 = vpop.eup %15788  ;;  %23433 = vst [vmem:[#allocation94_spill] sm:$0xff] %v20976_v15  ;;  %9646 = vmatpush1.bf16.msra.mxu0 %v15332_v34  ;;  %v21003_v34 = vadd.f32 %v6084_v16, %v20399_v50  ;;  %15806 = vrcp.f32 %v7170_v60  ;;  %v7161_v16 = vadd.f32 1.0, %v6905_v55 }
 0x4f8   : > { %23434 = vst [vmem:[#allocation72_spill] sm:$0xff] %v20979_v52  ;;  %v20982_v0 = vadd.f32 %v5314_v11, %v20387_v7  ;;  %v6086_v47 = vpop.f32.mrb[102].mxu1  ;;  %v5316_v46 = vpop.f32.mrb[103].mxu0  ;;  %10418 = vmatpush1.bf16.msra.mxu1 %v15335_v9  ;;  %9647 = vmatprep.subr.bf16.mxu0 %v15340_v57  ;;  %v7186_v57 = vadd.f32 1.0, %v6930_v18  ;;  %v6946_v52 = vunpack.c.h.bf16 %v20973_v6 }
 0x4f9   : > { %v15791_v5 = vpop.eup %15790  ;;  %v20991_v48 = vadd.f32 %v6086_v47, %v20394_v49  ;;  %v20994_v8 = vadd.f32 %v5316_v46, %v20396_v39  ;;  %v6088_v43 = vpop.f32.mrb[103].mxu1  ;;  %23437 = vst [vmem:[#allocation102_spill] sm:$0xff] %v21003_v34  ;;  %9511 = vmatmul.mubr.bf16.gmra.mrb[144].mxu0 %v7593_v28  ;;  %10419 = vmatprep.subr.bf16.mxu1 %v15343_v45  ;;  %v23440_v45 = vld [vmem:[#allocation16_spill] sm:$0xff] }
 0x4fa   : > { %23435 = vst [vmem:[#allocation106_spill] sm:$0xff] %v20982_v0  ;;  %v21008_v46 = vadd.f32 %v6088_v43, %v20399_v50  ;;  %v15793_v9 = vpop.eup %15792  ;;  %10283 = vmatmul.mubr.bf16.gmra.mrb[144].mxu1 %v7593_v28  ;;  %9520 = vmatprep.mubr.bf16.mxu0 %v7602_v17  ;;  %v23439_v43 = vmul.bf16 1069105081, %v20611_v61  ;;  %v23441_v47 = vpack.c.bf16 %v19559_v10, %v23440_v45  ;;  %v15344_v28 = vld [vmem:[%s22670_s3 + $0x520] ss:$16 sps:$4 sm:$0xff]   ;;  %v7178_v45 = vadd.f32 1.0, %v6922_v37 }
 0x4fb   : > { %23436 = vst [vmem:[#allocation104_spill] sm:$0xff] %v20991_v48  ;;  %v15795_v11 = vpop.eup %15794  ;;  %10292 = vmatprep.mubr.bf16.mxu1 %v7602_v17  ;;  %9648 = vmatpush1.bf16.msra.mxu0 %v15338_v33  ;;  %v23442_v61 = vmul.bf16 1069105081, %v20670_v36  ;;  %v15347_v10 = vld [vmem:[%s22670_s3 + $0x528] ss:$16 sps:$4 sm:$0xff]   ;;  %v6929_v36 = vunpack.c.h.bf16 %v20897_v1  ;;  %v7601_v24 = vpack.c.bf16 %v15793_v9, %v15791_v5  ;;  %v6937_v48 = vunpack.c.l.bf16 %v20969_v41 }
 0x4fc   : > { %23438 = vst [vmem:[#allocation101_spill] sm:$0xff] %v21008_v46  ;;  %15808 = vpow.bf16 %v23439_v43  ;;  %v21023_v15 = vsub.bf16 0, %v23441_v47  ;;  %v15797_v60 = vpop.eup %15796  ;;  %v5320_v55 = vpop.f32.mrb[104].mxu0  ;;  %v7169_v43 = vadd.f32 1.0, %v6913_v38  ;;  %10420 = vmatpush1.bf16.msra.mxu1 %v15341_v14  ;;  %9649 = vmatprep.subr.bf16.mxu0 %v15346_v51  ;;  %v15352_v17 = vld [vmem:[%s22670_s3 + $0x544] ss:$16 sps:$4 sm:$0xff]   ;;  %v6938_v38 = vunpack.c.l.bf16 %v20973_v6 }
 0x4fd   : > { %15810 = vpow.bf16 %v23442_v61  ;;  %v6092_v33 = vpop.f32.mrb[104].mxu1  ;;  %v5322_v47 = vpop.f32.mrb[105].mxu0  ;;  %10421 = vmatprep.subr.bf16.mxu1 %v15349_v3  ;;  %v15355_v14 = vld [vmem:[%s22670_s3 + $0x54c] ss:$16 sps:$4 sm:$0xff]   ;;  %v21049_v37 = vadd.f32 %v5320_v55, %v20387_v7  ;;  %v7610_v0 = vpack.c.bf16 %v15797_v60, %v15795_v11  ;;  %v15350_v6 = vld [vmem:[%s22670_s3 + $0x540] ss:$16 sps:$4 sm:$0xff]  }
 0x4fe   : > { %v6094_v51 = vpop.f32.mrb[105].mxu1  ;;  %v5324_v61 = vpop.f32.mrb[106].mxu0  ;;  %15812 = vrcp.f32 %v7161_v16  ;;  %v21052_v1 = vadd.f32 %v6092_v33, %v20394_v49  ;;  %v21061_v9 = vadd.f32 %v5322_v47, %v20396_v39  ;;  %v15353_v11 = vld [vmem:[%s22670_s3 + $0x548] ss:$16 sps:$4 sm:$0xff]  }
 0x4ff   : > { %v21046_v34 = vpop.eup %15798  ;;  %23443 = vst [vmem:[#allocation113_spill] sm:$0xff] %v21049_v37  ;;  %v21055_v18 = vadd.f32 %v5324_v61, %v20387_v7  ;;  %v6096_v3 = vpop.f32.mrb[106].mxu1  ;;  %9650 = vmatpush1.bf16.msra.mxu0 %v15344_v28  ;;  %15814 = vrcp.f32 %v7169_v43  ;;  %v15358_v28 = vld [vmem:[%s22670_s3 + $0x564] ss:$16 sps:$4 sm:$0xff]   ;;  %v21076_v60 = vadd.f32 %v6094_v51, %v20399_v50  ;;  %v15361_v43 = vld [vmem:[%s22670_s3 + $0x56c] ss:$16 sps:$4 sm:$0xff]  }
 0x500   : > { %23444 = vst [vmem:[#allocation111_spill] sm:$0xff] %v21052_v1  ;;  %v5326_v46 = vpop.f32.mrb[107].mxu0  ;;  %v15801_v5 = vpop.eup %15800  ;;  %v21064_v16 = vadd.f32 %v6096_v3, %v20394_v49  ;;  %10422 = vmatpush1.bf16.msra.mxu1 %v15347_v10  ;;  %9651 = vmatprep.subr.bf16.mxu0 %v15352_v17  ;;  %15816 = vrcp.f32 %v7178_v45  ;;  %v7177_v61 = vadd.f32 1.0, %v6921_v25  ;;  %v23449_v45 = vld [vmem:[#allocation145_spill] sm:$0xff]  ;;  %v7185_v17 = vadd.f32 1.0, %v6929_v36 }
 0x501   : > { %23445 = vst [vmem:[#allocation110_spill] sm:$0xff] %v21055_v18  ;;  %v21067_v55 = vadd.f32 %v5326_v46, %v20396_v39  ;;  %v6098_v33 = vpop.f32.mrb[107].mxu1  ;;  %23447 = vst [vmem:[#allocation119_spill] sm:$0xff] %v21076_v60  ;;  %9521 = vmatmul.mubr.bf16.gmra.mrb[148].mxu0 %v7601_v24  ;;  %10423 = vmatprep.subr.bf16.mxu1 %v15355_v14  ;;  %v15803_v10 = vpop.eup %15802  ;;  %15818 = vrcp.f32 %v7186_v57  ;;  %v23450_v14 = vld [vmem:[#allocation17_spill] sm:$0xff]  ;;  %v23452_v25 = vmul.bf16 1069105081, %v20665_v30  ;;  %v6945_v30 = vunpack.c.h.bf16 %v20969_v41 }
 0x502   : > { %23446 = vst [vmem:[#allocation5_spill] sm:$0xff] %v21064_v16  ;;  %v21081_v46 = vadd.f32 %v6098_v33, %v20399_v50  ;;  %10293 = vmatmul.mubr.bf16.gmra.mrb[148].mxu1 %v7601_v24  ;;  %9530 = vmatprep.mubr.bf16.mxu0 %v7610_v0  ;;  %v15805_v3 = vpop.eup %15804  ;;  %v23451_v47 = vpack.c.bf16 %v23449_v45, %v23450_v14  ;;  %v15356_v24 = vld [vmem:[%s22670_s3 + $0x560] ss:$16 sps:$4 sm:$0xff]   ;;  %v7194_v33 = vadd.f32 1.0, %v6938_v38  ;;  %v23453_v36 = vmul.bf16 1069105081, %v20813_v56 }
 0x503   : > { %10302 = vmatprep.mubr.bf16.mxu1 %v7610_v0  ;;  %9652 = vmatpush1.bf16.msra.mxu0 %v15350_v6  ;;  %v15807_v57 = vpop.eup %15806  ;;  %15820 = vpow.bf16 %v23452_v25  ;;  %v15364_v0 = vld [vmem:[%s22670_s3 + $0x584] ss:$16 sps:$4 sm:$0xff]   ;;  %v7202_v14 = vadd.f32 1.0, %v6946_v52  ;;  %v21112_v25 = vadd.f32 1.0, %v6937_v48  ;;  %v15367_v38 = vld [vmem:[%s22670_s3 + $0x58c] ss:$16 sps:$4 sm:$0xff]   ;;  %v7609_v1 = vpack.c.bf16 %v15803_v10, %v15801_v5 }
 0x504   : > { %23448 = vst [vmem:[#allocation117_spill] sm:$0xff] %v21081_v46  ;;  %v21094_v37 = vsub.bf16 0, %v23451_v47  ;;  %v5330_v51 = vpop.f32.mrb[108].mxu0  ;;  %10424 = vmatpush1.bf16.msra.mxu1 %v15353_v11  ;;  %9653 = vmatprep.subr.bf16.mxu0 %v15358_v28  ;;  %v15359_v47 = vld [vmem:[%s22670_s3 + $0x568] ss:$16 sps:$4 sm:$0xff]   ;;  %15822 = vpow.bf16 %v23453_v36  ;;  %v6954_v56 = vunpack.c.l.bf16 %v21046_v34  ;;  %v6962_v36 = vunpack.c.h.bf16 %v21046_v34 }
 0x505   : > { %v6102_v6 = vpop.f32.mrb[108].mxu1  ;;  %v5332_v45 = vpop.f32.mrb[109].mxu0  ;;  %10425 = vmatprep.subr.bf16.mxu1 %v15361_v43  ;;  %15824 = vrcp.f32 %v7177_v61  ;;  %v21124_v41 = vadd.f32 %v5330_v51, %v20387_v7  ;;  %v7618_v46 = vpack.c.bf16 %v15807_v57, %v15805_v3  ;;  %v15362_v5 = vld [vmem:[%s22670_s3 + $0x580] ss:$16 sps:$4 sm:$0xff]   ;;  %v15365_v3 = vld [vmem:[%s22670_s3 + $0x588] ss:$16 sps:$4 sm:$0xff]  }
 0x506   : > { %v6104_v28 = vpop.f32.mrb[109].mxu1  ;;  %v5334_v18 = vpop.f32.mrb[110].mxu0  ;;  %v21127_v48 = vadd.f32 %v6102_v6, %v20394_v49  ;;  %v21136_v10 = vadd.f32 %v5332_v45, %v20396_v39  ;;  %15826 = vrcp.f32 %v7185_v17  ;;  %v15373_v17 = vld [vmem:[%s22670_s3 + $0x5ac] ss:$16 sps:$4 sm:$0xff]   ;;  %v7201_v6 = vadd.f32 1.0, %v6945_v30 }
 0x507   : > { %v21117_v11 = vpop.eup %15808  ;;  %v21130_v43 = vadd.f32 %v5334_v18, %v20387_v7  ;;  %v6106_v16 = vpop.f32.mrb[110].mxu1  ;;  %9654 = vmatpush1.bf16.msra.mxu0 %v15356_v24  ;;  %v15370_v24 = vld [vmem:[%s22670_s3 + $0x5a4] ss:$16 sps:$4 sm:$0xff]   ;;  %v21151_v57 = vadd.f32 %v6104_v28, %v20399_v50  ;;  %15828 = vrcp.f32 %v7194_v33  ;;  %v23458_v33 = vmul.bf16 1069105081, %v20725_v12 }
 0x508   : > { %v21121_v52 = vpop.eup %15810  ;;  %23454 = vst [vmem:[#allocation116_spill] sm:$0xff] %v21127_v48  ;;  %v5336_v60 = vpop.f32.mrb[111].mxu0  ;;  %v21139_v51 = vadd.f32 %v6106_v16, %v20394_v49  ;;  %10426 = vmatpush1.bf16.msra.mxu1 %v15359_v47  ;;  %9655 = vmatprep.subr.bf16.mxu0 %v15364_v0  ;;  %15830 = vrcp.f32 %v7202_v14  ;;  %v6953_v45 = vunpack.c.l.bf16 %v21117_v11  ;;  %v23460_v12 = vmul.bf16 1069105081, %v20949_v63  ;;  %v15379_v30 = vld [vmem:[%s22670_s3 + $0x5cc] ss:$16 sps:$4 sm:$0xff]  }
 0x509   : > { %v15813_v34 = vpop.eup %15812  ;;  %v21142_v61 = vadd.f32 %v5336_v60, %v20396_v39  ;;  %v6108_v18 = vpop.f32.mrb[111].mxu1  ;;  %23456 = vst [vmem:[#allocation125_spill] sm:$0xff] %v21151_v57  ;;  %9531 = vmatmul.mubr.bf16.gmra.mrb[152].mxu0 %v7609_v1  ;;  %10427 = vmatprep.subr.bf16.mxu1 %v15367_v38  ;;  %15832 = vpow.bf16 %v23458_v33  ;;  %v7218_v0 = vadd.f32 1.0, %v6962_v36  ;;  %v6961_v38 = vunpack.c.h.bf16 %v21117_v11 }
 0x50a   : > { %23455 = vst [vmem:[#allocation6_spill] sm:$0xff] %v21139_v51  ;;  %v21156_v60 = vadd.f32 %v6108_v18, %v20399_v50  ;;  %v15815_v47 = vpop.eup %15814  ;;  %10303 = vmatmul.mubr.bf16.gmra.mrb[152].mxu1 %v7609_v1  ;;  %9540 = vmatprep.mubr.bf16.mxu0 %v7618_v46  ;;  %v23459_v18 = vpack.c.bf16 %v19606_v20, %v19601_v27  ;;  %v15368_v1 = vld [vmem:[%s22670_s3 + $0x5a0] ss:$16 sps:$4 sm:$0xff]   ;;  %15834 = vpow.bf16 %v23460_v12  ;;  %v15371_v27 = vld [vmem:[%s22670_s3 + $0x5a8] ss:$16 sps:$4 sm:$0xff]   ;;  %v6970_v63 = vunpack.c.l.bf16 %v21121_v52 }
 0x50b   : > { %v15817_v28 = vpop.eup %15816  ;;  %10312 = vmatprep.mubr.bf16.mxu1 %v7618_v46  ;;  %9656 = vmatpush1.bf16.msra.mxu0 %v15362_v5  ;;  %v15376_v20 = vld [vmem:[%s22670_s3 + $0x5c4] ss:$16 sps:$4 sm:$0xff]   ;;  %v7617_v12 = vpack.c.bf16 %v15815_v47, %v15813_v34  ;;  %15836 = vrcp.f32 %v21112_v25  ;;  %v21193_v48 = vadd.f32 1.0, %v6953_v45  ;;  %v6978_v51 = vunpack.c.h.bf16 %v21121_v52  ;;  %v15374_v25 = vld [vmem:[%s22670_s3 + $0x5c0] ss:$16 sps:$4 sm:$0xff]  }
 0x50c   : > { %23457 = vst [vmem:[#allocation123_spill] sm:$0xff] %v21156_v60  ;;  %v21172_v16 = vsub.bf16 0, %v23459_v18  ;;  %v15819_v14 = vpop.eup %15818  ;;  %v5340_v33 = vpop.f32.mrb[112].mxu0  ;;  %10428 = vmatpush1.bf16.msra.mxu1 %v15365_v3  ;;  %9657 = vmatprep.subr.bf16.mxu0 %v15370_v24  ;;  %v7210_v18 = vadd.f32 1.0, %v6954_v56  ;;  %15838 = vrcp.f32 %v7201_v6  ;;  %v15385_v6 = vld [vmem:[%s22670_s3 + $0x5ec] ss:$16 sps:$4 sm:$0xff]  }
 0x50d   : > { %v6112_v46 = vpop.f32.mrb[112].mxu1  ;;  %v5342_v5 = vpop.f32.mrb[113].mxu0  ;;  %10429 = vmatprep.subr.bf16.mxu1 %v15373_v17  ;;  %v21199_v11 = vadd.f32 %v5340_v33, %v20387_v7  ;;  %v7626_v34 = vpack.c.bf16 %v15819_v14, %v15817_v28  ;;  %v15377_v28 = vld [vmem:[%s22670_s3 + $0x5c8] ss:$16 sps:$4 sm:$0xff]  }
 0x50e   : > { %v6114_v3 = vpop.f32.mrb[113].mxu1  ;;  %v5344_v24 = vpop.f32.mrb[114].mxu0  ;;  %v21202_v36 = vadd.f32 %v6112_v46, %v20394_v49  ;;  %v21213_v45 = vadd.f32 %v5342_v5, %v20396_v39  ;;  %15840 = vrcp.f32 %v7210_v18  ;;  %v23468_v18 = vmul.bf16 1069105081, %v20876_v19 }
 0x50f   : > { %v21196_v56 = vpop.eup %15820  ;;  %23461 = vst [vmem:[#allocation75_spill] sm:$0xff] %v21199_v11  ;;  %v21205_v17 = vadd.f32 %v5344_v24, %v20387_v7  ;;  %v6116_v57 = vpop.f32.mrb[114].mxu1  ;;  %9658 = vmatpush1.bf16.msra.mxu0 %v15368_v1  ;;  %v15382_v1 = vld [vmem:[%s22670_s3 + $0x5e4] ss:$16 sps:$4 sm:$0xff]   ;;  %v21228_v14 = vadd.f32 %v6114_v3, %v20399_v50  ;;  %15842 = vrcp.f32 %v7218_v0  ;;  %v6777_v11 = vmul.bf16 1069105081, %v21172_v16 }
 0x510   : > { %23462 = vst [vmem:[#allocation74_spill] sm:$0xff] %v21202_v36  ;;  %v5346_v60 = vpop.f32.mrb[115].mxu0  ;;  %v21210_v52 = vpop.eup %15822  ;;  %23464 = vst [vmem:[#allocation8_spill] sm:$0xff] %v21213_v45  ;;  %v21216_v33 = vadd.f32 %v6116_v57, %v20394_v49  ;;  %10430 = vmatpush1.bf16.msra.mxu1 %v15371_v27  ;;  %9659 = vmatprep.subr.bf16.mxu0 %v15376_v20  ;;  %v6969_v3 = vunpack.c.l.bf16 %v21196_v56  ;;  %15844 = vpow.bf16 %v23468_v18  ;;  %v15380_v0 = vld [vmem:[%s22670_s3 + $0x5e0] ss:$16 sps:$4 sm:$0xff]   ;;  %v7217_v5 = vadd.f32 1.0, %v6961_v38 }
 0x511   : > { %23463 = vst [vmem:[#allocation122_spill] sm:$0xff] %v21205_v17  ;;  %v15825_v47 = vpop.eup %15824  ;;  %v21219_v46 = vadd.f32 %v5346_v60, %v20396_v39  ;;  %v6118_v24 = vpop.f32.mrb[115].mxu1  ;;  %23466 = vst [vmem:[#allocation129_spill] sm:$0xff] %v21228_v14  ;;  %9541 = vmatmul.mubr.bf16.gmra.mrb[156].mxu0 %v7617_v12  ;;  %10431 = vmatprep.subr.bf16.mxu1 %v15379_v30  ;;  %v23469_v30 = vpack.c.bf16 %v19595_v54, %v19589_v13  ;;  %v23470_v19 = vmul.bf16 1069105081, %v21023_v15 }
 0x512   : > { %23465 = vst [vmem:[#allocation131_spill] sm:$0xff] %v21216_v33  ;;  %v21233_v60 = vadd.f32 %v6118_v24, %v20399_v50  ;;  %v15827_v27 = vpop.eup %15826  ;;  %10313 = vmatmul.mubr.bf16.gmra.mrb[156].mxu1 %v7617_v12  ;;  %9550 = vmatprep.mubr.bf16.mxu0 %v7626_v34  ;;  %v15383_v13 = vld [vmem:[%s22670_s3 + $0x5e8] ss:$16 sps:$4 sm:$0xff]   ;;  %v15388_v54 = vld [vmem:[%s22670_s3 + $0x604] ss:$16 sps:$4 sm:$0xff]   ;;  %v6977_v20 = vunpack.c.h.bf16 %v21196_v56  ;;  %v6986_v15 = vunpack.c.l.bf16 %v21210_v52  ;;  %v7225_v33 = vadd.f32 1.0, %v6969_v3 }
 0x513   : > { %v15829_v24 = vpop.eup %15828  ;;  %v21248_v57 = vsub.bf16 0, %v23469_v30  ;;  %10322 = vmatprep.mubr.bf16.mxu1 %v7626_v34  ;;  %9660 = vmatpush1.bf16.msra.mxu0 %v15374_v25  ;;  %15846 = vpow.bf16 %v23470_v19  ;;  %v7226_v25 = vadd.f32 1.0, %v6970_v63  ;;  %v7234_v30 = vadd.f32 1.0, %v6978_v51  ;;  %v15391_v38 = vld [vmem:[%s22670_s3 + $0x60c] ss:$16 sps:$4 sm:$0xff]  }
 0x514   : > { %23467 = vst [vmem:[#allocation77_spill] sm:$0xff] %v21233_v60  ;;  %v15831_v12 = vpop.eup %15830  ;;  %v5350_v18 = vpop.f32.mrb[116].mxu0  ;;  %10432 = vmatpush1.bf16.msra.mxu1 %v15377_v28  ;;  %9661 = vmatprep.subr.bf16.mxu0 %v15382_v1  ;;  %v7625_v36 = vpack.c.bf16 %v15827_v27, %v15825_v47  ;;  %15848 = vrcp.f32 %v21193_v48  ;;  %v6994_v63 = vunpack.c.h.bf16 %v21210_v52 }
 0x515   : > { %v6122_v16 = vpop.f32.mrb[116].mxu1  ;;  %v5352_v34 = vpop.f32.mrb[117].mxu0  ;;  %10433 = vmatprep.subr.bf16.mxu1 %v15385_v6  ;;  %v21276_v56 = vadd.f32 %v5350_v18, %v20387_v7  ;;  %v7634_v45 = vpack.c.bf16 %v15831_v12, %v15829_v24  ;;  %15850 = vrcp.f32 %v7217_v5 }
 0x516   : > { %v21269_v28 = vpop.eup %15832  ;;  %v6124_v1 = vpop.f32.mrb[117].mxu1  ;;  %v21279_v6 = vadd.f32 %v6122_v16, %v20394_v49  ;;  %v21285_v48 = vadd.f32 %v5352_v34, %v20396_v39  ;;  %15852 = vrcp.f32 %v7226_v25  ;;  %v6774_v25 = vmul.bf16 1069105081, %v21248_v57 }
 0x517   : > { %v5354_v19 = vpop.f32.mrb[118].mxu0  ;;  %v21273_v51 = vpop.eup %15834  ;;  %9662 = vmatpush1.bf16.msra.mxu0 %v15380_v0  ;;  %v21294_v18 = vadd.f32 %v6124_v1, %v20399_v50  ;;  %15854 = vrcp.f32 %v7234_v30  ;;  %v6985_v12 = vunpack.c.l.bf16 %v21269_v28  ;;  %v7250_v30 = vadd.f32 1.0, %v6994_v63 }
 0x518   : > { %23471 = vst [vmem:[#allocation76_spill] sm:$0xff] %v21279_v6  ;;  %v21282_v14 = vadd.f32 %v5354_v19, %v20387_v7  ;;  %v6126_v60 = vpop.f32.mrb[118].mxu1  ;;  %v5356_v17 = vpop.f32.mrb[119].mxu0  ;;  %10434 = vmatpush1.bf16.msra.mxu1 %v15383_v13  ;;  %9824 = vmatprep.subr.bf16.mxu0 %v15388_v54  ;;  %v23475_v54 = vmul.bf16 1069105081, %v21094_v37  ;;  %v7010_v16 = vunpack.c.h.bf16 %v21273_v51 }
 0x519   : > { %v15837_v47 = vpop.eup %15836  ;;  %v21288_v52 = vadd.f32 %v6126_v60, %v20394_v49  ;;  %v21291_v27 = vadd.f32 %v5356_v17, %v20396_v39  ;;  %v6128_v3 = vpop.f32.mrb[119].mxu1  ;;  %23473 = vst [vmem:[#allocation10_spill] sm:$0xff] %v21294_v18  ;;  %9551 = vmatmul.mubr.bf16.gmra.mrb[160].mxu0 %v7625_v36  ;;  %10596 = vmatprep.subr.bf16.mxu1 %v15391_v38  ;;  %v6993_v17 = vunpack.c.h.bf16 %v21269_v28  ;;  %v7241_v5 = vadd.f32 1.0, %v6985_v12 }
 0x51a   : > { %v21299_v0 = vadd.f32 %v6128_v3, %v20399_v50  ;;  %v15839_v60 = vpop.eup %15838  ;;  %10323 = vmatmul.mubr.bf16.gmra.mrb[160].mxu1 %v7625_v36  ;;  %9560 = vmatprep.mubr.bf16.mxu0 %v7634_v45  ;;  %15856 = vpow.bf16 %v23475_v54  ;;  %v7233_v36 = vadd.f32 1.0, %v6977_v20  ;;  %v7242_v3 = vadd.f32 1.0, %v6986_v15 }
 0x51b   : > { %23472 = vst [vmem:[#allocation128_spill] sm:$0xff] %v21288_v52  ;;  %v15841_v13 = vpop.eup %15840  ;;  %10332 = vmatprep.mubr.bf16.mxu1 %v7634_v45  ;;  %15858 = vpow.bf16 %v6777_v11  ;;  %v7002_v45 = vunpack.c.l.bf16 %v21273_v51  ;;  %v7633_v63 = vpack.c.bf16 %v15839_v60, %v15837_v47 }
 0x51c   : > { %23474 = vst [vmem:[#allocation137_spill] sm:$0xff] %v21299_v0  ;;  %v15843_v34 = vpop.eup %15842  ;;  %v5360_v38 = vpop.f32.mrb[120].mxu0  ;;  %15860 = vrcp.f32 %v7225_v33 }
 0x51d   : > { %v6132_v1 = vpop.f32.mrb[120].mxu1  ;;  %v5362_v19 = vpop.f32.mrb[121].mxu0  ;;  %v21319_v11 = vadd.f32 %v5360_v38, %v20387_v7  ;;  %v7642_v6 = vpack.c.bf16 %v15843_v34, %v15841_v13  ;;  %15862 = vrcp.f32 %v7233_v36 }
 0x51e   : > { %v21312_v24 = vpop.eup %15844  ;;  %v6134_v37 = vpop.f32.mrb[121].mxu1  ;;  %v21325_v33 = vadd.f32 %v6132_v1, %v20394_v49  ;;  %v21328_v12 = vadd.f32 %v5362_v19, %v20396_v39  ;;  %15864 = vrcp.f32 %v7242_v3  ;;  %v7249_v19 = vadd.f32 1.0, %v6993_v17 }
 0x51f   : > { %v5364_v54 = vpop.f32.mrb[122].mxu0  ;;  %v21316_v57 = vpop.eup %15846  ;;  %15866 = vrcp.f32 %v7250_v30  ;;  %v7001_v3 = vunpack.c.l.bf16 %v21312_v24 }
 0x520   : > { %v21322_v20 = vadd.f32 %v5364_v54, %v20387_v7  ;;  %v6136_v15 = vpop.f32.mrb[122].mxu1  ;;  %v5366_v28 = vpop.f32.mrb[123].mxu0  ;;  %23476 = vst [vmem:[#allocation135_spill] sm:$0xff] %v21325_v33  ;;  %v21337_v54 = vadd.f32 %v6134_v37, %v20399_v50  ;;  %15868 = vpow.bf16 %v6774_v25 }
 0x521   : > { %v15849_v52 = vpop.eup %15848  ;;  %v21331_v51 = vadd.f32 %v6136_v15, %v20394_v49  ;;  %v21334_v38 = vadd.f32 %v5366_v28, %v20396_v39  ;;  %v6138_v18 = vpop.f32.mrb[123].mxu1  ;;  %9561 = vmatmul.mubr.bf16.gmra.mrb[164].mxu0 %v7633_v63  ;;  %v23480_v15 = vpack.c.bf16 %v20425_v59, %v20419_v29  ;;  %15870 = vrcp.f32 %v7241_v5 }
 0x522   : > { %23478 = vst [vmem:[#allocation78_spill] sm:$0xff] %v21337_v54  ;;  %v21342_v60 = vadd.f32 %v6138_v18, %v20399_v50  ;;  %v15851_v13 = vpop.eup %15850  ;;  %10333 = vmatmul.mubr.bf16.gmra.mrb[164].mxu1 %v7633_v63  ;;  %9570 = vmatprep.mubr.bf16.mxu0 %v7642_v6  ;;  %v7258_v63 = vadd.f32 1.0, %v7002_v45  ;;  %15872 = vrcp.f32 %v7249_v19  ;;  %v7266_v29 = vadd.f32 1.0, %v7010_v16 }
 0x523   : > { %23477 = vst [vmem:[#allocation79_spill] sm:$0xff] %v21331_v51  ;;  %v15853_v37 = vpop.eup %15852  ;;  %v6284_v28 = vsub.bf16 0, %v23480_v15  ;;  %10342 = vmatprep.mubr.bf16.mxu1 %v7642_v6  ;;  %v7641_v0 = vpack.c.bf16 %v15851_v13, %v15849_v52  ;;  %v7009_v59 = vunpack.c.h.bf16 %v21312_v24  ;;  %v7257_v19 = vadd.f32 1.0, %v7001_v3 }
 0x524   : > { %23479 = vst [vmem:[#allocation134_spill] sm:$0xff] %v21342_v60  ;;  %v15855_v36 = vpop.eup %15854  ;;  %v5370_v34 = vpop.f32.mrb[124].mxu0  ;;  %15874 = vrcp.f32 %v7258_v63 }
 0x525   : > { %v6142_v47 = vpop.f32.mrb[124].mxu1  ;;  %v5372_v33 = vpop.f32.mrb[125].mxu0  ;;  %v6423_v6 = vmul.bf16 1069105081, %v6284_v28  ;;  %v21358_v25 = vadd.f32 %v5370_v34, %v20387_v7  ;;  %v7650_v18 = vpack.c.bf16 %v15855_v36, %v15853_v37  ;;  %15876 = vrcp.f32 %v7266_v29 }
 0x526   : > { %v15857_v17 = vpop.eup %15856  ;;  %v6144_v1 = vpop.f32.mrb[125].mxu1  ;;  %v21364_v60 = vadd.f32 %v6142_v47, %v20394_v49  ;;  %v21367_v52 = vadd.f32 %v5372_v33, %v20396_v39  ;;  %v23482_v28 = vpack.c.bf16 %v20479_v62, %v20473_v58  ;;  %v23483_v62 = vpack.c.bf16 %v20467_v21, %v20464_v44 }
 0x527   : > { %v5374_v51 = vpop.f32.mrb[126].mxu0  ;;  %v21355_v15 = vpop.eup %15858  ;;  %v21379_v34 = vadd.f32 %v6144_v1, %v20399_v50  ;;  %15878 = vpow.bf16 %v6423_v6  ;;  %v7025_v6 = vunpack.c.h.bf16 %v21316_v57 }
 0x528   : > { %v21361_v30 = vadd.f32 %v5374_v51, %v20387_v7  ;;  %v6146_v5 = vpop.f32.mrb[126].mxu1  ;;  %v5376_v45 = vpop.f32.mrb[127].mxu0  ;;  %v23481_v7 = vpack.c.bf16 %v20411_v35, %v20408_v40  ;;  %v7018_v40 = vunpack.c.l.bf16 %v15857_v17  ;;  %v6292_v36 = vsub.bf16 0, %v23482_v28 }
 0x529   : > { %v15861_v54 = vpop.eup %15860  ;;  %v21370_v24 = vadd.f32 %v6146_v5, %v20394_v49  ;;  %v21373_v16 = vadd.f32 %v5376_v45, %v20396_v39  ;;  %v6148_v13 = vpop.f32.mrb[127].mxu1  ;;  %9571 = vmatmul.mubr.bf16.gmra.mrb[168].mxu0 %v7641_v0  ;;  %v7265_v5 = vadd.f32 1.0, %v7009_v59  ;;  %15880 = vrcp.f32 %v7257_v19 }
 0x52a   : > { %v6283_v51 = vsub.bf16 0, %v23481_v7  ;;  %v21384_v33 = vadd.f32 %v6148_v13, %v20399_v50  ;;  %10343 = vmatmul.mubr.bf16.gmra.mrb[168].mxu1 %v7641_v0  ;;  %9580 = vmatprep.mubr.bf16.mxu0 %v7650_v18  ;;  %v15863_v35 = vpop.eup %15862  ;;  %v7026_v50 = vunpack.c.h.bf16 %v15857_v17  ;;  %v7274_v13 = vadd.f32 1.0, %v7018_v40 }
 0x52b   : > { %v6276_v39 = vpack.c.bf16 %v21373_v16, %v21367_v52  ;;  %10352 = vmatprep.mubr.bf16.mxu1 %v7650_v18  ;;  %v15865_v37 = vpop.eup %15864  ;;  %v7649_v49 = vpack.c.bf16 %v15863_v35, %v15861_v54  ;;  %v7017_v18 = vunpack.c.l.bf16 %v21316_v57  ;;  %v6447_v3 = vmul.bf16 1069105081, %v6292_v36 }
 0x52c   : > { %v6278_v1 = vpack.c.bf16 %v21384_v33, %v21379_v34  ;;  %v15867_v45 = vpop.eup %15866  ;;  %v6420_v0 = vmul.bf16 1069105081, %v6283_v51  ;;  %v7282_v47 = vadd.f32 1.0, %v7026_v50  ;;  %15882 = vrcp.f32 %v7265_v5 }
 0x52d   : > { %v15869_v63 = vpop.eup %15868  ;;  %v7658_v17 = vpack.c.bf16 %v15867_v45, %v15865_v37  ;;  %v7034_v58 = vunpack.c.l.bf16 %v21355_v15  ;;  %v6291_v59 = vsub.bf16 0, %v23483_v62  ;;  %v7273_v54 = vadd.f32 1.0, %v7017_v18 }
 0x52e   : > { %v15871_v7 = vpop.eup %15870  ;;  %15884 = vpow.bf16 %v6420_v0  ;;  %v7042_v51 = vunpack.c.h.bf16 %v21355_v15  ;;  %v23484_v57 = vpack.c.bf16 %v20532_v26, %v20526_v4  ;;  %v7281_v19 = vadd.f32 1.0, %v7025_v6  ;;  %v23485_v0 = vld [vmem:[#allocation27_spill] sm:$0xff] }
 0x52f   : > { %v15873_v29 = vpop.eup %15872  ;;  %15886 = vrcp.f32 %v7274_v13  ;;  %v7290_v37 = vadd.f32 1.0, %v7034_v58  ;;  %v6444_v28 = vmul.bf16 1069105081, %v6291_v59  ;;  %v7033_v36 = vunpack.c.l.bf16 %v15869_v63  ;;  %v23486_v13 = vld [vmem:[#allocation26_spill] sm:$0xff] }
 0x530   : > { %15888 = vrcp.f32 %v7282_v47  ;;  %v15875_v40 = vpop.eup %15874  ;;  %v6300_v35 = vsub.bf16 0, %v23484_v57  ;;  %v7657_v21 = vpack.c.bf16 %v15873_v29, %v15871_v7  ;;  %v7041_v45 = vunpack.c.h.bf16 %v15869_v63  ;;  %v23488_v63 = vld [vmem:[#allocation38_spill] sm:$0xff] }
 0x531   : > { %9581 = vmatmul.mubr.bf16.gmra.mrb[172].mxu0 %v7649_v49  ;;  %15890 = vpow.bf16 %v6447_v3  ;;  %v15877_v50 = vpop.eup %15876  ;;  %v23487_v18 = vpack.c.bf16 %v23485_v0, %v23486_v13  ;;  %v7289_v7 = vadd.f32 1.0, %v7033_v36  ;;  %v23489_v58 = vld [vmem:[#allocation34_spill] sm:$0xff]  ;;  %v23491_v36 = vld [vmem:[#allocation35_spill] sm:$0xff] }
 0x532   : > { %10353 = vmatmul.mubr.bf16.gmra.mrb[172].mxu1 %v7649_v49  ;;  %9590 = vmatprep.mubr.bf16.mxu0 %v7658_v17  ;;  %v15879_v44 = vpop.eup %15878  ;;  %15892 = vrcp.f32 %v7273_v54  ;;  %v7298_v49 = vadd.f32 1.0, %v7042_v51  ;;  %v6471_v5 = vmul.bf16 1069105081, %v6300_v35  ;;  %v7666_v47 = vpack.c.bf16 %v15877_v50, %v15875_v40 }
 0x533   : > { %10362 = vmatprep.mubr.bf16.mxu1 %v7658_v17  ;;  %15894 = vrcp.f32 %v7281_v19  ;;  %v15881_v15 = vpop.eup %15880  ;;  %v6299_v3 = vsub.bf16 0, %v23487_v18  ;;  %v6796_v26 = vunpack.c.l.bf16 %v15879_v44  ;;  %v6804_v29 = vunpack.c.h.bf16 %v15879_v44 }
 0x534   : > { %15896 = vrcp.f32 %v7290_v37  ;;  %v23490_v62 = vpack.c.bf16 %v23488_v63, %v23489_v58  ;;  %v7297_v54 = vadd.f32 1.0, %v7041_v45 }
 0x535   : > { %15898 = vpow.bf16 %v6444_v28  ;;  %v6468_v40 = vmul.bf16 1069105081, %v6299_v3  ;;  %v7052_v57 = vadd.f32 1.0, %v6796_v26  ;;  %v7060_v37 = vadd.f32 1.0, %v6804_v29  ;;  %v23494_v26 = vld [vmem:[#allocation46_spill] sm:$0xff] }
 0x536   : > { %v15883_v4 = vpop.eup %15882  ;;  %15900 = vrcp.f32 %v7298_v49  ;;  %v6308_v59 = vsub.bf16 0, %v23490_v62 }
 0x537   : > { %15902 = vpow.bf16 %v6471_v5  ;;  %v7665_v50 = vpack.c.bf16 %v15883_v4, %v15881_v15  ;;  %v23492_v5 = vld [vmem:[#allocation32_spill] sm:$0xff] }
 0x538   : > { %15904 = vrcp.f32 %v7289_v7  ;;  %v23495_v7 = vld [vmem:[#allocation44_spill] sm:$0xff] }
 0x539   : > { %9591 = vmatmul.mubr.bf16.gmra.mrb[176].mxu0 %v7657_v21  ;;  %v15885_v17 = vpop.eup %15884  ;;  %15906 = vrcp.f32 %v7297_v54  ;;  %v23496_v29 = vpack.c.bf16 %v23494_v26, %v23495_v7  ;;  %v23497_v54 = vld [vmem:[#allocation42_spill] sm:$0xff] }
 0x53a   : > { %10363 = vmatmul.mubr.bf16.gmra.mrb[176].mxu1 %v7657_v21  ;;  %9600 = vmatprep.mubr.bf16.mxu0 %v7666_v47  ;;  %v15887_v6 = vpop.eup %15886  ;;  %v6795_v19 = vunpack.c.l.bf16 %v15885_v17  ;;  %v6803_v28 = vunpack.c.h.bf16 %v15885_v17  ;;  %v6495_v21 = vmul.bf16 1069105081, %v6308_v59  ;;  %15908 = vpow.bf16 %v6468_v40 }
 0x53b   : > { %10372 = vmatprep.mubr.bf16.mxu1 %v7666_v47  ;;  %v15889_v51 = vpop.eup %15888  ;;  %v23493_v47 = vpack.c.bf16 %v23491_v36, %v23492_v5  ;;  %15910 = vrcp.f32 %v7052_v57  ;;  %v6316_v17 = vsub.bf16 0, %v23496_v29  ;;  %v23501_v29 = vld [vmem:[#allocation49_spill] sm:$0xff] }
 0x53c   : > { %v15891_v35 = vpop.eup %15890  ;;  %v7674_v49 = vpack.c.bf16 %v15889_v51, %v15887_v6  ;;  %v7051_v15 = vadd.f32 1.0, %v6795_v19  ;;  %15912 = vrcp.f32 %v7060_v37  ;;  %v7059_v4 = vadd.f32 1.0, %v6803_v28  ;;  %v23498_v51 = vld [vmem:[#allocation40_spill] sm:$0xff] }
 0x53d   : > { %v15893_v44 = vpop.eup %15892  ;;  %v6307_v0 = vsub.bf16 0, %v23493_v47  ;;  %v6812_v13 = vunpack.c.l.bf16 %v15891_v35  ;;  %v6820_v3 = vunpack.c.h.bf16 %v15891_v35  ;;  %15914 = vpow.bf16 %v6495_v21 }
 0x53e   : > { %v15895_v45 = vpop.eup %15894  ;;  %15916 = vrcp.f32 %v7051_v15  ;;  %v23499_v40 = vpack.c.bf16 %v23497_v54, %v23498_v51  ;;  %v6519_v35 = vmul.bf16 1069105081, %v6316_v17  ;;  %v23502_v17 = vld [vmem:[#allocation48_spill] sm:$0xff] }
 0x53f   : > { %v15897_v18 = vpop.eup %15896  ;;  %v6492_v58 = vmul.bf16 1069105081, %v6307_v0  ;;  %v7068_v62 = vadd.f32 1.0, %v6812_v13  ;;  %v7673_v19 = vpack.c.bf16 %v15895_v45, %v15893_v44  ;;  %15918 = vrcp.f32 %v7059_v4 }
 0x540   : > { %v15899_v6 = vpop.eup %15898  ;;  %v6315_v57 = vsub.bf16 0, %v23499_v40  ;;  %v23500_v45 = vpack.c.bf16 %v20698_v2, %v20692_v53 }
 0x541   : > { %9601 = vmatmul.mubr.bf16.gmra.mrb[180].mxu0 %v7665_v50  ;;  %v15901_v63 = vpop.eup %15900  ;;  %v6811_v28 = vunpack.c.l.bf16 %v15899_v6  ;;  %15920 = vpow.bf16 %v6492_v58 }
 0x542   : > { %10373 = vmatmul.mubr.bf16.gmra.mrb[180].mxu1 %v7665_v50  ;;  %9610 = vmatprep.mubr.bf16.mxu0 %v7674_v49  ;;  %v15903_v59 = vpop.eup %15902  ;;  %v7076_v50 = vadd.f32 1.0, %v6820_v3  ;;  %v7682_v37 = vpack.c.bf16 %v15901_v63, %v15897_v18  ;;  %15922 = vrcp.f32 %v7068_v62  ;;  %v6516_v47 = vmul.bf16 1069105081, %v6315_v57 }
 0x543   : > { %10382 = vmatprep.mubr.bf16.mxu1 %v7674_v49  ;;  %v15905_v21 = vpop.eup %15904  ;;  %v6819_v49 = vunpack.c.h.bf16 %v15899_v6  ;;  %v6828_v5 = vunpack.c.l.bf16 %v15903_v59  ;;  %v6836_v0 = vunpack.c.h.bf16 %v15903_v59  ;;  %v6324_v18 = vsub.bf16 0, %v23500_v45 }
 0x544   : > { %v15907_v36 = vpop.eup %15906  ;;  %15924 = vrcp.f32 %v7076_v50  ;;  %v7067_v15 = vadd.f32 1.0, %v6811_v28  ;;  %v23503_v6 = vpack.c.bf16 %v23501_v29, %v23502_v17  ;;  %v23504_v28 = vpack.c.bf16 %v20769_v42, %v20763_v32  ;;  %v15389_v32 = vld [vmem:[%s22670_s3 + $0x608] ss:$16 sps:$4 sm:$0xff]   ;;  %v15394_v42 = vld [vmem:[%s22670_s3 + $0x624] ss:$16 sps:$4 sm:$0xff]  }
 0x545   : > { %v15909_v13 = vpop.eup %15908  ;;  %15926 = vpow.bf16 %v6519_v35  ;;  %v7075_v4 = vadd.f32 1.0, %v6819_v49  ;;  %v7084_v26 = vadd.f32 1.0, %v6828_v5  ;;  %v7681_v58 = vpack.c.bf16 %v15907_v36, %v15905_v21 }
 0x546   : > { %v15911_v44 = vpop.eup %15910  ;;  %15928 = vpow.bf16 %v6516_v47  ;;  %v6323_v63 = vsub.bf16 0, %v23503_v6  ;;  %v7092_v62 = vadd.f32 1.0, %v6836_v0  ;;  %v6543_v59 = vmul.bf16 1069105081, %v6324_v18 }
 0x547   : > { %v15913_v3 = vpop.eup %15912  ;;  %15930 = vrcp.f32 %v7067_v15  ;;  %v6827_v51 = vunpack.c.l.bf16 %v15909_v13  ;;  %v6835_v53 = vunpack.c.h.bf16 %v15909_v13  ;;  %v6332_v21 = vsub.bf16 0, %v23504_v28  ;;  %v23505_v13 = vld [vmem:[#allocation54_spill] sm:$0xff]  ;;  %v15386_v15 = vld [vmem:[%s22670_s3 + $0x600] ss:$16 sps:$4 sm:$0xff]  }
 0x548   : > { %v15915_v7 = vpop.eup %15914  ;;  %v7564_v54 = vpack.c.bf16 %v15913_v3, %v15911_v44  ;;  %15932 = vrcp.f32 %v7075_v4  ;;  %v23506_v44 = vpack.c.bf16 %v20757_v31, %v23505_v13  ;;  %v15397_v31 = vld [vmem:[%s22670_s3 + $0x62c] ss:$16 sps:$4 sm:$0xff]  }
 0x549   : > { %9611 = vmatmul.mubr.bf16.gmra.mrb[184].mxu0 %v7673_v19  ;;  %v15917_v40 = vpop.eup %15916  ;;  %15934 = vrcp.f32 %v7084_v26  ;;  %v6844_v57 = vunpack.c.l.bf16 %v15915_v7  ;;  %v6852_v50 = vunpack.c.h.bf16 %v15915_v7  ;;  %v7083_v49 = vadd.f32 1.0, %v6827_v51  ;;  %v15403_v28 = vld [vmem:[%s22670_s3 + $0x64c] ss:$16 sps:$4 sm:$0xff]  }
 0x54a   : > { %10383 = vmatmul.mubr.bf16.gmra.mrb[184].mxu1 %v7673_v19  ;;  %9620 = vmatprep.mubr.bf16.mxu0 %v7682_v37  ;;  %v15919_v2 = vpop.eup %15918  ;;  %v6540_v19 = vmul.bf16 1069105081, %v6323_v63  ;;  %15936 = vrcp.f32 %v7092_v62  ;;  %v7091_v5 = vadd.f32 1.0, %v6835_v53  ;;  %v6331_v45 = vsub.bf16 0, %v23506_v44  ;;  %v23508_v53 = vld [vmem:[#allocation62_spill] sm:$0xff] }
 0x54b   : > { %10392 = vmatprep.mubr.bf16.mxu1 %v7682_v37  ;;  %15938 = vpow.bf16 %v6543_v59  ;;  %v7100_v47 = vadd.f32 1.0, %v6844_v57  ;;  %v7563_v18 = vpack.c.bf16 %v15919_v2, %v15917_v40  ;;  %v7108_v3 = vadd.f32 1.0, %v6852_v50  ;;  %v15392_v59 = vld [vmem:[%s22670_s3 + $0x620] ss:$16 sps:$4 sm:$0xff]   ;;  %v23507_v40 = vld [vmem:[#allocation64_spill] sm:$0xff] }
 0x54c   : > { %v15921_v35 = vpop.eup %15920  ;;  %15940 = vpow.bf16 %v6540_v19  ;;  %v6567_v4 = vmul.bf16 1069105081, %v6332_v21  ;;  %v6564_v62 = vmul.bf16 1069105081, %v6331_v45  ;;  %v23509_v2 = vpack.c.bf16 %v23507_v40, %v23508_v53  ;;  %v15395_v19 = vld [vmem:[%s22670_s3 + $0x628] ss:$16 sps:$4 sm:$0xff]  }
 0x54d   : > { %v15923_v37 = vpop.eup %15922  ;;  %15942 = vrcp.f32 %v7083_v49  ;;  %v6843_v7 = vunpack.c.l.bf16 %v15921_v35  ;;  %v6851_v29 = vunpack.c.h.bf16 %v15921_v35  ;;  %v15400_v50 = vld [vmem:[%s22670_s3 + $0x644] ss:$16 sps:$4 sm:$0xff]   ;;  %v15398_v45 = vld [vmem:[%s22670_s3 + $0x640] ss:$16 sps:$4 sm:$0xff]   ;;  %v15407_v53 = vld [vmem:[%s22670_s3 + $0x668] ss:$16 sps:$4 sm:$0xff]  }
 0x54e   : > { %v15925_v36 = vpop.eup %15924  ;;  %15944 = vrcp.f32 %v7091_v5  ;;  %v6340_v57 = vsub.bf16 0, %v23509_v2  ;;  %v23510_v5 = vld [vmem:[#allocation61_spill] sm:$0xff] }
 0x54f   : > { %v7572_v26 = vpack.c.bf16 %v15925_v36, %v15923_v37  ;;  %15946 = vrcp.f32 %v7100_v47  ;;  %v7099_v35 = vadd.f32 1.0, %v6843_v7  ;;  %v7107_v21 = vadd.f32 1.0, %v6851_v29  ;;  %v23511_v47 = vld [vmem:[#allocation59_spill] sm:$0xff] }
 0x550   : > { %v15927_v0 = vpop.eup %15926  ;;  %15948 = vrcp.f32 %v7108_v3 }
 0x551   : > { %9621 = vmatmul.mubr.bf16.gmra.mrb[188].mxu0 %v7681_v58  ;;  %v21444_v17 = vpop.eup %15928  ;;  %v6860_v63 = vunpack.c.l.bf16 %v15927_v0  ;;  %15950 = vpow.bf16 %v6567_v4  ;;  %v15401_v4 = vld [vmem:[%s22670_s3 + $0x648] ss:$16 sps:$4 sm:$0xff]  }
 0x552   : > { %10393 = vmatmul.mubr.bf16.gmra.mrb[188].mxu1 %v7681_v58  ;;  %9663 = vmatprep.mubr.bf16.mxu0 %v7564_v54  ;;  %v15931_v6 = vpop.eup %15930  ;;  %15952 = vpow.bf16 %v6564_v62  ;;  %v6867_v7 = vunpack.c.h.bf16 %v21444_v17  ;;  %v15404_v62 = vld [vmem:[%s22670_s3 + $0x660] ss:$16 sps:$4 sm:$0xff]  }
 0x553   : > { %10435 = vmatprep.mubr.bf16.mxu1 %v7564_v54  ;;  %v15933_v58 = vpop.eup %15932  ;;  %v6868_v54 = vunpack.c.h.bf16 %v15927_v0  ;;  %v7116_v49 = vadd.f32 1.0, %v6860_v63  ;;  %v23512_v0 = vpack.c.bf16 %v23510_v5, %v23511_v47  ;;  %15954 = vrcp.f32 %v7099_v35  ;;  %v15415_v35 = vld [vmem:[%s22670_s3 + $0x68c] ss:$16 sps:$4 sm:$0xff]   ;;  %v15410_v47 = vld [vmem:[%s22670_s3 + $0x680] ss:$16 sps:$4 sm:$0xff]  }
 0x554   : > { %v15935_v51 = vpop.eup %15934  ;;  %v7571_v44 = vpack.c.bf16 %v15933_v58, %v15931_v6  ;;  %15956 = vrcp.f32 %v7107_v21  ;;  %v23516_v21 = vld [vmem:[#allocation67_spill] sm:$0xff] }
 0x555   : > { %v15937_v37 = vpop.eup %15936  ;;  %v6339_v13 = vsub.bf16 0, %v23512_v0  ;;  %15958 = vrcp.f32 %v7116_v49 }
 0x556   : > { %v15939_v36 = vpop.eup %15938  ;;  %v7580_v3 = vpack.c.bf16 %v15937_v37, %v15935_v51 }
 0x557   : > { %v6876_v6 = vunpack.c.l.bf16 %v15939_v36  ;;  %v6588_v58 = vmul.bf16 1069105081, %v6339_v13 }
 0x559   : > { %9664 = vmatmul.mubr.bf16.vlgmr.msra.gmra.mrb[128].mxu0 %v7563_v18 }
 0x55a   : > { %10436 = vmatmul.mubr.bf16.vlgmr.msra.gmra.mrb[128].mxu1 %v7563_v18  ;;  %9673 = vmatprep.mubr.bf16.mxu0 %v7572_v26  ;;  %v7124_v18 = vadd.f32 1.0, %v6868_v54 }
 0x55b   : > { %9825 = vmatpush1.bf16.msra.mxu0 %v15386_v15  ;;  %10445 = vmatprep.mubr.bf16.mxu1 %v7572_v26  ;;  %v6591_v15 = vmul.bf16 1069105081, %v6340_v57  ;;  %v15406_v26 = vld [vmem:[%s22670_s3 + $0x664] ss:$16 sps:$4 sm:$0xff]  }
 0x55c   : > { %10597 = vmatpush1.bf16.msra.mxu1 %v15389_v32  ;;  %9826 = vmatprep.subr.bf16.mxu0 %v15394_v42  ;;  %v6859_v32 = vunpack.c.l.bf16 %v21444_v17  ;;  %v15409_v42 = vld [vmem:[%s22670_s3 + $0x66c] ss:$16 sps:$4 sm:$0xff]   ;;  %15960 = vrcp.f32 %v7124_v18  ;;  %v15412_v57 = vld [vmem:[%s22670_s3 + $0x684] ss:$16 sps:$4 sm:$0xff]  }
 0x55d   : > { %10598 = vmatprep.subr.bf16.mxu1 %v15397_v31  ;;  %v21478_v31 = vpop.eup %15940  ;;  %15962 = vpow.bf16 %v6591_v15  ;;  %v23513_v17 = vld [vmem:[#allocation70_spill] sm:$0xff]  ;;  %v15418_v15 = vld [vmem:[%s22670_s3 + $0x6a4] ss:$16 sps:$4 sm:$0xff]  }
 0x55e   : > { %v15943_v29 = vpop.eup %15942  ;;  %v23514_v51 = vpack.c.bf16 %v20922_v22, %v23513_v17  ;;  %v7115_v2 = vadd.f32 1.0, %v6859_v32  ;;  %v7132_v22 = vadd.f32 1.0, %v6876_v6  ;;  %15964 = vpow.bf16 %v6588_v58  ;;  %v15424_v17 = vld [vmem:[%s22670_s3 + $0x6c4] ss:$16 sps:$4 sm:$0xff]  }
 0x55f   : > { %9827 = vmatpush1.bf16.msra.mxu0 %v15392_v59  ;;  %v15945_v63 = vpop.eup %15944  ;;  %v6884_v59 = vunpack.c.h.bf16 %v15939_v36  ;;  %v6875_v18 = vunpack.c.l.bf16 %v21478_v31  ;;  %v23518_v58 = vpack.c.bf16 %v20994_v8, %v20988_v23 }
 0x560   : > { %10599 = vmatpush1.bf16.msra.mxu1 %v15395_v19  ;;  %9828 = vmatprep.subr.bf16.mxu0 %v15400_v50  ;;  %v15947_v54 = vpop.eup %15946  ;;  %v6348_v40 = vsub.bf16 0, %v23514_v51  ;;  %v7123_v50 = vadd.f32 1.0, %v6867_v7  ;;  %v7579_v5 = vpack.c.bf16 %v15945_v63, %v15943_v29  ;;  %15966 = vrcp.f32 %v7115_v2  ;;  %v23519_v2 = vld [vmem:[#allocation106_spill] sm:$0xff] }
 0x561   : > { %9674 = vmatmul.mubr.bf16.gmra.mrb[132].mxu0 %v7571_v44  ;;  %10600 = vmatprep.subr.bf16.mxu1 %v15403_v28  ;;  %v15949_v19 = vpop.eup %15948  ;;  %v23515_v28 = vld [vmem:[#allocation69_spill] sm:$0xff]  ;;  %v7140_v0 = vadd.f32 1.0, %v6884_v59  ;;  %v7131_v59 = vadd.f32 1.0, %v6875_v18 }
 0x562   : > { %10446 = vmatmul.mubr.bf16.gmra.mrb[132].mxu1 %v7571_v44  ;;  %9683 = vmatprep.mubr.bf16.mxu0 %v7580_v3  ;;  %v15951_v37 = vpop.eup %15950  ;;  %v23517_v49 = vpack.c.bf16 %v23515_v28, %v23516_v21  ;;  %v6615_v13 = vmul.bf16 1069105081, %v6348_v40  ;;  %v7588_v44 = vpack.c.bf16 %v15949_v19, %v15947_v54  ;;  %15968 = vrcp.f32 %v7123_v50  ;;  %v15419_v54 = vld [vmem:[%s22670_s3 + $0x6a8] ss:$16 sps:$4 sm:$0xff]  }
 0x563   : > { %10455 = vmatprep.mubr.bf16.mxu1 %v7580_v3  ;;  %9829 = vmatpush1.bf16.msra.mxu0 %v15398_v45  ;;  %v15413_v45 = vld [vmem:[%s22670_s3 + $0x688] ss:$16 sps:$4 sm:$0xff]   ;;  %v6883_v3 = vunpack.c.h.bf16 %v21478_v31  ;;  %15970 = vrcp.f32 %v7132_v22  ;;  %v15416_v31 = vld [vmem:[%s22670_s3 + $0x6a0] ss:$16 sps:$4 sm:$0xff]   ;;  %v6900_v6 = vunpack.c.h.bf16 %v15951_v37 }
 0x564   : > { %10601 = vmatpush1.bf16.msra.mxu1 %v15401_v4  ;;  %9830 = vmatprep.subr.bf16.mxu0 %v15406_v26  ;;  %v6347_v36 = vsub.bf16 0, %v23517_v49  ;;  %v15421_v4 = vld [vmem:[%s22670_s3 + $0x6ac] ss:$16 sps:$4 sm:$0xff]   ;;  %v21512_v26 = vpop.eup %15952  ;;  %15972 = vrcp.f32 %v7140_v0 }
 0x565   : > { %10602 = vmatprep.subr.bf16.mxu1 %v15409_v42  ;;  %v15955_v32 = vpop.eup %15954  ;;  %v6892_v42 = vunpack.c.l.bf16 %v15951_v37  ;;  %15974 = vpow.bf16 %v6615_v13  ;;  %v7139_v40 = vadd.f32 1.0, %v6883_v3  ;;  %v7156_v22 = vadd.f32 1.0, %v6900_v6  ;;  %v15422_v37 = vld [vmem:[%s22670_s3 + $0x6c0] ss:$16 sps:$4 sm:$0xff]   ;;  %v15433_v0 = vld [vmem:[%s22670_s3 + $0x6ec] ss:$16 sps:$4 sm:$0xff]  }
 0x566   : > { %v15957_v7 = vpop.eup %15956  ;;  %v6612_v29 = vmul.bf16 1069105081, %v6347_v36  ;;  %v6891_v49 = vunpack.c.l.bf16 %v21512_v26  ;;  %v15425_v36 = vld [vmem:[%s22670_s3 + $0x6c8] ss:$16 sps:$4 sm:$0xff]  }
 0x567   : > { %9831 = vmatpush1.bf16.msra.mxu0 %v15404_v62  ;;  %v15959_v63 = vpop.eup %15958  ;;  %v6356_v62 = vsub.bf16 0, %v23518_v58  ;;  %v7148_v23 = vadd.f32 1.0, %v6892_v42  ;;  %v15439_v58 = vld [vmem:[%s22670_s3 + $0x70c] ss:$16 sps:$4 sm:$0xff]  }
 0x568   : > { %10603 = vmatpush1.bf16.msra.mxu1 %v15407_v53  ;;  %9832 = vmatprep.subr.bf16.mxu0 %v15412_v57  ;;  %v15961_v51 = vpop.eup %15960  ;;  %v15427_v53 = vld [vmem:[%s22670_s3 + $0x6cc] ss:$16 sps:$4 sm:$0xff]   ;;  %15976 = vpow.bf16 %v6612_v29  ;;  %v15431_v29 = vld [vmem:[%s22670_s3 + $0x6e8] ss:$16 sps:$4 sm:$0xff]  }
 0x569   : > { %9684 = vmatmul.mubr.bf16.gmra.mrb[136].mxu0 %v7579_v5  ;;  %10604 = vmatprep.subr.bf16.mxu1 %v15415_v35  ;;  %v15963_v8 = vpop.eup %15962  ;;  %v23520_v57 = vld [vmem:[#allocation94_spill] sm:$0xff]  ;;  %v7587_v35 = vpack.c.bf16 %v15957_v7, %v15955_v32  ;;  %v6639_v28 = vmul.bf16 1069105081, %v6356_v62  ;;  %v7596_v21 = vpack.c.bf16 %v15961_v51, %v15959_v63  ;;  %15978 = vrcp.f32 %v7131_v59  ;;  %v23524_v59 = vld [vmem:[#allocation113_spill] sm:$0xff] }
 0x56a   : > { %10456 = vmatmul.mubr.bf16.gmra.mrb[136].mxu1 %v7579_v5  ;;  %9693 = vmatprep.mubr.bf16.mxu0 %v7588_v44  ;;  %v23521_v19 = vpack.c.bf16 %v23519_v2, %v23520_v57  ;;  %v15430_v5 = vld [vmem:[%s22670_s3 + $0x6e4] ss:$16 sps:$4 sm:$0xff]   ;;  %15980 = vrcp.f32 %v7139_v40  ;;  %v21546_v13 = vpop.eup %15964  ;;  %v6916_v3 = vunpack.c.h.bf16 %v15963_v8  ;;  %v23522_v32 = vpack.c.bf16 %v21067_v55, %v21061_v9  ;;  %v23523_v62 = vld [vmem:[#allocation110_spill] sm:$0xff] }
 0x56b   : > { %10465 = vmatprep.mubr.bf16.mxu1 %v7588_v44  ;;  %9833 = vmatpush1.bf16.msra.mxu0 %v15410_v47  ;;  %v6899_v47 = vunpack.c.h.bf16 %v21512_v26  ;;  %v15967_v44 = vpop.eup %15966  ;;  %15982 = vrcp.f32 %v7148_v23  ;;  %v7147_v7 = vadd.f32 1.0, %v6891_v49  ;;  %v6907_v2 = vunpack.c.l.bf16 %v21546_v13  ;;  %v15437_v57 = vld [vmem:[%s22670_s3 + $0x708] ss:$16 sps:$4 sm:$0xff]  }
 0x56c   : > { %10605 = vmatpush1.bf16.msra.mxu1 %v15413_v45  ;;  %9834 = vmatprep.subr.bf16.mxu0 %v15418_v15  ;;  %v6355_v50 = vsub.bf16 0, %v23521_v19  ;;  %v6908_v45 = vunpack.c.l.bf16 %v15963_v8  ;;  %v15969_v18 = vpop.eup %15968  ;;  %15984 = vrcp.f32 %v7156_v22  ;;  %v6364_v42 = vsub.bf16 0, %v23522_v32  ;;  %v15442_v19 = vld [vmem:[%s22670_s3 + $0x724] ss:$16 sps:$4 sm:$0xff]  }
 0x56d   : > { %10606 = vmatprep.subr.bf16.mxu1 %v15421_v4  ;;  %v15428_v4 = vld [vmem:[%s22670_s3 + $0x6e0] ss:$16 sps:$4 sm:$0xff]   ;;  %v15971_v26 = vpop.eup %15970  ;;  %15986 = vpow.bf16 %v6639_v28  ;;  %v7155_v63 = vadd.f32 1.0, %v6899_v47  ;;  %v7595_v51 = vpack.c.bf16 %v15969_v18, %v15967_v44  ;;  %v7172_v40 = vadd.f32 1.0, %v6916_v3  ;;  %v15448_v18 = vld [vmem:[%s22670_s3 + $0x744] ss:$16 sps:$4 sm:$0xff]  }
 0x56e   : > { %v6636_v15 = vmul.bf16 1069105081, %v6355_v50  ;;  %v15973_v6 = vpop.eup %15972  ;;  %v7164_v9 = vadd.f32 1.0, %v6908_v45  ;;  %v6663_v23 = vmul.bf16 1069105081, %v6364_v42  ;;  %v6915_v50 = vunpack.c.h.bf16 %v21546_v13 }
 0x56f   : > { %9835 = vmatpush1.bf16.msra.mxu0 %v15416_v31  ;;  %v15436_v31 = vld [vmem:[%s22670_s3 + $0x704] ss:$16 sps:$4 sm:$0xff]   ;;  %v7604_v8 = vpack.c.bf16 %v15973_v6, %v15971_v26  ;;  %v7163_v44 = vadd.f32 1.0, %v6907_v2  ;;  %v15443_v45 = vld [vmem:[%s22670_s3 + $0x728] ss:$16 sps:$4 sm:$0xff]   ;;  %v23527_v26 = vpack.c.bf16 %v21130_v43, %v21124_v41 }
 0x570   : > { %10607 = vmatpush1.bf16.msra.mxu1 %v15419_v54  ;;  %9836 = vmatprep.subr.bf16.mxu0 %v15424_v17  ;;  %v15975_v55 = vpop.eup %15974  ;;  %15988 = vpow.bf16 %v6636_v15  ;;  %v23525_v54 = vpack.c.bf16 %v23523_v62, %v23524_v59  ;;  %v7171_v3 = vadd.f32 1.0, %v6915_v50  ;;  %v15454_v41 = vld [vmem:[%s22670_s3 + $0x764] ss:$16 sps:$4 sm:$0xff]  }
 0x571   : > { %9694 = vmatmul.mubr.bf16.gmra.mrb[140].mxu0 %v7587_v35  ;;  %10608 = vmatprep.subr.bf16.mxu1 %v15427_v53  ;;  %v15434_v53 = vld [vmem:[%s22670_s3 + $0x700] ss:$16 sps:$4 sm:$0xff]   ;;  %15990 = vrcp.f32 %v7147_v7  ;;  %v6924_v28 = vunpack.c.l.bf16 %v15975_v55  ;;  %v6371_v32 = vsub.bf16 0, %v23527_v26  ;;  %v15460_v50 = vld [vmem:[%s22670_s3 + $0x784] ss:$16 sps:$4 sm:$0xff]  }
 0x572   : > { %10466 = vmatmul.mubr.bf16.gmra.mrb[140].mxu1 %v7587_v35  ;;  %9703 = vmatprep.mubr.bf16.mxu0 %v7596_v21  ;;  %v6363_v17 = vsub.bf16 0, %v23525_v54  ;;  %15992 = vrcp.f32 %v7155_v63  ;;  %v15445_v35 = vld [vmem:[%s22670_s3 + $0x72c] ss:$16 sps:$4 sm:$0xff]  }
 0x573   : > { %10475 = vmatprep.mubr.bf16.mxu1 %v7596_v21  ;;  %9837 = vmatpush1.bf16.msra.mxu0 %v15422_v37  ;;  %v21580_v22 = vpop.eup %15976  ;;  %15994 = vrcp.f32 %v7164_v9  ;;  %v15457_v9 = vld [vmem:[%s22670_s3 + $0x76c] ss:$16 sps:$4 sm:$0xff]  }
 0x574   : > { %10609 = vmatpush1.bf16.msra.mxu1 %v15425_v36  ;;  %9838 = vmatprep.subr.bf16.mxu0 %v15430_v5  ;;  %v15979_v37 = vpop.eup %15978  ;;  %v6660_v49 = vmul.bf16 1069105081, %v6363_v17  ;;  %15996 = vrcp.f32 %v7172_v40  ;;  %v6932_v36 = vunpack.c.h.bf16 %v15975_v55  ;;  %v15440_v5 = vld [vmem:[%s22670_s3 + $0x720] ss:$16 sps:$4 sm:$0xff]   ;;  %v6923_v63 = vunpack.c.l.bf16 %v21580_v22 }
 0x575   : > { %10610 = vmatprep.subr.bf16.mxu1 %v15433_v0  ;;  %v15981_v21 = vpop.eup %15980  ;;  %15998 = vpow.bf16 %v6663_v23  ;;  %v23526_v0 = vpack.c.bf16 %v21142_v61, %v21136_v10  ;;  %v7180_v10 = vadd.f32 1.0, %v6924_v28  ;;  %v6931_v43 = vunpack.c.h.bf16 %v21580_v22  ;;  %v15452_v40 = vld [vmem:[%s22670_s3 + $0x760] ss:$16 sps:$4 sm:$0xff]   ;;  %v23528_v23 = vld [vmem:[#allocation8_spill] sm:$0xff] }
 0x576   : > { %v15983_v47 = vpop.eup %15982  ;;  %16000 = vpow.bf16 %v6660_v49  ;;  %v7603_v42 = vpack.c.bf16 %v15981_v21, %v15979_v37  ;;  %v7188_v7 = vadd.f32 1.0, %v6932_v36  ;;  %v6684_v17 = vmul.bf16 1069105081, %v6371_v32  ;;  %v15463_v37 = vld [vmem:[%s22670_s3 + $0x78c] ss:$16 sps:$4 sm:$0xff]   ;;  %v23531_v49 = vld [vmem:[#allocation75_spill] sm:$0xff] }
 0x577   : > { %9839 = vmatpush1.bf16.msra.mxu0 %v15428_v4  ;;  %v6372_v13 = vsub.bf16 0, %v23526_v0  ;;  %v15985_v15 = vpop.eup %15984  ;;  %v15451_v4 = vld [vmem:[%s22670_s3 + $0x74c] ss:$16 sps:$4 sm:$0xff]   ;;  %16002 = vrcp.f32 %v7163_v44  ;;  %v7187_v22 = vadd.f32 1.0, %v6931_v43  ;;  %v15467_v43 = vld [vmem:[%s22670_s3 + $0x7a8] ss:$16 sps:$4 sm:$0xff]  }
 0x578   : > { %10611 = vmatpush1.bf16.msra.mxu1 %v15431_v29  ;;  %9840 = vmatprep.subr.bf16.mxu0 %v15436_v31  ;;  %v15987_v61 = vpop.eup %15986  ;;  %v15446_v29 = vld [vmem:[%s22670_s3 + $0x740] ss:$16 sps:$4 sm:$0xff]   ;;  %v7612_v6 = vpack.c.bf16 %v15985_v15, %v15983_v47  ;;  %16004 = vrcp.f32 %v7171_v3  ;;  %v23530_v21 = vld [vmem:[#allocation122_spill] sm:$0xff]  ;;  %v15466_v3 = vld [vmem:[%s22670_s3 + $0x7a4] ss:$16 sps:$4 sm:$0xff]  }
 0x579   : > { %9704 = vmatmul.mubr.bf16.gmra.mrb[144].mxu0 %v7595_v51  ;;  %10612 = vmatprep.subr.bf16.mxu1 %v15439_v58  ;;  %v6687_v31 = vmul.bf16 1069105081, %v6372_v13  ;;  %v15449_v58 = vld [vmem:[%s22670_s3 + $0x748] ss:$16 sps:$4 sm:$0xff]   ;;  %16006 = vrcp.f32 %v7180_v10  ;;  %v6940_v59 = vunpack.c.l.bf16 %v15987_v61  ;;  %v23532_v36 = vpack.c.bf16 %v23530_v21, %v23531_v49  ;;  %v15458_v13 = vld [vmem:[%s22670_s3 + $0x780] ss:$16 sps:$4 sm:$0xff]  }
 0x57a   : > { %10476 = vmatmul.mubr.bf16.gmra.mrb[144].mxu1 %v7595_v51  ;;  %9713 = vmatprep.mubr.bf16.mxu0 %v7604_v8  ;;  %16008 = vrcp.f32 %v7188_v7  ;;  %v6948_v51 = vunpack.c.h.bf16 %v15987_v61  ;;  %v15461_v15 = vld [vmem:[%s22670_s3 + $0x788] ss:$16 sps:$4 sm:$0xff]   ;;  %v15469_v10 = vld [vmem:[%s22670_s3 + $0x7ac] ss:$16 sps:$4 sm:$0xff]   ;;  %v15476_v21 = vld [vmem:[%s22670_s3 + $0x7e0] ss:$16 sps:$4 sm:$0xff]  }
 0x57b   : > { %10485 = vmatprep.mubr.bf16.mxu1 %v7604_v8  ;;  %9841 = vmatpush1.bf16.msra.mxu0 %v15434_v53  ;;  %v21614_v55 = vpop.eup %15988  ;;  %16010 = vpow.bf16 %v6687_v31  ;;  %v23529_v8 = vpack.c.bf16 %v21219_v46, %v23528_v23  ;;  %v7196_v46 = vadd.f32 1.0, %v6940_v59  ;;  %v15464_v31 = vld [vmem:[%s22670_s3 + $0x7a0] ss:$16 sps:$4 sm:$0xff]   ;;  %v15475_v59 = vld [vmem:[%s22670_s3 + $0x7cc] ss:$16 sps:$4 sm:$0xff]  }
 0x57c   : > { %10613 = vmatpush1.bf16.msra.mxu1 %v15437_v57  ;;  %9842 = vmatprep.subr.bf16.mxu0 %v15442_v19  ;;  %v15991_v62 = vpop.eup %15990  ;;  %v7179_v57 = vadd.f32 1.0, %v6923_v63  ;;  %v15455_v19 = vld [vmem:[%s22670_s3 + $0x768] ss:$16 sps:$4 sm:$0xff]   ;;  %16012 = vpow.bf16 %v6684_v17  ;;  %v7204_v0 = vadd.f32 1.0, %v6948_v51  ;;  %v23533_v63 = vpack.c.bf16 %v21291_v27, %v21285_v48 }
 0x57d   : > { %10614 = vmatprep.subr.bf16.mxu1 %v15445_v35  ;;  %v15993_v54 = vpop.eup %15992  ;;  %v6380_v2 = vsub.bf16 0, %v23529_v8 }
 0x57e   : > { %v15995_v53 = vpop.eup %15994  ;;  %v7611_v47 = vpack.c.bf16 %v15993_v54, %v15991_v62  ;;  %16014 = vrcp.f32 %v7179_v57  ;;  %v23534_v54 = vpack.c.bf16 %v21282_v14, %v21276_v56  ;;  %v15473_v57 = vld [vmem:[%s22670_s3 + $0x7c8] ss:$16 sps:$4 sm:$0xff]   ;;  %v15478_v14 = vld [vmem:[%s22670_s3 + $0x7e4] ss:$16 sps:$4 sm:$0xff]  }
 0x57f   : > { %9843 = vmatpush1.bf16.msra.mxu0 %v15440_v5  ;;  %v15997_v35 = vpop.eup %15996  ;;  %v6379_v5 = vsub.bf16 0, %v23532_v36  ;;  %v6711_v44 = vmul.bf16 1069105081, %v6380_v2  ;;  %16016 = vrcp.f32 %v7187_v22  ;;  %v23535_v36 = vpack.c.bf16 %v21334_v38, %v21328_v12 }
 0x580   : > { %10615 = vmatpush1.bf16.msra.mxu1 %v15443_v45  ;;  %9844 = vmatprep.subr.bf16.mxu0 %v15448_v18  ;;  %v15999_v28 = vpop.eup %15998  ;;  %v7620_v45 = vpack.c.bf16 %v15997_v35, %v15995_v53  ;;  %v6939_v18 = vunpack.c.l.bf16 %v21614_v55  ;;  %16018 = vrcp.f32 %v7196_v46  ;;  %v6387_v17 = vsub.bf16 0, %v23534_v54  ;;  %v15470_v53 = vld [vmem:[%s22670_s3 + $0x7c0] ss:$16 sps:$4 sm:$0xff]  }
 0x581   : > { %9714 = vmatmul.mubr.bf16.gmra.mrb[148].mxu0 %v7603_v42  ;;  %10616 = vmatprep.subr.bf16.mxu1 %v15451_v4  ;;  %v6947_v4 = vunpack.c.h.bf16 %v21614_v55  ;;  %v21648_v61 = vpop.eup %16000  ;;  %v6956_v32 = vunpack.c.l.bf16 %v15999_v28  ;;  %v6708_v7 = vmul.bf16 1069105081, %v6379_v5  ;;  %16020 = vrcp.f32 %v7204_v0  ;;  %v15479_v0 = vld [vmem:[%s22670_s3 + $0x7e8] ss:$16 sps:$4 sm:$0xff]  }
 0x582   : > { %10486 = vmatmul.mubr.bf16.gmra.mrb[148].mxu1 %v7603_v42  ;;  %9723 = vmatprep.mubr.bf16.mxu0 %v7612_v6  ;;  %v16003_v26 = vpop.eup %16002  ;;  %16022 = vpow.bf16 %v6711_v44  ;;  %v6955_v2 = vunpack.c.l.bf16 %v21648_v61  ;;  %v6963_v56 = vunpack.c.h.bf16 %v21648_v61  ;;  %v6732_v46 = vmul.bf16 1069105081, %v6387_v17 }
 0x583   : > { %10495 = vmatprep.mubr.bf16.mxu1 %v7612_v6  ;;  %9845 = vmatpush1.bf16.msra.mxu0 %v15446_v29  ;;  %v16005_v42 = vpop.eup %16004  ;;  %v6964_v29 = vunpack.c.h.bf16 %v15999_v28  ;;  %v7203_v62 = vadd.f32 1.0, %v6947_v4  ;;  %v7212_v48 = vadd.f32 1.0, %v6956_v32  ;;  %16024 = vpow.bf16 %v6708_v7 }
 0x584   : > { %10617 = vmatpush1.bf16.msra.mxu1 %v15449_v58  ;;  %9846 = vmatprep.subr.bf16.mxu0 %v15454_v41  ;;  %v16007_v6 = vpop.eup %16006  ;;  %v6388_v58 = vsub.bf16 0, %v23533_v63  ;;  %v7195_v41 = vadd.f32 1.0, %v6939_v18  ;;  %v7619_v51 = vpack.c.bf16 %v16005_v42, %v16003_v26  ;;  %v6396_v5 = vsub.bf16 0, %v23535_v36 }
 0x585   : > { %10618 = vmatprep.subr.bf16.mxu1 %v15457_v9  ;;  %v15472_v9 = vld [vmem:[%s22670_s3 + $0x7c4] ss:$16 sps:$4 sm:$0xff]   ;;  %v16009_v55 = vpop.eup %16008  ;;  %v7219_v44 = vadd.f32 1.0, %v6963_v56 }
 0x586   : > { %v16011_v27 = vpop.eup %16010  ;;  %v6735_v23 = vmul.bf16 1069105081, %v6388_v58  ;;  %v7628_v8 = vpack.c.bf16 %v16009_v55, %v16007_v6  ;;  %16026 = vrcp.f32 %v7195_v41  ;;  %v6759_v38 = vmul.bf16 1069105081, %v6396_v5 }
 0x587   : > { %9847 = vmatpush1.bf16.msra.mxu0 %v15452_v40  ;;  %v7220_v40 = vadd.f32 1.0, %v6964_v29  ;;  %16028 = vrcp.f32 %v7203_v62  ;;  %v6972_v22 = vunpack.c.l.bf16 %v16011_v27  ;;  %v6980_v28 = vunpack.c.h.bf16 %v16011_v27 }
 0x588   : > { %10619 = vmatpush1.bf16.msra.mxu1 %v15455_v19  ;;  %9848 = vmatprep.subr.bf16.mxu0 %v15460_v50  ;;  %v15481_v19 = vld [vmem:[%s22670_s3 + $0x7ec] ss:$16 sps:$4 sm:$0xff]   ;;  %v16013_v50 = vpop.eup %16012  ;;  %16030 = vrcp.f32 %v7212_v48  ;;  %v6404_v6 = vsub.bf16 0, %v6276_v39  ;;  %v23537_v55 = vpack.c.bf16 %v21361_v30, %v21358_v25 }
 0x589   : > { %9724 = vmatmul.mubr.bf16.gmra.mrb[152].mxu0 %v7611_v47  ;;  %10620 = vmatprep.subr.bf16.mxu1 %v15463_v37  ;;  %v16015_v35 = vpop.eup %16014  ;;  %16032 = vrcp.f32 %v7220_v40  ;;  %v7236_v12 = vadd.f32 1.0, %v6980_v28  ;;  %v6971_v61 = vunpack.c.l.bf16 %v16013_v50  ;;  %v6979_v26 = vunpack.c.h.bf16 %v16013_v50 }
 0x58a   : > { %10496 = vmatmul.mubr.bf16.gmra.mrb[152].mxu1 %v7611_v47  ;;  %9733 = vmatprep.mubr.bf16.mxu0 %v7620_v45  ;;  %v16017_v37 = vpop.eup %16016  ;;  %16034 = vpow.bf16 %v6735_v23  ;;  %v7211_v47 = vadd.f32 1.0, %v6955_v2  ;;  %v6403_v62 = vsub.bf16 0, %v23537_v55  ;;  %v6783_v27 = vmul.bf16 1069105081, %v6404_v6  ;;  %v23538_v23 = vld [vmem:[#allocation21_spill] sm:$0xff] }
 0x58b   : > { %10505 = vmatprep.mubr.bf16.mxu1 %v7620_v45  ;;  %9849 = vmatpush1.bf16.msra.mxu0 %v15458_v13  ;;  %v16019_v49 = vpop.eup %16018  ;;  %v7228_v45 = vadd.f32 1.0, %v6972_v22  ;;  %16036 = vpow.bf16 %v6732_v46  ;;  %v7627_v4 = vpack.c.bf16 %v16017_v37, %v16015_v35  ;;  %v7227_v63 = vadd.f32 1.0, %v6971_v61  ;;  %v23541_v22 = vld [vmem:[#allocation19_spill] sm:$0xff]  ;;  %v23542_v37 = vld [vmem:[#allocation18_spill] sm:$0xff] }
 0x58c   : > { %10621 = vmatpush1.bf16.msra.mxu1 %v15461_v15  ;;  %9850 = vmatprep.subr.bf16.mxu0 %v15466_v3  ;;  %v16021_v13 = vpop.eup %16020  ;;  %v23536_v15 = vpack.c.bf16 %v21322_v20, %v21319_v11  ;;  %16038 = vrcp.f32 %v7211_v47  ;;  %v7235_v41 = vadd.f32 1.0, %v6979_v26  ;;  %v23543_v46 = vpack.c.bf16 %v23541_v22, %v23542_v37 }
 0x58d   : > { %10622 = vmatprep.subr.bf16.mxu1 %v15469_v10  ;;  %v16023_v18 = vpop.eup %16022  ;;  %v7636_v10 = vpack.c.bf16 %v16021_v13, %v16019_v49  ;;  %16040 = vrcp.f32 %v7219_v44 }
 0x58e   : > { %v6395_v3 = vsub.bf16 0, %v23536_v15  ;;  %v16025_v32 = vpop.eup %16024  ;;  %16042 = vrcp.f32 %v7228_v45  ;;  %v6988_v7 = vunpack.c.l.bf16 %v16023_v18  ;;  %v6996_v20 = vunpack.c.h.bf16 %v16023_v18 }
 0x58f   : > { %9851 = vmatpush1.bf16.msra.mxu0 %v15464_v31  ;;  %16044 = vrcp.f32 %v7236_v12  ;;  %v6987_v17 = vunpack.c.l.bf16 %v16025_v32  ;;  %v6995_v52 = vunpack.c.h.bf16 %v16025_v32  ;;  %v6285_v28 = vsub.bf16 0, %v23543_v46  ;;  %v23544_v12 = vld [vmem:[#allocation25_spill] sm:$0xff] }
 0x590   : > { %10623 = vmatpush1.bf16.msra.mxu1 %v15467_v43  ;;  %9852 = vmatprep.subr.bf16.mxu0 %v15472_v9  ;;  %v16027_v42 = vpop.eup %16026  ;;  %v6756_v11 = vmul.bf16 1069105081, %v6395_v3  ;;  %16046 = vpow.bf16 %v6759_v38  ;;  %v7244_v43 = vadd.f32 1.0, %v6988_v7  ;;  %v7252_v48 = vadd.f32 1.0, %v6996_v20  ;;  %v23545_v38 = vld [vmem:[#allocation24_spill] sm:$0xff]  ;;  %v23548_v20 = vld [vmem:[#allocation22_spill] sm:$0xff] }
 0x591   : > { %9734 = vmatmul.mubr.bf16.gmra.mrb[156].mxu0 %v7619_v51  ;;  %10624 = vmatprep.subr.bf16.mxu1 %v15475_v59  ;;  %v16029_v29 = vpop.eup %16028  ;;  %v6426_v15 = vmul.bf16 1069105081, %v6285_v28 }
 0x592   : > { %10506 = vmatmul.mubr.bf16.gmra.mrb[156].mxu1 %v7619_v51  ;;  %9743 = vmatprep.mubr.bf16.mxu0 %v7628_v8  ;;  %v16031_v31 = vpop.eup %16030  ;;  %16048 = vpow.bf16 %v6756_v11  ;;  %v7635_v59 = vpack.c.bf16 %v16029_v29, %v16027_v42  ;;  %v23547_v11 = vld [vmem:[#allocation23_spill] sm:$0xff] }
 0x593   : > { %10515 = vmatprep.mubr.bf16.mxu1 %v7628_v8  ;;  %9853 = vmatpush1.bf16.msra.mxu0 %v15470_v53  ;;  %v16033_v58 = vpop.eup %16032  ;;  %16050 = vrcp.f32 %v7227_v63  ;;  %v6780_v53 = vmul.bf16 1069105081, %v6403_v62  ;;  %v23539_v8 = vld [vmem:[#allocation20_spill] sm:$0xff] }
 0x594   : > { %10625 = vmatpush1.bf16.msra.mxu1 %v15473_v57  ;;  %9854 = vmatprep.subr.bf16.mxu0 %v15478_v14  ;;  %v7644_v54 = vpack.c.bf16 %v16033_v58, %v16031_v31  ;;  %16052 = vrcp.f32 %v7235_v41  ;;  %v23540_v2 = vpack.c.bf16 %v23538_v23, %v23539_v8  ;;  %v7243_v14 = vadd.f32 1.0, %v6987_v17 }
 0x595   : > { %10626 = vmatprep.subr.bf16.mxu1 %v15481_v19  ;;  %v16035_v9 = vpop.eup %16034  ;;  %16054 = vrcp.f32 %v7244_v43  ;;  %v7251_v19 = vadd.f32 1.0, %v6995_v52  ;;  %v23549_v31 = vpack.c.bf16 %v23547_v11, %v23548_v20  ;;  %v23560_v11 = vld [vmem:[#allocation33_spill] sm:$0xff] }
 0x596   : > { %v16037_v16 = vpop.eup %16036  ;;  %v7004_v51 = vunpack.c.l.bf16 %v16035_v9  ;;  %16056 = vrcp.f32 %v7252_v48  ;;  %v7012_v25 = vunpack.c.h.bf16 %v16035_v9  ;;  %v6286_v57 = vsub.bf16 0, %v23540_v2  ;;  %v23553_v2 = vld [vmem:[#allocation29_spill] sm:$0xff] }
 0x597   : > { %9855 = vmatpush1.bf16.msra.mxu0 %v15476_v21  ;;  %v16039_v39 = vpop.eup %16038  ;;  %16058 = vpow.bf16 %v6783_v27  ;;  %v7003_v47 = vunpack.c.l.bf16 %v16037_v16  ;;  %v6293_v6 = vsub.bf16 0, %v23549_v31 }
 0x598   : > { %10627 = vmatpush1.bf16.msra.mxu1 %v15479_v0  ;;  %v16041_v40 = vpop.eup %16040  ;;  %v7260_v50 = vadd.f32 1.0, %v7004_v51  ;;  %16060 = vpow.bf16 %v6780_v53  ;;  %v7268_v49 = vadd.f32 1.0, %v7012_v25  ;;  %v6429_v36 = vmul.bf16 1069105081, %v6286_v57  ;;  %v23554_v57 = vld [vmem:[#allocation28_spill] sm:$0xff] }
 0x599   : > { %9744 = vmatmul.mubr.bf16.gmra.mrb[160].mxu0 %v7627_v4  ;;  %v16043_v30 = vpop.eup %16042  ;;  %v7643_v21 = vpack.c.bf16 %v16041_v40, %v16039_v39  ;;  %16062 = vrcp.f32 %v7243_v14  ;;  %v7011_v0 = vunpack.c.h.bf16 %v16037_v16  ;;  %v7259_v26 = vadd.f32 1.0, %v7003_v47  ;;  %v23550_v16 = vld [vmem:[#allocation31_spill] sm:$0xff]  ;;  %v23551_v39 = vld [vmem:[#allocation30_spill] sm:$0xff] }
 0x59a   : > { %10516 = vmatmul.mubr.bf16.gmra.mrb[160].mxu1 %v7627_v4  ;;  %9753 = vmatprep.mubr.bf16.mxu0 %v7636_v10  ;;  %v16045_v56 = vpop.eup %16044  ;;  %16064 = vrcp.f32 %v7251_v19  ;;  %v23552_v51 = vpack.c.bf16 %v23550_v16, %v23551_v39  ;;  %v23555_v14 = vpack.c.bf16 %v23553_v2, %v23554_v57 }
 0x59b   : > { %10525 = vmatprep.mubr.bf16.mxu1 %v7636_v10  ;;  %v16047_v35 = vpop.eup %16046  ;;  %v7652_v5 = vpack.c.bf16 %v16045_v56, %v16043_v30  ;;  %16066 = vrcp.f32 %v7260_v50  ;;  %v23546_v10 = vpack.c.bf16 %v23544_v12, %v23545_v38  ;;  %v7267_v42 = vadd.f32 1.0, %v7011_v0 }
 0x59c   : > { %v7020_v45 = vunpack.c.l.bf16 %v16047_v35  ;;  %16068 = vrcp.f32 %v7268_v49  ;;  %v7028_v3 = vunpack.c.h.bf16 %v16047_v35  ;;  %v6302_v40 = vsub.bf16 0, %v23552_v51  ;;  %v23565_v51 = vld [vmem:[#allocation43_spill] sm:$0xff] }
 0x59d   : > { %v16049_v13 = vpop.eup %16048  ;;  %16070 = vpow.bf16 %v6429_v36  ;;  %v6294_v61 = vsub.bf16 0, %v23546_v10  ;;  %v6301_v56 = vsub.bf16 0, %v23555_v14 }
 0x59e   : > { %v16051_v44 = vpop.eup %16050  ;;  %v7276_v7 = vadd.f32 1.0, %v7020_v45  ;;  %16072 = vpow.bf16 %v6426_v15  ;;  %v7284_v58 = vadd.f32 1.0, %v7028_v3  ;;  %v7019_v9 = vunpack.c.l.bf16 %v16049_v13 }
 0x59f   : > { %v16053_v18 = vpop.eup %16052  ;;  %v6453_v41 = vmul.bf16 1069105081, %v6294_v61  ;;  %16074 = vrcp.f32 %v7259_v26  ;;  %v7027_v55 = vunpack.c.h.bf16 %v16049_v13  ;;  %v6477_v35 = vmul.bf16 1069105081, %v6302_v40  ;;  %v23556_v13 = vld [vmem:[#allocation39_spill] sm:$0xff]  ;;  %v23566_v40 = vld [vmem:[#allocation41_spill] sm:$0xff] }
 0x5a0   : > { %v16055_v4 = vpop.eup %16054  ;;  %v7651_v63 = vpack.c.bf16 %v16053_v18, %v16051_v44  ;;  %16076 = vrcp.f32 %v7267_v42  ;;  %v7275_v53 = vadd.f32 1.0, %v7019_v9  ;;  %v23557_v44 = vld [vmem:[#allocation37_spill] sm:$0xff] }
 0x5a1   : > { %9754 = vmatmul.mubr.bf16.gmra.mrb[164].mxu0 %v7635_v59  ;;  %v16057_v32 = vpop.eup %16056  ;;  %16078 = vrcp.f32 %v7276_v7  ;;  %v7283_v30 = vadd.f32 1.0, %v7027_v55  ;;  %v23558_v45 = vpack.c.bf16 %v23556_v13, %v23557_v44 }
 0x5a2   : > { %10526 = vmatmul.mubr.bf16.gmra.mrb[164].mxu1 %v7635_v59  ;;  %9763 = vmatprep.mubr.bf16.mxu0 %v7644_v54  ;;  %v16059_v29 = vpop.eup %16058  ;;  %v7660_v43 = vpack.c.bf16 %v16057_v32, %v16055_v4  ;;  %16080 = vrcp.f32 %v7284_v58 }
 0x5a3   : > { %10535 = vmatprep.mubr.bf16.mxu1 %v7644_v54  ;;  %v16061_v62 = vpop.eup %16060  ;;  %v7036_v48 = vunpack.c.l.bf16 %v16059_v29  ;;  %v6450_v54 = vmul.bf16 1069105081, %v6293_v6  ;;  %v7044_v17 = vunpack.c.h.bf16 %v16059_v29  ;;  %16082 = vpow.bf16 %v6453_v41  ;;  %v23559_v29 = vld [vmem:[#allocation36_spill] sm:$0xff] }
 0x5a4   : > { %v16063_v59 = vpop.eup %16062  ;;  %v7035_v37 = vunpack.c.l.bf16 %v16061_v62  ;;  %v7043_v46 = vunpack.c.h.bf16 %v16061_v62  ;;  %v6310_v18 = vsub.bf16 0, %v23558_v45  ;;  %v23561_v20 = vpack.c.bf16 %v23559_v29, %v23560_v11  ;;  %v23571_v45 = vld [vmem:[#allocation51_spill] sm:$0xff]  ;;  %v15482_v29 = vld [vmem:[%s22672_s5 + $0x40] sm:$0xff]  }
 0x5a5   : > { %v16065_v27 = vpop.eup %16064  ;;  %v7292_v23 = vadd.f32 1.0, %v7036_v48  ;;  %16084 = vpow.bf16 %v6450_v54  ;;  %v7300_v50 = vadd.f32 1.0, %v7044_v17  ;;  %v23563_v48 = vld [vmem:[#allocation45_spill] sm:$0xff]  ;;  %13295 = vmatprep.subr.bf16.mxu0 %v15482_v29  ;;  %v15493_v29 = vld [vmem:[%s22672_s5 + $0x90] sm:$0xff]  }
 0x5a6   : > { %v16067_v52 = vpop.eup %16066  ;;  %v7659_v19 = vpack.c.bf16 %v16065_v27, %v16063_v59  ;;  %16086 = vrcp.f32 %v7275_v53  ;;  %v7291_v15 = vadd.f32 1.0, %v7035_v37  ;;  %v7299_v4 = vadd.f32 1.0, %v7043_v46  ;;  %v23562_v59 = vld [vmem:[#allocation47_spill] sm:$0xff]  ;;  %v15484_v11 = vld [vmem:[%s22672_s5 + $0xc0] sm:$0xff]  }
 0x5a7   : > { %v16069_v25 = vpop.eup %16068  ;;  %16088 = vrcp.f32 %v7283_v30  ;;  %v6501_v42 = vmul.bf16 1069105081, %v6310_v18  ;;  %v6309_v31 = vsub.bf16 0, %v23561_v20  ;;  %v23564_v27 = vpack.c.bf16 %v23562_v59, %v23563_v48  ;;  %v23572_v18 = vld [vmem:[#allocation50_spill] sm:$0xff]  ;;  %13407 = vmatprep.subr.bf16.mxu1 %v15484_v11  ;;  %v15494_v11 = vld [vmem:[%s22672_s5 + $0x58] sm:$0xff]  }
 0x5a8   : > { %v16071_v8 = vpop.eup %16070  ;;  %v7668_v22 = vpack.c.bf16 %v16069_v25, %v16067_v52  ;;  %16090 = vrcp.f32 %v7292_v23  ;;  %v23567_v53 = vpack.c.bf16 %v23565_v51, %v23566_v40  ;;  %v15483_v40 = vld [vmem:[%s22672_s5] sm:$0xff]  }
 0x5a9   : > { %9764 = vmatmul.mubr.bf16.gmra.mrb[168].mxu0 %v7643_v21  ;;  %v16073_v28 = vpop.eup %16072  ;;  %v6798_v49 = vunpack.c.l.bf16 %v16071_v8  ;;  %16092 = vrcp.f32 %v7300_v50  ;;  %v6806_v47 = vunpack.c.h.bf16 %v16071_v8  ;;  %v6318_v54 = vsub.bf16 0, %v23564_v27 }
 0x5aa   : > { %10536 = vmatmul.mubr.bf16.gmra.mrb[168].mxu1 %v7643_v21  ;;  %9773 = vmatprep.mubr.bf16.mxu0 %v7652_v5  ;;  %v16075_v21 = vpop.eup %16074  ;;  %16094 = vpow.bf16 %v6477_v35  ;;  %v6797_v10 = vunpack.c.l.bf16 %v16073_v28  ;;  %v6805_v32 = vunpack.c.h.bf16 %v16073_v28  ;;  %v6498_v52 = vmul.bf16 1069105081, %v6309_v31  ;;  %v23568_v28 = vld [vmem:[#allocation53_spill] sm:$0xff] }
 0x5ab   : > { %10545 = vmatprep.mubr.bf16.mxu1 %v7652_v5  ;;  %v16077_v36 = vpop.eup %16076  ;;  %v6474_v5 = vmul.bf16 1069105081, %v6301_v56  ;;  %v7054_v12 = vadd.f32 1.0, %v6798_v49  ;;  %v7062_v26 = vadd.f32 1.0, %v6806_v47  ;;  %v6317_v25 = vsub.bf16 0, %v23567_v53 }
 0x5ac   : > { %v16079_v0 = vpop.eup %16078  ;;  %v7667_v61 = vpack.c.bf16 %v16077_v36, %v16075_v21  ;;  %v7061_v62 = vadd.f32 1.0, %v6805_v32  ;;  %v6525_v8 = vmul.bf16 1069105081, %v6318_v54  ;;  %v23569_v21 = vld [vmem:[#allocation52_spill] sm:$0xff] }
 0x5ad   : > { %v16081_v3 = vpop.eup %16080  ;;  %16096 = vpow.bf16 %v6474_v5  ;;  %v23570_v49 = vpack.c.bf16 %v23568_v28, %v23569_v21  ;;  %v23577_v54 = vld [vmem:[#allocation56_spill] sm:$0xff]  ;;  %v23580_v28 = vld [vmem:[#allocation66_spill] sm:$0xff]  ;;  %v23581_v21 = vld [vmem:[#allocation65_spill] sm:$0xff] }
 0x5ae   : > { %v16083_v38 = vpop.eup %16082  ;;  %v7676_v7 = vpack.c.bf16 %v16081_v3, %v16079_v0  ;;  %16098 = vrcp.f32 %v7291_v15  ;;  %v23573_v15 = vpack.c.bf16 %v23571_v45, %v23572_v18  ;;  %v15492_v45 = vld [vmem:[%s22672_s5 + $0xd0] sm:$0xff]  }
 0x5af   : > { %16100 = vrcp.f32 %v7299_v4  ;;  %v6814_v58 = vunpack.c.l.bf16 %v16083_v38  ;;  %v6822_v9 = vunpack.c.h.bf16 %v16083_v38  ;;  %v6326_v36 = vsub.bf16 0, %v23570_v49 }
 0x5b0   : > { %v16085_v6 = vpop.eup %16084  ;;  %16102 = vrcp.f32 %v7054_v12  ;;  %v6325_v3 = vsub.bf16 0, %v23573_v15  ;;  %v23582_v49 = vpack.c.bf16 %v23580_v28, %v23581_v21  ;;  %v15504_v28 = vld [vmem:[%s22672_s5 + $0xe8] sm:$0xff]  }
 0x5b1   : > { %9774 = vmatmul.mubr.bf16.gmra.mrb[172].mxu0 %v7651_v63  ;;  %16104 = vrcp.f32 %v7062_v26  ;;  %v7070_v16 = vadd.f32 1.0, %v6814_v58  ;;  %v7078_v23 = vadd.f32 1.0, %v6822_v9  ;;  %v6813_v57 = vunpack.c.l.bf16 %v16085_v6  ;;  %v23574_v58 = vld [vmem:[#allocation58_spill] sm:$0xff] }
 0x5b2   : > { %10546 = vmatmul.mubr.bf16.gmra.mrb[172].mxu1 %v7651_v63  ;;  %9783 = vmatprep.mubr.bf16.mxu0 %v7660_v43  ;;  %v16087_v63 = vpop.eup %16086  ;;  %16106 = vpow.bf16 %v6501_v42  ;;  %v6821_v14 = vunpack.c.h.bf16 %v16085_v6  ;;  %v6549_v38 = vmul.bf16 1069105081, %v6326_v36  ;;  %v6546_v20 = vmul.bf16 1069105081, %v6325_v3  ;;  %v23583_v3 = vld [vmem:[#allocation63_spill] sm:$0xff] }
 0x5b3   : > { %10555 = vmatprep.mubr.bf16.mxu1 %v7660_v43  ;;  %v16089_v41 = vpop.eup %16088  ;;  %v7053_v43 = vadd.f32 1.0, %v6797_v10  ;;  %v7069_v5 = vadd.f32 1.0, %v6813_v57  ;;  %v15488_v57 = vld [vmem:[%s22672_s5 + $0xc8] sm:$0xff]   ;;  %v6342_v36 = vsub.bf16 0, %v23582_v49 }
 0x5b4   : > { %v16091_v55 = vpop.eup %16090  ;;  %v7675_v30 = vpack.c.bf16 %v16089_v41, %v16087_v63  ;;  %v7077_v0 = vadd.f32 1.0, %v6821_v14  ;;  %v23575_v41 = vld [vmem:[#allocation57_spill] sm:$0xff] }
 0x5b5   : > { %v16093_v17 = vpop.eup %16092  ;;  %16108 = vrcp.f32 %v7053_v43  ;;  %v23576_v43 = vpack.c.bf16 %v23574_v58, %v23575_v41 }
 0x5b6   : > { %v16095_v39 = vpop.eup %16094  ;;  %16110 = vrcp.f32 %v7061_v62  ;;  %v7684_v2 = vpack.c.bf16 %v16093_v17, %v16091_v55  ;;  %v23578_v17 = vld [vmem:[#allocation55_spill] sm:$0xff] }
 0x5b7   : > { %16112 = vpow.bf16 %v6498_v52  ;;  %v6830_v50 = vunpack.c.l.bf16 %v16095_v39  ;;  %v6838_v37 = vunpack.c.h.bf16 %v16095_v39  ;;  %v6334_v9 = vsub.bf16 0, %v23576_v43 }
 0x5b8   : > { %v16097_v56 = vpop.eup %16096  ;;  %16114 = vrcp.f32 %v7070_v16  ;;  %v23579_v52 = vpack.c.bf16 %v23577_v54, %v23578_v17 }
 0x5b9   : > { %9784 = vmatmul.mubr.bf16.gmra.mrb[176].mxu0 %v7659_v19  ;;  %16116 = vrcp.f32 %v7078_v23  ;;  %v7086_v13 = vadd.f32 1.0, %v6830_v50  ;;  %v7094_v12 = vadd.f32 1.0, %v6838_v37  ;;  %v6837_v32 = vunpack.c.h.bf16 %v16097_v56  ;;  %v15485_v23 = vld [vmem:[%s22672_s5 + $0x80] sm:$0xff]   ;;  %v15487_v37 = vld [vmem:[%s22672_s5 + $0x8] sm:$0xff]  }
 0x5ba   : > { %10556 = vmatmul.mubr.bf16.gmra.mrb[176].mxu1 %v7659_v19  ;;  %9793 = vmatprep.mubr.bf16.mxu0 %v7668_v22  ;;  %v16099_v19 = vpop.eup %16098  ;;  %16118 = vpow.bf16 %v6525_v8  ;;  %v6333_v16 = vsub.bf16 0, %v23579_v52  ;;  %v6573_v53 = vmul.bf16 1069105081, %v6334_v9  ;;  %v15486_v8 = vld [vmem:[%s22672_s5 + $0x48] sm:$0xff]   ;;  %v15497_v52 = vld [vmem:[%s22672_s5 + $0x98] sm:$0xff]  }
 0x5bb   : > { %10565 = vmatprep.mubr.bf16.mxu1 %v7668_v22  ;;  %v16101_v35 = vpop.eup %16100  ;;  %v6522_v22 = vmul.bf16 1069105081, %v6317_v25  ;;  %v7093_v59 = vadd.f32 1.0, %v6837_v32  ;;  %v6597_v32 = vmul.bf16 1069105081, %v6342_v36 }
 0x5bc   : > { %v16103_v46 = vpop.eup %16102  ;;  %v7683_v4 = vpack.c.bf16 %v16101_v35, %v16099_v19  ;;  %v6570_v35 = vmul.bf16 1069105081, %v6333_v16  ;;  %v15498_v16 = vld [vmem:[%s22672_s5 + $0x60] sm:$0xff]  }
 0x5bd   : > { %v16105_v47 = vpop.eup %16104  ;;  %16120 = vpow.bf16 %v6522_v22 }
 0x5be   : > { %v16107_v44 = vpop.eup %16106  ;;  %v7566_v10 = vpack.c.bf16 %v16105_v47, %v16103_v46  ;;  %16122 = vrcp.f32 %v7069_v5  ;;  %v15489_v47 = vld [vmem:[%s22672_s5 + $0x88] sm:$0xff]  }
 0x5bf   : > { %v16109_v26 = vpop.eup %16108  ;;  %16124 = vrcp.f32 %v7077_v0  ;;  %v6854_v31 = vunpack.c.h.bf16 %v16107_v44  ;;  %v15490_v0 = vld [vmem:[%s22672_s5 + $0x50] sm:$0xff]  }
 0x5c0   : > { %v16111_v42 = vpop.eup %16110  ;;  %16126 = vrcp.f32 %v7086_v13 }
 0x5c1   : > { %9794 = vmatmul.mubr.bf16.gmra.mrb[180].mxu0 %v7667_v61  ;;  %16128 = vrcp.f32 %v7094_v12  ;;  %v7565_v39 = vpack.c.bf16 %v16111_v42, %v16109_v26  ;;  %v7110_v51 = vadd.f32 1.0, %v6854_v31  ;;  %v15491_v26 = vld [vmem:[%s22672_s5 + $0x10] sm:$0xff]   ;;  %v15496_v31 = vld [vmem:[%s22672_s5 + $0xd8] sm:$0xff]  }
 0x5c2   : > { %10566 = vmatmul.mubr.bf16.gmra.mrb[180].mxu1 %v7667_v61  ;;  %9803 = vmatprep.mubr.bf16.mxu0 %v7676_v7  ;;  %v6829_v61 = vunpack.c.l.bf16 %v16097_v56  ;;  %v16113_v6 = vpop.eup %16112  ;;  %16130 = vpow.bf16 %v6549_v38 }
 0x5c3   : > { %10575 = vmatprep.mubr.bf16.mxu1 %v7676_v7  ;;  %v6846_v7 = vunpack.c.l.bf16 %v16107_v44  ;;  %v16115_v63 = vpop.eup %16114  ;;  %16132 = vpow.bf16 %v6546_v20 }
 0x5c4   : > { %v7085_v55 = vadd.f32 1.0, %v6829_v61  ;;  %v16117_v62 = vpop.eup %16116 }
 0x5c5   : > { %v7102_v48 = vadd.f32 1.0, %v6846_v7  ;;  %v16119_v27 = vpop.eup %16118  ;;  %v7574_v25 = vpack.c.bf16 %v16117_v62, %v16115_v63 }
 0x5c6   : > { %16134 = vrcp.f32 %v7085_v55  ;;  %v6862_v19 = vunpack.c.l.bf16 %v16119_v27  ;;  %v6870_v22 = vunpack.c.h.bf16 %v16119_v27  ;;  %v15495_v55 = vld [vmem:[%s22672_s5 + $0x18] sm:$0xff]  }
 0x5c7   : > { %16136 = vrcp.f32 %v7093_v59  ;;  %v23586_v59 = vld [vmem:[#allocation95_spill] sm:$0xff] }
 0x5c8   : > { %v21760_v14 = vpop.eup %16120  ;;  %16138 = vrcp.f32 %v7102_v48  ;;  %v7118_v18 = vadd.f32 1.0, %v6862_v19  ;;  %v7126_v61 = vadd.f32 1.0, %v6870_v22  ;;  %v23587_v48 = vld [vmem:[#allocation97_spill] sm:$0xff] }
 0x5c9   : > { %9804 = vmatmul.mubr.bf16.gmra.mrb[184].mxu0 %v7675_v30  ;;  %v16123_v56 = vpop.eup %16122  ;;  %16140 = vrcp.f32 %v7110_v51  ;;  %v6861_v7 = vunpack.c.l.bf16 %v21760_v14  ;;  %v6869_v20 = vunpack.c.h.bf16 %v21760_v14  ;;  %v23588_v27 = vpack.c.bf16 %v23586_v59, %v23587_v48  ;;  %v15501_v22 = vld [vmem:[%s22672_s5 + $0xa0] sm:$0xff]  }
 0x5ca   : > { %10576 = vmatmul.mubr.bf16.gmra.mrb[184].mxu1 %v7675_v30  ;;  %9813 = vmatprep.mubr.bf16.mxu0 %v7684_v2  ;;  %v6845_v30 = vunpack.c.l.bf16 %v16113_v6  ;;  %v16125_v50 = vpop.eup %16124  ;;  %16142 = vpow.bf16 %v6573_v53 }
 0x5cb   : > { %10585 = vmatprep.mubr.bf16.mxu1 %v7684_v2  ;;  %v6853_v2 = vunpack.c.h.bf16 %v16113_v6  ;;  %v16127_v46 = vpop.eup %16126  ;;  %16144 = vpow.bf16 %v6570_v35  ;;  %v6350_v54 = vsub.bf16 0, %v23588_v27  ;;  %v7117_v17 = vadd.f32 1.0, %v6861_v7  ;;  %v23598_v27 = vld [vmem:[#allocation117_spill] sm:$0xff] }
 0x5cc   : > { %v7101_v5 = vadd.f32 1.0, %v6845_v30  ;;  %v16129_v13 = vpop.eup %16128  ;;  %v7125_v51 = vadd.f32 1.0, %v6869_v20  ;;  %v23589_v30 = vld [vmem:[#allocation71_spill] sm:$0xff] }
 0x5cd   : > { %v7109_v44 = vadd.f32 1.0, %v6853_v2  ;;  %v16131_v15 = vpop.eup %16130  ;;  %v7582_v42 = vpack.c.bf16 %v16129_v13, %v16127_v46  ;;  %v6621_v19 = vmul.bf16 1069105081, %v6350_v54  ;;  %v15503_v13 = vld [vmem:[%s22672_s5 + $0x28] sm:$0xff]   ;;  %v23599_v54 = vld [vmem:[#allocation119_spill] sm:$0xff] }
 0x5ce   : > { %16146 = vrcp.f32 %v7101_v5  ;;  %v21794_v6 = vpop.eup %16132  ;;  %v6878_v58 = vunpack.c.l.bf16 %v16131_v15  ;;  %v6886_v9 = vunpack.c.h.bf16 %v16131_v15 }
 0x5cf   : > { %16148 = vrcp.f32 %v7109_v44  ;;  %v6877_v35 = vunpack.c.l.bf16 %v21794_v6  ;;  %v6885_v46 = vunpack.c.h.bf16 %v21794_v6 }
 0x5d0   : > { %v16135_v63 = vpop.eup %16134  ;;  %16150 = vrcp.f32 %v7118_v18  ;;  %v7134_v53 = vadd.f32 1.0, %v6878_v58  ;;  %v7142_v14 = vadd.f32 1.0, %v6886_v9  ;;  %v23593_v18 = vld [vmem:[#allocation102_spill] sm:$0xff] }
 0x5d1   : > { %9814 = vmatmul.mubr.bf16.gmra.mrb[188].mxu0 %v7683_v4  ;;  %v16137_v41 = vpop.eup %16136  ;;  %16152 = vrcp.f32 %v7126_v61 }
 0x5d2   : > { %10586 = vmatmul.mubr.bf16.gmra.mrb[188].mxu1 %v7683_v4  ;;  %9856 = vmatprep.mubr.bf16.mxu0 %v7566_v10  ;;  %v23584_v4 = vld [vmem:[#allocation60_spill] sm:$0xff]  ;;  %v16139_v62 = vpop.eup %16138  ;;  %16154 = vpow.bf16 %v6597_v32 }
 0x5d3   : > { %10628 = vmatprep.mubr.bf16.mxu1 %v7566_v10  ;;  %v23585_v12 = vpack.c.bf16 %v23583_v3, %v23584_v4  ;;  %v7573_v10 = vpack.c.bf16 %v16125_v50, %v16123_v56  ;;  %v15499_v56 = vld [vmem:[%s22672_s5 + $0x20] sm:$0xff]   ;;  %v7133_v4 = vadd.f32 1.0, %v6877_v35  ;;  %v23595_v32 = vld [vmem:[#allocation104_spill] sm:$0xff] }
 0x5d5   : > { %v6341_v38 = vsub.bf16 0, %v23585_v12  ;;  %v15505_v12 = vld [vmem:[%s22672_s5 + $0xa8] sm:$0xff]  }
 0x5d7   : > { %v6594_v43 = vmul.bf16 1069105081, %v6341_v38 }
 0x5d9   : > { %9857 = vmatmul.mubr.bf16.vlgmr.msra.gmra.mrb[128].mxu0 %v7565_v39  ;;  %16156 = vpow.bf16 %v6594_v43 }
 0x5da   : > { %10629 = vmatmul.mubr.bf16.vlgmr.msra.gmra.mrb[128].mxu1 %v7565_v39  ;;  %9866 = vmatprep.mubr.bf16.mxu0 %v7574_v25  ;;  %v16141_v39 = vpop.eup %16140  ;;  %16158 = vrcp.f32 %v7117_v17  ;;  %v23600_v17 = vpack.c.bf16 %v23598_v27, %v23599_v54 }
 0x5db   : > { %10638 = vmatprep.mubr.bf16.mxu1 %v7574_v25  ;;  %13296 = vmatpush3.bf16.msra.mxu0 %v15483_v40  ;;  %v15500_v40 = vld [vmem:[%s22672_s5 + $0xe0] sm:$0xff]   ;;  %v16143_v25 = vpop.eup %16142  ;;  %v7590_v50 = vpack.c.bf16 %v16141_v39, %v16139_v62  ;;  %16160 = vrcp.f32 %v7125_v51 }
 0x5dc   : > { %13408 = vmatpush3.bf16.msra.mxu1 %v15485_v23  ;;  %13297 = vmatprep.subr.bf16.mxu0 %v15486_v8  ;;  %v23590_v23 = vld [vmem:[#allocation68_spill] sm:$0xff]  ;;  %v16145_v21 = vpop.eup %16144  ;;  %16162 = vrcp.f32 %v7134_v53  ;;  %v6894_v36 = vunpack.c.l.bf16 %v16143_v25 }
 0x5dd   : > { %13409 = vmatprep.subr.bf16.mxu1 %v15488_v57  ;;  %v23591_v8 = vpack.c.bf16 %v23589_v30, %v23590_v23  ;;  %v7581_v57 = vpack.c.bf16 %v16137_v41, %v16135_v63  ;;  %v16147_v49 = vpop.eup %16146  ;;  %16164 = vrcp.f32 %v7142_v14  ;;  %v6893_v63 = vunpack.c.l.bf16 %v16145_v21  ;;  %v23602_v30 = vld [vmem:[#allocation111_spill] sm:$0xff] }
 0x5de   : > { %v16149_v5 = vpop.eup %16148  ;;  %16166 = vpow.bf16 %v6621_v19  ;;  %v7150_v61 = vadd.f32 1.0, %v6894_v36  ;;  %v6901_v58 = vunpack.c.h.bf16 %v16145_v21  ;;  %v23604_v36 = vld [vmem:[#allocation123_spill] sm:$0xff] }
 0x5df   : > { %13298 = vmatpush3.bf16.msra.mxu0 %v15487_v37  ;;  %v6349_v2 = vsub.bf16 0, %v23591_v8  ;;  %v15502_v37 = vld [vmem:[%s22672_s5 + $0x68] sm:$0xff]   ;;  %v16151_v44 = vpop.eup %16150 }
 0x5e0   : > { %13410 = vmatpush3.bf16.msra.mxu1 %v15489_v47  ;;  %13299 = vmatprep.subr.bf16.mxu0 %v15490_v0  ;;  %v6902_v0 = vunpack.c.h.bf16 %v16143_v25  ;;  %v16153_v38 = vpop.eup %16152  ;;  %v7157_v51 = vadd.f32 1.0, %v6901_v58  ;;  %v23601_v25 = vld [vmem:[#allocation5_spill] sm:$0xff] }
 0x5e1   : > { %9867 = vmatmul.mubr.bf16.gmra.mrb[132].mxu0 %v7573_v10  ;;  %13411 = vmatprep.subr.bf16.mxu1 %v15492_v45  ;;  %v6618_v47 = vmul.bf16 1069105081, %v6349_v2  ;;  %v23592_v45 = vld [vmem:[#allocation101_spill] sm:$0xff]  ;;  %v7598_v6 = vpack.c.bf16 %v16153_v38, %v16151_v44  ;;  %v23603_v23 = vpack.c.bf16 %v23601_v25, %v23602_v30 }
 0x5e2   : > { %10639 = vmatmul.mubr.bf16.gmra.mrb[132].mxu1 %v7573_v10  ;;  %9876 = vmatprep.mubr.bf16.mxu0 %v7582_v42  ;;  %v23594_v15 = vpack.c.bf16 %v23592_v45, %v23593_v18  ;;  %v7141_v10 = vadd.f32 1.0, %v6885_v46  ;;  %v7158_v20 = vadd.f32 1.0, %v6902_v0 }
 0x5e3   : > { %10648 = vmatprep.mubr.bf16.mxu1 %v7582_v42  ;;  %13300 = vmatpush3.bf16.msra.mxu0 %v15491_v26  ;;  %v16155_v26 = vpop.eup %16154  ;;  %16168 = vpow.bf16 %v6618_v47  ;;  %v23596_v42 = vld [vmem:[#allocation72_spill] sm:$0xff]  ;;  %v6365_v8 = vsub.bf16 0, %v23603_v23 }
 0x5e4   : > { %13412 = vmatpush3.bf16.msra.mxu1 %v15493_v29  ;;  %13301 = vmatprep.subr.bf16.mxu0 %v15494_v11  ;;  %v6358_v3 = vsub.bf16 0, %v23594_v15  ;;  %v23597_v7 = vpack.c.bf16 %v23595_v32, %v23596_v42  ;;  %v7589_v11 = vpack.c.bf16 %v16149_v5, %v16147_v49  ;;  %16170 = vrcp.f32 %v7133_v4  ;;  %v16157_v41 = vpop.eup %16156  ;;  %v23605_v5 = vld [vmem:[#allocation125_spill] sm:$0xff]  ;;  %v23608_v4 = vld [vmem:[#allocation116_spill] sm:$0xff] }
 0x5e5   : > { %13413 = vmatprep.subr.bf16.mxu1 %v15496_v31  ;;  %16172 = vrcp.f32 %v7141_v10  ;;  %v16159_v43 = vpop.eup %16158  ;;  %v6910_v9 = vunpack.c.l.bf16 %v16155_v26  ;;  %v6918_v59 = vunpack.c.h.bf16 %v16155_v26  ;;  %v6909_v19 = vunpack.c.l.bf16 %v16157_v41 }
 0x5e6   : > { %v6357_v29 = vsub.bf16 0, %v23597_v7  ;;  %v6645_v31 = vmul.bf16 1069105081, %v6358_v3  ;;  %16174 = vrcp.f32 %v7150_v61  ;;  %v23606_v47 = vpack.c.bf16 %v23604_v36, %v23605_v5  ;;  %v23607_v3 = vld [vmem:[#allocation6_spill] sm:$0xff] }
 0x5e7   : > { %13302 = vmatpush3.bf16.msra.mxu0 %v15495_v55  ;;  %v16161_v55 = vpop.eup %16160  ;;  %16176 = vrcp.f32 %v7158_v20 }
 0x5e8   : > { %13414 = vmatpush3.bf16.msra.mxu1 %v15497_v52  ;;  %13303 = vmatprep.subr.bf16.mxu0 %v15498_v16  ;;  %v6642_v62 = vmul.bf16 1069105081, %v6357_v29  ;;  %v16163_v48 = vpop.eup %16162  ;;  %16178 = vpow.bf16 %v6645_v31  ;;  %v6366_v52 = vsub.bf16 0, %v23600_v17  ;;  %v7149_v16 = vadd.f32 1.0, %v6893_v63  ;;  %v23613_v17 = vld [vmem:[#allocation131_spill] sm:$0xff] }
 0x5e9   : > { %9877 = vmatmul.mubr.bf16.gmra.mrb[136].mxu0 %v7581_v57  ;;  %13415 = vmatprep.subr.bf16.mxu1 %v15500_v40  ;;  %v16165_v39 = vpop.eup %16164  ;;  %v7166_v40 = vadd.f32 1.0, %v6910_v9  ;;  %v7597_v2 = vpack.c.bf16 %v16161_v55, %v16159_v43  ;;  %v6374_v0 = vsub.bf16 0, %v23606_v47  ;;  %v23611_v43 = vld [vmem:[#allocation129_spill] sm:$0xff]  ;;  %v23619_v47 = vld [vmem:[#allocation128_spill] sm:$0xff] }
 0x5ea   : > { %10649 = vmatmul.mubr.bf16.gmra.mrb[136].mxu1 %v7581_v57  ;;  %9886 = vmatprep.mubr.bf16.mxu0 %v7590_v50  ;;  %v16167_v53 = vpop.eup %16166  ;;  %16180 = vpow.bf16 %v6642_v62  ;;  %v7174_v57 = vadd.f32 1.0, %v6918_v59  ;;  %v6669_v14 = vmul.bf16 1069105081, %v6366_v52  ;;  %v23614_v52 = vld [vmem:[#allocation74_spill] sm:$0xff] }
 0x5eb   : > { %10658 = vmatprep.mubr.bf16.mxu1 %v7590_v50  ;;  %13304 = vmatpush3.bf16.msra.mxu0 %v15499_v56  ;;  %v7606_v56 = vpack.c.bf16 %v16165_v39, %v16163_v48  ;;  %16182 = vrcp.f32 %v7149_v16  ;;  %v6917_v50 = vunpack.c.h.bf16 %v16157_v41  ;;  %v6934_v21 = vunpack.c.h.bf16 %v16167_v53  ;;  %v23610_v41 = vld [vmem:[#allocation77_spill] sm:$0xff] }
 0x5ec   : > { %13416 = vmatpush3.bf16.msra.mxu1 %v15501_v22  ;;  %13305 = vmatprep.subr.bf16.mxu0 %v15502_v37  ;;  %16184 = vrcp.f32 %v7157_v51  ;;  %v6926_v37 = vunpack.c.l.bf16 %v16167_v53  ;;  %v6693_v26 = vmul.bf16 1069105081, %v6374_v0  ;;  %v23612_v9 = vpack.c.bf16 %v23610_v41, %v23611_v43  ;;  %v23620_v0 = vld [vmem:[#allocation76_spill] sm:$0xff] }
 0x5ed   : > { %13417 = vmatprep.subr.bf16.mxu1 %v15504_v28  ;;  %16186 = vrcp.f32 %v7166_v40  ;;  %v6666_v28 = vmul.bf16 1069105081, %v6365_v8  ;;  %v7173_v45 = vadd.f32 1.0, %v6917_v50  ;;  %v7190_v61 = vadd.f32 1.0, %v6934_v21 }
 0x5ee   : > { %v16169_v35 = vpop.eup %16168  ;;  %16188 = vrcp.f32 %v7174_v57  ;;  %v7182_v18 = vadd.f32 1.0, %v6926_v37  ;;  %v6382_v55 = vsub.bf16 0, %v23612_v9  ;;  %v23615_v16 = vpack.c.bf16 %v23613_v17, %v23614_v52  ;;  %v23625_v9 = vld [vmem:[#allocation79_spill] sm:$0xff] }
 0x5ef   : > { %13306 = vmatpush3.bf16.msra.mxu0 %v15503_v13  ;;  %v16171_v22 = vpop.eup %16170  ;;  %16190 = vpow.bf16 %v6669_v14  ;;  %v7165_v13 = vadd.f32 1.0, %v6909_v19  ;;  %v6925_v42 = vunpack.c.l.bf16 %v16169_v35  ;;  %v6933_v7 = vunpack.c.h.bf16 %v16169_v35  ;;  %v23616_v35 = vld [vmem:[#allocation137_spill] sm:$0xff] }
 0x5f0   : > { %13418 = vmatpush3.bf16.msra.mxu1 %v15505_v12  ;;  %v16173_v46 = vpop.eup %16172  ;;  %16192 = vpow.bf16 %v6666_v28  ;;  %v23609_v12 = vpack.c.bf16 %v23607_v3, %v23608_v4  ;;  %v6381_v39 = vsub.bf16 0, %v23615_v16  ;;  %v6717_v53 = vmul.bf16 1069105081, %v6382_v55  ;;  %v23626_v55 = vld [vmem:[#allocation135_spill] sm:$0xff] }
 0x5f1   : > { %9887 = vmatmul.mubr.bf16.gmra.mrb[140].mxu0 %v7589_v11  ;;  %v16175_v49 = vpop.eup %16174  ;;  %v7605_v10 = vpack.c.bf16 %v16173_v46, %v16171_v22  ;;  %16194 = vrcp.f32 %v7165_v13  ;;  %v7181_v62 = vadd.f32 1.0, %v6925_v42  ;;  %v7189_v48 = vadd.f32 1.0, %v6933_v7  ;;  %v23617_v22 = vld [vmem:[#allocation10_spill] sm:$0xff] }
 0x5f2   : > { %10659 = vmatmul.mubr.bf16.gmra.mrb[140].mxu1 %v7589_v11  ;;  %9896 = vmatprep.mubr.bf16.mxu0 %v7598_v6  ;;  %v16177_v44 = vpop.eup %16176  ;;  %v6373_v38 = vsub.bf16 0, %v23609_v12  ;;  %16196 = vrcp.f32 %v7173_v45  ;;  %v23618_v37 = vpack.c.bf16 %v23616_v35, %v23617_v22  ;;  %v23621_v13 = vpack.c.bf16 %v23619_v47, %v23620_v0 }
 0x5f3   : > { %10668 = vmatprep.mubr.bf16.mxu1 %v7598_v6  ;;  %v16179_v15 = vpop.eup %16178  ;;  %v7614_v32 = vpack.c.bf16 %v16177_v44, %v16175_v49  ;;  %16198 = vrcp.f32 %v7182_v18 }
 0x5f4   : > { %v6942_v20 = vunpack.c.l.bf16 %v16179_v15  ;;  %v6690_v6 = vmul.bf16 1069105081, %v6373_v38  ;;  %16200 = vrcp.f32 %v7190_v61  ;;  %v6950_v63 = vunpack.c.h.bf16 %v16179_v15 }
 0x5f5   : > { %v16181_v29 = vpop.eup %16180  ;;  %16202 = vpow.bf16 %v6693_v26  ;;  %v6390_v46 = vsub.bf16 0, %v23618_v37  ;;  %v6389_v44 = vsub.bf16 0, %v23621_v13 }
 0x5f6   : > { %v16183_v11 = vpop.eup %16182  ;;  %v7198_v27 = vadd.f32 1.0, %v6942_v20  ;;  %16204 = vpow.bf16 %v6690_v6  ;;  %v7206_v40 = vadd.f32 1.0, %v6950_v63  ;;  %v6941_v30 = vunpack.c.l.bf16 %v16181_v29 }
 0x5f7   : > { %v16185_v31 = vpop.eup %16184  ;;  %16206 = vrcp.f32 %v7181_v62  ;;  %v6949_v23 = vunpack.c.h.bf16 %v16181_v29  ;;  %v6741_v15 = vmul.bf16 1069105081, %v6390_v46  ;;  %v23622_v29 = vld [vmem:[#allocation134_spill] sm:$0xff]  ;;  %v23627_v62 = vpack.c.bf16 %v23625_v9, %v23626_v55 }
 0x5f8   : > { %v16187_v58 = vpop.eup %16186  ;;  %v7613_v51 = vpack.c.bf16 %v16185_v31, %v16183_v11  ;;  %16208 = vrcp.f32 %v7189_v48  ;;  %v7197_v28 = vadd.f32 1.0, %v6941_v30  ;;  %v23623_v11 = vld [vmem:[#allocation78_spill] sm:$0xff] }
 0x5f9   : > { %9897 = vmatmul.mubr.bf16.gmra.mrb[144].mxu0 %v7597_v2  ;;  %v16189_v59 = vpop.eup %16188  ;;  %16210 = vrcp.f32 %v7198_v27  ;;  %v7205_v49 = vadd.f32 1.0, %v6949_v23  ;;  %v23624_v20 = vpack.c.bf16 %v23622_v29, %v23623_v11 }
 0x5fa   : > { %10669 = vmatmul.mubr.bf16.gmra.mrb[144].mxu1 %v7597_v2  ;;  %9906 = vmatprep.mubr.bf16.mxu0 %v7606_v56  ;;  %v16191_v54 = vpop.eup %16190  ;;  %v7622_v25 = vpack.c.bf16 %v16189_v59, %v16187_v58  ;;  %16212 = vrcp.f32 %v7206_v40  ;;  %v6397_v59 = vsub.bf16 0, %v23627_v62 }
 0x5fb   : > { %10678 = vmatprep.mubr.bf16.mxu1 %v7606_v56  ;;  %v16193_v8 = vpop.eup %16192  ;;  %v6958_v57 = vunpack.c.l.bf16 %v16191_v54  ;;  %v6714_v56 = vmul.bf16 1069105081, %v6381_v39  ;;  %v6966_v19 = vunpack.c.h.bf16 %v16191_v54  ;;  %16214 = vpow.bf16 %v6717_v53 }
 0x5fc   : > { %v16195_v2 = vpop.eup %16194  ;;  %v6957_v4 = vunpack.c.l.bf16 %v16193_v8  ;;  %v6965_v12 = vunpack.c.h.bf16 %v16193_v8  ;;  %v6398_v31 = vsub.bf16 0, %v23624_v20  ;;  %v6406_v8 = vsub.bf16 0, %v6278_v1 }
 0x5fd   : > { %v16197_v14 = vpop.eup %16196  ;;  %v7214_v36 = vadd.f32 1.0, %v6958_v57  ;;  %16216 = vpow.bf16 %v6714_v56  ;;  %v7222_v18 = vadd.f32 1.0, %v6966_v19 }
 0x5fe   : > { %v16199_v50 = vpop.eup %16198  ;;  %v7621_v45 = vpack.c.bf16 %v16197_v14, %v16195_v2  ;;  %16218 = vrcp.f32 %v7197_v28  ;;  %v7213_v6 = vadd.f32 1.0, %v6957_v4  ;;  %v7221_v58 = vadd.f32 1.0, %v6965_v12 }
 0x5ff   : > { %v16201_v21 = vpop.eup %16200  ;;  %16220 = vrcp.f32 %v7205_v49  ;;  %v6765_v54 = vmul.bf16 1069105081, %v6398_v31  ;;  %v6789_v46 = vmul.bf16 1069105081, %v6406_v8 }
 0x600   : > { %v16203_v5 = vpop.eup %16202  ;;  %v7630_v3 = vpack.c.bf16 %v16201_v21, %v16199_v50  ;;  %16222 = vrcp.f32 %v7214_v36  ;;  %v23628_v50 = vpack.c.bf16 %v21370_v24, %v21364_v60 }
 0x601   : > { %9907 = vmatmul.mubr.bf16.gmra.mrb[148].mxu0 %v7605_v10  ;;  %v16205_v38 = vpop.eup %16204  ;;  %v6974_v61 = vunpack.c.l.bf16 %v16203_v5  ;;  %16224 = vrcp.f32 %v7222_v18  ;;  %v6982_v42 = vunpack.c.h.bf16 %v16203_v5 }
 0x602   : > { %10679 = vmatmul.mubr.bf16.gmra.mrb[148].mxu1 %v7605_v10  ;;  %9916 = vmatprep.mubr.bf16.mxu0 %v7614_v32  ;;  %v16207_v10 = vpop.eup %16206  ;;  %16226 = vpow.bf16 %v6741_v15  ;;  %v6973_v52 = vunpack.c.l.bf16 %v16205_v38  ;;  %v6981_v16 = vunpack.c.h.bf16 %v16205_v38  ;;  %v6405_v35 = vsub.bf16 0, %v23628_v50 }
 0x603   : > { %10688 = vmatprep.mubr.bf16.mxu1 %v7614_v32  ;;  %v16209_v26 = vpop.eup %16208  ;;  %v6738_v32 = vmul.bf16 1069105081, %v6389_v44  ;;  %v7230_v41 = vadd.f32 1.0, %v6974_v61  ;;  %v7238_v27 = vadd.f32 1.0, %v6982_v42 }
 0x604   : > { %v16211_v7 = vpop.eup %16210  ;;  %v7629_v48 = vpack.c.bf16 %v16209_v26, %v16207_v10  ;;  %v7229_v2 = vadd.f32 1.0, %v6973_v52  ;;  %v7237_v14 = vadd.f32 1.0, %v6981_v16  ;;  %v6786_v5 = vmul.bf16 1069105081, %v6405_v35 }
 0x605   : > { %v16213_v63 = vpop.eup %16212  ;;  %16228 = vpow.bf16 %v6738_v32 }
 0x606   : > { %v16215_v43 = vpop.eup %16214  ;;  %v7638_v17 = vpack.c.bf16 %v16213_v63, %v16211_v7  ;;  %16230 = vrcp.f32 %v7213_v6 }
 0x607   : > { %16232 = vrcp.f32 %v7221_v58  ;;  %v6990_v40 = vunpack.c.l.bf16 %v16215_v43  ;;  %v6998_v30 = vunpack.c.h.bf16 %v16215_v43 }
 0x608   : > { %v16217_v39 = vpop.eup %16216  ;;  %16234 = vrcp.f32 %v7230_v41 }
 0x609   : > { %9917 = vmatmul.mubr.bf16.gmra.mrb[152].mxu0 %v7613_v51  ;;  %16236 = vrcp.f32 %v7238_v27  ;;  %v7246_v56 = vadd.f32 1.0, %v6990_v40  ;;  %v7254_v37 = vadd.f32 1.0, %v6998_v30  ;;  %v6989_v21 = vunpack.c.l.bf16 %v16217_v39 }
 0x60a   : > { %10689 = vmatmul.mubr.bf16.gmra.mrb[152].mxu1 %v7613_v51  ;;  %9926 = vmatprep.mubr.bf16.mxu0 %v7622_v25  ;;  %v16219_v51 = vpop.eup %16218  ;;  %16238 = vpow.bf16 %v6765_v54  ;;  %v6997_v34 = vunpack.c.h.bf16 %v16217_v39 }
 0x60b   : > { %10698 = vmatprep.mubr.bf16.mxu1 %v7622_v25  ;;  %v16221_v53 = vpop.eup %16220  ;;  %v6762_v25 = vmul.bf16 1069105081, %v6397_v59  ;;  %v7245_v47 = vadd.f32 1.0, %v6989_v21  ;;  %v15506_v21 = vld [vmem:[%s22672_s5 + $0x70] sm:$0xff]  }
 0x60c   : > { %v16223_v23 = vpop.eup %16222  ;;  %v7637_v22 = vpack.c.bf16 %v16221_v53, %v16219_v51  ;;  %v7253_v13 = vadd.f32 1.0, %v6997_v34  ;;  %v15507_v34 = vld [vmem:[%s22672_s5 + $0x30] sm:$0xff]   ;;  %13307 = vmatprep.subr.bf16.mxu0 %v15506_v21 }
 0x60d   : > { %v16225_v57 = vpop.eup %16224  ;;  %16240 = vpow.bf16 %v6762_v25  ;;  %13308 = vmatpush3.bf16.msra.mxu0 %v15507_v34 }
 0x60e   : > { %v16227_v19 = vpop.eup %16226  ;;  %v7646_v28 = vpack.c.bf16 %v16225_v57, %v16223_v23  ;;  %16242 = vrcp.f32 %v7229_v2 }
 0x60f   : > { %16244 = vrcp.f32 %v7237_v14  ;;  %v7006_v49 = vunpack.c.l.bf16 %v16227_v19  ;;  %v7014_v60 = vunpack.c.h.bf16 %v16227_v19 }
 0x610   : > { %v16229_v33 = vpop.eup %16228  ;;  %16246 = vrcp.f32 %v7246_v56 }
 0x611   : > { %9927 = vmatmul.mubr.bf16.gmra.mrb[156].mxu0 %v7621_v45  ;;  %v16231_v1 = vpop.eup %16230  ;;  %16248 = vrcp.f32 %v7254_v37  ;;  %v7262_v44 = vadd.f32 1.0, %v7006_v49  ;;  %v7270_v15 = vadd.f32 1.0, %v7014_v60  ;;  %v7005_v4 = vunpack.c.l.bf16 %v16229_v33  ;;  %v15509_v49 = vld [vmem:[%s22672_s5 + $0xb0] sm:$0xff]   ;;  %v15510_v60 = vld [vmem:[%s22672_s5 + $0x78] sm:$0xff]  }
 0x612   : > { %10699 = vmatmul.mubr.bf16.gmra.mrb[156].mxu1 %v7621_v45  ;;  %9936 = vmatprep.mubr.bf16.mxu0 %v7630_v3  ;;  %v16233_v36 = vpop.eup %16232  ;;  %16250 = vpow.bf16 %v6789_v46  ;;  %v7013_v12 = vunpack.c.h.bf16 %v16229_v33  ;;  %v15508_v33 = vld [vmem:[%s22672_s5 + $0xf0] sm:$0xff]  }
 0x613   : > { %10708 = vmatprep.mubr.bf16.mxu1 %v7630_v3  ;;  %v16235_v24 = vpop.eup %16234  ;;  %16252 = vpow.bf16 %v6786_v5  ;;  %v7645_v18 = vpack.c.bf16 %v16233_v36, %v16231_v1  ;;  %v7261_v7 = vadd.f32 1.0, %v7005_v4  ;;  %13419 = vmatprep.subr.bf16.mxu1 %v15508_v33 }
 0x614   : > { %v16237_v0 = vpop.eup %16236  ;;  %16254 = vrcp.f32 %v7245_v47  ;;  %v7269_v11 = vadd.f32 1.0, %v7013_v12  ;;  %13420 = vmatpush3.bf16.msra.mxu1 %v15509_v49  ;;  %13309 = vmatprep.subr.bf16.mxu0 %v15510_v60  ;;  %v15512_v47 = vld [vmem:[%s22672_s5 + $0xf8] sm:$0xff]  }
 0x615   : > { %v16239_v45 = vpop.eup %16238  ;;  %v7654_v3 = vpack.c.bf16 %v16237_v0, %v16235_v24  ;;  %16256 = vrcp.f32 %v7253_v13  ;;  %v15511_v24 = vld [vmem:[%s22672_s5 + $0x38] sm:$0xff]   ;;  %13421 = vmatprep.subr.bf16.mxu1 %v15512_v47  ;;  %v7943_v13 = vld [vmem:[%s22671_s4] sm:$0xf] }
 0x616   : > { %16258 = vrcp.f32 %v7262_v44  ;;  %v7022_v61 = vunpack.c.l.bf16 %v16239_v45  ;;  %v7030_v32 = vunpack.c.h.bf16 %v16239_v45  ;;  %v15513_v0 = vld [vmem:[%s22672_s5 + $0xb8] sm:$0xff]   ;;  %13310 = vmatpush3.bf16.msra.mxu0 %v15511_v24  ;;  %v23629_v44 = vld [vmem:[#allocation73_spill] sm:$0xff] }
 0x617   : > { %16260 = vrcp.f32 %v7270_v15  ;;  %v23630_v45 = vsub.s32 0, %v23629_v44  ;;  %v23632_v12 = vsub.s32 1, %v23629_v44 }
 0x618   : > { %v16241_v38 = vpop.eup %16240  ;;  %v7278_v20 = vadd.f32 1.0, %v7022_v61  ;;  %v7286_v63 = vadd.f32 1.0, %v7030_v32  ;;  %16262 = vrcp.f32 %v7261_v7  ;;  %13422 = vmatpush3.bf16.msra.mxu1 %v15513_v0 }
 0x619   : > { %9937 = vmatmul.mubr.bf16.gmra.mrb[160].mxu0 %v7629_v48  ;;  %v16243_v10 = vpop.eup %16242  ;;  %v7021_v41 = vunpack.c.l.bf16 %v16241_v38  ;;  %16264 = vrcp.f32 %v7269_v11  ;;  %v7029_v43 = vunpack.c.h.bf16 %v16241_v38  ;;  %v21913_v38 = vrot.slane %v7943_v13, %v23632_v12 }
 0x61a   : > { %10709 = vmatmul.mubr.bf16.gmra.mrb[160].mxu1 %v7629_v48  ;;  %9946 = vmatprep.mubr.bf16.mxu0 %v7638_v17  ;;  %v16245_v26 = vpop.eup %16244  ;;  %16266 = vrcp.f32 %v7278_v20 }
 0x61b   : > { %10718 = vmatprep.mubr.bf16.mxu1 %v7638_v17  ;;  %v16247_v42 = vpop.eup %16246  ;;  %v7653_v6 = vpack.c.bf16 %v16245_v26, %v16243_v10  ;;  %16268 = vrcp.f32 %v7286_v63  ;;  %v7277_v54 = vadd.f32 1.0, %v7021_v41  ;;  %v7285_v52 = vadd.f32 1.0, %v7029_v43 }
 0x61c   : > { %v16249_v29 = vpop.eup %16248  ;;  %v23633_v26 = vsub.s32 3, %v23629_v44 }
 0x61d   : > { %v16251_v31 = vpop.eup %16250  ;;  %v7662_v58 = vpack.c.bf16 %v16249_v29, %v16247_v42  ;;  %16270 = vrcp.f32 %v7277_v54 }
 0x61e   : > { %v16253_v9 = vpop.eup %16252  ;;  %v7038_v62 = vunpack.c.l.bf16 %v16251_v31  ;;  %v7046_v48 = vunpack.c.h.bf16 %v16251_v31  ;;  %16272 = vrcp.f32 %v7285_v52  ;;  %v21917_v32 = vrot.slane %v7943_v13, %v23633_v26 }
 0x61f   : > { %v16255_v55 = vpop.eup %16254  ;;  %v7037_v53 = vunpack.c.l.bf16 %v16253_v9  ;;  %v7045_v30 = vunpack.c.h.bf16 %v16253_v9 }
 0x620   : > { %v16257_v59 = vpop.eup %16256  ;;  %v7294_v16 = vadd.f32 1.0, %v7038_v62  ;;  %v7302_v51 = vadd.f32 1.0, %v7046_v48 }
 0x621   : > { %9947 = vmatmul.mubr.bf16.gmra.mrb[164].mxu0 %v7637_v22  ;;  %v16259_v27 = vpop.eup %16258  ;;  %v7661_v39 = vpack.c.bf16 %v16257_v59, %v16255_v55  ;;  %v7293_v57 = vadd.f32 1.0, %v7037_v53  ;;  %v7301_v14 = vadd.f32 1.0, %v7045_v30 }
 0x622   : > { %10719 = vmatmul.mubr.bf16.gmra.mrb[164].mxu1 %v7637_v22  ;;  %9956 = vmatprep.mubr.bf16.mxu0 %v7646_v28  ;;  %v16261_v17 = vpop.eup %16260  ;;  %16274 = vrcp.f32 %v7294_v16 }
 0x623   : > { %10728 = vmatprep.mubr.bf16.mxu1 %v7646_v28  ;;  %v7670_v40 = vpack.c.bf16 %v16261_v17, %v16259_v27  ;;  %v16263_v25 = vpop.eup %16262  ;;  %16276 = vrcp.f32 %v7302_v51 }
 0x624   : > { %v16265_v23 = vpop.eup %16264  ;;  %16278 = vrcp.f32 %v7293_v57 }
 0x625   : > { %v16267_v8 = vpop.eup %16266  ;;  %v7669_v56 = vpack.c.bf16 %v16265_v23, %v16263_v25  ;;  %16280 = vrcp.f32 %v7301_v14 }
 0x626   : > { %v16269_v2 = vpop.eup %16268 }
 0x627   : > { %v7678_v19 = vpack.c.bf16 %v16269_v2, %v16267_v8  ;;  %v16271_v50 = vpop.eup %16270 }
 0x628   : > { %v16273_v35 = vpop.eup %16272 }
 0x629   : > { %9957 = vmatmul.mubr.bf16.gmra.mrb[168].mxu0 %v7645_v18  ;;  %v7677_v46 = vpack.c.bf16 %v16273_v35, %v16271_v50 }
 0x62a   : > { %10729 = vmatmul.mubr.bf16.gmra.mrb[168].mxu1 %v7645_v18  ;;  %9966 = vmatprep.mubr.bf16.mxu0 %v7654_v3  ;;  %v21905_v18 = vrot.slane %v7943_v13, %v23630_v45 }
 0x62b   : > { %10738 = vmatprep.mubr.bf16.mxu1 %v7654_v3  ;;  %v23631_v3 = vsub.s32 2, %v23629_v44 }
 0x62c   : > { %v16275_v22 = vpop.eup %16274 }
 0x62d   : > { %v16277_v37 = vpop.eup %16276  ;;  %v21909_v4 = vrot.slane %v7943_v13, %v23631_v3 }
 0x62e   : > { %v7686_v28 = vpack.c.bf16 %v16277_v37, %v16275_v22  ;;  %v16279_v1 = vpop.eup %16278 }
 0x62f   : > { %v16281_v36 = vpop.eup %16280 }
 0x630   : > { %v7685_v5 = vpack.c.bf16 %v16281_v36, %v16279_v1 }
 0x631   : > { %9967 = vmatmul.mubr.bf16.gmra.mrb[172].mxu0 %v7653_v6 }
 0x632   : > { %10739 = vmatmul.mubr.bf16.gmra.mrb[172].mxu1 %v7653_v6  ;;  %9976 = vmatprep.mubr.bf16.mxu0 %v7662_v58 }
 0x633   : > { %10748 = vmatprep.mubr.bf16.mxu1 %v7662_v58 }
 0x639   : > { %9977 = vmatmul.mubr.bf16.gmra.mrb[176].mxu0 %v7661_v39 }
 0x63a   : > { %10749 = vmatmul.mubr.bf16.gmra.mrb[176].mxu1 %v7661_v39  ;;  %9986 = vmatprep.mubr.bf16.mxu0 %v7670_v40 }
 0x63b   : > { %10758 = vmatprep.mubr.bf16.mxu1 %v7670_v40 }
 0x641   : > { %9987 = vmatmul.mubr.bf16.gmra.mrb[180].mxu0 %v7669_v56 }
 0x642   : > { %10759 = vmatmul.mubr.bf16.gmra.mrb[180].mxu1 %v7669_v56  ;;  %9996 = vmatprep.mubr.bf16.mxu0 %v7678_v19 }
 0x643   : > { %10768 = vmatprep.mubr.bf16.mxu1 %v7678_v19 }
 0x649   : > { %9997 = vmatmul.mubr.bf16.gmra.mrb[184].mxu0 %v7677_v46 }
 0x64a   : > { %10769 = vmatmul.mubr.bf16.gmra.mrb[184].mxu1 %v7677_v46  ;;  %10006 = vmatprep.mubr.bf16.mxu0 %v7686_v28 }
 0x64b   : > { %10778 = vmatprep.mubr.bf16.mxu1 %v7686_v28 }
 0x651   : > { %10007 = vmatmul.mubr.bf16.gmra.mrb[188].mxu0 %v7685_v5 }
 0x652   : > { %10779 = vmatmul.mubr.bf16.gmra.mrb[188].mxu1 %v7685_v5 }
 0x6ac   : > { %v9858_v15 = vpop.f32.mrb[128].mxu0 }
 0x6ad   : > { %v10630_v10 = vpop.f32.mrb[128].mxu1  ;;  %v9860_v61 = vpop.f32.mrb[129].mxu0  ;;  %v13775_v29 = vadd.f32 %v9858_v15, %v21905_v18 }
 0x6ae   : > { %v10632_v42 = vpop.f32.mrb[129].mxu1  ;;  %v9862_v7 = vpop.f32.mrb[130].mxu0  ;;  %v13839_v6 = vadd.f32 %v10630_v10, %v21909_v4  ;;  %v13776_v63 = vadd.f32 %v9860_v61, %v21913_v38 }
 0x6af   : > { %v13777_v11 = vadd.f32 %v9862_v7, %v21905_v18  ;;  %v10634_v20 = vpop.f32.mrb[130].mxu1  ;;  %v9864_v31 = vpop.f32.mrb[131].mxu0  ;;  %v13840_v9 = vadd.f32 %v10632_v42, %v21917_v32 }
 0x6b0   : > { %v13841_v58 = vadd.f32 %v10634_v20, %v21909_v4  ;;  %v13778_v41 = vadd.f32 %v9864_v31, %v21913_v38  ;;  %v10636_v43 = vpop.f32.mrb[131].mxu1 }
 0x6b1   : > { %v10789_v55 = vpack.c.bf16 %v13777_v11, %v13775_v29  ;;  %v13842_v62 = vadd.f32 %v10636_v43, %v21917_v32 }
 0x6b2   : > { %v10791_v59 = vpack.c.bf16 %v13841_v58, %v13839_v6  ;;  %v10790_v48 = vpack.c.bf16 %v13778_v41, %v13776_v63 }
 0x6b3   : > { %v10853_v27 = vsub.bf16 0, %v10789_v55  ;;  %v10792_v54 = vpack.c.bf16 %v13842_v62, %v13840_v9 }
 0x6b4   : > { %v10855_v17 = vsub.bf16 0, %v10791_v59  ;;  %v10854_v52 = vsub.bf16 0, %v10790_v48  ;;  %v9868_v16 = vpop.f32.mrb[132].mxu0 }
 0x6b5   : > { %v10918_v39 = vmul.bf16 1069105081, %v10853_v27  ;;  %v10856_v51 = vsub.bf16 0, %v10792_v54  ;;  %v10640_v40 = vpop.f32.mrb[132].mxu1  ;;  %v9870_v53 = vpop.f32.mrb[133].mxu0  ;;  %v13779_v2 = vadd.f32 %v9868_v16, %v21905_v18 }
 0x6b6   : > { %v10924_v25 = vmul.bf16 1069105081, %v10855_v17  ;;  %v10921_v30 = vmul.bf16 1069105081, %v10854_v52  ;;  %v10642_v23 = vpop.f32.mrb[133].mxu1  ;;  %v9872_v8 = vpop.f32.mrb[134].mxu0  ;;  %v13843_v57 = vadd.f32 %v10640_v40, %v21909_v4  ;;  %v13780_v50 = vadd.f32 %v9870_v53, %v21913_v38 }
 0x6b7   : > { %16282 = vpow.bf16 %v10918_v39  ;;  %v13781_v14 = vadd.f32 %v9872_v8, %v21905_v18  ;;  %v10644_v56 = vpop.f32.mrb[134].mxu1  ;;  %v9874_v19 = vpop.f32.mrb[135].mxu0  ;;  %v13844_v46 = vadd.f32 %v10642_v23, %v21917_v32  ;;  %v10927_v34 = vmul.bf16 1069105081, %v10856_v51 }
 0x6b8   : > { %16284 = vpow.bf16 %v10924_v25  ;;  %v13845_v35 = vadd.f32 %v10644_v56, %v21909_v4  ;;  %v13782_v22 = vadd.f32 %v9874_v19, %v21913_v38  ;;  %v10646_v37 = vpop.f32.mrb[135].mxu1 }
 0x6b9   : > { %v10793_v28 = vpack.c.bf16 %v13781_v14, %v13779_v2  ;;  %v13846_v21 = vadd.f32 %v10646_v37, %v21917_v32  ;;  %16286 = vpow.bf16 %v10921_v30 }
 0x6ba   : > { %v10795_v33 = vpack.c.bf16 %v13845_v35, %v13843_v57  ;;  %v10794_v1 = vpack.c.bf16 %v13782_v22, %v13780_v50  ;;  %16288 = vpow.bf16 %v10927_v34 }
 0x6bb   : > { %v10857_v49 = vsub.bf16 0, %v10793_v28  ;;  %v10796_v36 = vpack.c.bf16 %v13846_v21, %v13844_v46 }
 0x6bc   : > { %v10859_v5 = vsub.bf16 0, %v10795_v33  ;;  %v10858_v60 = vsub.bf16 0, %v10794_v1  ;;  %v9878_v24 = vpop.f32.mrb[136].mxu0 }
 0x6bd   : > { %v10930_v47 = vmul.bf16 1069105081, %v10857_v49  ;;  %v10860_v0 = vsub.bf16 0, %v10796_v36  ;;  %v10650_v13 = vpop.f32.mrb[136].mxu1  ;;  %v9880_v44 = vpop.f32.mrb[137].mxu0  ;;  %v13783_v3 = vadd.f32 %v9878_v24, %v21905_v18 }
 0x6be   : > { %v10936_v45 = vmul.bf16 1069105081, %v10859_v5  ;;  %v10933_v15 = vmul.bf16 1069105081, %v10858_v60  ;;  %v10652_v12 = vpop.f32.mrb[137].mxu1  ;;  %v9882_v10 = vpop.f32.mrb[138].mxu0  ;;  %v13847_v26 = vadd.f32 %v10650_v13, %v21909_v4  ;;  %v13784_v11 = vadd.f32 %v9880_v44, %v21913_v38 }
 0x6bf   : > { %16290 = vpow.bf16 %v10930_v47  ;;  %v10939_v61 = vmul.bf16 1069105081, %v10860_v0  ;;  %v13785_v42 = vadd.f32 %v9882_v10, %v21905_v18  ;;  %v10654_v7 = vpop.f32.mrb[138].mxu1  ;;  %v9884_v29 = vpop.f32.mrb[139].mxu0  ;;  %v13848_v63 = vadd.f32 %v10652_v12, %v21917_v32 }
 0x6c0   : > { %16292 = vpow.bf16 %v10936_v45  ;;  %v13849_v20 = vadd.f32 %v10654_v7, %v21909_v4  ;;  %v13786_v31 = vadd.f32 %v9884_v29, %v21913_v38  ;;  %v10656_v6 = vpop.f32.mrb[139].mxu1 }
 0x6c1   : > { %16294 = vpow.bf16 %v10933_v15  ;;  %v10797_v58 = vpack.c.bf16 %v13785_v42, %v13783_v3  ;;  %v13850_v41 = vadd.f32 %v10656_v6, %v21917_v32 }
 0x6c2   : > { %v16283_v43 = vpop.eup %16282  ;;  %16296 = vpow.bf16 %v10939_v61  ;;  %v10799_v9 = vpack.c.bf16 %v13849_v20, %v13847_v26  ;;  %v10798_v55 = vpack.c.bf16 %v13786_v31, %v13784_v11 }
 0x6c3   : > { %v16285_v62 = vpop.eup %16284  ;;  %v11109_v59 = vunpack.c.l.bf16 %v16283_v43  ;;  %v11113_v48 = vunpack.c.h.bf16 %v16283_v43  ;;  %v10861_v27 = vsub.bf16 0, %v10797_v58  ;;  %v10800_v54 = vpack.c.bf16 %v13850_v41, %v13848_v63 }
 0x6c4   : > { %v11111_v17 = vunpack.c.l.bf16 %v16285_v62  ;;  %v11115_v52 = vunpack.c.h.bf16 %v16285_v62  ;;  %v10863_v16 = vsub.bf16 0, %v10799_v9  ;;  %v10862_v39 = vsub.bf16 0, %v10798_v55  ;;  %v9888_v51 = vpop.f32.mrb[140].mxu0  ;;  %v16287_v40 = vpop.eup %16286 }
 0x6c5   : > { %v11237_v53 = vadd.f32 1.0, %v11109_v59  ;;  %v11241_v25 = vadd.f32 1.0, %v11113_v48  ;;  %v10942_v30 = vmul.bf16 1069105081, %v10861_v27  ;;  %v10864_v23 = vsub.bf16 0, %v10800_v54  ;;  %v10660_v8 = vpop.f32.mrb[140].mxu1  ;;  %v16289_v1 = vpop.eup %16288 }
 0x6c6   : > { %v11239_v2 = vadd.f32 1.0, %v11111_v17  ;;  %v11243_v57 = vadd.f32 1.0, %v11115_v52  ;;  %v10948_v14 = vmul.bf16 1069105081, %v10863_v16  ;;  %v10945_v56 = vmul.bf16 1069105081, %v10862_v39 }
 0x6c7   : > { %16298 = vrcp.f32 %v11237_v53  ;;  %v10951_v19 = vmul.bf16 1069105081, %v10864_v23  ;;  %v13787_v50 = vadd.f32 %v9888_v51, %v21905_v18  ;;  %v13851_v35 = vadd.f32 %v10660_v8, %v21909_v4  ;;  %v9890_v22 = vpop.f32.mrb[141].mxu0  ;;  %v10662_v37 = vpop.f32.mrb[141].mxu1 }
 0x6c8   : > { %16300 = vrcp.f32 %v11241_v25  ;;  %v13788_v46 = vadd.f32 %v9890_v22, %v21913_v38  ;;  %v13852_v28 = vadd.f32 %v10662_v37, %v21917_v32  ;;  %v9892_v21 = vpop.f32.mrb[142].mxu0  ;;  %v10664_v34 = vpop.f32.mrb[142].mxu1  ;;  %v11110_v33 = vunpack.c.l.bf16 %v16287_v40 }
 0x6c9   : > { %16302 = vrcp.f32 %v11239_v2  ;;  %v13789_v49 = vadd.f32 %v9892_v21, %v21905_v18  ;;  %v13853_v36 = vadd.f32 %v10664_v34, %v21909_v4  ;;  %v9894_v5 = vpop.f32.mrb[143].mxu0  ;;  %v10666_v60 = vpop.f32.mrb[143].mxu1  ;;  %v11114_v24 = vunpack.c.h.bf16 %v16287_v40 }
 0x6ca   : > { %v21949_v47 = vpop.eup %16290  ;;  %16304 = vrcp.f32 %v11243_v57  ;;  %v13790_v0 = vadd.f32 %v9894_v5, %v21913_v38  ;;  %v13854_v13 = vadd.f32 %v10666_v60, %v21917_v32  ;;  %v11238_v44 = vadd.f32 1.0, %v11110_v33 }
 0x6cb   : > { %v21953_v45 = vpop.eup %16292  ;;  %16306 = vpow.bf16 %v10942_v30  ;;  %v10801_v15 = vpack.c.bf16 %v13789_v49, %v13787_v50  ;;  %v10803_v3 = vpack.c.bf16 %v13853_v36, %v13851_v35  ;;  %v21955_v12 = vadd.f32 1.0, %v11114_v24 }
 0x6cc   : > { %v21957_v10 = vpop.eup %16294  ;;  %16308 = vpow.bf16 %v10948_v14  ;;  %v10802_v61 = vpack.c.bf16 %v13790_v0, %v13788_v46  ;;  %v10804_v26 = vpack.c.bf16 %v13854_v13, %v13852_v28  ;;  %v9898_v42 = vpop.f32.mrb[144].mxu0  ;;  %v11112_v7 = vunpack.c.l.bf16 %v16289_v1 }
 0x6cd   : > { %v21959_v29 = vpop.eup %16296  ;;  %16310 = vpow.bf16 %v10945_v56  ;;  %v10865_v11 = vsub.bf16 0, %v10801_v15  ;;  %v10867_v20 = vsub.bf16 0, %v10803_v3  ;;  %v13791_v31 = vadd.f32 %v9898_v42, %v21905_v18  ;;  %v10670_v6 = vpop.f32.mrb[144].mxu1 }
 0x6ce   : > { %v9900_v63 = vpop.f32.mrb[145].mxu0  ;;  %16312 = vpow.bf16 %v10951_v19  ;;  %v10866_v58 = vsub.bf16 0, %v10802_v61  ;;  %v10868_v41 = vsub.bf16 0, %v10804_v26  ;;  %v13855_v43 = vadd.f32 %v10670_v6, %v21909_v4  ;;  %v10672_v9 = vpop.f32.mrb[145].mxu1 }
 0x6cf   : > { %v9902_v55 = vpop.f32.mrb[146].mxu0  ;;  %v10954_v62 = vmul.bf16 1069105081, %v10865_v11  ;;  %v10960_v59 = vmul.bf16 1069105081, %v10867_v20  ;;  %v13792_v48 = vadd.f32 %v9900_v63, %v21913_v38  ;;  %v13856_v27 = vadd.f32 %v10672_v9, %v21917_v32  ;;  %v10674_v54 = vpop.f32.mrb[146].mxu1 }
 0x6d0   : > { %v9904_v17 = vpop.f32.mrb[147].mxu0  ;;  %v10957_v52 = vmul.bf16 1069105081, %v10866_v58  ;;  %v10963_v16 = vmul.bf16 1069105081, %v10868_v41  ;;  %v13793_v39 = vadd.f32 %v9902_v55, %v21905_v18  ;;  %v13857_v51 = vadd.f32 %v10674_v54, %v21909_v4  ;;  %v10676_v40 = vpop.f32.mrb[147].mxu1 }
 0x6d1   : > { %v21967_v53 = vpop.eup %16298  ;;  %16314 = vpow.bf16 %v10954_v62  ;;  %v13794_v25 = vadd.f32 %v9904_v17, %v21913_v38  ;;  %v13858_v30 = vadd.f32 %v10676_v40, %v21917_v32  ;;  %v11116_v23 = vunpack.c.h.bf16 %v16289_v1 }
 0x6d2   : > { %v21971_v8 = vpop.eup %16300  ;;  %16316 = vpow.bf16 %v10960_v59  ;;  %v10805_v2 = vpack.c.bf16 %v13793_v39, %v13791_v31  ;;  %v10807_v57 = vpack.c.bf16 %v13857_v51, %v13855_v43  ;;  %v11240_v14 = vadd.f32 1.0, %v11112_v7 }
 0x6d3   : > { %v21973_v56 = vpop.eup %16302  ;;  %16318 = vpow.bf16 %v10957_v52  ;;  %v10806_v19 = vpack.c.bf16 %v13794_v25, %v13792_v48  ;;  %v10808_v50 = vpack.c.bf16 %v13858_v30, %v13856_v27  ;;  %v11244_v35 = vadd.f32 1.0, %v11116_v23 }
 0x6d4   : > { %v21975_v22 = vpop.eup %16304  ;;  %16320 = vpow.bf16 %v10963_v16  ;;  %v10869_v37 = vsub.bf16 0, %v10805_v2  ;;  %v10871_v46 = vsub.bf16 0, %v10807_v57  ;;  %v9908_v28 = vpop.f32.mrb[148].mxu0  ;;  %v11493_v21 = vpack.c.bf16 %v21971_v8, %v21967_v53 }
 0x6d5   : > { %v10870_v34 = vsub.bf16 0, %v10806_v19  ;;  %v10872_v33 = vsub.bf16 0, %v10808_v50  ;;  %v13795_v1 = vadd.f32 %v9908_v28, %v21905_v18  ;;  %v10680_v49 = vpop.f32.mrb[148].mxu1  ;;  %v9910_v36 = vpop.f32.mrb[149].mxu0  ;;  %16322 = vrcp.f32 %v11238_v44 }
 0x6d6   : > { %v21980_v5 = vpop.eup %16306  ;;  %v10966_v60 = vmul.bf16 1069105081, %v10869_v37  ;;  %v10972_v24 = vmul.bf16 1069105081, %v10871_v46  ;;  %v13859_v0 = vadd.f32 %v10680_v49, %v21909_v4  ;;  %v13796_v13 = vadd.f32 %v9910_v36, %v21913_v38  ;;  %v10682_v15 = vpop.f32.mrb[149].mxu1 }
 0x6d7   : > { %v9912_v3 = vpop.f32.mrb[150].mxu0  ;;  %v21984_v61 = vpop.eup %16308  ;;  %v10969_v26 = vmul.bf16 1069105081, %v10870_v34  ;;  %v10975_v42 = vmul.bf16 1069105081, %v10872_v33  ;;  %v13860_v7 = vadd.f32 %v10682_v15, %v21917_v32  ;;  %16324 = vrcp.f32 %v21955_v12 }
 0x6d8   : > { %v10684_v11 = vpop.f32.mrb[150].mxu1  ;;  %v9914_v44 = vpop.f32.mrb[151].mxu0  ;;  %16326 = vpow.bf16 %v10966_v60  ;;  %v13797_v31 = vadd.f32 %v9912_v3, %v21905_v18  ;;  %v11495_v63 = vpack.c.bf16 %v21975_v22, %v21973_v56  ;;  %v11118_v9 = vunpack.c.l.bf16 %v21957_v10 }
 0x6d9   : > { %v21988_v20 = vpop.eup %16310  ;;  %v13861_v6 = vadd.f32 %v10684_v11, %v21909_v4  ;;  %v10686_v58 = vpop.f32.mrb[151].mxu1  ;;  %16328 = vpow.bf16 %v10972_v24  ;;  %v13798_v43 = vadd.f32 %v9914_v44, %v21913_v38  ;;  %v11122_v59 = vunpack.c.h.bf16 %v21957_v10 }
 0x6da   : > { %v21994_v41 = vpop.eup %16312  ;;  %v13862_v12 = vadd.f32 %v10686_v58, %v21917_v32  ;;  %16330 = vpow.bf16 %v10969_v26  ;;  %v10809_v55 = vpack.c.bf16 %v13797_v31, %v13795_v1  ;;  %v11246_v54 = vadd.f32 1.0, %v11118_v9 }
 0x6db   : > { %v10811_v62 = vpack.c.bf16 %v13861_v6, %v13859_v0  ;;  %16332 = vpow.bf16 %v10975_v42  ;;  %v10810_v48 = vpack.c.bf16 %v13798_v43, %v13796_v13  ;;  %v11250_v51 = vadd.f32 1.0, %v11122_v59 }
 0x6dc   : > { %v10812_v27 = vpack.c.bf16 %v13862_v12, %v13860_v7  ;;  %v22000_v17 = vpop.eup %16314  ;;  %16334 = vrcp.f32 %v11240_v14  ;;  %v10873_v52 = vsub.bf16 0, %v10809_v55  ;;  %v9918_v39 = vpop.f32.mrb[152].mxu0  ;;  %v11120_v24 = vunpack.c.l.bf16 %v21959_v29 }
 0x6dd   : > { %v10875_v16 = vsub.bf16 0, %v10811_v62  ;;  %v22002_v40 = vpop.eup %16316  ;;  %16336 = vrcp.f32 %v11244_v35  ;;  %v10874_v25 = vsub.bf16 0, %v10810_v48  ;;  %v13799_v23 = vadd.f32 %v9918_v39, %v21905_v18  ;;  %v10690_v2 = vpop.f32.mrb[152].mxu1 }
 0x6de   : > { %v10876_v30 = vsub.bf16 0, %v10812_v27  ;;  %v9920_v10 = vpop.f32.mrb[153].mxu0  ;;  %v22005_v57 = vpop.eup %16318  ;;  %v10978_v19 = vmul.bf16 1069105081, %v10873_v52  ;;  %v13863_v37 = vadd.f32 %v10690_v2, %v21909_v4  ;;  %16338 = vrcp.f32 %v11246_v54 }
 0x6df   : > { %v10984_v50 = vmul.bf16 1069105081, %v10875_v16  ;;  %v22009_v14 = vadd.f32 %v9920_v10, %v21913_v38  ;;  %v10692_v46 = vpop.f32.mrb[153].mxu1  ;;  %v9922_v28 = vpop.f32.mrb[154].mxu0  ;;  %v10981_v33 = vmul.bf16 1069105081, %v10874_v25  ;;  %v11124_v0 = vunpack.c.h.bf16 %v21959_v29 }
 0x6e0   : > { %v22011_v34 = vpop.eup %16320  ;;  %v10987_v1 = vmul.bf16 1069105081, %v10876_v30  ;;  %v22014_v49 = vadd.f32 %v10692_v46, %v21917_v32  ;;  %v10694_v36 = vpop.f32.mrb[154].mxu1  ;;  %16340 = vpow.bf16 %v10978_v19  ;;  %v13801_v13 = vadd.f32 %v9922_v28, %v21905_v18 }
 0x6e1   : > { %v16323_v35 = vpop.eup %16322  ;;  %v9924_v60 = vpop.f32.mrb[155].mxu0  ;;  %16342 = vpow.bf16 %v10984_v50  ;;  %v13865_v26 = vadd.f32 %v10694_v36, %v21909_v4  ;;  %v11117_v42 = vunpack.c.l.bf16 %v21949_v47  ;;  %v11121_v7 = vunpack.c.h.bf16 %v21949_v47 }
 0x6e2   : > { %v10696_v15 = vpop.f32.mrb[155].mxu1  ;;  %v16325_v3 = vpop.eup %16324  ;;  %16344 = vpow.bf16 %v10981_v33  ;;  %v11248_v44 = vadd.f32 1.0, %v11120_v24  ;;  %v11252_v31 = vadd.f32 1.0, %v11124_v0  ;;  %v10813_v58 = vpack.c.bf16 %v13801_v13, %v13799_v23 }
 0x6e3   : > { %v11494_v11 = vpack.c.bf16 %v16325_v3, %v16323_v35  ;;  %v22022_v6 = vpop.eup %16326  ;;  %16346 = vpow.bf16 %v10987_v1  ;;  %v10815_v29 = vpack.c.bf16 %v13865_v26, %v13863_v37  ;;  %v11245_v43 = vadd.f32 1.0, %v11117_v42 }
 0x6e4   : > { %v22024_v12 = vpop.eup %16328  ;;  %16348 = vrcp.f32 %v11250_v51  ;;  %v11249_v9 = vadd.f32 1.0, %v11121_v7  ;;  %v11119_v55 = vunpack.c.l.bf16 %v21953_v45  ;;  %v11123_v62 = vunpack.c.h.bf16 %v21953_v45  ;;  %v9928_v47 = vpop.f32.mrb[156].mxu0 }
 0x6e5   : > { %11852 = vmatprep.mubr.bf16.mxu0 %v11494_v11  ;;  %v22028_v59 = vpop.eup %16330  ;;  %16350 = vrcp.f32 %v11248_v44  ;;  %v10877_v48 = vsub.bf16 0, %v10813_v58  ;;  %v10879_v27 = vsub.bf16 0, %v10815_v29  ;;  %v13802_v54 = vadd.f32 %v9924_v60, %v21913_v38  ;;  %v10700_v52 = vpop.f32.mrb[156].mxu1 }
 0x6e6   : > { %11853 = vmatmul.mubr.bf16.vlgmr.msra.gmra.mrb[192].mxu0 %v11493_v21  ;;  %v9930_v16 = vpop.f32.mrb[157].mxu0  ;;  %v22034_v39 = vpop.eup %16332  ;;  %16352 = vrcp.f32 %v11252_v31  ;;  %v11247_v25 = vadd.f32 1.0, %v11119_v55  ;;  %v11251_v45 = vadd.f32 1.0, %v11123_v62  ;;  %v13866_v30 = vadd.f32 %v10696_v15, %v21917_v32 }
 0x6e7   : > { %v16335_v51 = vpop.eup %16334  ;;  %v10702_v23 = vpop.f32.mrb[157].mxu1  ;;  %v10990_v53 = vmul.bf16 1069105081, %v10877_v48  ;;  %v10996_v8 = vmul.bf16 1069105081, %v10879_v27  ;;  %16354 = vrcp.f32 %v11245_v43  ;;  %v10814_v21 = vpack.c.bf16 %v13802_v54, %v22009_v14 }
 0x6e8   : > { %v9932_v2 = vpop.f32.mrb[158].mxu0  ;;  %v16337_v10 = vpop.eup %16336  ;;  %16356 = vrcp.f32 %v11249_v9  ;;  %v10816_v46 = vpack.c.bf16 %v13866_v30, %v22014_v49  ;;  %v13803_v28 = vadd.f32 %v9928_v47, %v21905_v18  ;;  %v13867_v36 = vadd.f32 %v10700_v52, %v21909_v4 }
 0x6e9   : > { %v10704_v19 = vpop.f32.mrb[158].mxu1  ;;  %v22038_v50 = vpop.f32.mrb[159].mxu0  ;;  %v11496_v37 = vpack.c.bf16 %v16337_v10, %v16335_v51  ;;  %16358 = vpow.bf16 %v10990_v53  ;;  %v10878_v1 = vsub.bf16 0, %v10814_v21  ;;  %v22046_v60 = vadd.f32 %v9930_v16, %v21913_v38 }
 0x6ea   : > { %v22042_v35 = vpop.f32.mrb[159].mxu1  ;;  %v16339_v33 = vpop.eup %16338  ;;  %16360 = vpow.bf16 %v10996_v8  ;;  %v10880_v14 = vsub.bf16 0, %v10816_v46  ;;  %v22049_v24 = vadd.f32 %v10702_v23, %v21917_v32  ;;  %v11126_v49 = vunpack.c.l.bf16 %v21988_v20 }
 0x6eb   : > { %12013 = vmatprep.mubr.bf16.mxu1 %v11496_v37  ;;  %v22052_v0 = vpop.eup %16340  ;;  %16362 = vrcp.f32 %v11247_v25  ;;  %v10993_v13 = vmul.bf16 1069105081, %v10878_v1  ;;  %v11130_v15 = vunpack.c.h.bf16 %v21988_v20  ;;  %v11128_v3 = vunpack.c.l.bf16 %v21994_v41 }
 0x6ec   : > { %12014 = vmatmul.mubr.bf16.vlgmr.msra.gmra.mrb[192].mxu1 %v11495_v63  ;;  %v22059_v26 = vpop.eup %16342  ;;  %16364 = vrcp.f32 %v11251_v45  ;;  %v10999_v42 = vmul.bf16 1069105081, %v10880_v14  ;;  %v11254_v7 = vadd.f32 1.0, %v11126_v49  ;;  %v11132_v11 = vunpack.c.h.bf16 %v21994_v41  ;;  %v9938_v44 = vpop.f32.mrb[160].mxu0 }
 0x6ed   : > { %v22062_v31 = vpop.eup %16344  ;;  %16366 = vpow.bf16 %v10993_v13  ;;  %v11258_v58 = vadd.f32 1.0, %v11130_v15  ;;  %v11256_v56 = vadd.f32 1.0, %v11128_v3  ;;  %v13805_v22 = vadd.f32 %v9932_v2, %v21905_v18  ;;  %v10710_v63 = vpop.f32.mrb[160].mxu1 }
 0x6ee   : > { %v9940_v29 = vpop.f32.mrb[161].mxu0  ;;  %v22065_v20 = vpop.eup %16346  ;;  %16368 = vpow.bf16 %v10999_v42  ;;  %v11260_v9 = vadd.f32 1.0, %v11132_v11  ;;  %v13869_v55 = vadd.f32 %v10704_v19, %v21909_v4  ;;  %v11125_v62 = vunpack.c.l.bf16 %v21980_v5 }
 0x6ef   : > { %v16349_v43 = vpop.eup %16348  ;;  %v10712_v41 = vpop.f32.mrb[161].mxu1  ;;  %16370 = vrcp.f32 %v11254_v7  ;;  %v10817_v54 = vpack.c.bf16 %v13805_v22, %v13803_v28  ;;  %v11129_v52 = vunpack.c.h.bf16 %v21980_v5  ;;  %v11127_v23 = vunpack.c.l.bf16 %v21984_v61 }
 0x6f0   : > { %v22069_v47 = vpop.f32.mrb[162].mxu0  ;;  %v16351_v48 = vpop.eup %16350  ;;  %v11498_v27 = vpack.c.bf16 %v16349_v43, %v16339_v33  ;;  %16372 = vrcp.f32 %v11258_v58  ;;  %v10819_v45 = vpack.c.bf16 %v13869_v55, %v13867_v36  ;;  %v11253_v30 = vadd.f32 1.0, %v11125_v62 }
 0x6f1   : > { %v22072_v16 = vpop.f32.mrb[162].mxu1  ;;  %v22074_v51 = vpop.f32.mrb[163].mxu0  ;;  %16374 = vrcp.f32 %v11256_v56  ;;  %v10881_v8 = vsub.bf16 0, %v10817_v54  ;;  %v11257_v21 = vadd.f32 1.0, %v11129_v52  ;;  %v11131_v37 = vunpack.c.h.bf16 %v21984_v61 }
 0x6f2   : > { %v16353_v25 = vpop.eup %16352  ;;  %v22077_v2 = vpop.f32.mrb[163].mxu1  ;;  %11860 = vmatprep.mubr.bf16.mxu0 %v11498_v27  ;;  %16376 = vrcp.f32 %v11260_v9  ;;  %v10883_v5 = vsub.bf16 0, %v10819_v45  ;;  %v11255_v46 = vadd.f32 1.0, %v11127_v23  ;;  %v13806_v1 = vadd.f32 %v22038_v50, %v21913_v38 }
 0x6f3   : > { %v16355_v10 = vpop.eup %16354  ;;  %v11500_v53 = vpack.c.bf16 %v16353_v25, %v16351_v48  ;;  %v11002_v33 = vmul.bf16 1069105081, %v10881_v8  ;;  %16378 = vrcp.f32 %v11253_v30  ;;  %v11259_v49 = vadd.f32 1.0, %v11131_v37 }
 0x6f4   : > { %v16357_v19 = vpop.eup %16356  ;;  %v11008_v14 = vmul.bf16 1069105081, %v10883_v5  ;;  %16380 = vrcp.f32 %v11257_v21  ;;  %v13870_v13 = vadd.f32 %v22042_v35, %v21917_v32  ;;  %v22086_v15 = vpop.f32.mrb[164].mxu0  ;;  %v10818_v42 = vpack.c.bf16 %v13806_v1, %v22046_v60 }
 0x6f5   : > { %12021 = vmatprep.mubr.bf16.mxu1 %v11500_v53  ;;  %v11497_v28 = vpack.c.bf16 %v16357_v19, %v16355_v10  ;;  %v22082_v36 = vpop.eup %16358  ;;  %16382 = vpow.bf16 %v11002_v33  ;;  %v13807_v7 = vadd.f32 %v9938_v44, %v21905_v18  ;;  %v13871_v50 = vadd.f32 %v10710_v63, %v21909_v4  ;;  %v22093_v11 = vpop.f32.mrb[164].mxu1 }
 0x6f6   : > { %v22088_v3 = vpop.eup %16360  ;;  %v22095_v58 = vpop.f32.mrb[165].mxu0  ;;  %16384 = vpow.bf16 %v11008_v14  ;;  %v10820_v35 = vpack.c.bf16 %v13870_v13, %v22049_v24  ;;  %v22099_v22 = vadd.f32 %v9940_v29, %v21913_v38  ;;  %v22102_v43 = vadd.f32 %v10712_v41, %v21917_v32 }
 0x6f7   : > { %v16363_v61 = vpop.eup %16362  ;;  %11861 = vmatmul.mubr.bf16.gmra.mrb[196].mxu0 %v11497_v28  ;;  %v22104_v9 = vpop.f32.mrb[165].mxu1  ;;  %16386 = vrcp.f32 %v11255_v46  ;;  %v10882_v63 = vsub.bf16 0, %v10818_v42  ;;  %v11134_v55 = vunpack.c.l.bf16 %v22005_v57  ;;  %v11138_v41 = vunpack.c.h.bf16 %v22005_v57 }
 0x6f8   : > { %v16365_v56 = vpop.eup %16364  ;;  %v22106_v60 = vpop.f32.mrb[166].mxu0  ;;  %16388 = vrcp.f32 %v11259_v49  ;;  %v10884_v29 = vsub.bf16 0, %v10820_v35  ;;  %v11136_v27 = vunpack.c.l.bf16 %v22011_v34  ;;  %v11140_v23 = vunpack.c.h.bf16 %v22011_v34 }
 0x6f9   : > { %v11499_v44 = vpack.c.bf16 %v16365_v56, %v16363_v61  ;;  %v22109_v62 = vpop.f32.mrb[166].mxu1  ;;  %v22111_v48 = vpop.f32.mrb[167].mxu0  ;;  %v11005_v45 = vmul.bf16 1069105081, %v10882_v63  ;;  %v11262_v30 = vadd.f32 1.0, %v11134_v55  ;;  %v13809_v10 = vadd.f32 %v22069_v47, %v21905_v18 }
 0x6fa   : > { %v22113_v24 = vpop.eup %16366  ;;  %v22117_v54 = vpop.f32.mrb[167].mxu1  ;;  %v11011_v8 = vmul.bf16 1069105081, %v10884_v29  ;;  %v11266_v21 = vadd.f32 1.0, %v11138_v41  ;;  %v11264_v19 = vadd.f32 1.0, %v11136_v27  ;;  %v13873_v57 = vadd.f32 %v22072_v16, %v21909_v4 }
 0x6fb   : > { %v22119_v52 = vpop.eup %16368  ;;  %12022 = vmatmul.mubr.bf16.gmra.mrb[196].mxu1 %v11499_v44  ;;  %16390 = vpow.bf16 %v11005_v45  ;;  %v11268_v46 = vadd.f32 1.0, %v11140_v23  ;;  %v10821_v28 = vpack.c.bf16 %v13809_v10, %v13807_v7  ;;  %v11133_v34 = vunpack.c.l.bf16 %v22000_v17 }
 0x6fc   : > { %v16371_v25 = vpop.eup %16370  ;;  %16392 = vpow.bf16 %v11011_v8  ;;  %v10823_v1 = vpack.c.bf16 %v13873_v57, %v13871_v50  ;;  %v11137_v14 = vunpack.c.h.bf16 %v22000_v17  ;;  %v22128_v47 = vpop.f32.mrb[168].mxu0  ;;  %v11135_v16 = vunpack.c.l.bf16 %v22002_v40 }
 0x6fd   : > { %v16373_v53 = vpop.eup %16372  ;;  %16394 = vrcp.f32 %v11262_v30  ;;  %v10885_v61 = vsub.bf16 0, %v10821_v28  ;;  %v22131_v42 = vpop.f32.mrb[168].mxu1  ;;  %v11261_v35 = vadd.f32 1.0, %v11133_v34  ;;  %v11139_v41 = vunpack.c.h.bf16 %v22002_v40 }
 0x6fe   : > { %v16375_v5 = vpop.eup %16374  ;;  %v11502_v37 = vpack.c.bf16 %v16373_v53, %v16371_v25  ;;  %v22133_v56 = vpop.f32.mrb[169].mxu0  ;;  %16396 = vrcp.f32 %v11266_v21  ;;  %v10887_v50 = vsub.bf16 0, %v10823_v1  ;;  %v11265_v44 = vadd.f32 1.0, %v11137_v14 }
 0x6ff   : > { %v16377_v33 = vpop.eup %16376  ;;  %v22135_v63 = vpop.f32.mrb[169].mxu1  ;;  %16398 = vrcp.f32 %v11264_v19  ;;  %v11014_v29 = vmul.bf16 1069105081, %v10885_v61  ;;  %v11263_v23 = vadd.f32 1.0, %v11135_v16  ;;  %v13810_v10 = vadd.f32 %v22074_v51, %v21913_v38 }
 0x700   : > { %v16379_v49 = vpop.eup %16378  ;;  %11868 = vmatprep.mubr.bf16.mxu0 %v11502_v37  ;;  %v11504_v13 = vpack.c.bf16 %v16377_v33, %v16375_v5  ;;  %v22137_v17 = vpop.f32.mrb[170].mxu0  ;;  %16400 = vrcp.f32 %v11268_v46  ;;  %v11020_v30 = vmul.bf16 1069105081, %v10887_v50  ;;  %v11267_v40 = vadd.f32 1.0, %v11139_v41 }
 0x701   : > { %v16381_v7 = vpop.eup %16380  ;;  %v22140_v27 = vpop.f32.mrb[170].mxu1  ;;  %16402 = vpow.bf16 %v11014_v29  ;;  %v13874_v19 = vadd.f32 %v22077_v2, %v21917_v32  ;;  %v13811_v57 = vadd.f32 %v22086_v15, %v21905_v18  ;;  %v10822_v37 = vpack.c.bf16 %v13810_v10, %v22099_v22 }
 0x702   : > { %12029 = vmatprep.mubr.bf16.mxu1 %v11504_v13  ;;  %v11501_v55 = vpack.c.bf16 %v16381_v7, %v16379_v49  ;;  %v22142_v25 = vpop.f32.mrb[171].mxu0  ;;  %v22144_v45 = vpop.eup %16382  ;;  %16404 = vpow.bf16 %v11020_v30  ;;  %v13875_v51 = vadd.f32 %v22093_v11, %v21909_v4  ;;  %v22161_v46 = vadd.f32 %v22095_v58, %v21913_v38 }
 0x703   : > { %v22148_v53 = vpop.f32.mrb[171].mxu1  ;;  %v22150_v8 = vpop.eup %16384  ;;  %16406 = vrcp.f32 %v11261_v35  ;;  %v10824_v33 = vpack.c.bf16 %v13874_v19, %v22102_v43  ;;  %v22166_v2 = vadd.f32 %v22104_v9, %v21917_v32  ;;  %v10886_v15 = vsub.bf16 0, %v10822_v37 }
 0x704   : > { %v16387_v21 = vpop.eup %16386  ;;  %11869 = vmatmul.mubr.bf16.gmra.mrb[200].mxu0 %v11501_v55  ;;  %16408 = vrcp.f32 %v11265_v44  ;;  %v11142_v1 = vunpack.c.l.bf16 %v22028_v59  ;;  %v11146_v22 = vunpack.c.h.bf16 %v22028_v59  ;;  %v22170_v34 = vpop.f32.mrb[172].mxu0  ;;  %v11144_v58 = vunpack.c.l.bf16 %v22034_v39 }
 0x705   : > { %v16389_v5 = vpop.eup %16388  ;;  %16410 = vrcp.f32 %v11263_v23  ;;  %v10888_v11 = vsub.bf16 0, %v10824_v33  ;;  %v11148_v14 = vunpack.c.h.bf16 %v22034_v39  ;;  %v22174_v43 = vpop.f32.mrb[172].mxu1  ;;  %v11017_v13 = vmul.bf16 1069105081, %v10886_v15 }
 0x706   : > { %v11503_v28 = vpack.c.bf16 %v16389_v5, %v16387_v21  ;;  %v22176_v49 = vpop.f32.mrb[173].mxu0  ;;  %v22178_v9 = vpop.eup %16390  ;;  %16412 = vrcp.f32 %v11267_v40  ;;  %v11270_v61 = vadd.f32 1.0, %v11142_v1  ;;  %v11274_v16 = vadd.f32 1.0, %v11146_v22 }
 0x707   : > { %v22180_v59 = vpop.f32.mrb[173].mxu1  ;;  %v22182_v7 = vpop.f32.mrb[174].mxu0  ;;  %v11023_v44 = vmul.bf16 1069105081, %v10888_v11  ;;  %v11272_v55 = vadd.f32 1.0, %v11144_v58  ;;  %v11276_v39 = vadd.f32 1.0, %v11148_v14  ;;  %v13813_v29 = vadd.f32 %v22106_v60, %v21905_v18 }
 0x708   : > { %12030 = vmatmul.mubr.bf16.gmra.mrb[200].mxu1 %v11503_v28  ;;  %v22184_v50 = vpop.eup %16392  ;;  %v22188_v41 = vpop.f32.mrb[174].mxu1  ;;  %16414 = vpow.bf16 %v11017_v13  ;;  %v13877_v10 = vadd.f32 %v22109_v62, %v21909_v4  ;;  %v11141_v21 = vunpack.c.l.bf16 %v22022_v6  ;;  %v11145_v40 = vunpack.c.h.bf16 %v22022_v6 }
 0x709   : > { %v16395_v35 = vpop.eup %16394  ;;  %v22190_v30 = vpop.f32.mrb[175].mxu0  ;;  %16416 = vpow.bf16 %v11023_v44  ;;  %v10825_v28 = vpack.c.bf16 %v13813_v29, %v13811_v57  ;;  %v11143_v60 = vunpack.c.l.bf16 %v22024_v12  ;;  %v11147_v58 = vunpack.c.h.bf16 %v22024_v12 }
 0x70a   : > { %v16397_v23 = vpop.eup %16396  ;;  %v22196_v19 = vpop.f32.mrb[175].mxu1  ;;  %16418 = vrcp.f32 %v11270_v61  ;;  %v10827_v15 = vpack.c.bf16 %v13877_v10, %v13875_v51  ;;  %v11269_v1 = vadd.f32 1.0, %v11141_v21  ;;  %v11273_v22 = vadd.f32 1.0, %v11145_v40 }
 0x70b   : > { %v16399_v5 = vpop.eup %16398  ;;  %v11506_v37 = vpack.c.bf16 %v16397_v23, %v16395_v35  ;;  %16420 = vrcp.f32 %v11274_v16  ;;  %v10889_v62 = vsub.bf16 0, %v10825_v28  ;;  %v11271_v13 = vadd.f32 1.0, %v11143_v60 }
 0x70c   : > { %v16401_v33 = vpop.eup %16400  ;;  %16422 = vrcp.f32 %v11272_v55  ;;  %v10891_v14 = vsub.bf16 0, %v10827_v15  ;;  %v13814_v57 = vadd.f32 %v22111_v48, %v21913_v38  ;;  %v22204_v35 = vpop.f32.mrb[176].mxu0  ;;  %v11275_v16 = vadd.f32 1.0, %v11147_v58 }
 0x70d   : > { %11876 = vmatprep.mubr.bf16.mxu0 %v11506_v37  ;;  %v11508_v11 = vpack.c.bf16 %v16401_v33, %v16399_v5  ;;  %v22200_v6 = vpop.eup %16402  ;;  %16424 = vrcp.f32 %v11276_v39  ;;  %v11026_v44 = vmul.bf16 1069105081, %v10889_v62  ;;  %v13878_v12 = vadd.f32 %v22117_v54, %v21917_v32  ;;  %v22210_v29 = vpop.f32.mrb[176].mxu1 }
 0x70e   : > { %v22206_v61 = vpop.eup %16404  ;;  %v22212_v55 = vpop.f32.mrb[177].mxu0  ;;  %v11032_v10 = vmul.bf16 1069105081, %v10891_v14  ;;  %16426 = vrcp.f32 %v11269_v1  ;;  %v10826_v48 = vpack.c.bf16 %v13814_v57, %v22161_v46  ;;  %v22217_v21 = vadd.f32 %v22128_v47, %v21905_v18 }
 0x70f   : > { %v16407_v51 = vpop.eup %16406  ;;  %12037 = vmatprep.mubr.bf16.mxu1 %v11508_v11  ;;  %v22219_v40 = vpop.f32.mrb[177].mxu1  ;;  %16428 = vpow.bf16 %v11026_v44  ;;  %v10828_v54 = vpack.c.bf16 %v13878_v12, %v22166_v2  ;;  %v13879_v28 = vadd.f32 %v22131_v42, %v21909_v4  ;;  %v22232_v15 = vadd.f32 %v22133_v56, %v21913_v38 }
 0x710   : > { %v16409_v23 = vpop.eup %16408  ;;  %v22221_v39 = vpop.f32.mrb[178].mxu0  ;;  %16430 = vpow.bf16 %v11032_v10  ;;  %v10890_v47 = vsub.bf16 0, %v10826_v48  ;;  %v22236_v1 = vadd.f32 %v22135_v63, %v21917_v32  ;;  %v11150_v62 = vunpack.c.l.bf16 %v22062_v31 }
 0x711   : > { %v16411_v5 = vpop.eup %16410  ;;  %v11505_v37 = vpack.c.bf16 %v16409_v23, %v16407_v51  ;;  %v22226_v60 = vpop.f32.mrb[178].mxu1  ;;  %16432 = vrcp.f32 %v11273_v22  ;;  %v10892_v42 = vsub.bf16 0, %v10828_v54  ;;  %v11154_v14 = vunpack.c.h.bf16 %v22062_v31 }
 0x712   : > { %v22228_v33 = vpop.f32.mrb[179].mxu0  ;;  %v16413_v46 = vpop.eup %16412  ;;  %16434 = vrcp.f32 %v11271_v13  ;;  %v11029_v58 = vmul.bf16 1069105081, %v10890_v47  ;;  %v11152_v57 = vunpack.c.l.bf16 %v22065_v20  ;;  %v11278_v51 = vadd.f32 1.0, %v11150_v62 }
 0x713   : > { %v22238_v11 = vpop.f32.mrb[179].mxu1  ;;  %11877 = vmatmul.mubr.bf16.gmra.mrb[204].mxu0 %v11505_v37  ;;  %v11507_v2 = vpack.c.bf16 %v16413_v46, %v16411_v5  ;;  %v22243_v56 = vpop.eup %16414  ;;  %16436 = vrcp.f32 %v11275_v16  ;;  %v11035_v63 = vmul.bf16 1069105081, %v10892_v42  ;;  %v11156_v44 = vunpack.c.h.bf16 %v22065_v20 }
 0x714   : > { %v22246_v12 = vpop.eup %16416  ;;  %16438 = vpow.bf16 %v11029_v58  ;;  %v11282_v23 = vadd.f32 1.0, %v11154_v14  ;;  %v11280_v10 = vadd.f32 1.0, %v11152_v57  ;;  %v13817_v13 = vadd.f32 %v22137_v17, %v21905_v18  ;;  %v22250_v31 = vpop.f32.mrb[180].mxu0 }
 0x715   : > { %12038 = vmatmul.mubr.bf16.gmra.mrb[204].mxu1 %v11507_v2  ;;  %v16419_v22 = vpop.eup %16418  ;;  %16440 = vpow.bf16 %v11035_v63  ;;  %v11284_v5 = vadd.f32 1.0, %v11156_v44  ;;  %v13881_v16 = vadd.f32 %v22140_v27, %v21909_v4  ;;  %v11149_v37 = vunpack.c.l.bf16 %v22052_v0  ;;  %v22255_v20 = vpop.f32.mrb[180].mxu1 }
 0x716   : > { %v16421_v48 = vpop.eup %16420  ;;  %v22257_v54 = vpop.f32.mrb[181].mxu0  ;;  %16442 = vrcp.f32 %v11278_v51  ;;  %v10829_v2 = vpack.c.bf16 %v13817_v13, %v22217_v21  ;;  %v11153_v17 = vunpack.c.h.bf16 %v22052_v0  ;;  %v11151_v57 = vunpack.c.l.bf16 %v22059_v26 }
 0x717   : > { %v16423_v46 = vpop.eup %16422  ;;  %v11510_v47 = vpack.c.bf16 %v16421_v48, %v16419_v22  ;;  %v22261_v42 = vpop.f32.mrb[181].mxu1  ;;  %16444 = vrcp.f32 %v11282_v23  ;;  %v10831_v27 = vpack.c.bf16 %v13881_v16, %v13879_v28  ;;  %v11277_v14 = vadd.f32 1.0, %v11149_v37 }
 0x718   : > { %v22263_v62 = vpop.f32.mrb[182].mxu0  ;;  %v16425_v58 = vpop.eup %16424  ;;  %16446 = vrcp.f32 %v11280_v10  ;;  %v10893_v21 = vsub.bf16 0, %v10829_v2  ;;  %v11281_v0 = vadd.f32 1.0, %v11153_v17  ;;  %v11155_v23 = vunpack.c.h.bf16 %v22059_v26 }
 0x719   : > { %v22266_v63 = vpop.f32.mrb[182].mxu1  ;;  %v22268_v44 = vpop.f32.mrb[183].mxu0  ;;  %11884 = vmatprep.mubr.bf16.mxu0 %v11510_v47  ;;  %v11512_v51 = vpack.c.bf16 %v16425_v58, %v16423_v46  ;;  %16448 = vrcp.f32 %v11284_v5  ;;  %v10895_v48 = vsub.bf16 0, %v10831_v27  ;;  %v11279_v28 = vadd.f32 1.0, %v11151_v57 }
 0x71a   : > { %23634 = vst [vmem:[#allocation12_spill] sm:$0xff] %v22268_v44  ;;  %v16427_v22 = vpop.eup %16426  ;;  %v22270_v13 = vpop.f32.mrb[183].mxu1  ;;  %v11038_v37 = vmul.bf16 1069105081, %v10893_v21  ;;  %16450 = vrcp.f32 %v11277_v14  ;;  %v13818_v44 = vadd.f32 %v22142_v25, %v21913_v38  ;;  %v13882_v10 = vadd.f32 %v22148_v53, %v21917_v32 }
 0x71b   : > { %v22273_v16 = vpop.eup %16428  ;;  %12045 = vmatprep.mubr.bf16.mxu1 %v11512_v51  ;;  %v11044_v2 = vmul.bf16 1069105081, %v10895_v48  ;;  %16452 = vrcp.f32 %v11281_v0  ;;  %v11283_v5 = vadd.f32 1.0, %v11155_v23  ;;  %v13819_v26 = vadd.f32 %v22170_v34, %v21905_v18 }
 0x71c   : > { %23635 = vst [vmem:[#allocation81_spill] sm:$0xff] %v22273_v16  ;;  %v22279_v46 = vpop.eup %16430  ;;  %16454 = vpow.bf16 %v11038_v37  ;;  %v10830_v27 = vpack.c.bf16 %v13818_v44, %v22232_v15  ;;  %v10832_v14 = vpack.c.bf16 %v13882_v10, %v22236_v1  ;;  %v22285_v25 = vpop.f32.mrb[184].mxu0  ;;  %v13883_v53 = vadd.f32 %v22174_v43, %v21909_v4 }
 0x71d   : > { %23636 = vst [vmem:[#allocation80_spill] sm:$0xff] %v22279_v46  ;;  %v16433_v47 = vpop.eup %16432  ;;  %16456 = vpow.bf16 %v11044_v2  ;;  %v22291_v51 = vadd.f32 %v22176_v49, %v21913_v38  ;;  %v22295_v34 = vadd.f32 %v22180_v59, %v21917_v32  ;;  %v22299_v15 = vpop.f32.mrb[185].mxu0  ;;  %v11158_v49 = vunpack.c.l.bf16 %v22113_v24 }
 0x71e   : > { %v16435_v17 = vpop.eup %16434  ;;  %v11509_v58 = vpack.c.bf16 %v16433_v47, %v16427_v22  ;;  %v22297_v22 = vpop.f32.mrb[184].mxu1  ;;  %16458 = vrcp.f32 %v11279_v28  ;;  %v10894_v44 = vsub.bf16 0, %v10830_v27  ;;  %v10896_v21 = vsub.bf16 0, %v10832_v14 }
 0x71f   : > { %v16437_v57 = vpop.eup %16436  ;;  %v22301_v0 = vpop.f32.mrb[185].mxu1  ;;  %16460 = vrcp.f32 %v11283_v5  ;;  %v11162_v59 = vunpack.c.h.bf16 %v22113_v24  ;;  %v11160_v23 = vunpack.c.l.bf16 %v22119_v52  ;;  %v13821_v5 = vadd.f32 %v22182_v7, %v21905_v18 }
 0x720   : > { %11885 = vmatmul.mubr.bf16.gmra.mrb[208].mxu0 %v11509_v58  ;;  %v11511_v1 = vpack.c.bf16 %v16437_v57, %v16435_v17  ;;  %v22303_v43 = vpop.f32.mrb[186].mxu0  ;;  %v22305_v48 = vpop.eup %16438  ;;  %v11041_v2 = vmul.bf16 1069105081, %v10894_v44  ;;  %v11047_v17 = vmul.bf16 1069105081, %v10896_v21  ;;  %v11164_v58 = vunpack.c.h.bf16 %v22119_v52 }
 0x721   : > { %23637 = vst [vmem:[#allocation83_spill] sm:$0xff] %v22303_v43  ;;  %v22310_v37 = vpop.f32.mrb[186].mxu1  ;;  %v22312_v10 = vpop.f32.mrb[187].mxu0  ;;  %v11286_v14 = vadd.f32 1.0, %v11158_v49  ;;  %v11290_v57 = vadd.f32 1.0, %v11162_v59  ;;  %v11288_v46 = vadd.f32 1.0, %v11160_v23  ;;  %v10833_v44 = vpack.c.bf16 %v13821_v5, %v13819_v26 }
 0x722   : > { %23638 = vst [vmem:[#allocation82_spill] sm:$0xff] %v22310_v37  ;;  %23639 = vst [vmem:[#allocation85_spill] sm:$0xff] %v22312_v10  ;;  %v22314_v28 = vpop.eup %16440  ;;  %12046 = vmatmul.mubr.bf16.gmra.mrb[208].mxu1 %v11511_v1  ;;  %v22319_v27 = vpop.f32.mrb[187].mxu1  ;;  %v13885_v10 = vadd.f32 %v22188_v41, %v21909_v4  ;;  %16462 = vpow.bf16 %v11041_v2  ;;  %v11292_v1 = vadd.f32 1.0, %v11164_v58  ;;  %v11157_v43 = vunpack.c.l.bf16 %v22082_v36 }
 0x723   : > { %v16443_v47 = vpop.eup %16442  ;;  %23640 = vst [vmem:[#allocation84_spill] sm:$0xff] %v22319_v27  ;;  %16464 = vpow.bf16 %v11047_v17  ;;  %v11161_v7 = vunpack.c.h.bf16 %v22082_v36  ;;  %v10897_v59 = vsub.bf16 0, %v10833_v44  ;;  %v11159_v23 = vunpack.c.l.bf16 %v22088_v3 }
 0x724   : > { %v16445_v24 = vpop.eup %16444  ;;  %v10835_v52 = vpack.c.bf16 %v13885_v10, %v13883_v53  ;;  %16466 = vrcp.f32 %v11286_v14  ;;  %v22326_v41 = vpop.f32.mrb[188].mxu0  ;;  %v11285_v26 = vadd.f32 1.0, %v11157_v43 }
 0x725   : > { %v16447_v16 = vpop.eup %16446  ;;  %v11514_v37 = vpack.c.bf16 %v16445_v24, %v16443_v47  ;;  %16468 = vrcp.f32 %v11290_v57  ;;  %v11289_v58 = vadd.f32 1.0, %v11161_v7  ;;  %v22328_v17 = vpop.f32.mrb[188].mxu1  ;;  %v11287_v43 = vadd.f32 1.0, %v11159_v23 }
 0x726   : > { %v16449_v21 = vpop.eup %16448  ;;  %v10899_v2 = vsub.bf16 0, %v10835_v52  ;;  %v22330_v53 = vpop.f32.mrb[189].mxu0  ;;  %16470 = vrcp.f32 %v11288_v46  ;;  %v13822_v57 = vadd.f32 %v22190_v30, %v21913_v38  ;;  %v13886_v52 = vadd.f32 %v22196_v19, %v21917_v32 }
 0x727   : > { %v16451_v27 = vpop.eup %16450  ;;  %11892 = vmatprep.mubr.bf16.mxu0 %v11514_v37  ;;  %v11516_v49 = vpack.c.bf16 %v16449_v21, %v16447_v16  ;;  %v11050_v37 = vmul.bf16 1069105081, %v10897_v59  ;;  %v11163_v16 = vunpack.c.h.bf16 %v22088_v3  ;;  %v22333_v10 = vpop.f32.mrb[189].mxu1  ;;  %16472 = vrcp.f32 %v11292_v1 }
 0x728   : > { %v16453_v47 = vpop.eup %16452  ;;  %v22335_v5 = vpop.f32.mrb[190].mxu0  ;;  %v11056_v14 = vmul.bf16 1069105081, %v10899_v2  ;;  %v13823_v1 = vadd.f32 %v22204_v35, %v21905_v18  ;;  %v10834_v30 = vpack.c.bf16 %v13822_v57, %v22291_v51  ;;  %v13887_v59 = vadd.f32 %v22210_v29, %v21909_v4 }
 0x729   : > { %12053 = vmatprep.mubr.bf16.mxu1 %v11516_v49  ;;  %v11513_v36 = vpack.c.bf16 %v16453_v47, %v16451_v27  ;;  %v22337_v24 = vpop.eup %16454  ;;  %v22341_v44 = vpop.f32.mrb[190].mxu1  ;;  %16474 = vpow.bf16 %v11050_v37  ;;  %v11291_v3 = vadd.f32 1.0, %v11163_v16  ;;  %v22358_v23 = vadd.f32 %v22212_v55, %v21913_v38 }
 0x72a   : > { %v22343_v21 = vpop.f32.mrb[191].mxu0  ;;  %v22345_v46 = vpop.eup %16456  ;;  %16476 = vpow.bf16 %v11056_v14  ;;  %v10836_v19 = vpack.c.bf16 %v13886_v52, %v22295_v34  ;;  %v22363_v35 = vadd.f32 %v22219_v40, %v21917_v32  ;;  %v10898_v2 = vsub.bf16 0, %v10834_v30 }
 0x72b   : > { %v16459_v27 = vpop.eup %16458  ;;  %11893 = vmatmul.mubr.bf16.gmra.mrb[212].mxu0 %v11513_v36  ;;  %v22351_v7 = vpop.f32.mrb[191].mxu1  ;;  %16478 = vrcp.f32 %v11285_v26  ;;  %v11166_v36 = vunpack.c.l.bf16 %v22178_v9  ;;  %v11170_v51 = vunpack.c.h.bf16 %v22178_v9  ;;  %v11168_v55 = vunpack.c.l.bf16 %v22184_v50 }
 0x72c   : > { %v16461_v49 = vpop.eup %16460  ;;  %16480 = vrcp.f32 %v11289_v58  ;;  %v10900_v29 = vsub.bf16 0, %v10836_v19  ;;  %v11172_v37 = vunpack.c.h.bf16 %v22184_v50  ;;  %v11053_v34 = vmul.bf16 1069105081, %v10898_v2 }
 0x72d   : > { %v11515_v47 = vpack.c.bf16 %v16461_v49, %v16459_v27  ;;  %16482 = vrcp.f32 %v11287_v43  ;;  %v22369_v26 = vpop.eup %16462  ;;  %v11294_v16 = vadd.f32 1.0, %v11166_v36  ;;  %v11298_v40 = vadd.f32 1.0, %v11170_v51 }
 0x72e   : > { %16484 = vrcp.f32 %v11291_v3  ;;  %v22371_v14 = vpop.eup %16464  ;;  %v11059_v57 = vmul.bf16 1069105081, %v10900_v29  ;;  %v11296_v27 = vadd.f32 1.0, %v11168_v55  ;;  %v11300_v52 = vadd.f32 1.0, %v11172_v37 }
 0x72f   : > { %12054 = vmatmul.mubr.bf16.gmra.mrb[212].mxu1 %v11515_v47  ;;  %v16467_v58 = vpop.eup %16466  ;;  %v13825_v9 = vadd.f32 %v22221_v39, %v21905_v18  ;;  %16486 = vpow.bf16 %v11053_v34  ;;  %v13889_v50 = vadd.f32 %v22226_v60, %v21909_v4  ;;  %v11165_v49 = vunpack.c.l.bf16 %v22144_v45 }
 0x730   : > { %v16469_v43 = vpop.eup %16468  ;;  %v11169_v3 = vunpack.c.h.bf16 %v22144_v45  ;;  %16488 = vpow.bf16 %v11059_v57  ;;  %v11167_v2 = vunpack.c.l.bf16 %v22150_v8  ;;  %v11171_v60 = vunpack.c.h.bf16 %v22150_v8 }
 0x731   : > { %v16471_v30 = vpop.eup %16470  ;;  %v11518_v47 = vpack.c.bf16 %v16469_v43, %v16467_v58  ;;  %v10837_v19 = vpack.c.bf16 %v13825_v9, %v13823_v1  ;;  %16490 = vrcp.f32 %v11294_v16  ;;  %v10839_v51 = vpack.c.bf16 %v13889_v50, %v13887_v59 }
 0x732   : > { %v16473_v36 = vpop.eup %16472  ;;  %v11293_v29 = vadd.f32 1.0, %v11165_v49  ;;  %v11297_v39 = vadd.f32 1.0, %v11169_v3  ;;  %16492 = vrcp.f32 %v11298_v40  ;;  %v11295_v58 = vadd.f32 1.0, %v11167_v2 }
 0x733   : > { %11900 = vmatprep.mubr.bf16.mxu0 %v11518_v47  ;;  %v11520_v55 = vpack.c.bf16 %v16473_v36, %v16471_v30  ;;  %v10901_v37 = vsub.bf16 0, %v10837_v19  ;;  %16494 = vrcp.f32 %v11296_v27  ;;  %v10903_v45 = vsub.bf16 0, %v10839_v51 }
 0x734   : > { %v22381_v34 = vpop.eup %16474  ;;  %v13826_v1 = vadd.f32 %v22228_v33, %v21913_v38  ;;  %16496 = vrcp.f32 %v11300_v52  ;;  %v11299_v9 = vadd.f32 1.0, %v11171_v60  ;;  %v13890_v40 = vadd.f32 %v22238_v11, %v21917_v32 }
 0x735   : > { %v22385_v57 = vpop.eup %16476  ;;  %12061 = vmatprep.mubr.bf16.mxu1 %v11520_v55  ;;  %v11062_v59 = vmul.bf16 1069105081, %v10901_v37  ;;  %v11068_v8 = vmul.bf16 1069105081, %v10903_v45  ;;  %16498 = vrcp.f32 %v11293_v29  ;;  %v13827_v50 = vadd.f32 %v22250_v31, %v21905_v18 }
 0x736   : > { %v16479_v16 = vpop.eup %16478  ;;  %v10838_v27 = vpack.c.bf16 %v13826_v1, %v22358_v23  ;;  %v10840_v3 = vpack.c.bf16 %v13890_v40, %v22363_v35  ;;  %v13891_v52 = vadd.f32 %v22255_v20, %v21909_v4  ;;  %v22397_v11 = vadd.f32 %v22257_v54, %v21913_v38 }
 0x737   : > { %v16481_v43 = vpop.eup %16480  ;;  %16500 = vpow.bf16 %v11062_v59  ;;  %v22401_v23 = vadd.f32 %v22261_v42, %v21917_v32  ;;  %v11174_v35 = vunpack.c.l.bf16 %v22243_v56  ;;  %v11178_v20 = vunpack.c.h.bf16 %v22243_v56 }
 0x738   : > { %v16483_v49 = vpop.eup %16482  ;;  %v11517_v33 = vpack.c.bf16 %v16481_v43, %v16479_v16  ;;  %16502 = vpow.bf16 %v11068_v8  ;;  %v10902_v47 = vsub.bf16 0, %v10838_v27  ;;  %v10904_v19 = vsub.bf16 0, %v10840_v3 }
 0x739   : > { %v16485_v30 = vpop.eup %16484  ;;  %16504 = vrcp.f32 %v11297_v39  ;;  %v11176_v36 = vunpack.c.l.bf16 %v22246_v12  ;;  %v11302_v29 = vadd.f32 1.0, %v11174_v35  ;;  %v11180_v42 = vunpack.c.h.bf16 %v22246_v12 }
 0x73a   : > { %11901 = vmatmul.mubr.bf16.gmra.mrb[216].mxu0 %v11517_v33  ;;  %v11519_v31 = vpack.c.bf16 %v16485_v30, %v16483_v49  ;;  %16506 = vrcp.f32 %v11295_v58  ;;  %v11065_v2 = vmul.bf16 1069105081, %v10902_v47  ;;  %v22406_v51 = vpop.eup %16486  ;;  %v11071_v54 = vmul.bf16 1069105081, %v10904_v19 }
 0x73b   : > { %16508 = vrcp.f32 %v11299_v9  ;;  %v22409_v55 = vpop.eup %16488  ;;  %v11306_v37 = vadd.f32 1.0, %v11178_v20  ;;  %v11304_v60 = vadd.f32 1.0, %v11176_v36  ;;  %v13829_v45 = vadd.f32 %v22263_v62, %v21905_v18 }
 0x73c   : > { %12062 = vmatmul.mubr.bf16.gmra.mrb[216].mxu1 %v11519_v31  ;;  %v16491_v39 = vpop.eup %16490  ;;  %16510 = vpow.bf16 %v11065_v2  ;;  %v11308_v58 = vadd.f32 1.0, %v11180_v42  ;;  %v13893_v1 = vadd.f32 %v22266_v63, %v21909_v4  ;;  %v11173_v16 = vunpack.c.l.bf16 %v22200_v6 }
 0x73d   : > { %v16493_v56 = vpop.eup %16492  ;;  %16512 = vpow.bf16 %v11071_v54  ;;  %v10841_v12 = vpack.c.bf16 %v13829_v45, %v13827_v50  ;;  %v11177_v40 = vunpack.c.h.bf16 %v22200_v6  ;;  %v11175_v62 = vunpack.c.l.bf16 %v22206_v61 }
 0x73e   : > { %v16495_v59 = vpop.eup %16494  ;;  %v11522_v9 = vpack.c.bf16 %v16493_v56, %v16491_v39  ;;  %16514 = vrcp.f32 %v11302_v29  ;;  %v10843_v8 = vpack.c.bf16 %v13893_v1, %v13891_v52  ;;  %v11301_v27 = vadd.f32 1.0, %v11173_v16  ;;  %v23641_v52 = vld [vmem:[#allocation12_spill] sm:$0xff] }
 0x73f   : > { %v16497_v43 = vpop.eup %16496  ;;  %16516 = vrcp.f32 %v11306_v37  ;;  %v10905_v3 = vsub.bf16 0, %v10841_v12  ;;  %v11305_v63 = vadd.f32 1.0, %v11177_v40  ;;  %v11179_v47 = vunpack.c.h.bf16 %v22206_v61  ;;  %v23642_v40 = vld [vmem:[#allocation83_spill] sm:$0xff] }
 0x740   : > { %v16499_v49 = vpop.eup %16498  ;;  %11908 = vmatprep.mubr.bf16.mxu0 %v11522_v9  ;;  %v11524_v33 = vpack.c.bf16 %v16497_v43, %v16495_v59  ;;  %16518 = vrcp.f32 %v11304_v60  ;;  %v10907_v30 = vsub.bf16 0, %v10843_v8  ;;  %v11303_v31 = vadd.f32 1.0, %v11175_v62 }
 0x741   : > { %16520 = vrcp.f32 %v11308_v58  ;;  %v11074_v6 = vmul.bf16 1069105081, %v10905_v3  ;;  %v13830_v19 = vadd.f32 %v23641_v52, %v21913_v38  ;;  %v13894_v35 = vadd.f32 %v22270_v13, %v21917_v32  ;;  %v23644_v52 = vld [vmem:[#allocation81_spill] sm:$0xff] }
 0x742   : > { %v22419_v50 = vpop.eup %16500  ;;  %12069 = vmatprep.mubr.bf16.mxu1 %v11524_v33  ;;  %16522 = vrcp.f32 %v11301_v27  ;;  %v11080_v36 = vmul.bf16 1069105081, %v10907_v30  ;;  %v11307_v54 = vadd.f32 1.0, %v11179_v47  ;;  %v13831_v61 = vadd.f32 %v22285_v25, %v21905_v18  ;;  %v23643_v33 = vld [vmem:[#allocation82_spill] sm:$0xff] }
 0x743   : > { %v22425_v2 = vpop.eup %16502  ;;  %16524 = vrcp.f32 %v11305_v63  ;;  %v10842_v39 = vpack.c.bf16 %v13830_v19, %v22397_v11  ;;  %v10844_v37 = vpack.c.bf16 %v13894_v35, %v22401_v23  ;;  %v13895_v13 = vadd.f32 %v22297_v22, %v21909_v4 }
 0x744   : > { %v16505_v20 = vpop.eup %16504  ;;  %16526 = vpow.bf16 %v11074_v6  ;;  %v22435_v45 = vadd.f32 %v22299_v15, %v21913_v38  ;;  %v22439_v56 = vadd.f32 %v22301_v0, %v21917_v32  ;;  %v11182_v23 = vunpack.c.l.bf16 %v22305_v48 }
 0x745   : > { %v16507_v29 = vpop.eup %16506  ;;  %v11521_v42 = vpack.c.bf16 %v16505_v20, %v16499_v49  ;;  %16528 = vpow.bf16 %v11080_v36  ;;  %v10906_v58 = vsub.bf16 0, %v10842_v39  ;;  %v10908_v11 = vsub.bf16 0, %v10844_v37 }
 0x746   : > { %v16509_v60 = vpop.eup %16508  ;;  %16530 = vrcp.f32 %v11303_v31  ;;  %v11186_v22 = vunpack.c.h.bf16 %v22305_v48  ;;  %v11184_v16 = vunpack.c.l.bf16 %v22314_v28  ;;  %v11188_v12 = vunpack.c.h.bf16 %v22314_v28 }
 0x747   : > { %11909 = vmatmul.mubr.bf16.gmra.mrb[220].mxu0 %v11521_v42  ;;  %v11523_v25 = vpack.c.bf16 %v16509_v60, %v16507_v29  ;;  %v22441_v1 = vpop.eup %16510  ;;  %16532 = vrcp.f32 %v11307_v54  ;;  %v11077_v0 = vmul.bf16 1069105081, %v10906_v58  ;;  %v11083_v9 = vmul.bf16 1069105081, %v10908_v11  ;;  %v23645_v54 = vld [vmem:[#allocation80_spill] sm:$0xff] }
 0x748   : > { %v22446_v15 = vpop.eup %16512  ;;  %v13833_v43 = vadd.f32 %v23642_v40, %v21905_v18  ;;  %v11310_v27 = vadd.f32 1.0, %v11182_v23  ;;  %v11314_v62 = vadd.f32 1.0, %v11186_v22  ;;  %v11312_v49 = vadd.f32 1.0, %v11184_v16  ;;  %v23646_v22 = vld [vmem:[#allocation85_spill] sm:$0xff] }
 0x749   : > { %v16515_v59 = vpop.eup %16514  ;;  %12070 = vmatmul.mubr.bf16.gmra.mrb[220].mxu1 %v11523_v25  ;;  %v13897_v48 = vadd.f32 %v23643_v33, %v21909_v4  ;;  %16534 = vpow.bf16 %v11077_v0  ;;  %v11316_v30 = vadd.f32 1.0, %v11188_v12  ;;  %v11181_v28 = vunpack.c.l.bf16 %v23644_v52  ;;  %v23647_v12 = vld [vmem:[#allocation84_spill] sm:$0xff] }
 0x74a   : > { %v16517_v8 = vpop.eup %16516  ;;  %v10845_v47 = vpack.c.bf16 %v13833_v43, %v13831_v61  ;;  %16536 = vpow.bf16 %v11083_v9  ;;  %v11185_v19 = vunpack.c.h.bf16 %v23644_v52  ;;  %v11183_v29 = vunpack.c.l.bf16 %v23645_v54 }
 0x74b   : > { %v16519_v3 = vpop.eup %16518  ;;  %v11526_v63 = vpack.c.bf16 %v16517_v8, %v16515_v59  ;;  %v10847_v6 = vpack.c.bf16 %v13897_v48, %v13895_v13  ;;  %16538 = vrcp.f32 %v11310_v27  ;;  %v11309_v37 = vadd.f32 1.0, %v11181_v28 }
 0x74c   : > { %v16521_v31 = vpop.eup %16520  ;;  %v10909_v36 = vsub.bf16 0, %v10845_v47  ;;  %16540 = vrcp.f32 %v11314_v62  ;;  %v11313_v60 = vadd.f32 1.0, %v11185_v19  ;;  %v11187_v25 = vunpack.c.h.bf16 %v23645_v54 }
 0x74d   : > { %v16523_v35 = vpop.eup %16522  ;;  %11916 = vmatprep.mubr.bf16.mxu0 %v11526_v63  ;;  %v11528_v20 = vpack.c.bf16 %v16521_v31, %v16519_v3  ;;  %v10911_v39 = vsub.bf16 0, %v10847_v6  ;;  %16542 = vrcp.f32 %v11312_v49  ;;  %v11311_v23 = vadd.f32 1.0, %v11183_v29 }
 0x74e   : > { %v16525_v42 = vpop.eup %16524  ;;  %v11086_v13 = vmul.bf16 1069105081, %v10909_v36  ;;  %16544 = vrcp.f32 %v11316_v30  ;;  %v13834_v16 = vadd.f32 %v23646_v22, %v21913_v38  ;;  %v11315_v9 = vadd.f32 1.0, %v11187_v25 }
 0x74f   : > { %12077 = vmatprep.mubr.bf16.mxu1 %v11528_v20  ;;  %v11525_v61 = vpack.c.bf16 %v16525_v42, %v16523_v35  ;;  %v22457_v58 = vpop.eup %16526  ;;  %v11092_v11 = vmul.bf16 1069105081, %v10911_v39  ;;  %v13898_v40 = vadd.f32 %v23647_v12, %v21917_v32  ;;  %v13835_v43 = vadd.f32 %v22326_v41, %v21905_v18 }
 0x750   : > { %v22461_v59 = vpop.eup %16528  ;;  %16546 = vpow.bf16 %v11086_v13  ;;  %v10846_v27 = vpack.c.bf16 %v13834_v16, %v22435_v45  ;;  %v13899_v62 = vadd.f32 %v22328_v17, %v21909_v4  ;;  %v22472_v49 = vadd.f32 %v22330_v53, %v21913_v38 }
 0x751   : > { %v16531_v0 = vpop.eup %16530  ;;  %11917 = vmatmul.mubr.bf16.gmra.mrb[224].mxu0 %v11525_v61  ;;  %16548 = vpow.bf16 %v11092_v11  ;;  %v10848_v48 = vpack.c.bf16 %v13898_v40, %v22439_v56  ;;  %v22477_v3 = vadd.f32 %v22333_v10, %v21917_v32  ;;  %v11190_v63 = vunpack.c.l.bf16 %v22369_v26 }
 0x752   : > { %v16533_v8 = vpop.eup %16532  ;;  %16550 = vrcp.f32 %v11309_v37  ;;  %v10910_v41 = vsub.bf16 0, %v10846_v27  ;;  %v11194_v45 = vunpack.c.h.bf16 %v22369_v26  ;;  %v11192_v53 = vunpack.c.l.bf16 %v22371_v14 }
 0x753   : > { %v11527_v33 = vpack.c.bf16 %v16533_v8, %v16531_v0  ;;  %16552 = vrcp.f32 %v11313_v60  ;;  %v10912_v17 = vsub.bf16 0, %v10848_v48  ;;  %v11196_v30 = vunpack.c.h.bf16 %v22371_v14 }
 0x754   : > { %16554 = vrcp.f32 %v11311_v23  ;;  %v22483_v47 = vpop.eup %16534  ;;  %v11089_v56 = vmul.bf16 1069105081, %v10910_v41  ;;  %v11318_v31 = vadd.f32 1.0, %v11190_v63  ;;  %v11322_v10 = vadd.f32 1.0, %v11194_v45 }
 0x755   : > { %12078 = vmatmul.mubr.bf16.gmra.mrb[224].mxu1 %v11527_v33  ;;  %16556 = vrcp.f32 %v11315_v9  ;;  %v22485_v6 = vpop.eup %16536  ;;  %v11095_v28 = vmul.bf16 1069105081, %v10912_v17  ;;  %v11320_v19 = vadd.f32 1.0, %v11192_v53  ;;  %v11324_v35 = vadd.f32 1.0, %v11196_v30 }
 0x756   : > { %v16539_v52 = vpop.eup %16538  ;;  %v13837_v26 = vadd.f32 %v22335_v5, %v21905_v18  ;;  %16558 = vpow.bf16 %v11089_v56  ;;  %v13901_v14 = vadd.f32 %v22341_v44, %v21909_v4  ;;  %v11189_v36 = vunpack.c.l.bf16 %v22337_v24 }
 0x757   : > { %v16541_v20 = vpop.eup %16540  ;;  %v11193_v54 = vunpack.c.h.bf16 %v22337_v24  ;;  %16560 = vpow.bf16 %v11095_v28  ;;  %v11191_v37 = vunpack.c.l.bf16 %v22345_v46  ;;  %v11195_v4 = vunpack.c.h.bf16 %v22345_v46 }
 0x758   : > { %v16543_v29 = vpop.eup %16542  ;;  %v11530_v42 = vpack.c.bf16 %v16541_v20, %v16539_v52  ;;  %v10849_v39 = vpack.c.bf16 %v13837_v26, %v13835_v43  ;;  %16562 = vrcp.f32 %v11318_v31  ;;  %v10851_v61 = vpack.c.bf16 %v13901_v14, %v13899_v62 }
 0x759   : > { %v16545_v60 = vpop.eup %16544  ;;  %v11317_v13 = vadd.f32 1.0, %v11189_v36  ;;  %v11321_v18 = vadd.f32 1.0, %v11193_v54  ;;  %16564 = vrcp.f32 %v11322_v10  ;;  %v11319_v11 = vadd.f32 1.0, %v11191_v37 }
 0x75a   : > { %11924 = vmatprep.mubr.bf16.mxu0 %v11530_v42  ;;  %v11532_v5 = vpack.c.bf16 %v16545_v60, %v16543_v29  ;;  %v10913_v25 = vsub.bf16 0, %v10849_v39  ;;  %16566 = vrcp.f32 %v11320_v19  ;;  %v10915_v24 = vsub.bf16 0, %v10851_v61 }
 0x75b   : > { %v22495_v44 = vpop.eup %16546  ;;  %v13838_v23 = vadd.f32 %v22343_v21, %v21913_v38  ;;  %16568 = vrcp.f32 %v11324_v35  ;;  %v11323_v9 = vadd.f32 1.0, %v11195_v4  ;;  %v13902_v12 = vadd.f32 %v22351_v7, %v21917_v32 }
 0x75c   : > { %v22499_v22 = vpop.eup %16548  ;;  %12085 = vmatprep.mubr.bf16.mxu1 %v11532_v5  ;;  %v11098_v0 = vmul.bf16 1069105081, %v10913_v25  ;;  %v11104_v46 = vmul.bf16 1069105081, %v10915_v24  ;;  %16570 = vrcp.f32 %v11317_v13  ;;  %v11198_v8 = vunpack.c.l.bf16 %v22406_v51 }
 0x75d   : > { %v16551_v16 = vpop.eup %16550  ;;  %v10850_v43 = vpack.c.bf16 %v13838_v23, %v22472_v49  ;;  %v10852_v38 = vpack.c.bf16 %v13902_v12, %v22477_v3  ;;  %v11202_v21 = vunpack.c.h.bf16 %v22406_v51  ;;  %v11200_v41 = vunpack.c.l.bf16 %v22409_v55 }
 0x75e   : > { %v16553_v40 = vpop.eup %16552  ;;  %16572 = vpow.bf16 %v11098_v0  ;;  %v11326_v63 = vadd.f32 1.0, %v11198_v8  ;;  %v11204_v17 = vunpack.c.h.bf16 %v22409_v55  ;;  %v11197_v3 = vunpack.c.l.bf16 %v22381_v34 }
 0x75f   : > { %v16555_v27 = vpop.eup %16554  ;;  %v11529_v62 = vpack.c.bf16 %v16553_v40, %v16551_v16  ;;  %16574 = vpow.bf16 %v11104_v46  ;;  %v10914_v48 = vsub.bf16 0, %v10850_v43  ;;  %v10916_v7 = vsub.bf16 0, %v10852_v38 }
 0x760   : > { %v16557_v33 = vpop.eup %16556  ;;  %16576 = vrcp.f32 %v11321_v18  ;;  %v11330_v45 = vadd.f32 1.0, %v11202_v21  ;;  %v11201_v30 = vunpack.c.h.bf16 %v22381_v34  ;;  %v11328_v10 = vadd.f32 1.0, %v11200_v41 }
 0x761   : > { %11925 = vmatmul.mubr.bf16.gmra.mrb[228].mxu0 %v11529_v62  ;;  %v11531_v32 = vpack.c.bf16 %v16557_v33, %v16555_v27  ;;  %16578 = vrcp.f32 %v11319_v11  ;;  %v11101_v49 = vmul.bf16 1069105081, %v10914_v48  ;;  %v22509_v53 = vpop.eup %16558  ;;  %v11107_v51 = vmul.bf16 1069105081, %v10916_v7 }
 0x762   : > { %16580 = vrcp.f32 %v11323_v9  ;;  %v22513_v56 = vpop.eup %16560  ;;  %v11199_v52 = vunpack.c.l.bf16 %v22385_v57  ;;  %v11332_v19 = vadd.f32 1.0, %v11204_v17  ;;  %v11203_v55 = vunpack.c.h.bf16 %v22385_v57 }
 0x763   : > { %12086 = vmatmul.mubr.bf16.gmra.mrb[228].mxu1 %v11531_v32  ;;  %v16563_v31 = vpop.eup %16562  ;;  %16582 = vpow.bf16 %v11101_v49  ;;  %v11325_v20 = vadd.f32 1.0, %v11197_v3  ;;  %v11206_v14 = vunpack.c.l.bf16 %v22441_v1  ;;  %v11329_v34 = vadd.f32 1.0, %v11201_v30 }
 0x764   : > { %v16565_v28 = vpop.eup %16564  ;;  %16584 = vpow.bf16 %v11107_v51  ;;  %v11210_v54 = vunpack.c.h.bf16 %v22441_v1  ;;  %v11327_v39 = vadd.f32 1.0, %v11199_v52  ;;  %v11208_v37 = vunpack.c.l.bf16 %v22446_v15 }
 0x765   : > { %v16567_v35 = vpop.eup %16566  ;;  %v11534_v26 = vpack.c.bf16 %v16565_v28, %v16563_v31  ;;  %16586 = vrcp.f32 %v11326_v63  ;;  %v11331_v57 = vadd.f32 1.0, %v11203_v55  ;;  %v11212_v60 = vunpack.c.h.bf16 %v22446_v15 }
 0x766   : > { %v16569_v36 = vpop.eup %16568  ;;  %16588 = vrcp.f32 %v11330_v45  ;;  %v11334_v13 = vadd.f32 1.0, %v11206_v14  ;;  %v11205_v18 = vunpack.c.l.bf16 %v22419_v50  ;;  %v11338_v25 = vadd.f32 1.0, %v11210_v54 }
 0x767   : > { %v16571_v29 = vpop.eup %16570  ;;  %11932 = vmatprep.mubr.bf16.mxu0 %v11534_v26  ;;  %v11536_v42 = vpack.c.bf16 %v16569_v36, %v16567_v35  ;;  %16590 = vrcp.f32 %v11328_v10  ;;  %v11209_v4 = vunpack.c.h.bf16 %v22419_v50  ;;  %v11336_v23 = vadd.f32 1.0, %v11208_v37 }
 0x768   : > { %16592 = vrcp.f32 %v11332_v19  ;;  %v11207_v15 = vunpack.c.l.bf16 %v22425_v2  ;;  %v11340_v0 = vadd.f32 1.0, %v11212_v60  ;;  %v11211_v9 = vunpack.c.h.bf16 %v22425_v2 }
 0x769   : > { %v22521_v61 = vpop.eup %16572  ;;  %12093 = vmatprep.mubr.bf16.mxu1 %v11536_v42  ;;  %16594 = vrcp.f32 %v11325_v20  ;;  %v11333_v40 = vadd.f32 1.0, %v11205_v18  ;;  %v11214_v46 = vunpack.c.l.bf16 %v22483_v47  ;;  %v11337_v50 = vadd.f32 1.0, %v11209_v4 }
 0x76a   : > { %v22524_v5 = vpop.eup %16574  ;;  %16596 = vrcp.f32 %v11329_v34  ;;  %v11218_v8 = vunpack.c.h.bf16 %v22483_v47  ;;  %v11335_v38 = vadd.f32 1.0, %v11207_v15  ;;  %v11216_v2 = vunpack.c.l.bf16 %v22485_v6 }
 0x76b   : > { %v16577_v1 = vpop.eup %16576  ;;  %16598 = vrcp.f32 %v11327_v39  ;;  %v11339_v33 = vadd.f32 1.0, %v11211_v9  ;;  %v11220_v48 = vunpack.c.h.bf16 %v22485_v6  ;;  %v11342_v7 = vadd.f32 1.0, %v11214_v46 }
 0x76c   : > { %v16579_v24 = vpop.eup %16578  ;;  %v11533_v11 = vpack.c.bf16 %v16577_v1, %v16571_v29  ;;  %16600 = vrcp.f32 %v11331_v57  ;;  %v11213_v63 = vunpack.c.l.bf16 %v22457_v58  ;;  %v11346_v49 = vadd.f32 1.0, %v11218_v8 }
 0x76d   : > { %v16581_v16 = vpop.eup %16580  ;;  %16602 = vrcp.f32 %v11334_v13  ;;  %v11217_v45 = vunpack.c.h.bf16 %v22457_v58  ;;  %v11344_v3 = vadd.f32 1.0, %v11216_v2  ;;  %v11215_v30 = vunpack.c.l.bf16 %v22461_v59 }
 0x76e   : > { %11933 = vmatmul.mubr.bf16.gmra.mrb[232].mxu0 %v11533_v11  ;;  %v11535_v12 = vpack.c.bf16 %v16581_v16, %v16579_v24  ;;  %v22530_v43 = vpop.eup %16582  ;;  %16604 = vrcp.f32 %v11338_v25  ;;  %v11348_v6 = vadd.f32 1.0, %v11220_v48  ;;  %v11219_v10 = vunpack.c.h.bf16 %v22461_v59 }
 0x76f   : > { %v22533_v27 = vpop.eup %16584  ;;  %16606 = vrcp.f32 %v11336_v23  ;;  %v11341_v19 = vadd.f32 1.0, %v11213_v63  ;;  %v11222_v55 = vunpack.c.l.bf16 %v22509_v53  ;;  %v11345_v35 = vadd.f32 1.0, %v11217_v45 }
 0x770   : > { %v16587_v62 = vpop.eup %16586  ;;  %12094 = vmatmul.mubr.bf16.gmra.mrb[232].mxu1 %v11535_v12  ;;  %16608 = vrcp.f32 %v11340_v0  ;;  %v11226_v26 = vunpack.c.h.bf16 %v22509_v53  ;;  %v11343_v36 = vadd.f32 1.0, %v11215_v30  ;;  %v11224_v34 = vunpack.c.l.bf16 %v22513_v56 }
 0x771   : > { %v16589_v21 = vpop.eup %16588  ;;  %16610 = vrcp.f32 %v11333_v40  ;;  %v11347_v54 = vadd.f32 1.0, %v11219_v10  ;;  %v11228_v29 = vunpack.c.h.bf16 %v22513_v56  ;;  %v11350_v37 = vadd.f32 1.0, %v11222_v55 }
 0x772   : > { %v16591_v41 = vpop.eup %16590  ;;  %v11538_v32 = vpack.c.bf16 %v16589_v21, %v16587_v62  ;;  %16612 = vrcp.f32 %v11337_v50  ;;  %v11221_v57 = vunpack.c.l.bf16 %v22495_v44  ;;  %v11354_v60 = vadd.f32 1.0, %v11226_v26 }
 0x773   : > { %v16593_v47 = vpop.eup %16592  ;;  %16614 = vrcp.f32 %v11335_v38  ;;  %v11225_v13 = vunpack.c.h.bf16 %v22495_v44  ;;  %v11352_v25 = vadd.f32 1.0, %v11224_v34  ;;  %v11223_v4 = vunpack.c.l.bf16 %v22499_v22 }
 0x774   : > { %v16595_v17 = vpop.eup %16594  ;;  %11940 = vmatprep.mubr.bf16.mxu0 %v11538_v32  ;;  %v11540_v51 = vpack.c.bf16 %v16593_v47, %v16591_v41  ;;  %16616 = vrcp.f32 %v11339_v33  ;;  %v11356_v24 = vadd.f32 1.0, %v11228_v29  ;;  %v11227_v11 = vunpack.c.h.bf16 %v22499_v22 }
 0x775   : > { %v16597_v31 = vpop.eup %16596  ;;  %16618 = vrcp.f32 %v11342_v7  ;;  %v11349_v16 = vadd.f32 1.0, %v11221_v57  ;;  %v11230_v0 = vunpack.c.l.bf16 %v22530_v43  ;;  %v11353_v9 = vadd.f32 1.0, %v11225_v13 }
 0x776   : > { %v16599_v52 = vpop.eup %16598  ;;  %12101 = vmatprep.mubr.bf16.mxu1 %v11540_v51  ;;  %v11537_v28 = vpack.c.bf16 %v16597_v31, %v16595_v17  ;;  %16620 = vrcp.f32 %v11346_v49  ;;  %v11234_v12 = vunpack.c.h.bf16 %v22530_v43  ;;  %v11351_v50 = vadd.f32 1.0, %v11223_v4 }
 0x777   : > { %v16601_v58 = vpop.eup %16600  ;;  %16622 = vrcp.f32 %v11344_v3  ;;  %v11232_v8 = vunpack.c.l.bf16 %v22533_v27  ;;  %v11355_v62 = vadd.f32 1.0, %v11227_v11  ;;  %v11236_v38 = vunpack.c.h.bf16 %v22533_v27 }
 0x778   : > { %v16603_v20 = vpop.eup %16602  ;;  %11941 = vmatmul.mubr.bf16.gmra.mrb[236].mxu0 %v11537_v28  ;;  %v11539_v14 = vpack.c.bf16 %v16601_v58, %v16599_v52  ;;  %16624 = vrcp.f32 %v11348_v6  ;;  %v11358_v33 = vadd.f32 1.0, %v11230_v0  ;;  %v11229_v48 = vunpack.c.l.bf16 %v22521_v61 }
 0x779   : > { %v16605_v59 = vpop.eup %16604  ;;  %16626 = vrcp.f32 %v11341_v19  ;;  %v11362_v41 = vadd.f32 1.0, %v11234_v12  ;;  %v11233_v32 = vunpack.c.h.bf16 %v22521_v61  ;;  %v11360_v47 = vadd.f32 1.0, %v11232_v8 }
 0x77a   : > { %v16607_v42 = vpop.eup %16606  ;;  %12102 = vmatmul.mubr.bf16.gmra.mrb[236].mxu1 %v11539_v14  ;;  %v11542_v39 = vpack.c.bf16 %v16605_v59, %v16603_v20  ;;  %16628 = vrcp.f32 %v11345_v35  ;;  %v11231_v49 = vunpack.c.l.bf16 %v22524_v5  ;;  %v11364_v45 = vadd.f32 1.0, %v11236_v38 }
 0x77b   : > { %v16609_v53 = vpop.eup %16608  ;;  %16630 = vrcp.f32 %v11343_v36  ;;  %v11235_v17 = vunpack.c.h.bf16 %v22524_v5  ;;  %v11357_v30 = vadd.f32 1.0, %v11229_v48  ;;  %v11361_v61 = vadd.f32 1.0, %v11233_v32 }
 0x77c   : > { %v16611_v18 = vpop.eup %16610  ;;  %11948 = vmatprep.mubr.bf16.mxu0 %v11542_v39  ;;  %v11544_v1 = vpack.c.bf16 %v16609_v53, %v16607_v42  ;;  %16632 = vrcp.f32 %v11347_v54  ;;  %v11359_v52 = vadd.f32 1.0, %v11231_v49 }
 0x77d   : > { %v16613_v56 = vpop.eup %16612  ;;  %16634 = vrcp.f32 %v11350_v37  ;;  %v11363_v19 = vadd.f32 1.0, %v11235_v17 }
 0x77e   : > { %v16615_v23 = vpop.eup %16614  ;;  %12109 = vmatprep.mubr.bf16.mxu1 %v11544_v1  ;;  %v11541_v15 = vpack.c.bf16 %v16613_v56, %v16611_v18  ;;  %16636 = vrcp.f32 %v11354_v60 }
 0x77f   : > { %v16617_v44 = vpop.eup %16616  ;;  %16638 = vrcp.f32 %v11352_v25 }
 0x780   : > { %v16619_v40 = vpop.eup %16618  ;;  %11949 = vmatmul.mubr.bf16.gmra.mrb[240].mxu0 %v11541_v15  ;;  %v11543_v46 = vpack.c.bf16 %v16617_v44, %v16615_v23  ;;  %16640 = vrcp.f32 %v11356_v24  ;;  %v22560_v23 = vld [vmem:[%s22673_s6] ss:$0 sm:$0xff] }
 0x781   : > { %v16621_v22 = vpop.eup %16620  ;;  %16642 = vrcp.f32 %v11349_v16 }
 0x782   : > { %v16623_v2 = vpop.eup %16622  ;;  %12110 = vmatmul.mubr.bf16.gmra.mrb[240].mxu1 %v11543_v46  ;;  %v11546_v21 = vpack.c.bf16 %v16621_v22, %v16619_v40  ;;  %16644 = vrcp.f32 %v11353_v9 }
 0x783   : > { %v16625_v43 = vpop.eup %16624  ;;  %16646 = vrcp.f32 %v11351_v50 }
 0x784   : > { %v16627_v7 = vpop.eup %16626  ;;  %11956 = vmatprep.mubr.bf16.mxu0 %v11546_v21  ;;  %v11548_v63 = vpack.c.bf16 %v16625_v43, %v16623_v2  ;;  %16648 = vrcp.f32 %v11355_v62 }
 0x785   : > { %v16629_v27 = vpop.eup %16628  ;;  %16650 = vrcp.f32 %v11358_v33 }
 0x786   : > { %v16631_v51 = vpop.eup %16630  ;;  %12117 = vmatprep.mubr.bf16.mxu1 %v11548_v63  ;;  %v11545_v3 = vpack.c.bf16 %v16629_v27, %v16627_v7  ;;  %16652 = vrcp.f32 %v11362_v41 }
 0x787   : > { %v16633_v31 = vpop.eup %16632  ;;  %16654 = vrcp.f32 %v11360_v47 }
 0x788   : > { %v16635_v6 = vpop.eup %16634  ;;  %11957 = vmatmul.mubr.bf16.gmra.mrb[244].mxu0 %v11545_v3  ;;  %v11547_v10 = vpack.c.bf16 %v16633_v31, %v16631_v51  ;;  %16656 = vrcp.f32 %v11364_v45 }
 0x789   : > { %v16637_v28 = vpop.eup %16636  ;;  %16658 = vrcp.f32 %v11357_v30 }
 0x78a   : > { %v16639_v55 = vpop.eup %16638  ;;  %12118 = vmatmul.mubr.bf16.gmra.mrb[244].mxu1 %v11547_v10  ;;  %v11550_v58 = vpack.c.bf16 %v16637_v28, %v16635_v6  ;;  %16660 = vrcp.f32 %v11361_v61 }
 0x78b   : > { %v16641_v5 = vpop.eup %16640  ;;  %16662 = vrcp.f32 %v11359_v52 }
 0x78c   : > { %v16643_v35 = vpop.eup %16642  ;;  %11964 = vmatprep.mubr.bf16.mxu0 %v11550_v58  ;;  %v11552_v26 = vpack.c.bf16 %v16641_v5, %v16639_v55  ;;  %16664 = vrcp.f32 %v11363_v19 }
 0x78d   : > { %v16645_v20 = vpop.eup %16644 }
 0x78e   : > { %v16647_v14 = vpop.eup %16646  ;;  %12125 = vmatprep.mubr.bf16.mxu1 %v11552_v26  ;;  %v11549_v36 = vpack.c.bf16 %v16645_v20, %v16643_v35 }
 0x78f   : > { %v16649_v34 = vpop.eup %16648 }
 0x790   : > { %v16651_v59 = vpop.eup %16650  ;;  %11965 = vmatmul.mubr.bf16.gmra.mrb[248].mxu0 %v11549_v36  ;;  %v11551_v54 = vpack.c.bf16 %v16649_v34, %v16647_v14 }
 0x791   : > { %v16653_v29 = vpop.eup %16652 }
 0x792   : > { %v16655_v42 = vpop.eup %16654  ;;  %12126 = vmatmul.mubr.bf16.gmra.mrb[248].mxu1 %v11551_v54  ;;  %v11554_v39 = vpack.c.bf16 %v16653_v29, %v16651_v59 }
 0x793   : > { %v16657_v37 = vpop.eup %16656 }
 0x794   : > { %v16659_v57 = vpop.eup %16658  ;;  %11972 = vmatprep.mubr.bf16.mxu0 %v11554_v39  ;;  %v11556_v53 = vpack.c.bf16 %v16657_v37, %v16655_v42 }
 0x795   : > { %v16661_v60 = vpop.eup %16660 }
 0x796   : > { %v16663_v13 = vpop.eup %16662  ;;  %12133 = vmatprep.mubr.bf16.mxu1 %v11556_v53  ;;  %v11553_v18 = vpack.c.bf16 %v16661_v60, %v16659_v57 }
 0x797   : > { %v16665_v1 = vpop.eup %16664 }
 0x798   : > { %11973 = vmatmul.mubr.bf16.gmra.mrb[252].mxu0 %v11553_v18  ;;  %v11555_v25 = vpack.c.bf16 %v16665_v1, %v16663_v13 }
 0x79a   : > { %12134 = vmatmul.mubr.bf16.gmra.mrb[252].mxu1 %v11555_v25 }
 0x7b9   : > { %v13311_v4 = vpop.f32.mrb[192].mxu0 }
 0x7ba   : > { %v13312_v56 = vpop.f32.mrb[193].mxu0 }
 0x7bb   : > { %v13313_v24 = vadd.f32 %v13312_v56, %v13311_v4  ;;  %v13314_v11 = vpop.f32.mrb[194].mxu0 }
 0x7bc   : > { %v13315_v15 = vpop.f32.mrb[195].mxu0 }
 0x7bd   : > { %v13316_v16 = vadd.f32 %v13315_v15, %v13314_v11  ;;  %v11855_v44 = vadd.f32 %v13313_v24, %v22560_v23 }
 0x7bf   : > { %v13423_v0 = vpop.f32.mrb[192].mxu1  ;;  %v11858_v46 = vadd.f32 %v13316_v16, %v22560_v23 }
 0x7c0   : > { %v13424_v9 = vpop.f32.mrb[193].mxu1 }
 0x7c1   : > { %v13425_v12 = vadd.f32 %v13424_v9, %v13423_v0  ;;  %v13426_v40 = vpop.f32.mrb[194].mxu1 }
 0x7c2   : > { %v13427_v50 = vpop.f32.mrb[195].mxu1 }
 0x7c3   : > { %v12016_v8 = vadd.f32 %v13425_v12, %v11855_v44  ;;  %v13428_v22 = vadd.f32 %v13427_v50, %v13426_v40 }
 0x7c5   : > { %v12019_v62 = vadd.f32 %v13428_v22, %v11858_v46 }
 0x7c7   : > { %v13203_v38 = vpack.c.bf16 %v12019_v62, %v12016_v8 }
 0x7c9   : > { %13204 = vst [vmem:[%s22567_s8] sm:$0xff] %v13203_v38  }
 0x7ca   : > { %v13317_v2 = vpop.f32.mrb[196].mxu0 }
 0x7cb   : > { %v13318_v21 = vpop.f32.mrb[197].mxu0 }
 0x7cc   : > { %v13319_v33 = vadd.f32 %v13318_v21, %v13317_v2  ;;  %v13320_v48 = vpop.f32.mrb[198].mxu0 }
 0x7cd   : > { %v13321_v43 = vpop.f32.mrb[199].mxu0 }
 0x7ce   : > { %v13429_v41 = vpop.f32.mrb[196].mxu1  ;;  %v11863_v32 = vadd.f32 %v13319_v33, %v22560_v23  ;;  %v13322_v7 = vadd.f32 %v13321_v43, %v13320_v48 }
 0x7cf   : > { %v13430_v63 = vpop.f32.mrb[197].mxu1 }
 0x7d0   : > { %v13431_v47 = vadd.f32 %v13430_v63, %v13429_v41  ;;  %v13432_v49 = vpop.f32.mrb[198].mxu1  ;;  %v11866_v27 = vadd.f32 %v13322_v7, %v22560_v23 }
 0x7d1   : > { %v13433_v45 = vpop.f32.mrb[199].mxu1 }
 0x7d2   : > { %v12024_v17 = vadd.f32 %v13431_v47, %v11863_v32  ;;  %v13434_v51 = vadd.f32 %v13433_v45, %v13432_v49 }
 0x7d4   : > { %v12027_v3 = vadd.f32 %v13434_v51, %v11866_v27 }
 0x7d6   : > { %v13208_v30 = vpack.c.bf16 %v12027_v3, %v12024_v17 }
 0x7d7   : > { %v13323_v31 = vpop.f32.mrb[200].mxu0 }
 0x7d8   : > { %v13324_v61 = vpop.f32.mrb[201].mxu0  ;;  %13280 = vst [vmem:[%s22567_s8 + $0x8] sm:$0xff] %v13208_v30  }
 0x7d9   : > { %v13325_v6 = vadd.f32 %v13324_v61, %v13323_v31  ;;  %v13326_v10 = vpop.f32.mrb[202].mxu0 }
 0x7da   : > { %v13327_v52 = vpop.f32.mrb[203].mxu0 }
 0x7db   : > { %v13435_v28 = vpop.f32.mrb[200].mxu1  ;;  %v11871_v19 = vadd.f32 %v13325_v6, %v22560_v23  ;;  %v13328_v55 = vadd.f32 %v13327_v52, %v13326_v10 }
 0x7dc   : > { %v13436_v58 = vpop.f32.mrb[201].mxu1 }
 0x7dd   : > { %v13437_v5 = vadd.f32 %v13436_v58, %v13435_v28  ;;  %v13438_v35 = vpop.f32.mrb[202].mxu1  ;;  %v11874_v26 = vadd.f32 %v13328_v55, %v22560_v23 }
 0x7de   : > { %v13439_v20 = vpop.f32.mrb[203].mxu1 }
 0x7df   : > { %v12032_v14 = vadd.f32 %v13437_v5, %v11871_v19  ;;  %v13440_v36 = vadd.f32 %v13439_v20, %v13438_v35 }
 0x7e1   : > { %v12035_v34 = vadd.f32 %v13440_v36, %v11874_v26 }
 0x7e3   : > { %v13213_v59 = vpack.c.bf16 %v12035_v34, %v12032_v14 }
 0x7e5   : > { %13281 = vst [vmem:[%s22567_s8 + $0x10] sm:$0xff] %v13213_v59  }
 0x7e6   : > { %v13329_v54 = vpop.f32.mrb[204].mxu0 }
 0x7e7   : > { %v13330_v29 = vpop.f32.mrb[205].mxu0 }
 0x7e8   : > { %v13441_v42 = vpop.f32.mrb[204].mxu1  ;;  %v13331_v39 = vadd.f32 %v13330_v29, %v13329_v54  ;;  %v13332_v37 = vpop.f32.mrb[206].mxu0 }
 0x7e9   : > { %v13442_v57 = vpop.f32.mrb[205].mxu1  ;;  %v13333_v53 = vpop.f32.mrb[207].mxu0 }
 0x7ea   : > { %v11879_v60 = vadd.f32 %v13331_v39, %v22560_v23  ;;  %v13443_v13 = vadd.f32 %v13442_v57, %v13441_v42  ;;  %v13444_v18 = vpop.f32.mrb[206].mxu1  ;;  %v13334_v1 = vadd.f32 %v13333_v53, %v13332_v37 }
 0x7eb   : > { %v13445_v25 = vpop.f32.mrb[207].mxu1 }
 0x7ec   : > { %v12040_v4 = vadd.f32 %v13443_v13, %v11879_v60  ;;  %v11882_v56 = vadd.f32 %v13334_v1, %v22560_v23  ;;  %v13446_v24 = vadd.f32 %v13445_v25, %v13444_v18 }
 0x7ee   : > { %v12043_v11 = vadd.f32 %v13446_v24, %v11882_v56 }
 0x7f0   : > { %v13218_v15 = vpack.c.bf16 %v12043_v11, %v12040_v4 }
 0x7f2   : > { %13282 = vst [vmem:[%s22567_s8 + $0x18] sm:$0xff] %v13218_v15  }
 0x7f3   : > { %v13335_v16 = vpop.f32.mrb[208].mxu0 }
 0x7f4   : > { %v13336_v0 = vpop.f32.mrb[209].mxu0 }
 0x7f5   : > { %v13447_v44 = vpop.f32.mrb[208].mxu1  ;;  %v13337_v9 = vadd.f32 %v13336_v0, %v13335_v16  ;;  %v13338_v12 = vpop.f32.mrb[210].mxu0 }
 0x7f6   : > { %v13448_v40 = vpop.f32.mrb[209].mxu1  ;;  %v13339_v46 = vpop.f32.mrb[211].mxu0 }
 0x7f7   : > { %v11887_v50 = vadd.f32 %v13337_v9, %v22560_v23  ;;  %v13449_v8 = vadd.f32 %v13448_v40, %v13447_v44  ;;  %v13450_v22 = vpop.f32.mrb[210].mxu1  ;;  %v13340_v62 = vadd.f32 %v13339_v46, %v13338_v12 }
 0x7f8   : > { %v13451_v38 = vpop.f32.mrb[211].mxu1 }
 0x7f9   : > { %v12048_v2 = vadd.f32 %v13449_v8, %v11887_v50  ;;  %v11890_v21 = vadd.f32 %v13340_v62, %v22560_v23  ;;  %v13452_v33 = vadd.f32 %v13451_v38, %v13450_v22 }
 0x7fb   : > { %v12051_v48 = vadd.f32 %v13452_v33, %v11890_v21 }
 0x7fd   : > { %v13223_v43 = vpack.c.bf16 %v12051_v48, %v12048_v2 }
 0x7fe   : > { %v13341_v41 = vpop.f32.mrb[212].mxu0 }
 0x7ff   : > { %v13342_v32 = vpop.f32.mrb[213].mxu0  ;;  %13283 = vst [vmem:[%s22567_s8 + $0x20] sm:$0xff] %v13223_v43  }
 0x800   : > { %v13343_v7 = vadd.f32 %v13342_v32, %v13341_v41  ;;  %v13344_v63 = vpop.f32.mrb[214].mxu0 }
 0x801   : > { %v13345_v47 = vpop.f32.mrb[215].mxu0 }
 0x802   : > { %v13453_v49 = vpop.f32.mrb[212].mxu1  ;;  %v11895_v27 = vadd.f32 %v13343_v7, %v22560_v23  ;;  %v13346_v45 = vadd.f32 %v13345_v47, %v13344_v63 }
 0x803   : > { %v13454_v17 = vpop.f32.mrb[213].mxu1 }
 0x804   : > { %v13455_v51 = vadd.f32 %v13454_v17, %v13453_v49  ;;  %v13456_v3 = vpop.f32.mrb[214].mxu1  ;;  %v11898_v30 = vadd.f32 %v13346_v45, %v22560_v23 }
 0x805   : > { %v13457_v31 = vpop.f32.mrb[215].mxu1 }
 0x806   : > { %v12056_v61 = vadd.f32 %v13455_v51, %v11895_v27  ;;  %v13458_v6 = vadd.f32 %v13457_v31, %v13456_v3 }
 0x808   : > { %v12059_v10 = vadd.f32 %v13458_v6, %v11898_v30 }
 0x80a   : > { %v13228_v52 = vpack.c.bf16 %v12059_v10, %v12056_v61 }
 0x80c   : > { %13284 = vst [vmem:[%s22567_s8 + $0x28] sm:$0xff] %v13228_v52  }
 0x80d   : > { %v13347_v28 = vpop.f32.mrb[216].mxu0 }
 0x80e   : > { %v13348_v19 = vpop.f32.mrb[217].mxu0 }
 0x80f   : > { %v13459_v55 = vpop.f32.mrb[216].mxu1  ;;  %v13349_v58 = vadd.f32 %v13348_v19, %v13347_v28  ;;  %v13350_v5 = vpop.f32.mrb[218].mxu0 }
 0x810   : > { %v13460_v35 = vpop.f32.mrb[217].mxu1  ;;  %v13351_v26 = vpop.f32.mrb[219].mxu0 }
 0x811   : > { %v11903_v20 = vadd.f32 %v13349_v58, %v22560_v23  ;;  %v13461_v14 = vadd.f32 %v13460_v35, %v13459_v55  ;;  %v13462_v36 = vpop.f32.mrb[218].mxu1  ;;  %v13352_v34 = vadd.f32 %v13351_v26, %v13350_v5 }
 0x812   : > { %v13463_v59 = vpop.f32.mrb[219].mxu1 }
 0x813   : > { %v12064_v54 = vadd.f32 %v13461_v14, %v11903_v20  ;;  %v11906_v29 = vadd.f32 %v13352_v34, %v22560_v23  ;;  %v13464_v42 = vadd.f32 %v13463_v59, %v13462_v36 }
 0x815   : > { %v12067_v39 = vadd.f32 %v13464_v42, %v11906_v29 }
 0x817   : > { %v13233_v37 = vpack.c.bf16 %v12067_v39, %v12064_v54 }
 0x819   : > { %13285 = vst [vmem:[%s22567_s8 + $0x30] sm:$0xff] %v13233_v37  }
 0x81a   : > { %v13353_v57 = vpop.f32.mrb[220].mxu0 }
 0x81b   : > { %v13354_v53 = vpop.f32.mrb[221].mxu0 }
 0x81c   : > { %v13465_v60 = vpop.f32.mrb[220].mxu1  ;;  %v13355_v13 = vadd.f32 %v13354_v53, %v13353_v57  ;;  %v13356_v18 = vpop.f32.mrb[222].mxu0 }
 0x81d   : > { %v13466_v1 = vpop.f32.mrb[221].mxu1  ;;  %v13357_v25 = vpop.f32.mrb[223].mxu0 }
 0x81e   : > { %v11911_v4 = vadd.f32 %v13355_v13, %v22560_v23  ;;  %v13467_v56 = vadd.f32 %v13466_v1, %v13465_v60  ;;  %v13468_v24 = vpop.f32.mrb[222].mxu1  ;;  %v13358_v11 = vadd.f32 %v13357_v25, %v13356_v18 }
 0x81f   : > { %v13469_v15 = vpop.f32.mrb[223].mxu1 }
 0x820   : > { %v12072_v16 = vadd.f32 %v13467_v56, %v11911_v4  ;;  %v11914_v0 = vadd.f32 %v13358_v11, %v22560_v23  ;;  %v13470_v44 = vadd.f32 %v13469_v15, %v13468_v24 }
 0x822   : > { %v12075_v9 = vadd.f32 %v13470_v44, %v11914_v0 }
 0x824   : > { %v13238_v12 = vpack.c.bf16 %v12075_v9, %v12072_v16  ;;  %v13359_v40 = vpop.f32.mrb[224].mxu0 }
 0x825   : > { %v13360_v46 = vpop.f32.mrb[225].mxu0 }
 0x826   : > { %13286 = vst [vmem:[%s22567_s8 + $0x38] sm:$0xff] %v13238_v12   ;;  %v13361_v50 = vadd.f32 %v13360_v46, %v13359_v40  ;;  %v13362_v8 = vpop.f32.mrb[226].mxu0 }
 0x827   : > { %v13363_v22 = vpop.f32.mrb[227].mxu0 }
 0x828   : > { %v13471_v62 = vpop.f32.mrb[224].mxu1  ;;  %v11919_v38 = vadd.f32 %v13361_v50, %v22560_v23  ;;  %v13364_v2 = vadd.f32 %v13363_v22, %v13362_v8 }
 0x829   : > { %v13472_v21 = vpop.f32.mrb[225].mxu1 }
 0x82a   : > { %v13473_v33 = vadd.f32 %v13472_v21, %v13471_v62  ;;  %v13474_v48 = vpop.f32.mrb[226].mxu1  ;;  %v11922_v43 = vadd.f32 %v13364_v2, %v22560_v23 }
 0x82b   : > { %v13475_v41 = vpop.f32.mrb[227].mxu1 }
 0x82c   : > { %v12080_v32 = vadd.f32 %v13473_v33, %v11919_v38  ;;  %v13476_v7 = vadd.f32 %v13475_v41, %v13474_v48 }
 0x82e   : > { %v12083_v63 = vadd.f32 %v13476_v7, %v11922_v43 }
 0x830   : > { %v13243_v47 = vpack.c.bf16 %v12083_v63, %v12080_v32 }
 0x832   : > { %13287 = vst [vmem:[%s22567_s8 + $0x40] sm:$0xff] %v13243_v47  }
 0x834   : > { %v13365_v49 = vpop.f32.mrb[228].mxu0 }
 0x835   : > { %v13366_v27 = vpop.f32.mrb[229].mxu0 }
 0x836   : > { %v13477_v45 = vpop.f32.mrb[228].mxu1  ;;  %v13367_v17 = vadd.f32 %v13366_v27, %v13365_v49  ;;  %v13368_v51 = vpop.f32.mrb[230].mxu0 }
 0x837   : > { %v13478_v3 = vpop.f32.mrb[229].mxu1  ;;  %v13369_v30 = vpop.f32.mrb[231].mxu0 }
 0x838   : > { %v11927_v31 = vadd.f32 %v13367_v17, %v22560_v23  ;;  %v13479_v61 = vadd.f32 %v13478_v3, %v13477_v45  ;;  %v13480_v6 = vpop.f32.mrb[230].mxu1  ;;  %v13370_v10 = vadd.f32 %v13369_v30, %v13368_v51 }
 0x839   : > { %v13481_v52 = vpop.f32.mrb[231].mxu1 }
 0x83a   : > { %v12088_v28 = vadd.f32 %v13479_v61, %v11927_v31  ;;  %v11930_v19 = vadd.f32 %v13370_v10, %v22560_v23  ;;  %v13482_v55 = vadd.f32 %v13481_v52, %v13480_v6 }
 0x83c   : > { %v12091_v58 = vadd.f32 %v13482_v55, %v11930_v19 }
 0x83e   : > { %v13248_v5 = vpack.c.bf16 %v12091_v58, %v12088_v28 }
 0x840   : > { %13288 = vst [vmem:[%s22567_s8 + $0x48] sm:$0xff] %v13248_v5  }
 0x841   : > { %v13371_v35 = vpop.f32.mrb[232].mxu0 }
 0x842   : > { %v13372_v26 = vpop.f32.mrb[233].mxu0 }
 0x843   : > { %v13483_v20 = vpop.f32.mrb[232].mxu1  ;;  %v13373_v14 = vadd.f32 %v13372_v26, %v13371_v35  ;;  %v13374_v36 = vpop.f32.mrb[234].mxu0 }
 0x844   : > { %v13484_v34 = vpop.f32.mrb[233].mxu1  ;;  %v13375_v59 = vpop.f32.mrb[235].mxu0 }
 0x845   : > { %v11935_v54 = vadd.f32 %v13373_v14, %v22560_v23  ;;  %v13485_v29 = vadd.f32 %v13484_v34, %v13483_v20  ;;  %v13486_v42 = vpop.f32.mrb[234].mxu1  ;;  %v13376_v39 = vadd.f32 %v13375_v59, %v13374_v36 }
 0x846   : > { %v13487_v37 = vpop.f32.mrb[235].mxu1 }
 0x847   : > { %v12096_v57 = vadd.f32 %v13485_v29, %v11935_v54  ;;  %v11938_v53 = vadd.f32 %v13376_v39, %v22560_v23  ;;  %v13488_v60 = vadd.f32 %v13487_v37, %v13486_v42 }
 0x849   : > { %v12099_v13 = vadd.f32 %v13488_v60, %v11938_v53 }
 0x84b   : > { %v13253_v18 = vpack.c.bf16 %v12099_v13, %v12096_v57  ;;  %v13377_v1 = vpop.f32.mrb[236].mxu0 }
 0x84c   : > { %v13378_v25 = vpop.f32.mrb[237].mxu0 }
 0x84d   : > { %13289 = vst [vmem:[%s22567_s8 + $0x50] sm:$0xff] %v13253_v18   ;;  %v13489_v4 = vpop.f32.mrb[236].mxu1  ;;  %v13379_v56 = vadd.f32 %v13378_v25, %v13377_v1  ;;  %v13380_v24 = vpop.f32.mrb[238].mxu0 }
 0x84e   : > { %v13490_v11 = vpop.f32.mrb[237].mxu1  ;;  %v13381_v15 = vpop.f32.mrb[239].mxu0 }
 0x84f   : > { %v11943_v16 = vadd.f32 %v13379_v56, %v22560_v23  ;;  %v13491_v0 = vadd.f32 %v13490_v11, %v13489_v4  ;;  %v13492_v44 = vpop.f32.mrb[238].mxu1  ;;  %v13382_v9 = vadd.f32 %v13381_v15, %v13380_v24 }
 0x850   : > { %v13493_v12 = vpop.f32.mrb[239].mxu1 }
 0x851   : > { %v12104_v40 = vadd.f32 %v13491_v0, %v11943_v16  ;;  %v11946_v46 = vadd.f32 %v13382_v9, %v22560_v23  ;;  %v13494_v50 = vadd.f32 %v13493_v12, %v13492_v44 }
 0x853   : > { %v12107_v8 = vadd.f32 %v13494_v50, %v11946_v46  ;;  %v13383_v22 = vpop.f32.mrb[240].mxu0 }
 0x854   : > { %v13384_v62 = vpop.f32.mrb[241].mxu0 }
 0x855   : > { %v13258_v38 = vpack.c.bf16 %v12107_v8, %v12104_v40  ;;  %v13495_v2 = vpop.f32.mrb[240].mxu1  ;;  %v13385_v21 = vadd.f32 %v13384_v62, %v13383_v22  ;;  %v13386_v33 = vpop.f32.mrb[242].mxu0 }
 0x856   : > { %v13496_v48 = vpop.f32.mrb[241].mxu1  ;;  %v13387_v43 = vpop.f32.mrb[243].mxu0 }
 0x857   : > { %13290 = vst [vmem:[%s22567_s8 + $0x58] sm:$0xff] %v13258_v38   ;;  %v11951_v41 = vadd.f32 %v13385_v21, %v22560_v23  ;;  %v13497_v32 = vadd.f32 %v13496_v48, %v13495_v2  ;;  %v13498_v7 = vpop.f32.mrb[242].mxu1  ;;  %v13388_v63 = vadd.f32 %v13387_v43, %v13386_v33 }
 0x858   : > { %v13499_v47 = vpop.f32.mrb[243].mxu1 }
 0x859   : > { %v12112_v49 = vadd.f32 %v13497_v32, %v11951_v41  ;;  %v11954_v27 = vadd.f32 %v13388_v63, %v22560_v23  ;;  %v13500_v45 = vadd.f32 %v13499_v47, %v13498_v7 }
 0x85b   : > { %v12115_v17 = vadd.f32 %v13500_v45, %v11954_v27  ;;  %v13389_v51 = vpop.f32.mrb[244].mxu0 }
 0x85c   : > { %v13390_v3 = vpop.f32.mrb[245].mxu0 }
 0x85d   : > { %v13263_v30 = vpack.c.bf16 %v12115_v17, %v12112_v49  ;;  %v13501_v31 = vpop.f32.mrb[244].mxu1  ;;  %v13391_v61 = vadd.f32 %v13390_v3, %v13389_v51  ;;  %v13392_v6 = vpop.f32.mrb[246].mxu0 }
 0x85e   : > { %v13502_v10 = vpop.f32.mrb[245].mxu1  ;;  %v13393_v52 = vpop.f32.mrb[247].mxu0 }
 0x85f   : > { %13291 = vst [vmem:[%s22567_s8 + $0x60] sm:$0xff] %v13263_v30   ;;  %v11959_v28 = vadd.f32 %v13391_v61, %v22560_v23  ;;  %v13503_v19 = vadd.f32 %v13502_v10, %v13501_v31  ;;  %v13504_v55 = vpop.f32.mrb[246].mxu1  ;;  %v13394_v58 = vadd.f32 %v13393_v52, %v13392_v6 }
 0x860   : > { %v13505_v5 = vpop.f32.mrb[247].mxu1 }
 0x861   : > { %v12120_v35 = vadd.f32 %v13503_v19, %v11959_v28  ;;  %v11962_v26 = vadd.f32 %v13394_v58, %v22560_v23  ;;  %v13506_v20 = vadd.f32 %v13505_v5, %v13504_v55 }
 0x863   : > { %v12123_v14 = vadd.f32 %v13506_v20, %v11962_v26  ;;  %v13395_v36 = vpop.f32.mrb[248].mxu0 }
 0x864   : > { %v13396_v34 = vpop.f32.mrb[249].mxu0 }
 0x865   : > { %v13268_v59 = vpack.c.bf16 %v12123_v14, %v12120_v35  ;;  %v13507_v54 = vpop.f32.mrb[248].mxu1  ;;  %v13397_v29 = vadd.f32 %v13396_v34, %v13395_v36  ;;  %v13398_v42 = vpop.f32.mrb[250].mxu0 }
 0x866   : > { %v13508_v39 = vpop.f32.mrb[249].mxu1  ;;  %v13399_v37 = vpop.f32.mrb[251].mxu0 }
 0x867   : > { %13292 = vst [vmem:[%s22567_s8 + $0x68] sm:$0xff] %v13268_v59   ;;  %v11967_v57 = vadd.f32 %v13397_v29, %v22560_v23  ;;  %v13509_v53 = vadd.f32 %v13508_v39, %v13507_v54  ;;  %v13510_v60 = vpop.f32.mrb[250].mxu1  ;;  %v13400_v13 = vadd.f32 %v13399_v37, %v13398_v42 }
 0x868   : > { %v13511_v18 = vpop.f32.mrb[251].mxu1 }
 0x869   : > { %v12128_v1 = vadd.f32 %v13509_v53, %v11967_v57  ;;  %v11970_v25 = vadd.f32 %v13400_v13, %v22560_v23  ;;  %v13512_v4 = vadd.f32 %v13511_v18, %v13510_v60 }
 0x86b   : > { %v12131_v56 = vadd.f32 %v13512_v4, %v11970_v25  ;;  %v13401_v24 = vpop.f32.mrb[252].mxu0 }
 0x86c   : > { %v13402_v11 = vpop.f32.mrb[253].mxu0 }
 0x86d   : > { %v13273_v15 = vpack.c.bf16 %v12131_v56, %v12128_v1  ;;  %v13513_v16 = vpop.f32.mrb[252].mxu1  ;;  %v13403_v0 = vadd.f32 %v13402_v11, %v13401_v24  ;;  %v13404_v44 = vpop.f32.mrb[254].mxu0 }
 0x86e   : > { %v13514_v9 = vpop.f32.mrb[253].mxu1  ;;  %v13405_v12 = vpop.f32.mrb[255].mxu0 }
 0x86f   : > { %13293 = vst [vmem:[%s22567_s8 + $0x70] sm:$0xff] %v13273_v15   ;;  %v11975_v40 = vadd.f32 %v13403_v0, %v22560_v23  ;;  %v13515_v46 = vadd.f32 %v13514_v9, %v13513_v16  ;;  %v13516_v50 = vpop.f32.mrb[254].mxu1  ;;  %v13406_v8 = vadd.f32 %v13405_v12, %v13404_v44 }
 0x870   : > { %v13517_v22 = vpop.f32.mrb[255].mxu1 }
 0x871   : > { %v12136_v62 = vadd.f32 %v13515_v46, %v11975_v40  ;;  %v11978_v38 = vadd.f32 %v13406_v8, %v22560_v23  ;;  %v13518_v2 = vadd.f32 %v13517_v22, %v13516_v50 }
 0x873   : > { %v12139_v21 = vadd.f32 %v13518_v2, %v11978_v38 }
 0x875   : > { %v13278_v33 = vpack.c.bf16 %v12139_v21, %v12136_v62 }
 0x877   : > { %13294 = vst [vmem:[%s22567_s8 + $0x78] sm:$0xff] %v13278_v33  }
 0x878   : > { %16680 = shalt.err (!%p16677_p3)
}
 0x879   : > { %s16681_s21 = scalar_lea.hbm %s22619_s16, 2048  ;;  %s16685_s23 = scalar_lea.hbm %s22674_s7, 16384 }
 0x87a   : > { %p16682_p4 = scmp.ne.s32.totalorder %s22619_s16, %s16681_s21  ;;  %p16686_p9 = scmp.lt.u32.totalorder %s22619_s16, %s22674_s7 }
 0x87b   : > { %p16687_p10 = scmp.lt.u32.totalorder %s16685_s23, %s16681_s21  ;;  %p16689_p12 = scmp.lt.u32.totalorder %s16681_s21, %s22619_s16 }
 0x87c   : > { %p16683_p7 = pnand %p16682_p4, %p16813_p5 }
 0x87d   : > { %p16688_p11 = por %p16687_p10, %p16686_p9 }
 0x87e   : > { %p16684_p8 = pneg %p16683_p7 }
 0x87f   : > { %p16690_p13 = por %p16689_p12, %p16688_p11 }
 0x881   : > { %p16691_p0 = pnand %p16690_p13, %p16684_p8 }
 0x883   : > { %16694 = shalt.err (!%p16691_p0)
}
 0x884   : > { %s16733_s13 = smov 64   ;;  %s16734_s15 = smov 4  }
 0x885   : > { %15056 = dma.vmem_to_hbm [thread:$0]  (%p16813_p5), %s22621_s9, 2048, %s22619_s16, %s22626_s18, %s16733_s13, %s16733_s13, %s16734_s15  }
 0x886 PF: > { %p15062_p1 = scmp.ge.s32.totalorder %s16729_s27, 2  ;;  %s12331_s19 = sand.u32 1, %s16717_s24  }
 0x887   : > { %s12332_s28 = scalar_lea.sflag [#allocation3], %s12331_s19 }
 0x888   : > { %p15059_p2 = pnand %p15062_p1, %p16817_p6 }
 0x88a   : > { %16712 = dma.done.wait (!%p15059_p2), %s12332_s28, 2048  }
 0x88b   : > { %16714 = vsyncadd (!%p15059_p2), %s12332_s28, 4294965248  ;;  %p17_p3 = scmp.ge.s32.totalorder %s16800_s30, 10   ;;  %s23648_s24 = smov %s16721_s25 }
 0x88c   : > { %s23649_s25 = smov %s16725_s26  ;;  %s23650_s26 = smov %s16811_s10 }
 0x88d   : > { %s23651_s27 = smov %s16800_s30  ;;  %19 = sbr.rel (!%p17_p3) target bundleno = 3 (0x3), region = 83 }
 0x894   :  { %12337 = vsyncpa [#allocation3], 1 }
 0x895   :  { %12339 = vsyncpa [#allocation3 + $0x1], 1 }

</bundles_post_ra>
